<compile_context>
chip_gen: v7x
topology: tpu7x:2x2x1
jax: 0.10.0
libtpu: 0.0.40
codegen_flags: <defaults>
</compile_context>

<pallas_src>
import jax
import jax.numpy as jnp
from jax import lax
from jax.experimental import pallas as pl
from jax.experimental.pallas import tpu as pltpu


# --------------------------- offline weight lowering -------------------------

def _lowered_conv_weight(w, in_width, k_pad, n_pad):
    """Lower a (Cout, Cin, K, K) conv filter to a single (K*k_pad, 2*n_pad)
    matrix for the fused-K / fused-column-parity matmul.

    Row index:  di*k_pad + (w_in*Cin + ci)      (w_in < in_width, ci < Cin)
    Col index:  cp*n_pad + (wp*Cout + co)       (output col = 2*wp + cp)
    so that   out[h, col] = sum_row  LHS[h, row] * W[row, col]
    with      LHS[h, di*k_pad + (w_in*Cin + ci)] = input[h + di, w_in, ci].
    """
    cout, cin, k, _ = w.shape
    out_w = in_width - k + 1
    wpn = out_w // 2
    dj = jnp.arange(k)
    win = jnp.arange(in_width)
    cp = jnp.arange(2)
    wp = jnp.arange(wpn)
    # sel[dj, w_in, cp, wp] = 1  iff  w_in == 2*wp + cp + dj
    sel = (win[None, :, None, None] ==
           dj[:, None, None, None] + cp[None, None, :, None]
           + 2 * wp[None, None, None, :]).astype(w.dtype)      # (K, Win, 2, Wp)
    wt = jnp.transpose(w, (2, 3, 1, 0))                        # (K, K, Cin, Cout)
    low = jnp.einsum("jwpq,djio->dwipqo", sel, wt)             # (K,Win,Cin,2,Wp,Cout)
    low = low.reshape(k, in_width * cin, 2, wpn * cout)
    low = jnp.pad(low, ((0, 0), (0, k_pad - in_width * cin),
                        (0, 0), (0, n_pad - wpn * cout)))
    return low.reshape(k * k_pad, 2 * n_pad)


def _prepare_params(params):
    """Precompute fused/lowered conv weights, lane-padded biases, permuted fc1."""
    w1, b1 = params["conv1_w"], params["conv1_b"]              # (10,1,5,5), (10,)
    w2, b2 = params["conv2_w"], params["conv2_b"]              # (20,10,5,5), (20,)
    fc1_w, fc1_b = params["fc1_w"], params["fc1_b"]            # (50,320), (50,)
    fc2_w, fc2_b = params["fc2_w"], params["fc2_b"]            # (10,50), (10,)

    # torch flatten of the (20, 4, 4) pooled map is index c*16 + hp*4 + wp; our
    # pooled2 layout is (hp, wp*20 + c)  -> permute fc1 columns offline.
    fw = fc1_w.reshape(50, 20, 4, 4)
    fw = jnp.transpose(fw, (2, 3, 1, 0))                       # (hp, wp, c, out)
    fw = fw.reshape(4, 80, 50)
    fw = jnp.pad(fw, ((0, 0), (0, 48), (0, 14)))               # (4, 128, 64)

    return dict(
        w1=_lowered_conv_weight(w1, 28, 32, 128),              # (160, 256)
        b1=jnp.pad(jnp.tile(b1, 12), (0, 8))[None, :],         # (1, 128)
        w2=_lowered_conv_weight(w2, 12, 128, 128),              # (640, 256)
        b2=jnp.pad(jnp.tile(b2, 4), (0, 48))[None, :],         # (1, 128)
        fc1w=fw.reshape(512, 64),                               # (512, 64)
        fc1b=jnp.pad(fc1_b, (0, 14))[None, :],                  # (1, 64)
        fc2w=jnp.pad(fc2_w.T, ((0, 14), (0, 0))),               # (64, 10)
        fc2b=fc2_b[None, :],                                    # (1, 10)
    )


# --------------------------------- the kernel -------------------------------

def _mnist_fused_kernel(x_ref, w1_ref, b1_ref, w2_ref, b2_ref,
                        fc1w_ref, fc1b_ref, fc2w_ref, fc2b_ref,
                        out_ref, c1_ref, p1_ref, c2_ref, p2_ref):
    """One block of B images per grid step.
    x_ref: (B, 36, 32) = the 28x28 image zero-padded to 36 rows x 32 cols."""
    f32 = jnp.float32
    B = x_ref.shape[0]

    # ---- conv1 (5x5, 1->10) + 2x2 max-pool + bias + ReLU --------------------
    # Fused-K LHS: L1[b, h, di*32 + j] = x[b, h + di, j]   (h = output row 0..31)
    l1 = jnp.concatenate([x_ref[:, d:d + 32, :] for d in range(5)], axis=-1)
    l1 = l1.reshape(B * 32, 5 * 32)
    c1 = jnp.dot(l1, w1_ref[...], preferred_element_type=f32)        # (32B, 256)
    # Column half of the pool: even/odd output-column parities are the two
    # 128-lane halves of the fused-N matmul output.
    c1_ref[...] = jnp.maximum(c1[:, :128], c1[:, 128:])
    # Row half of the pool: stride-2 sublane reads (rows 2*hp and 2*hp + 1).
    ev = c1_ref[pl.ds(0, B * 16, 2), :]
    od = c1_ref[pl.ds(1, B * 16, 2), :]
    p1 = jnp.maximum(jnp.maximum(ev, od) + b1_ref[...], 0.0)         # (16B, 128)
    p1_ref[...] = p1.reshape(B, 16, 128)      # lanes: wp1*10 + c; rows 0..11 valid

    # ---- conv2 (5x5, 10->20) + 2x2 max-pool + bias + ReLU -------------------
    # (Dropout2d = identity in eval mode.)
    l2 = jnp.concatenate([p1_ref[:, d:d + 8, :] for d in range(5)], axis=-1)
    l2 = l2.reshape(B * 8, 5 * 128)
    c2 = jnp.dot(l2, w2_ref[...], preferred_element_type=f32)        # (8B, 256)
    c2_ref[...] = jnp.maximum(c2[:, :128], c2[:, 128:])
    ev2 = c2_ref[pl.ds(0, B * 4, 2), :]
    od2 = c2_ref[pl.ds(1, B * 4, 2), :]
    p2_ref[...] = jnp.maximum(jnp.maximum(ev2, od2) + b2_ref[...], 0.0)  # (4B,128)

    # ---- fc1 + ReLU (dropout = identity) + fc2 + log_softmax ----------------
    # (B, 512) LHS with column hp*128 + (wp2*20 + c2)  ==  pooled2[b, hp, wp2, c2]
    lfc = jnp.concatenate([p2_ref[pl.ds(hp, B, 4), :] for hp in range(4)],
                          axis=-1)                                    # (B, 512)
    h = jnp.dot(lfc, fc1w_ref[...], preferred_element_type=f32) + fc1b_ref[...]
    h = jnp.maximum(h, 0.0)                                           # (B, 64)
    logits = (jnp.dot(h, fc2w_ref[...], preferred_element_type=f32)
              + fc2b_ref[...])                                        # (B, 10)
    zmax = jnp.max(logits, axis=-1, keepdims=True)
    z = logits - zmax
    lse = jnp.log(jnp.sum(jnp.exp(z), axis=-1, keepdims=True))
    out_ref[...] = (z - lse).astype(out_ref.dtype)


# ------------------------------- forward wrapper -----------------------------

def mnist_net_forward(params, x, *, block_b=32):
    """x: (N, 1, 28, 28) float32 -> (N, 10) log-probabilities."""
    n = x.shape[0]
    lp = _prepare_params(params)

    B = block_b
    nb = max(1, -(-n // B))
    npad = nb * B

    # Pad to (npad, 36, 32): rows 28..35 / cols 28..31 are zeros (they feed only
    # never-read garbage rows / zero weight rows).
    x3 = x.reshape(n, 28, 28)
    x3 = jnp.pad(x3, ((0, npad - n), (0, 8), (0, 4)))

    const2 = lambda i: (0, 0)

    out = pl.pallas_call(
        _mnist_fused_kernel,
        out_shape=jax.ShapeDtypeStruct((npad, 10), jnp.float32),
        grid=(nb,),
        in_specs=[
            pl.BlockSpec((B, 36, 32), lambda i: (i, 0, 0)),   # images
            pl.BlockSpec((160, 256), const2),                 # conv1 fused weight
            pl.BlockSpec((1, 128), const2),                   # conv1 bias (tiled)
            pl.BlockSpec((640, 256), const2),                 # conv2 fused weight
            pl.BlockSpec((1, 128), const2),                   # conv2 bias (tiled)
            pl.BlockSpec((512, 64), const2),                  # fc1 weight (permuted)
            pl.BlockSpec((1, 64), const2),                    # fc1 bias
            pl.BlockSpec((64, 10), const2),                   # fc2 weight^T
            pl.BlockSpec((1, 10), const2),                    # fc2 bias
        ],
        out_specs=pl.BlockSpec((B, 10), lambda i: (i, 0)),
        scratch_shapes=[
            pltpu.VMEM((B * 32, 128), jnp.float32),  # conv1 col-pooled output
            pltpu.VMEM((B, 16, 128), jnp.float32),   # pooled1 (12 valid rows)
            pltpu.VMEM((B * 8, 128), jnp.float32),   # conv2 col-pooled output
            pltpu.VMEM((B * 4, 128), jnp.float32),   # pooled2
        ],
        compiler_params=pltpu.CompilerParams(
            dimension_semantics=("parallel",)),
    )(x3, lp["w1"], lp["b1"], lp["w2"], lp["b2"],
      lp["fc1w"], lp["fc1b"], lp["fc2w"], lp["fc2b"])
    return out[:n]


# -------------------------------- test harness -------------------------------

def init_params(key):
    ks = jax.random.split(key, 8)
    s = 0.1
    return dict(
        conv1_w=jax.random.normal(ks[0], (10, 1, 5, 5), jnp.float32) * s,
        conv1_b=jax.random.normal(ks[1], (10,), jnp.float32) * s,
        conv2_w=jax.random.normal(ks[2], (20, 10, 5, 5), jnp.float32) * s,
        conv2_b=jax.random.normal(ks[3], (20,), jnp.float32) * s,
        fc1_w=jax.random.normal(ks[4], (50, 320), jnp.float32) * s,
        fc1_b=jax.random.normal(ks[5], (50,), jnp.float32) * s,
        fc2_w=jax.random.normal(ks[6], (10, 50), jnp.float32) * s,
        fc2_b=jax.random.normal(ks[7], (10,), jnp.float32) * s,
    )


def _reference_forward(params, x):
    """Pure-JAX (XLA) reference of the PyTorch module, eval mode."""
    hi = lax.Precision.HIGHEST
    dn = ("NCHW", "OIHW", "NCHW")
    y = lax.conv_general_dilated(x, params["conv1_w"], (1, 1), "VALID",
                                 dimension_numbers=dn, precision=hi)
    y = y + params["conv1_b"][None, :, None, None]
    y = lax.reduce_window(y, -jnp.inf, lax.max, (1, 1, 2, 2), (1, 1, 2, 2),
                          "VALID")
    y = jnp.maximum(y, 0.0)
    y = lax.conv_general_dilated(y, params["conv2_w"], (1, 1), "VALID",
                                 dimension_numbers=dn, precision=hi)
    y = y + params["conv2_b"][None, :, None, None]
    y = lax.reduce_window(y, -jnp.inf, lax.max, (1, 1, 2, 2), (1, 1, 2, 2),
                          "VALID")
    y = jnp.maximum(y, 0.0)
    y = y.reshape(y.shape[0], -1)                       # (N, 320) channel-major
    y = jnp.maximum(jnp.dot(y, params["fc1_w"].T, precision=hi)
                    + params["fc1_b"], 0.0)
    y = jnp.dot(y, params["fc2_w"].T, precision=hi) + params["fc2_b"]
    return jax.nn.log_softmax(y, axis=-1)


if __name__ == "__main__":
    key = jax.random.PRNGKey(0)
    pkey, xkey = jax.random.split(key)
    params = init_params(pkey)
    # Module hardcodes fc1 = Linear(320, 50) => input must be (N, 1, 28, 28).
    x = jax.random.normal(xkey, (2, 1, 28, 28), jnp.float32)

    fwd = jax.jit(mnist_net_forward)
    out = jax.block_until_ready(fwd(params, x))

    assert out.shape == (2, 10), out.shape
    # log_softmax rows should exp-sum to ~1
    row_sums = jnp.sum(jnp.exp(out), axis=-1)
    assert jnp.allclose(row_sums, 1.0, atol=1e-4), row_sums
    # cross-check against a pure-JAX reference of the PyTorch forward
    ref = _reference_forward(params, x)
    assert jnp.allclose(out, ref, atol=5e-2), float(jnp.max(jnp.abs(out - ref)))
    print("KERNEL_OK")
</pallas_src>

<mosaic_0001>
module attributes {stable_mosaic.version = 11 : i64} {
  func.func @_mnist_fused_kernel(%arg0: i32, %arg1: memref<32x36x32xf32, #tpu.memory_space<vmem>>, %arg2: memref<160x256xf32, #tpu.memory_space<vmem>>, %arg3: memref<1x128xf32, #tpu.memory_space<vmem>>, %arg4: memref<640x256xf32, #tpu.memory_space<vmem>>, %arg5: memref<1x128xf32, #tpu.memory_space<vmem>>, %arg6: memref<512x64xf32, #tpu.memory_space<vmem>>, %arg7: memref<1x64xf32, #tpu.memory_space<vmem>>, %arg8: memref<64x10xf32, #tpu.memory_space<vmem>>, %arg9: memref<1x10xf32, #tpu.memory_space<vmem>>, %arg10: memref<32x10xf32, #tpu.memory_space<vmem>>, %arg11: memref<1024x128xf32, #tpu.memory_space<vmem>>, %arg12: memref<32x16x128xf32, #tpu.memory_space<vmem>>, %arg13: memref<256x128xf32, #tpu.memory_space<vmem>>, %arg14: memref<128x128xf32, #tpu.memory_space<vmem>>) attributes {dimension_semantics = [#tpu.dimension_semantics<parallel>], iteration_bounds = array<i64: 1>, scalar_prefetch = 0 : i64, scratch_operands = 4 : i64, tpu.core_type = #tpu.core_type<tc>, window_params = [{transform_indices = @transform_0, window_bounds = array<i64: 32, 36, 32>}, {pipeline_mode = #tpu.pipeline_mode<synchronous>, transform_indices = @transform_1, window_bounds = array<i64: 160, 256>}, {pipeline_mode = #tpu.pipeline_mode<synchronous>, transform_indices = @transform_2, window_bounds = array<i64: 1, 128>}, {pipeline_mode = #tpu.pipeline_mode<synchronous>, transform_indices = @transform_3, window_bounds = array<i64: 640, 256>}, {pipeline_mode = #tpu.pipeline_mode<synchronous>, transform_indices = @transform_4, window_bounds = array<i64: 1, 128>}, {pipeline_mode = #tpu.pipeline_mode<synchronous>, transform_indices = @transform_5, window_bounds = array<i64: 512, 64>}, {pipeline_mode = #tpu.pipeline_mode<synchronous>, transform_indices = @transform_6, window_bounds = array<i64: 1, 64>}, {pipeline_mode = #tpu.pipeline_mode<synchronous>, transform_indices = @transform_7, window_bounds = array<i64: 64, 10>}, {pipeline_mode = #tpu.pipeline_mode<synchronous>, transform_indices = @transform_8, window_bounds = array<i64: 1, 10>}, {transform_indices = @transform_9, window_bounds = array<i64: 32, 10>}]} {
    %c0 = arith.constant 0 : index
    %c0_0 = arith.constant 0 : index
    %c0_1 = arith.constant 0 : index
    %0 = vector.load %arg1[%c0, %c0_0, %c0_1] : memref<32x36x32xf32, #tpu.memory_space<vmem>>, vector<32x32x32xf32>
    %c0_2 = arith.constant 0 : index
    %c1 = arith.constant 1 : index
    %c0_3 = arith.constant 0 : index
    %1 = vector.load %arg1[%c0_2, %c1, %c0_3] : memref<32x36x32xf32, #tpu.memory_space<vmem>>, vector<32x32x32xf32>
    %c0_4 = arith.constant 0 : index
    %c2 = arith.constant 2 : index
    %c0_5 = arith.constant 0 : index
    %2 = vector.load %arg1[%c0_4, %c2, %c0_5] : memref<32x36x32xf32, #tpu.memory_space<vmem>>, vector<32x32x32xf32>
    %c0_6 = arith.constant 0 : index
    %c3 = arith.constant 3 : index
    %c0_7 = arith.constant 0 : index
    %3 = vector.load %arg1[%c0_6, %c3, %c0_7] : memref<32x36x32xf32, #tpu.memory_space<vmem>>, vector<32x32x32xf32>
    %c0_8 = arith.constant 0 : index
    %c4 = arith.constant 4 : index
    %c0_9 = arith.constant 0 : index
    %4 = vector.load %arg1[%c0_8, %c4, %c0_9] : memref<32x36x32xf32, #tpu.memory_space<vmem>>, vector<32x32x32xf32>
    %5 = tpu.concatenate %0, %1, %2, %3, %4 in 2 : vector<32x32x32xf32>, vector<32x32x32xf32>, vector<32x32x32xf32>, vector<32x32x32xf32>, vector<32x32x32xf32> -> vector<32x32x160xf32>
    %6 = vector.shape_cast %5 : vector<32x32x160xf32> to vector<1024x160xf32>
    %c0_10 = arith.constant 0 : index
    %c0_11 = arith.constant 0 : index
    %7 = vector.load %arg2[%c0_10, %c0_11] : memref<160x256xf32, #tpu.memory_space<vmem>>, vector<160x256xf32>
    %cst = arith.constant dense<0.000000e+00> : vector<1024x256xf32>
    %8 = tpu.matmul %6, %7, %cst {dimension_numbers = #tpu.dot_dimension_numbers<[1], [0], [0], [1], [0, 0, 1, 1], [], []>} : vector<1024x160xf32>, vector<160x256xf32>, vector<1024x256xf32> -> vector<1024x256xf32>
    %9 = vector.extract_strided_slice %8 {offsets = [0, 0], sizes = [1024, 128], strides = [1, 1]} : vector<1024x256xf32> to vector<1024x128xf32>
    %10 = vector.extract_strided_slice %8 {offsets = [0, 128], sizes = [1024, 128], strides = [1, 1]} : vector<1024x256xf32> to vector<1024x128xf32>
    %11 = arith.maximumf %9, %10 : vector<1024x128xf32>
    %c0_12 = arith.constant 0 : index
    %c0_13 = arith.constant 0 : index
    %12 = vector.load %arg11[%c0_12, %c0_13] : memref<1024x128xf32, #tpu.memory_space<vmem>>, vector<1024x128xf32>
    tpu.vector_store %arg11[%c0_12, %c0_13], %11 {strides = array<i32>} : memref<1024x128xf32, #tpu.memory_space<vmem>>, vector<1024x128xf32>,
    %c0_14 = arith.constant 0 : index
    %c0_15 = arith.constant 0 : index
    %13 = tpu.strided_load %arg11[%c0_14, %c0_15] {strides = array<i32: 2, 1>} : memref<1024x128xf32, #tpu.memory_space<vmem>>, vector<512x128xf32>
    %c1_16 = arith.constant 1 : index
    %c0_17 = arith.constant 0 : index
    %14 = tpu.strided_load %arg11[%c1_16, %c0_17] {strides = array<i32: 2, 1>} : memref<1024x128xf32, #tpu.memory_space<vmem>>, vector<512x128xf32>
    %15 = arith.maximumf %13, %14 : vector<512x128xf32>
    %c0_18 = arith.constant 0 : index
    %c0_19 = arith.constant 0 : index
    %16 = vector.load %arg3[%c0_18, %c0_19] : memref<1x128xf32, #tpu.memory_space<vmem>>, vector<1x128xf32>
    %17 = vector.broadcast %16 : vector<1x128xf32> to vector<512x128xf32>
    %18 = arith.addf %15, %17 : vector<512x128xf32>
    %cst_20 = arith.constant 0.000000e+00 : f32
    %19 = vector.broadcast %cst_20 : f32 to vector<512x128xf32>
    %20 = arith.maximumf %18, %19 : vector<512x128xf32>
    %21 = vector.shape_cast %20 : vector<512x128xf32> to vector<32x16x128xf32>
    %c0_21 = arith.constant 0 : index
    %c0_22 = arith.constant 0 : index
    %c0_23 = arith.constant 0 : index
    %22 = vector.load %arg12[%c0_21, %c0_22, %c0_23] : memref<32x16x128xf32, #tpu.memory_space<vmem>>, vector<32x16x128xf32>
    tpu.vector_store %arg12[%c0_21, %c0_22, %c0_23], %21 {strides = array<i32>} : memref<32x16x128xf32, #tpu.memory_space<vmem>>, vector<32x16x128xf32>,
    %c0_24 = arith.constant 0 : index
    %c0_25 = arith.constant 0 : index
    %c0_26 = arith.constant 0 : index
    %23 = vector.load %arg12[%c0_24, %c0_25, %c0_26] : memref<32x16x128xf32, #tpu.memory_space<vmem>>, vector<32x8x128xf32>
    %c0_27 = arith.constant 0 : index
    %c1_28 = arith.constant 1 : index
    %c0_29 = arith.constant 0 : index
    %24 = vector.load %arg12[%c0_27, %c1_28, %c0_29] : memref<32x16x128xf32, #tpu.memory_space<vmem>>, vector<32x8x128xf32>
    %c0_30 = arith.constant 0 : index
    %c2_31 = arith.constant 2 : index
    %c0_32 = arith.constant 0 : index
    %25 = vector.load %arg12[%c0_30, %c2_31, %c0_32] : memref<32x16x128xf32, #tpu.memory_space<vmem>>, vector<32x8x128xf32>
    %c0_33 = arith.constant 0 : index
    %c3_34 = arith.constant 3 : index
    %c0_35 = arith.constant 0 : index
    %26 = vector.load %arg12[%c0_33, %c3_34, %c0_35] : memref<32x16x128xf32, #tpu.memory_space<vmem>>, vector<32x8x128xf32>
    %c0_36 = arith.constant 0 : index
    %c4_37 = arith.constant 4 : index
    %c0_38 = arith.constant 0 : index
    %27 = vector.load %arg12[%c0_36, %c4_37, %c0_38] : memref<32x16x128xf32, #tpu.memory_space<vmem>>, vector<32x8x128xf32>
    %28 = tpu.concatenate %23, %24, %25, %26, %27 in 2 : vector<32x8x128xf32>, vector<32x8x128xf32>, vector<32x8x128xf32>, vector<32x8x128xf32>, vector<32x8x128xf32> -> vector<32x8x640xf32>
    %29 = vector.shape_cast %28 : vector<32x8x640xf32> to vector<256x640xf32>
    %c0_39 = arith.constant 0 : index
    %c0_40 = arith.constant 0 : index
    %30 = vector.load %arg4[%c0_39, %c0_40] : memref<640x256xf32, #tpu.memory_space<vmem>>, vector<640x256xf32>
    %cst_41 = arith.constant dense<0.000000e+00> : vector<256x256xf32>
    %31 = tpu.matmul %29, %30, %cst_41 {dimension_numbers = #tpu.dot_dimension_numbers<[1], [0], [0], [1], [0, 0, 1, 1], [], []>} : vector<256x640xf32>, vector<640x256xf32>, vector<256x256xf32> -> vector<256x256xf32>
    %32 = vector.extract_strided_slice %31 {offsets = [0, 0], sizes = [256, 128], strides = [1, 1]} : vector<256x256xf32> to vector<256x128xf32>
    %33 = vector.extract_strided_slice %31 {offsets = [0, 128], sizes = [256, 128], strides = [1, 1]} : vector<256x256xf32> to vector<256x128xf32>
    %34 = arith.maximumf %32, %33 : vector<256x128xf32>
    %c0_42 = arith.constant 0 : index
    %c0_43 = arith.constant 0 : index
    %35 = vector.load %arg13[%c0_42, %c0_43] : memref<256x128xf32, #tpu.memory_space<vmem>>, vector<256x128xf32>
    tpu.vector_store %arg13[%c0_42, %c0_43], %34 {strides = array<i32>} : memref<256x128xf32, #tpu.memory_space<vmem>>, vector<256x128xf32>,
    %c0_44 = arith.constant 0 : index
    %c0_45 = arith.constant 0 : index
    %36 = tpu.strided_load %arg13[%c0_44, %c0_45] {strides = array<i32: 2, 1>} : memref<256x128xf32, #tpu.memory_space<vmem>>, vector<128x128xf32>
    %c1_46 = arith.constant 1 : index
    %c0_47 = arith.constant 0 : index
    %37 = tpu.strided_load %arg13[%c1_46, %c0_47] {strides = array<i32: 2, 1>} : memref<256x128xf32, #tpu.memory_space<vmem>>, vector<128x128xf32>
    %38 = arith.maximumf %36, %37 : vector<128x128xf32>
    %c0_48 = arith.constant 0 : index
    %c0_49 = arith.constant 0 : index
    %39 = vector.load %arg5[%c0_48, %c0_49] : memref<1x128xf32, #tpu.memory_space<vmem>>, vector<1x128xf32>
    %40 = vector.broadcast %39 : vector<1x128xf32> to vector<128x128xf32>
    %41 = arith.addf %38, %40 : vector<128x128xf32>
    %cst_50 = arith.constant 0.000000e+00 : f32
    %42 = vector.broadcast %cst_50 : f32 to vector<128x128xf32>
    %43 = arith.maximumf %41, %42 : vector<128x128xf32>
    %c0_51 = arith.constant 0 : index
    %c0_52 = arith.constant 0 : index
    %44 = vector.load %arg14[%c0_51, %c0_52] : memref<128x128xf32, #tpu.memory_space<vmem>>, vector<128x128xf32>
    tpu.vector_store %arg14[%c0_51, %c0_52], %43 {strides = array<i32>} : memref<128x128xf32, #tpu.memory_space<vmem>>, vector<128x128xf32>,
    %c0_53 = arith.constant 0 : index
    %c0_54 = arith.constant 0 : index
    %45 = tpu.strided_load %arg14[%c0_53, %c0_54] {strides = array<i32: 4, 1>} : memref<128x128xf32, #tpu.memory_space<vmem>>, vector<32x128xf32>
    %c1_55 = arith.constant 1 : index
    %c0_56 = arith.constant 0 : index
    %46 = tpu.strided_load %arg14[%c1_55, %c0_56] {strides = array<i32: 4, 1>} : memref<128x128xf32, #tpu.memory_space<vmem>>, vector<32x128xf32>
    %c2_57 = arith.constant 2 : index
    %c0_58 = arith.constant 0 : index
    %47 = tpu.strided_load %arg14[%c2_57, %c0_58] {strides = array<i32: 4, 1>} : memref<128x128xf32, #tpu.memory_space<vmem>>, vector<32x128xf32>
    %c3_59 = arith.constant 3 : index
    %c0_60 = arith.constant 0 : index
    %48 = tpu.strided_load %arg14[%c3_59, %c0_60] {strides = array<i32: 4, 1>} : memref<128x128xf32, #tpu.memory_space<vmem>>, vector<32x128xf32>
    %49 = tpu.concatenate %45, %46, %47, %48 in 1 : vector<32x128xf32>, vector<32x128xf32>, vector<32x128xf32>, vector<32x128xf32> -> vector<32x512xf32>
    %c0_61 = arith.constant 0 : index
    %c0_62 = arith.constant 0 : index
    %50 = vector.load %arg6[%c0_61, %c0_62] : memref<512x64xf32, #tpu.memory_space<vmem>>, vector<512x64xf32>
    %cst_63 = arith.constant dense<0.000000e+00> : vector<32x64xf32>
    %51 = tpu.matmul %49, %50, %cst_63 {dimension_numbers = #tpu.dot_dimension_numbers<[1], [0], [0], [1], [0, 0, 1, 1], [], []>} : vector<32x512xf32>, vector<512x64xf32>, vector<32x64xf32> -> vector<32x64xf32>
    %c0_64 = arith.constant 0 : index
    %c0_65 = arith.constant 0 : index
    %52 = vector.load %arg7[%c0_64, %c0_65] : memref<1x64xf32, #tpu.memory_space<vmem>>, vector<1x64xf32>
    %53 = vector.broadcast %52 : vector<1x64xf32> to vector<32x64xf32>
    %54 = arith.addf %51, %53 : vector<32x64xf32>
    %cst_66 = arith.constant 0.000000e+00 : f32
    %55 = vector.broadcast %cst_66 : f32 to vector<32x64xf32>
    %56 = arith.maximumf %54, %55 : vector<32x64xf32>
    %c0_67 = arith.constant 0 : index
    %c0_68 = arith.constant 0 : index
    %57 = vector.load %arg8[%c0_67, %c0_68] : memref<64x10xf32, #tpu.memory_space<vmem>>, vector<64x10xf32>
    %cst_69 = arith.constant dense<0.000000e+00> : vector<32x10xf32>
    %58 = tpu.matmul %56, %57, %cst_69 {dimension_numbers = #tpu.dot_dimension_numbers<[1], [0], [0], [1], [0, 0, 1, 1], [], []>} : vector<32x64xf32>, vector<64x10xf32>, vector<32x10xf32> -> vector<32x10xf32>
    %c0_70 = arith.constant 0 : index
    %c0_71 = arith.constant 0 : index
    %59 = vector.load %arg9[%c0_70, %c0_71] : memref<1x10xf32, #tpu.memory_space<vmem>>, vector<1x10xf32>
    %60 = vector.broadcast %59 : vector<1x10xf32> to vector<32x10xf32>
    %61 = arith.addf %58, %60 : vector<32x10xf32>
    %cst_72 = arith.constant dense<0xFF800000> : vector<32xf32>
    %62 = vector.multi_reduction <maximumf>, %61, %cst_72 [1] : vector<32x10xf32> to vector<32xf32>
    %63 = vector.shape_cast %62 : vector<32xf32> to vector<32x1xf32>
    %64 = vector.broadcast %63 : vector<32x1xf32> to vector<32x10xf32>
    %65 = arith.subf %61, %64 : vector<32x10xf32>
    %66 = math.exp %65 : vector<32x10xf32>
    %cst_73 = arith.constant dense<0.000000e+00> : vector<32xf32>
    %67 = vector.multi_reduction <add>, %66, %cst_73 [1] : vector<32x10xf32> to vector<32xf32>
    %68 = vector.shape_cast %67 : vector<32xf32> to vector<32x1xf32>
    %69 = math.log %68 : vector<32x1xf32>
    %70 = vector.broadcast %69 : vector<32x1xf32> to vector<32x10xf32>
    %71 = arith.subf %65, %70 : vector<32x10xf32>
    %c0_74 = arith.constant 0 : index
    %c0_75 = arith.constant 0 : index
    %72 = vector.load %arg10[%c0_74, %c0_75] : memref<32x10xf32, #tpu.memory_space<vmem>>, vector<32x10xf32>
    tpu.vector_store %arg10[%c0_74, %c0_75], %71 {strides = array<i32>} : memref<32x10xf32, #tpu.memory_space<vmem>>, vector<32x10xf32>,
    return
  }
  func.func @transform_0(%arg0: i32) -> (i32, i32, i32) {
    %c0_i32 = arith.constant 0 : i32
    %c0_i32_0 = arith.constant 0 : i32
    %c0_i32_1 = arith.constant 0 : i32
    return %arg0, %c0_i32, %c0_i32_0 : i32, i32, i32
  }
  func.func @transform_1(%arg0: i32) -> (i32, i32) {
    %c0_i32 = arith.constant 0 : i32
    %c0_i32_0 = arith.constant 0 : i32
    %c0_i32_1 = arith.constant 0 : i32
    return %c0_i32, %c0_i32_0 : i32, i32
  }
  func.func @transform_2(%arg0: i32) -> (i32, i32) {
    %c0_i32 = arith.constant 0 : i32
    %c0_i32_0 = arith.constant 0 : i32
    %c0_i32_1 = arith.constant 0 : i32
    return %c0_i32, %c0_i32_0 : i32, i32
  }
  func.func @transform_3(%arg0: i32) -> (i32, i32) {
    %c0_i32 = arith.constant 0 : i32
    %c0_i32_0 = arith.constant 0 : i32
    %c0_i32_1 = arith.constant 0 : i32
    return %c0_i32, %c0_i32_0 : i32, i32
  }
  func.func @transform_4(%arg0: i32) -> (i32, i32) {
    %c0_i32 = arith.constant 0 : i32
    %c0_i32_0 = arith.constant 0 : i32
    %c0_i32_1 = arith.constant 0 : i32
    return %c0_i32, %c0_i32_0 : i32, i32
  }
  func.func @transform_5(%arg0: i32) -> (i32, i32) {
    %c0_i32 = arith.constant 0 : i32
    %c0_i32_0 = arith.constant 0 : i32
    %c0_i32_1 = arith.constant 0 : i32
    return %c0_i32, %c0_i32_0 : i32, i32
  }
  func.func @transform_6(%arg0: i32) -> (i32, i32) {
    %c0_i32 = arith.constant 0 : i32
    %c0_i32_0 = arith.constant 0 : i32
    %c0_i32_1 = arith.constant 0 : i32
    return %c0_i32, %c0_i32_0 : i32, i32
  }
  func.func @transform_7(%arg0: i32) -> (i32, i32) {
    %c0_i32 = arith.constant 0 : i32
    %c0_i32_0 = arith.constant 0 : i32
    %c0_i32_1 = arith.constant 0 : i32
    return %c0_i32, %c0_i32_0 : i32, i32
  }
  func.func @transform_8(%arg0: i32) -> (i32, i32) {
    %c0_i32 = arith.constant 0 : i32
    %c0_i32_0 = arith.constant 0 : i32
    %c0_i32_1 = arith.constant 0 : i32
    return %c0_i32, %c0_i32_0 : i32, i32
  }
  func.func @transform_9(%arg0: i32) -> (i32, i32) {
    %c0_i32 = arith.constant 0 : i32
    %c0_i32_0 = arith.constant 0 : i32
    return %arg0, %c0_i32 : i32, i32
  }
}

</mosaic_0001>

<bundles_post_ra>
// kernel: tile.13
= control target key start
LH: loop header
LB: loop body
LE: loop exit
PB: predicated region body
PF: predicated region fallthrough
CT: control target
= control target key end

     0   :  { %s28_s0 = inlined_call_operand.vmem [shape: f32[10], index: 0, kind: input, shape index: {}]   ;;  %s29_s1 = inlined_call_operand.vmem [shape: f32[12,10], index: 1, kind: output, shape index: {}]  }
   0x1   :  { %v4_v0 = vld [vmem:[%s28_s0] ss:$0 sm:$0xff] }
   0x2   :  { %5 = vst [vmem:[%s29_s1] sm:$0xff] %v4_v0  ;;  %8 = vst [vmem:[%s29_s1 + $0x8] sm:$0xff] %v4_v0 }

// kernel: tile.14
= control target key start
LH: loop header
LB: loop body
LE: loop exit
PB: predicated region body
PF: predicated region fallthrough
CT: control target
= control target key end

     0   :  { %s99_s10 = smov 110   ;;  %s100_s11 = smov 90   ;;  %vm3_vm0 = vcmask 80896   ;;  %vm9_vm1 = vcmask 982896   ;;  %vm15_vm2 = vcmask 900896   ;;  %vm21_vm3 = vcmask 818896   ;;  %s159_s0 = inlined_call_operand.vmem [shape: f32[12,10], index: 0, kind: input, shape index: {}]   ;;  %s160_s1 = inlined_call_operand.vmem [shape: f32[120], index: 1, kind: output, shape index: {}]  }
   0x1   :  { %v77_v0 = vld [vmem:[%s159_s0 + $0xb] sm:$0x1]   ;;  %v79_v1 = vld [vmem:[%s159_s0 + $0x9] sm:$0x1]   ;;  %v78_v2 = vld [vmem:[%s159_s0 + $0xa] sm:$0x1]  }
   0x2   :  { %7 = vrot.lane.b32.xlu0 %v77_v0, %s99_s10  ;;  %19 = vrot.lane.b32.xlu1 %v79_v1, %s100_s11  ;;  %v80_v3 = vld [vmem:[%s159_s0 + $0x8] sm:$0x1]   ;;  %s101_s16 = smov 100   ;;  %s102_s17 = smov 80   ;;  %v81_v4 = vld [vmem:[%s159_s0 + $0x7] sm:$0x1]  }
   0x3   :  { %v2_v5 = vld [vmem:[%s159_s0] sm:$0x1]   ;;  %v82_v6 = vld [vmem:[%s159_s0 + $0x6] sm:$0x1]   ;;  %s103_s24 = smov 70   ;;  %s104_s25 = smov 60  }
   0x4   :  { %4 = vst.msk [vmem:[#allocation0] sm:$0x1] %vm3_vm0, %v2_v5   ;;  %v83_v7 = vld [vmem:[%s159_s0 + $0x5] sm:$0x1]   ;;  %v84_v8 = vld [vmem:[%s159_s0 + $0x4] sm:$0x1]  }
   0x5   :  { %s105_s30 = smov 50   ;;  %s106_s2 = smov 40   ;;  %v85_v9 = vld [vmem:[%s159_s0 + $0x3] sm:$0x1]   ;;  %v86_v10 = vld [vmem:[%s159_s0 + $0x2] sm:$0x1]  }
   0x6   :  { %13 = vrot.lane.b32.xlu0 %v78_v2, %s101_s16  ;;  %25 = vrot.lane.b32.xlu1 %v80_v3, %s102_s17  ;;  %s107_s7 = smov 30   ;;  %s108_s8 = smov 20   ;;  %v87_v11 = vld [vmem:[%s159_s0 + $0x1] sm:$0x1]   ;;  %vm27_vm4 = vcmask 736896   ;;  %vm33_vm5 = vcmask 654896  }
   0x7   :  { %s109_s0 = smov 10   ;;  %vm39_vm6 = vcmask 572896   ;;  %vm45_vm7 = vcmask 490896   ;;  %vm51_vm8 = vcmask 408896   ;;  %vm57_vm9 = vcmask 326896  }
   0x8   :  { %vm63_vm10 = vcmask 244896   ;;  %vm69_vm11 = vcmask 162896  }
   0xa   :  { %31 = vrot.lane.b32.xlu0 %v81_v4, %s103_s24  ;;  %37 = vrot.lane.b32.xlu1 %v82_v6, %s104_s25 }
   0xe   :  { %43 = vrot.lane.b32.xlu0 %v83_v7, %s105_s30  ;;  %49 = vrot.lane.b32.xlu1 %v84_v8, %s106_s2 }
  0x12   :  { %55 = vrot.lane.b32.xlu0 %v85_v9, %s107_s7  ;;  %61 = vrot.lane.b32.xlu1 %v86_v10, %s108_s8 }
  0x16   :  { %67 = vrot.lane.b32.xlu0 %v87_v11, %s109_s0 }
  0x74   :  { %v8_v12 = vpop.permute.xlu0 %7   ;;  %v20_v13 = vpop.permute.xlu1 %19  }
  0x75   :  { %10 = vst.msk [vmem:[#allocation0] sm:$0x1] %vm9_vm1, %v8_v12  }
  0x78   :  { %v14_v14 = vpop.permute.xlu0 %13   ;;  %v26_v15 = vpop.permute.xlu1 %25  }
  0x79   :  { %16 = vst.msk [vmem:[#allocation0] sm:$0x1] %vm15_vm2, %v14_v14  }
  0x7a   :  { %22 = vst.msk [vmem:[#allocation0] sm:$0x1] %vm21_vm3, %v20_v13  }
  0x7b   :  { %28 = vst.msk [vmem:[#allocation0] sm:$0x1] %vm27_vm4, %v26_v15  }
  0x7c   :  { %v32_v16 = vpop.permute.xlu0 %31   ;;  %v38_v17 = vpop.permute.xlu1 %37  }
  0x7d   :  { %34 = vst.msk [vmem:[#allocation0] sm:$0x1] %vm33_vm5, %v32_v16  }
  0x7e   :  { %40 = vst.msk [vmem:[#allocation0] sm:$0x1] %vm39_vm6, %v38_v17  }
  0x80   :  { %v44_v18 = vpop.permute.xlu0 %43   ;;  %v50_v19 = vpop.permute.xlu1 %49  }
  0x81   :  { %46 = vst.msk [vmem:[#allocation0] sm:$0x1] %vm45_vm7, %v44_v18  }
  0x82   :  { %52 = vst.msk [vmem:[#allocation0] sm:$0x1] %vm51_vm8, %v50_v19  }
  0x84   :  { %v56_v20 = vpop.permute.xlu0 %55   ;;  %v62_v21 = vpop.permute.xlu1 %61  }
  0x85   :  { %58 = vst.msk [vmem:[#allocation0] sm:$0x1] %vm57_vm9, %v56_v20  }
  0x86   :  { %64 = vst.msk [vmem:[#allocation0] sm:$0x1] %vm63_vm10, %v62_v21  }
  0x88   :  { %v68_v22 = vpop.permute.xlu0 %67  }
  0x89   :  { %70 = vst.msk [vmem:[#allocation0] sm:$0x1] %vm69_vm11, %v68_v22  }
  0x90   :  { %v74_v23 = vld [vmem:[#allocation0] sm:$0x1] }
  0x91   :  { %76 = vst [vmem:[%s160_s1] sm:$0x1] %v74_v23 }

// kernel: tile.18
= control target key start
LH: loop header
LB: loop body
LE: loop exit
PB: predicated region body
PF: predicated region fallthrough
CT: control target
= control target key end

     0   :  { %s22_s0 = inlined_call_operand.vmem [shape: f32[20], index: 0, kind: input, shape index: {}]   ;;  %s23_s1 = inlined_call_operand.vmem [shape: f32[4,20], index: 1, kind: output, shape index: {}]  }
   0x1   :  { %v4_v0 = vld [vmem:[%s22_s0] ss:$0 sm:$0xff] }
   0x2   :  { %5 = vst [vmem:[%s23_s1] sm:$0xf] %v4_v0 }

// kernel: tile.19
= control target key start
LH: loop header
LB: loop body
LE: loop exit
PB: predicated region body
PF: predicated region fallthrough
CT: control target
= control target key end

     0   :  { %vm7_vm0 = vcmask 162816   ;;  %s37_s8 = smov 20   ;;  %s38_s9 = smov 40   ;;  %vm13_vm1 = vcmask 654816   ;;  %vm19_vm2 = vcmask 490816   ;;  %vm25_vm3 = vcmask 326816   ;;  %s55_s0 = inlined_call_operand.vmem [shape: f32[4,20], index: 0, kind: input, shape index: {}]   ;;  %s56_s1 = inlined_call_operand.vmem [shape: f32[80], index: 1, kind: output, shape index: {}]  }
   0x1   :  { %v4_v0 = vld [vmem:[%s55_s0] sm:$0xf]  ;;  %s36_s0 = smov 60  }
   0x2   :  { %5 = vst [vmem:[#allocation1] sm:$0xf] %v4_v0 }
   0x9   :  { %v10_v1 = vld [vmem:[#allocation1 + $0x3] sm:$0x1]   ;;  %v22_v2 = vld [vmem:[#allocation1 + $0x1] sm:$0x1]   ;;  %v6_v3 = vld [vmem:[#allocation1] sm:$0x1]  }
   0xa   :  { %11 = vrot.lane.b32.xlu0 %v10_v1, %s36_s0  ;;  %23 = vrot.lane.b32.xlu1 %v22_v2, %s37_s8  ;;  %v16_v4 = vld [vmem:[#allocation1 + $0x2] sm:$0x1]   ;;  %8 = vst.msk [vmem:[#allocation0] sm:$0x1] %vm7_vm0, %v6_v3  }
   0xe   :  { %17 = vrot.lane.b32.xlu0 %v16_v4, %s38_s9 }
  0x7c   :  { %v12_v5 = vpop.permute.xlu0 %11   ;;  %v24_v6 = vpop.permute.xlu1 %23  }
  0x7d   :  { %14 = vst.msk [vmem:[#allocation0] sm:$0x1] %vm13_vm1, %v12_v5  }
  0x80   :  { %v18_v7 = vpop.permute.xlu0 %17  }
  0x81   :  { %20 = vst.msk [vmem:[#allocation0] sm:$0x1] %vm19_vm2, %v18_v7  }
  0x82   :  { %26 = vst.msk [vmem:[#allocation0] sm:$0x1] %vm25_vm3, %v24_v6  }
  0x89   :  { %v30_v8 = vld [vmem:[#allocation0] sm:$0x1] }
  0x8a   :  { %32 = vst [vmem:[%s56_s1] sm:$0x1] %v30_v8 }

// kernel: mnist_net_forward.1
= control target key start
LH: loop header
LB: loop body
LE: loop exit
PB: predicated region body
PF: predicated region fallthrough
CT: control target
= control target key end

     0   :  { %s7994_s25 = smov 32   ;;  %s7995_s26 = smov 96   ;;  %vm2208_vm0 = vcmask 261120   ;;  %vm2337_vm1 = vcmask 523264   ;;  %vm2466_vm2 = vcmask 785408   ;;  %vm6303_vm3 = vcmask 80896   ;;  %s11991_s0 = inlined_call_operand.vmem [shape: f32[32,36,32], index: 0, kind: input, shape index: {}]   ;;  %s11992_s1 = inlined_call_operand.vmem [shape: f32[160,256], index: 1, kind: input, shape index: {}]   ;;  %s11993_s3 = inlined_call_operand.vmem [shape: f32[640,256], index: 3, kind: input, shape index: {}]   ;;  %s11994_s2 = inlined_call_operand.vmem [shape: f32[1,128], index: 2, kind: input, shape index: {}]   ;;  %s11995_s5 = inlined_call_operand.vmem [shape: f32[512,64], index: 5, kind: input, shape index: {}]   ;;  %s11996_s4 = inlined_call_operand.vmem [shape: f32[1,128], index: 4, kind: input, shape index: {}]   ;;  %s11997_s7 = inlined_call_operand.vmem [shape: f32[64,10], index: 7, kind: input, shape index: {}]   ;;  %s11998_s6 = inlined_call_operand.vmem [shape: f32[1,64], index: 6, kind: input, shape index: {}]   ;;  %s11999_s8 = inlined_call_operand.vmem [shape: f32[1,10], index: 8, kind: input, shape index: {}]   ;;  %s12000_s9 = inlined_call_operand.vmem [shape: f32[32,10], index: 9, kind: output, shape index: {}]  }
   0x1   :  { %v160_v0 = vld [vmem:[%s11991_s0 + $0x1] sm:$0xff]  ;;  %v161_v1 = vld [vmem:[%s11991_s0 + $0x9] sm:$0xff]  ;;  %v162_v8 = vld [vmem:[%s11991_s0 + $0x11] sm:$0xff]  ;;  %s7996_s14 = smov 64  }
   0x2   :  { %v416_v2 = vld [vmem:[%s11991_s0 + $0x3] sm:$0xff]  ;;  %v7030_v3 = vpack.i.bf16 %v161_v1, %v160_v0  ;;  %v417_v4 = vld [vmem:[%s11991_s0 + $0xb] sm:$0xff]  ;;  %v163_v9 = vld [vmem:[%s11991_s0 + $0x19] sm:$0xff] }
   0x3   :  { %v288_v5 = vld [vmem:[%s11991_s0 + $0x2] sm:$0xff]  ;;  %v289_v6 = vld [vmem:[%s11991_s0 + $0xa] sm:$0xff]  ;;  %v7040_v7 = vpack.i.bf16 %v417_v4, %v416_v2  ;;  %v7045_v11 = vpack.i.bf16 %v163_v9, %v162_v8  ;;  %v290_v12 = vld [vmem:[%s11991_s0 + $0x12] sm:$0xff] }
   0x4   :  { %7031 = vrot.lane.b32.xlu0 %v7030_v3, %s7994_s25  ;;  %v7035_v10 = vpack.i.bf16 %v289_v6, %v288_v5  ;;  %v291_v13 = vld [vmem:[%s11991_s0 + $0x1a] sm:$0xff]  ;;  %v164_v18 = vld [vmem:[%s11991_s0 + $0x29] sm:$0xff]  ;;  %v165_v19 = vld [vmem:[%s11991_s0 + $0x31] sm:$0xff] }
   0x5   :  { %7041 = vrot.lane.b32.xlu1 %v7040_v7, %s7995_s26  ;;  %v418_v14 = vld [vmem:[%s11991_s0 + $0x13] sm:$0xff]  ;;  %v419_v15 = vld [vmem:[%s11991_s0 + $0x1b] sm:$0xff]  ;;  %v7050_v16 = vpack.i.bf16 %v291_v13, %v290_v12  ;;  %v292_v20 = vld [vmem:[%s11991_s0 + $0x2a] sm:$0xff]  ;;  %v7060_v22 = vpack.i.bf16 %v165_v19, %v164_v18 }
   0x6   :  { %v7055_v17 = vpack.i.bf16 %v419_v15, %v418_v14  ;;  %v293_v21 = vld [vmem:[%s11991_s0 + $0x32] sm:$0xff]  ;;  %v167_v27 = vld [vmem:[%s11991_s0 + $0x41] sm:$0xff]  ;;  %v171_v55 = vld [vmem:[%s11991_s0 + $0x69] sm:$0xff] }
   0x7   :  { %v7065_v23 = vpack.i.bf16 %v293_v21, %v292_v20  ;;  %v420_v24 = vld [vmem:[%s11991_s0 + $0x2b] sm:$0xff]  ;;  %v421_v25 = vld [vmem:[%s11991_s0 + $0x33] sm:$0xff]  ;;  %v295_v31 = vld [vmem:[%s11991_s0 + $0x42] sm:$0xff] }
   0x8   :  { %7036 = vrot.lane.b32.xlu0 %v7035_v10, %s7996_s14  ;;  %v166_v26 = vld [vmem:[%s11991_s0 + $0x39] sm:$0xff]  ;;  %v7070_v28 = vpack.i.bf16 %v421_v25, %v420_v24  ;;  %v423_v33 = vld [vmem:[%s11991_s0 + $0x43] sm:$0xff]  ;;  %v168_v36 = vld [vmem:[%s11991_s0 + $0x51] sm:$0xff] }
   0x9   :  { %7046 = vrot.lane.b32.xlu1 %v7045_v11, %s7994_s25  ;;  %v7075_v29 = vpack.i.bf16 %v167_v27, %v166_v26  ;;  %v294_v30 = vld [vmem:[%s11991_s0 + $0x3a] sm:$0xff]  ;;  %v296_v38 = vld [vmem:[%s11991_s0 + $0x52] sm:$0xff]  ;;  %v2596_v40 = vld [vmem:[%s11992_s1 + $0x8] sm:$0xff] }
   0xa   :  { %v422_v32 = vld [vmem:[%s11991_s0 + $0x3b] sm:$0xff]  ;;  %v7080_v34 = vpack.i.bf16 %v295_v31, %v294_v30  ;;  %v2597_v45 = vld [vmem:[%s11992_s1 + $0x10] sm:$0xff]  ;;  %v2600_v46 = vld [vmem:[%s11992_s1 + $0x28] sm:$0xff] }
   0xb   :  { %v7085_v35 = vpack.i.bf16 %v423_v33, %v422_v32  ;;  %v169_v37 = vld [vmem:[%s11991_s0 + $0x59] sm:$0xff]  ;;  %v170_v54 = vld [vmem:[%s11991_s0 + $0x61] sm:$0xff]  ;;  %v2601_v56 = vld [vmem:[%s11992_s1 + $0x30] sm:$0xff] }
   0xc   :  { %7051 = vrot.lane.b32.xlu0 %v7050_v16, %s7996_s14  ;;  %v297_v39 = vld [vmem:[%s11991_s0 + $0x5a] sm:$0xff]  ;;  %v7090_v44 = vpack.i.bf16 %v169_v37, %v168_v36  ;;  %v2604_v58 = vld [vmem:[%s11992_s1 + $0x48] sm:$0xff]  ;;  %v2605_v0 = vld [vmem:[%s11992_s1 + $0x50] sm:$0xff]  ;;  %v7105_v1 = vpack.i.bf16 %v171_v55, %v170_v54 }
   0xd   :  { %7056 = vrot.lane.b32.xlu1 %v7055_v17, %s7995_s26  ;;  %v2598_v41 = vld [vmem:[%s11992_s1 + $0x18] sm:$0xff]  ;;  %v2595_v43 = vld [vmem:[%s11992_s1] sm:$0xff]  ;;  %v7095_v48 = vpack.i.bf16 %v297_v39, %v296_v38  ;;  %v299_v2 = vld [vmem:[%s11991_s0 + $0x6a] sm:$0xff] }
   0xe   :  { %v6618_v42 = vpack.c.bf16 %v2598_v41, %v2596_v40  ;;  %v2602_v47 = vld [vmem:[%s11992_s1 + $0x38] sm:$0xff]  ;;  %v6620_v51 = vpack.c.bf16 %v2597_v45, %v2595_v43  ;;  %v2599_v53 = vld [vmem:[%s11992_s1 + $0x20] sm:$0xff]  ;;  %v2608_v3 = vld [vmem:[%s11992_s1 + $0x68] sm:$0xff] }
   0xf   :  { %v424_v49 = vld [vmem:[%s11991_s0 + $0x53] sm:$0xff]  ;;  %v425_v50 = vld [vmem:[%s11991_s0 + $0x5b] sm:$0xff]  ;;  %v6622_v52 = vpack.c.bf16 %v2602_v47, %v2600_v46  ;;  %v6624_v57 = vpack.c.bf16 %v2601_v56, %v2599_v53  ;;  %v426_v5 = vld [vmem:[%s11991_s0 + $0x63] sm:$0xff] }
  0x10   :  { %7061 = vrot.lane.b32.xlu0 %v7060_v22, %s7994_s25  ;;  %6619 = vmatprep.subr.bf16.mxu0 %v6618_v42  ;;  %v2606_v59 = vld [vmem:[%s11992_s1 + $0x58] sm:$0xff]  ;;  %v7100_v60 = vpack.i.bf16 %v425_v50, %v424_v49  ;;  %v298_v61 = vld [vmem:[%s11991_s0 + $0x62] sm:$0xff]  ;;  %v427_v6 = vld [vmem:[%s11991_s0 + $0x6b] sm:$0xff] }
  0x11   :  { %7066 = vrot.lane.b32.xlu1 %v7065_v23, %s7996_s14  ;;  %6621 = vmatpush1.bf16.msra.mxu0 %v6620_v51  ;;  %v6626_v62 = vpack.c.bf16 %v2606_v59, %v2604_v58  ;;  %v2603_v63 = vld [vmem:[%s11992_s1 + $0x40] sm:$0xff]  ;;  %v2610_v4 = vld [vmem:[%s11992_s1 + $0x78] sm:$0xff]  ;;  %v7110_v8 = vpack.i.bf16 %v299_v2, %v298_v61  ;;  %v2609_v12 = vld [vmem:[%s11992_s1 + $0x70] sm:$0xff]  ;;  %v7115_v13 = vpack.i.bf16 %v427_v6, %v426_v5 }
  0x12   :  { %6623 = vmatprep.subr.bf16.mxu0 %v6622_v52  ;;  %v6628_v7 = vpack.c.bf16 %v2605_v0, %v2603_v63  ;;  %v172_v9 = vld [vmem:[%s11991_s0 + $0x79] sm:$0xff]  ;;  %v6630_v10 = vpack.c.bf16 %v2610_v4, %v2608_v3  ;;  %v173_v14 = vld [vmem:[%s11991_s0 + $0x81] sm:$0xff]  ;;  %v2613_v24 = vld [vmem:[%s11992_s1 + $0x90] sm:$0xff] }
  0x13   :  { %v2607_v11 = vld [vmem:[%s11992_s1 + $0x60] sm:$0xff]  ;;  %v2612_v15 = vld [vmem:[%s11992_s1 + $0x88] sm:$0xff]  ;;  %v2614_v16 = vld [vmem:[%s11992_s1 + $0x98] sm:$0xff]  ;;  %v7120_v20 = vpack.i.bf16 %v173_v14, %v172_v9 }
  0x14   :  { %7071 = vrot.lane.b32.xlu0 %v7070_v28, %s7995_s26  ;;  %v300_v17 = vld [vmem:[%s11991_s0 + $0x7a] sm:$0xff]  ;;  %v301_v18 = vld [vmem:[%s11991_s0 + $0x82] sm:$0xff]  ;;  %v6632_v19 = vpack.c.bf16 %v2609_v12, %v2607_v11  ;;  %v6634_v22 = vpack.c.bf16 %v2614_v16, %v2612_v15  ;;  %v175_v30 = vld [vmem:[%s11991_s0 + $0x91] sm:$0xff] }
  0x15   :  { %7076 = vrot.lane.b32.xlu1 %v7075_v29, %s7994_s25  ;;  %6625 = vmatpush1.bf16.msra.mxu0 %v6624_v57  ;;  %v428_v21 = vld [vmem:[%s11991_s0 + $0x7b] sm:$0xff]  ;;  %v7125_v25 = vpack.i.bf16 %v301_v18, %v300_v17  ;;  %v429_v26 = vld [vmem:[%s11991_s0 + $0x83] sm:$0xff]  ;;  %v2617_v36 = vld [vmem:[%s11992_s1 + $0xb0] sm:$0xff] }
  0x16   :  { %6627 = vmatprep.subr.bf16.mxu0 %v6626_v62  ;;  %v2611_v23 = vld [vmem:[%s11992_s1 + $0x80] sm:$0xff]  ;;  %v2616_v27 = vld [vmem:[%s11992_s1 + $0xa8] sm:$0xff]  ;;  %v2618_v28 = vld [vmem:[%s11992_s1 + $0xb8] sm:$0xff]  ;;  %v7130_v32 = vpack.i.bf16 %v429_v26, %v428_v21 }
  0x17   :  { %v174_v29 = vld [vmem:[%s11991_s0 + $0x89] sm:$0xff]  ;;  %v6636_v31 = vpack.c.bf16 %v2613_v24, %v2611_v23  ;;  %v303_v38 = vld [vmem:[%s11991_s0 + $0x92] sm:$0xff]  ;;  %v176_v43 = vld [vmem:[%s11991_s0 + $0xa1] sm:$0xff] }
  0x18   :  { %7081 = vrot.lane.b32.xlu0 %v7080_v34, %s7996_s14  ;;  %v302_v33 = vld [vmem:[%s11991_s0 + $0x8a] sm:$0xff]  ;;  %v6638_v34 = vpack.c.bf16 %v2618_v28, %v2616_v27  ;;  %v7135_v37 = vpack.i.bf16 %v175_v30, %v174_v29  ;;  %v2622_v40 = vld [vmem:[%s11992_s1 + $0xd8] sm:$0xff]  ;;  %v304_v54 = vld [vmem:[%s11991_s0 + $0xa2] sm:$0xff] }
  0x19   :  { %7086 = vrot.lane.b32.xlu1 %v7085_v35, %s7995_s26  ;;  %6629 = vmatpush1.bf16.msra.mxu0 %v6628_v7  ;;  %v2615_v35 = vld [vmem:[%s11992_s1 + $0xa0] sm:$0xff]  ;;  %v2620_v39 = vld [vmem:[%s11992_s1 + $0xc8] sm:$0xff]  ;;  %v431_v42 = vld [vmem:[%s11991_s0 + $0x93] sm:$0xff]  ;;  %v7140_v45 = vpack.i.bf16 %v303_v38, %v302_v33 }
  0x1a   :  { %6631 = vmatprep.subr.bf16.mxu0 %v6630_v10  ;;  %v430_v41 = vld [vmem:[%s11991_s0 + $0x8b] sm:$0xff]  ;;  %v6642_v47 = vpack.c.bf16 %v2622_v40, %v2620_v39  ;;  %v2626_v52 = vld [vmem:[%s11992_s1 + $0xf8] sm:$0xff]  ;;  %v432_v58 = vld [vmem:[%s11991_s0 + $0xa3] sm:$0xff] }
  0x1b   :  { %v177_v46 = vld [vmem:[%s11991_s0 + $0xa9] sm:$0xff]  ;;  %v7145_v50 = vpack.i.bf16 %v431_v42, %v430_v41  ;;  %v178_v2 = vld [vmem:[%s11991_s0 + $0xb1] sm:$0xff]  ;;  %v179_v3 = vld [vmem:[%s11991_s0 + $0xb9] sm:$0xff] }
  0x1c   :  { %7091 = vrot.lane.b32.xlu0 %v7090_v44, %s7994_s25  ;;  %v6640_v44 = vpack.c.bf16 %v2617_v36, %v2615_v35  ;;  %v2621_v49 = vld [vmem:[%s11992_s1 + $0xd0] sm:$0xff]  ;;  %v2624_v51 = vld [vmem:[%s11992_s1 + $0xe8] sm:$0xff]  ;;  %v7150_v57 = vpack.i.bf16 %v177_v46, %v176_v43  ;;  %v7165_v10 = vpack.i.bf16 %v179_v3, %v178_v2  ;;  %v307_v11 = vld [vmem:[%s11991_s0 + $0xba] sm:$0xff] }
  0x1d   :  { %7096 = vrot.lane.b32.xlu1 %v7095_v48, %s7996_s14  ;;  %6633 = vmatpush1.bf16.msra.mxu0 %v6632_v19  ;;  %v2619_v48 = vld [vmem:[%s11992_s1 + $0xc0] sm:$0xff]  ;;  %v305_v55 = vld [vmem:[%s11991_s0 + $0xaa] sm:$0xff]  ;;  %v6646_v59 = vpack.c.bf16 %v2626_v52, %v2624_v51  ;;  %v306_v6 = vld [vmem:[%s11991_s0 + $0xb2] sm:$0xff] }
  0x1e   :  { %6635 = vmatprep.subr.bf16.mxu0 %v6634_v22  ;;  %v544_v53 = vld [vmem:[%s11991_s0 + $0x4] sm:$0xff]  ;;  %v6644_v56 = vpack.c.bf16 %v2621_v49, %v2619_v48  ;;  %v2625_v61 = vld [vmem:[%s11992_s1 + $0xf0] sm:$0xff]  ;;  %v7155_v62 = vpack.i.bf16 %v305_v55, %v304_v54  ;;  %v435_v15 = vld [vmem:[%s11991_s0 + $0xbb] sm:$0xff]  ;;  %v7170_v17 = vpack.i.bf16 %v307_v11, %v306_v6 }
  0x1f   :  { %6360 = vmatprep.mubr.msk.f32.mxu0 %vm2208_vm0, %v544_v53  ;;  %v433_v63 = vld [vmem:[%s11991_s0 + $0xab] sm:$0xff]  ;;  %v434_v14 = vld [vmem:[%s11991_s0 + $0xb3] sm:$0xff]  ;;  %v2631_v19 = vld [vmem:[%s11992_s1 + $0x120] sm:$0xff] }
  0x20   :  { %7101 = vrot.lane.b32.xlu0 %v7100_v60, %s7995_s26  ;;  %v2623_v60 = vld [vmem:[%s11992_s1 + $0xe0] sm:$0xff]  ;;  %v2628_v0 = vld [vmem:[%s11992_s1 + $0x108] sm:$0xff]  ;;  %v7160_v5 = vpack.i.bf16 %v433_v63, %v432_v58  ;;  %v2629_v9 = vld [vmem:[%s11992_s1 + $0x110] sm:$0xff]  ;;  %v7175_v21 = vpack.i.bf16 %v435_v15, %v434_v14 }
  0x21   :  { %7106 = vrot.lane.b32.xlu1 %v7105_v1, %s7994_s25  ;;  %6637 = vmatpush1.bf16.msra.mxu0 %v6636_v31  ;;  %v2630_v1 = vld [vmem:[%s11992_s1 + $0x118] sm:$0xff]  ;;  %v6648_v4 = vpack.c.bf16 %v2625_v61, %v2623_v60  ;;  %v2632_v12 = vld [vmem:[%s11992_s1 + $0x128] sm:$0xff] }
  0x22   :  { %6639 = vmatprep.subr.bf16.mxu0 %v6638_v34  ;;  %v6650_v7 = vpack.c.bf16 %v2630_v1, %v2628_v0  ;;  %v180_v22 = vld [vmem:[%s11991_s0 + $0xc9] sm:$0xff]  ;;  %v181_v23 = vld [vmem:[%s11991_s0 + $0xd1] sm:$0xff]  ;;  %v182_v31 = vld [vmem:[%s11991_s0 + $0xd9] sm:$0xff] }
  0x23   :  { %v308_v24 = vld [vmem:[%s11991_s0 + $0xca] sm:$0xff]  ;;  %v7180_v27 = vpack.i.bf16 %v181_v23, %v180_v22  ;;  %v437_v30 = vld [vmem:[%s11991_s0 + $0xd3] sm:$0xff]  ;;  %v311_v36 = vld [vmem:[%s11991_s0 + $0xe2] sm:$0xff] }
  0x24   :  { %7111 = vrot.lane.b32.xlu0 %v7110_v8, %s7996_s14  ;;  %v2627_v8 = vld [vmem:[%s11992_s1 + $0x100] sm:$0xff]  ;;  %v436_v29 = vld [vmem:[%s11991_s0 + $0xcb] sm:$0xff] }
  0x25   :  { %7116 = vrot.lane.b32.xlu1 %v7115_v13, %s7995_s26  ;;  %6641 = vmatpush1.bf16.msra.mxu0 %v6640_v44  ;;  %v2634_v13 = vld [vmem:[%s11992_s1 + $0x138] sm:$0xff]  ;;  %v6652_v16 = vpack.c.bf16 %v2629_v9, %v2627_v8  ;;  %v7190_v33 = vpack.i.bf16 %v437_v30, %v436_v29  ;;  %v439_v38 = vld [vmem:[%s11991_s0 + $0xe3] sm:$0xff]  ;;  %v446_v9 = vld [vmem:[%s11991_s0 + $0x12b] sm:$0xff] }
  0x26   :  { %6643 = vmatprep.subr.bf16.mxu0 %v6642_v47  ;;  %v6654_v18 = vpack.c.bf16 %v2634_v13, %v2632_v12  ;;  %v310_v35 = vld [vmem:[%s11991_s0 + $0xda] sm:$0xff]  ;;  %v184_v41 = vld [vmem:[%s11991_s0 + $0xf1] sm:$0xff]  ;;  %v314_v53 = vld [vmem:[%s11991_s0 + $0x102] sm:$0xff] }
  0x27   :  { %v7200_v39 = vpack.i.bf16 %v311_v36, %v310_v35  ;;  %v185_v42 = vld [vmem:[%s11991_s0 + $0xf9] sm:$0xff]  ;;  %v186_v49 = vld [vmem:[%s11991_s0 + $0x101] sm:$0xff]  ;;  %v315_v54 = vld [vmem:[%s11991_s0 + $0x10a] sm:$0xff] }
  0x28   :  { %7121 = vrot.lane.b32.xlu0 %v7120_v20, %s7994_s25  ;;  %v2633_v20 = vld [vmem:[%s11992_s1 + $0x130] sm:$0xff]  ;;  %v313_v44 = vld [vmem:[%s11991_s0 + $0xfa] sm:$0xff]  ;;  %v442_v55 = vld [vmem:[%s11991_s0 + $0x103] sm:$0xff] }
  0x29   :  { %7126 = vrot.lane.b32.xlu1 %v7125_v25, %s7996_s14  ;;  %6645 = vmatpush1.bf16.msra.mxu0 %v6644_v56  ;;  %v309_v25 = vld [vmem:[%s11991_s0 + $0xd2] sm:$0xff]  ;;  %v6656_v26 = vpack.c.bf16 %v2633_v20, %v2631_v19  ;;  %v441_v48 = vld [vmem:[%s11991_s0 + $0xfb] sm:$0xff]  ;;  %v445_v2 = vld [vmem:[%s11991_s0 + $0x123] sm:$0xff] }
  0x2a   :  { %6647 = vmatprep.subr.bf16.mxu0 %v6646_v59  ;;  %v7185_v28 = vpack.i.bf16 %v309_v25, %v308_v24  ;;  %v312_v43 = vld [vmem:[%s11991_s0 + $0xf2] sm:$0xff]  ;;  %v189_v60 = vld [vmem:[%s11991_s0 + $0x121] sm:$0xff]  ;;  %v190_v3 = vld [vmem:[%s11991_s0 + $0x129] sm:$0xff] }
  0x2b   :  { %v7215_v46 = vpack.i.bf16 %v313_v44, %v312_v43  ;;  %v440_v47 = vld [vmem:[%s11991_s0 + $0xf3] sm:$0xff]  ;;  %v443_v56 = vld [vmem:[%s11991_s0 + $0x10b] sm:$0xff]  ;;  %v444_v1 = vld [vmem:[%s11991_s0 + $0x11b] sm:$0xff] }
  0x2c   :  { %7131 = vrot.lane.b32.xlu0 %v7130_v32, %s7995_s26  ;;  %v183_v32 = vld [vmem:[%s11991_s0 + $0xe1] sm:$0xff]  ;;  %v7220_v51 = vpack.i.bf16 %v441_v48, %v440_v47  ;;  %v7235_v58 = vpack.i.bf16 %v443_v56, %v442_v55  ;;  %v188_v59 = vld [vmem:[%s11991_s0 + $0x119] sm:$0xff]  ;;  %v193_v14 = vld [vmem:[%s11991_s0 + $0x149] sm:$0xff] }
  0x2d   :  { %7136 = vrot.lane.b32.xlu1 %v7135_v37, %s7994_s25  ;;  %6649 = vmatpush1.bf16.msra.mxu0 %v6648_v4  ;;  %v7195_v34 = vpack.i.bf16 %v183_v32, %v182_v31  ;;  %v438_v37 = vld [vmem:[%s11991_s0 + $0xdb] sm:$0xff]  ;;  %v7240_v63 = vpack.i.bf16 %v189_v60, %v188_v59  ;;  %v191_v4 = vld [vmem:[%s11991_s0 + $0x131] sm:$0xff]  ;;  %v448_v19 = vld [vmem:[%s11991_s0 + $0x143] sm:$0xff] }
  0x2e   :  { %6651 = vmatprep.subr.bf16.mxu0 %v6650_v7  ;;  %v7205_v40 = vpack.i.bf16 %v439_v38, %v438_v37  ;;  %v316_v61 = vld [vmem:[%s11991_s0 + $0x11a] sm:$0xff]  ;;  %v7255_v6 = vpack.i.bf16 %v191_v4, %v190_v3  ;;  %v318_v7 = vld [vmem:[%s11991_s0 + $0x12a] sm:$0xff]  ;;  %v319_v8 = vld [vmem:[%s11991_s0 + $0x132] sm:$0xff] }
  0x2f   :  { %v7260_v11 = vpack.i.bf16 %v319_v8, %v318_v7  ;;  %v192_v13 = vld [vmem:[%s11991_s0 + $0x141] sm:$0xff]  ;;  %v449_v20 = vld [vmem:[%s11991_s0 + $0x14b] sm:$0xff]  ;;  %v195_v22 = vld [vmem:[%s11991_s0 + $0x159] sm:$0xff] }
  0x30   :  { %7141 = vrot.lane.b32.xlu0 %v7140_v45, %s7996_s14  ;;  %v7210_v45 = vpack.i.bf16 %v185_v42, %v184_v41  ;;  %v320_v15 = vld [vmem:[%s11991_s0 + $0x142] sm:$0xff]  ;;  %v7280_v23 = vpack.i.bf16 %v449_v20, %v448_v19  ;;  %v322_v25 = vld [vmem:[%s11991_s0 + $0x152] sm:$0xff]  ;;  %v326_v43 = vld [vmem:[%s11991_s0 + $0x17a] sm:$0xff] }
  0x31   :  { %7146 = vrot.lane.b32.xlu1 %v7145_v50, %s7995_s26  ;;  %6653 = vmatpush1.bf16.msra.mxu0 %v6652_v16  ;;  %v187_v50 = vld [vmem:[%s11991_s0 + $0x109] sm:$0xff]  ;;  %v197_v32 = vld [vmem:[%s11991_s0 + $0x171] sm:$0xff]  ;;  %v457_v60 = vld [vmem:[%s11991_s0 + $0x19b] sm:$0xff] }
  0x32   :  { %6655 = vmatprep.subr.bf16.mxu0 %v6654_v18  ;;  %v7225_v52 = vpack.i.bf16 %v187_v50, %v186_v49  ;;  %v321_v16 = vld [vmem:[%s11991_s0 + $0x14a] sm:$0xff]  ;;  %v453_v38 = vld [vmem:[%s11991_s0 + $0x173] sm:$0xff]  ;;  %v327_v44 = vld [vmem:[%s11991_s0 + $0x182] sm:$0xff] }
  0x33   :  { %v7275_v18 = vpack.i.bf16 %v321_v16, %v320_v15  ;;  %v196_v31 = vld [vmem:[%s11991_s0 + $0x169] sm:$0xff]  ;;  %v7320_v47 = vpack.i.bf16 %v327_v44, %v326_v43  ;;  %v200_v49 = vld [vmem:[%s11991_s0 + $0x191] sm:$0xff]  ;;  %v201_v50 = vld [vmem:[%s11991_s0 + $0x199] sm:$0xff] }
  0x34   :  { %7151 = vrot.lane.b32.xlu0 %v7150_v57, %s7994_s25  ;;  %v7230_v57 = vpack.i.bf16 %v315_v54, %v314_v53  ;;  %v7300_v35 = vpack.i.bf16 %v197_v32, %v196_v31  ;;  %v452_v37 = vld [vmem:[%s11991_s0 + $0x16b] sm:$0xff]  ;;  %v329_v53 = vld [vmem:[%s11991_s0 + $0x19a] sm:$0xff]  ;;  %v7330_v56 = vpack.i.bf16 %v201_v50, %v200_v49  ;;  %v458_v19 = vld [vmem:[%s11991_s0 + $0x1a3] sm:$0xff] }
  0x35   :  { %7156 = vrot.lane.b32.xlu1 %v7155_v62, %s7996_s14  ;;  %6657 = vmatpush1.bf16.msra.mxu0 %v6656_v26  ;;  %v317_v62 = vld [vmem:[%s11991_s0 + $0x122] sm:$0xff]  ;;  %v323_v26 = vld [vmem:[%s11991_s0 + $0x15a] sm:$0xff]  ;;  %v7310_v41 = vpack.i.bf16 %v453_v38, %v452_v37  ;;  %v545_v8 = vld [vmem:[%s11991_s0 + $0xc] sm:$0xff] }
  0x36   :  { %v7245_v0 = vpack.i.bf16 %v317_v62, %v316_v61  ;;  %v7290_v29 = vpack.i.bf16 %v323_v26, %v322_v25  ;;  %v456_v59 = vld [vmem:[%s11991_s0 + $0x193] sm:$0xff]  ;;  %v459_v20 = vld [vmem:[%s11991_s0 + $0x1ab] sm:$0xff]  ;;  %v205_v31 = vld [vmem:[%s11991_s0 + $0x1c1] sm:$0xff] }
  0x37   :  { %v546_v25 = vld [vmem:[%s11991_s0 + $0x14] sm:$0xff]  ;;  %v36_v44 = vld [vmem:[%s11991_s0 + $0x28] sm:$0xff] }
  0x38   :  { %7161 = vrot.lane.b32.xlu0 %v7160_v5, %s7995_s26  ;;  %v7250_v5 = vpack.i.bf16 %v445_v2, %v444_v1  ;;  %v203_v1 = vld [vmem:[%s11991_s0 + $0x1a9] sm:$0xff] }
  0x39   :  { %7166 = vrot.lane.b32.xlu1 %v7165_v10, %s7994_s25  ;;  %v447_v10 = vld [vmem:[%s11991_s0 + $0x133] sm:$0xff]  ;;  %v206_v50 = vld [vmem:[%s11991_s0 + $0x1c9] sm:$0xff] }
  0x3a   :  { %v7265_v12 = vpack.i.bf16 %v447_v10, %v446_v9  ;;  %v7340_v9 = vpack.i.bf16 %v457_v60, %v456_v59  ;;  %v37_v60 = vld [vmem:[%s11991_s0 + $0x30] sm:$0xff] }
  0x3c   :  { %7171 = vrot.lane.b32.xlu0 %v7170_v17, %s7996_s14  ;;  %v7270_v17 = vpack.i.bf16 %v193_v14, %v192_v13  ;;  %v330_v13 = vld [vmem:[%s11991_s0 + $0x1a2] sm:$0xff]  ;;  %v331_v14 = vld [vmem:[%s11991_s0 + $0x1aa] sm:$0xff] }
  0x3d   :  { %7176 = vrot.lane.b32.xlu1 %v7175_v21, %s7995_s26  ;;  %v194_v21 = vld [vmem:[%s11991_s0 + $0x151] sm:$0xff] }
  0x3e   :  { %v7285_v24 = vpack.i.bf16 %v195_v22, %v194_v21 }
  0x40   :  { %7181 = vrot.lane.b32.xlu0 %v7180_v27, %s7994_s25  ;;  %v450_v27 = vld [vmem:[%s11991_s0 + $0x153] sm:$0xff] }
  0x41   :  { %7186 = vrot.lane.b32.xlu1 %v7185_v28, %s7996_s14  ;;  %v451_v28 = vld [vmem:[%s11991_s0 + $0x15b] sm:$0xff] }
  0x42   :  { %v7295_v30 = vpack.i.bf16 %v451_v28, %v450_v27  ;;  %v7350_v27 = vpack.i.bf16 %v331_v14, %v330_v13  ;;  %v35_v28 = vld [vmem:[%s11991_s0 + $0x18] sm:$0xff]  ;;  %v208_v13 = vld [vmem:[%s11991_s0 + $0x1e1] sm:$0xff]  ;;  %v209_v14 = vld [vmem:[%s11991_s0 + $0x1e9] sm:$0xff] }
  0x44   :  { %7191 = vrot.lane.b32.xlu0 %v7190_v33, %s7995_s26  ;;  %v324_v33 = vld [vmem:[%s11991_s0 + $0x16a] sm:$0xff] }
  0x45   :  { %7196 = vrot.lane.b32.xlu1 %v7195_v34, %s7994_s25  ;;  %v325_v34 = vld [vmem:[%s11991_s0 + $0x172] sm:$0xff] }
  0x46   :  { %v7305_v36 = vpack.i.bf16 %v325_v34, %v324_v33 }
  0x48   :  { %7201 = vrot.lane.b32.xlu0 %v7200_v39, %s7996_s14  ;;  %v198_v39 = vld [vmem:[%s11991_s0 + $0x179] sm:$0xff] }
  0x49   :  { %7206 = vrot.lane.b32.xlu1 %v7205_v40, %s7995_s26  ;;  %v199_v40 = vld [vmem:[%s11991_s0 + $0x181] sm:$0xff] }
  0x4a   :  { %v7315_v42 = vpack.i.bf16 %v199_v40, %v198_v39 }
  0x4c   :  { %7211 = vrot.lane.b32.xlu0 %v7210_v45, %s7994_s25  ;;  %v454_v45 = vld [vmem:[%s11991_s0 + $0x17b] sm:$0xff] }
  0x4d   :  { %7216 = vrot.lane.b32.xlu1 %v7215_v46, %s7996_s14  ;;  %v455_v46 = vld [vmem:[%s11991_s0 + $0x183] sm:$0xff] }
  0x4e   :  { %v7325_v48 = vpack.i.bf16 %v455_v46, %v454_v45  ;;  %v460_v46 = vld [vmem:[%s11991_s0 + $0x1bb] sm:$0xff] }
  0x50   :  { %7221 = vrot.lane.b32.xlu0 %v7220_v51, %s7995_s26 }
  0x51   :  { %7226 = vrot.lane.b32.xlu1 %v7225_v52, %s7994_s25  ;;  %v328_v52 = vld [vmem:[%s11991_s0 + $0x192] sm:$0xff] }
  0x54   :  { %7231 = vrot.lane.b32.xlu0 %v7230_v57, %s7996_s14  ;;  %v32_v57 = vld [vmem:[%s11991_s0] sm:$0xff] }
  0x55   :  { %7236 = vrot.lane.b32.xlu1 %v7235_v58, %s7995_s26  ;;  %v7335_v58 = vpack.i.bf16 %v329_v53, %v328_v52 }
  0x58   :  { %7241 = vrot.lane.b32.xlu0 %v7240_v63, %s7994_s25 }
  0x59   :  { %7246 = vrot.lane.b32.xlu1 %v7245_v0, %s7996_s14  ;;  %v202_v0 = vld [vmem:[%s11991_s0 + $0x1a1] sm:$0xff] }
  0x5c   :  { %7251 = vrot.lane.b32.xlu0 %v7250_v5, %s7995_s26  ;;  %v33_v5 = vld [vmem:[%s11991_s0 + $0x8] sm:$0xff] }
  0x5d   :  { %7256 = vrot.lane.b32.xlu1 %v7255_v6, %s7994_s25 }
  0x60   :  { %7261 = vrot.lane.b32.xlu0 %v7260_v11, %s7996_s14  ;;  %v34_v11 = vld [vmem:[%s11991_s0 + $0x10] sm:$0xff] }
  0x61   :  { %7266 = vrot.lane.b32.xlu1 %v7265_v12, %s7995_s26  ;;  %v7345_v12 = vpack.i.bf16 %v203_v1, %v202_v0 }
  0x64   :  { %7271 = vrot.lane.b32.xlu0 %v7270_v17, %s7994_s25 }
  0x65   :  { %7276 = vrot.lane.b32.xlu1 %v7275_v18, %s7996_s14 }
  0x68   :  { %7281 = vrot.lane.b32.xlu0 %v7280_v23, %s7995_s26 }
  0x69   :  { %7286 = vrot.lane.b32.xlu1 %v7285_v24, %s7994_s25 }
  0x6c   :  { %7291 = vrot.lane.b32.xlu0 %v7290_v29, %s7996_s14  ;;  %v7355_v29 = vpack.i.bf16 %v459_v20, %v458_v19 }
  0x6d   :  { %7296 = vrot.lane.b32.xlu1 %v7295_v30, %s7995_s26  ;;  %v204_v30 = vld [vmem:[%s11991_s0 + $0x1b9] sm:$0xff] }
  0x6e   :  { %v7360_v43 = vpack.i.bf16 %v205_v31, %v204_v30  ;;  %v465_v30 = vld [vmem:[%s11991_s0 + $0x1eb] sm:$0xff] }
  0x70   :  { %7301 = vrot.lane.b32.xlu0 %v7300_v35, %s7994_s25  ;;  %v332_v35 = vld [vmem:[%s11991_s0 + $0x1ba] sm:$0xff] }
  0x71   :  { %7306 = vrot.lane.b32.xlu1 %v7305_v36, %s7996_s14  ;;  %v333_v36 = vld [vmem:[%s11991_s0 + $0x1c2] sm:$0xff] }
  0x72   :  { %v7365_v45 = vpack.i.bf16 %v333_v36, %v332_v35 }
  0x74   :  { %7311 = vrot.lane.b32.xlu0 %v7310_v41, %s7995_s26  ;;  %v547_v41 = vld [vmem:[%s11991_s0 + $0x1c] sm:$0xff] }
  0x75   :  { %7316 = vrot.lane.b32.xlu1 %v7315_v42, %s7994_s25 }
  0x76   :  { %v7032_v51 = vpop.permute.xlu0 %7031 }
  0x77   :  { %v7042_v54 = vpop.permute.xlu1 %7041  ;;  %v7033_v55 = vunpack.i.l.bf16 %v7032_v51  ;;  %v7034_v61 = vunpack.i.h.bf16 %v7032_v51  ;;  %v207_v51 = vld [vmem:[%s11991_s0 + $0x1d1] sm:$0xff] }
  0x78   :  { %7321 = vrot.lane.b32.xlu0 %v7320_v47, %s7996_s14  ;;  %v7043_v62 = vunpack.i.l.bf16 %v7042_v54  ;;  %v7044_v15 = vunpack.i.h.bf16 %v7042_v54  ;;  %v461_v47 = vld [vmem:[%s11991_s0 + $0x1c3] sm:$0xff] }
  0x79   :  { %7326 = vrot.lane.b32.xlu1 %v7325_v48, %s7995_s26  ;;  %v2209_v7 = vsel %vm2208_vm0, %v32_v57, %v7033_v55  ;;  %v2210_v18 = vsel %vm2208_vm0, %v33_v5, %v7034_v61  ;;  %v7375_v61 = vpack.i.bf16 %v207_v51, %v206_v50 }
  0x7a   :  { %v7037_v63 = vpop.permute.xlu0 %7036 }
  0x7b   :  { %v7039_v2 = vunpack.i.h.bf16 %v7037_v63  ;;  %v7038_v3 = vunpack.i.l.bf16 %v7037_v63  ;;  %v7047_v4 = vpop.permute.xlu1 %7046  ;;  %v335_v63 = vld [vmem:[%s11991_s0 + $0x1d2] sm:$0xff] }
  0x7c   :  { %v7048_v6 = vunpack.i.l.bf16 %v7047_v4  ;;  %7331 = vrot.lane.b32.xlu0 %v7330_v56, %s7994_s25  ;;  %v7049_v24 = vunpack.i.h.bf16 %v7047_v4  ;;  %v548_v56 = vld [vmem:[%s11991_s0 + $0x2c] sm:$0xff] }
  0x7d   :  { %v2338_v10 = vsel %vm2337_vm1, %v2209_v7, %v7038_v3  ;;  %7336 = vrot.lane.b32.xlu1 %v7335_v58, %s7996_s14  ;;  %v2339_v23 = vsel %vm2337_vm1, %v2210_v18, %v7039_v2  ;;  %v7370_v58 = vpack.i.bf16 %v461_v47, %v460_v46  ;;  %v462_v2 = vld [vmem:[%s11991_s0 + $0x1cb] sm:$0xff]  ;;  %v463_v3 = vld [vmem:[%s11991_s0 + $0x1d3] sm:$0xff] }
  0x7e   :  { %v2467_v16 = vsel %vm2466_vm2, %v2338_v10, %v7043_v62  ;;  %v7052_v17 = vpop.permute.xlu0 %7051  ;;  %v2211_v26 = vsel %vm2208_vm0, %v34_v11, %v7048_v6  ;;  %v2468_v33 = vsel %vm2466_vm2, %v2339_v23, %v7044_v15  ;;  %v2212_v42 = vsel %vm2208_vm0, %v35_v28, %v7049_v24  ;;  %v334_v62 = vld [vmem:[%s11991_s0 + $0x1ca] sm:$0xff]  ;;  %v38_v11 = vld [vmem:[%s11991_s0 + $0x38] sm:$0xff] }
  0x7f   :  { %3084 = vmatmul.mubr.f32.vlgmr.msra.gmra.mrb[0].mxu0 %v2467_v16  ;;  %v7053_v21 = vunpack.i.l.bf16 %v7052_v17  ;;  %v7057_v22 = vpop.permute.xlu1 %7056  ;;  %v7054_v37 = vunpack.i.h.bf16 %v7052_v17  ;;  %v7380_v10 = vpack.i.bf16 %v335_v63, %v334_v62  ;;  %v336_v17 = vld [vmem:[%s11991_s0 + $0x1e2] sm:$0xff]  ;;  %v337_v18 = vld [vmem:[%s11991_s0 + $0x1ea] sm:$0xff] }
  0x80   :  { %6361 = vmatprep.mubr.msk.f32.mxu0 %vm2208_vm0, %v545_v8  ;;  %7341 = vrot.lane.b32.xlu0 %v7340_v9, %s7995_s26  ;;  %v7058_v32 = vunpack.i.l.bf16 %v7057_v22  ;;  %v7059_v48 = vunpack.i.h.bf16 %v7057_v22  ;;  %v549_v8 = vld [vmem:[%s11991_s0 + $0x34] sm:$0xff]  ;;  %v550_v23 = vld [vmem:[%s11991_s0 + $0x3c] sm:$0xff]  ;;  %v7395_v28 = vpack.i.bf16 %v337_v18, %v336_v17 }
  0x81   :  { %7346 = vrot.lane.b32.xlu1 %v7345_v12, %s7994_s25  ;;  %v2340_v38 = vsel %vm2337_vm1, %v2211_v26, %v7053_v21  ;;  %v2341_v54 = vsel %vm2337_vm1, %v2212_v42, %v7054_v37  ;;  %v7385_v12 = vpack.i.bf16 %v463_v3, %v462_v2  ;;  %v40_v42 = vld [vmem:[%s11991_s0 + $0x50] sm:$0xff] }
  0x82   :  { %v7062_v34 = vpop.permute.xlu0 %7061  ;;  %v2469_v49 = vsel %vm2466_vm2, %v2340_v38, %v7058_v32  ;;  %v2470_v1 = vsel %vm2466_vm2, %v2341_v54, %v7059_v48  ;;  %v466_v48 = vld [vmem:[%s11991_s0 + $0x1f3] sm:$0xff] }
  0x83   :  { %3090 = vmatmul.mubr.f32.gmra.mrb[2].mxu0 %v2468_v33  ;;  %v7067_v39 = vpop.permute.xlu1 %7066  ;;  %v7063_v40 = vunpack.i.l.bf16 %v7062_v34  ;;  %v7064_v55 = vunpack.i.h.bf16 %v7062_v34  ;;  %v210_v33 = vld [vmem:[%s11991_s0 + $0x1f1] sm:$0xff]  ;;  %v211_v34 = vld [vmem:[%s11991_s0 + $0x1f9] sm:$0xff] }
  0x84   :  { %6362 = vmatprep.mubr.msk.f32.mxu0 %vm2208_vm0, %v546_v25  ;;  %7351 = vrot.lane.b32.xlu0 %v7350_v27, %s7996_s14  ;;  %v7068_v52 = vunpack.i.l.bf16 %v7067_v39  ;;  %v7069_v4 = vunpack.i.h.bf16 %v7067_v39  ;;  %v7390_v25 = vpack.i.bf16 %v209_v14, %v208_v13  ;;  %v39_v27 = vld [vmem:[%s11991_s0 + $0x40] sm:$0xff]  ;;  %v552_v54 = vld [vmem:[%s11991_s0 + $0x54] sm:$0xff] }
  0x85   :  { %7356 = vrot.lane.b32.xlu1 %v7355_v29, %s7995_s26  ;;  %v2213_v57 = vsel %vm2208_vm0, %v36_v44, %v7063_v40  ;;  %v2214_v9 = vsel %vm2208_vm0, %v37_v60, %v7064_v55  ;;  %v464_v29 = vld [vmem:[%s11991_s0 + $0x1e3] sm:$0xff]  ;;  %v338_v44 = vld [vmem:[%s11991_s0 + $0x1f2] sm:$0xff] }
  0x86   :  { %v7072_v53 = vpop.permute.xlu0 %7071  ;;  %v2342_v5 = vsel %vm2337_vm1, %v2213_v57, %v7068_v52  ;;  %v2343_v21 = vsel %vm2337_vm1, %v2214_v9, %v7069_v4  ;;  %v551_v39 = vld [vmem:[%s11991_s0 + $0x44] sm:$0xff] }
  0x87   :  { %3096 = vmatmul.mubr.f32.gmra.mrb[4].mxu0 %v2469_v49  ;;  %v7077_v59 = vpop.permute.xlu1 %7076  ;;  %v7073_v0 = vunpack.i.l.bf16 %v7072_v53  ;;  %v7074_v15 = vunpack.i.h.bf16 %v7072_v53  ;;  %v467_v49 = vld [vmem:[%s11991_s0 + $0x1fb] sm:$0xff]  ;;  %v212_v60 = vld [vmem:[%s11991_s0 + $0x209] sm:$0xff] }
  0x88   :  { %6363 = vmatprep.mubr.msk.f32.mxu0 %vm2208_vm0, %v547_v41  ;;  %7361 = vrot.lane.b32.xlu0 %v7360_v43, %s7994_s25  ;;  %v7078_v7 = vunpack.i.l.bf16 %v7077_v59  ;;  %v7079_v22 = vunpack.i.h.bf16 %v7077_v59  ;;  %v7400_v41 = vpack.i.bf16 %v465_v30, %v464_v29  ;;  %v7405_v43 = vpack.i.bf16 %v211_v34, %v210_v33  ;;  %v42_v9 = vld [vmem:[%s11991_s0 + $0x60] sm:$0xff] }
  0x89   :  { %7366 = vrot.lane.b32.xlu1 %v7365_v45, %s7996_s14  ;;  %v2471_v16 = vsel %vm2466_vm2, %v2342_v5, %v7073_v0  ;;  %v2472_v32 = vsel %vm2466_vm2, %v2343_v21, %v7074_v15  ;;  %v339_v45 = vld [vmem:[%s11991_s0 + $0x1fa] sm:$0xff]  ;;  %v7415_v59 = vpack.i.bf16 %v467_v49, %v466_v48  ;;  %v340_v0 = vld [vmem:[%s11991_s0 + $0x20a] sm:$0xff] }
  0x8a   :  { %v7082_v6 = vpop.permute.xlu0 %7081  ;;  %v2215_v24 = vsel %vm2208_vm0, %v38_v11, %v7078_v7  ;;  %v2216_v40 = vsel %vm2208_vm0, %v39_v27, %v7079_v22  ;;  %v468_v11 = vld [vmem:[%s11991_s0 + $0x20b] sm:$0xff]  ;;  %v214_v15 = vld [vmem:[%s11991_s0 + $0x219] sm:$0xff] }
  0x8b   :  { %3102 = vmatmul.mubr.f32.gmra.mrb[6].mxu0 %v2470_v1  ;;  %v7083_v19 = vunpack.i.l.bf16 %v7082_v6  ;;  %v7087_v20 = vpop.permute.xlu1 %7086  ;;  %v7084_v35 = vunpack.i.h.bf16 %v7082_v6  ;;  %v341_v1 = vld [vmem:[%s11991_s0 + $0x212] sm:$0xff]  ;;  %v553_v6 = vld [vmem:[%s11991_s0 + $0x5c] sm:$0xff]  ;;  %v554_v21 = vld [vmem:[%s11991_s0 + $0x64] sm:$0xff] }
  0x8c   :  { %6364 = vmatprep.mubr.msk.f32.mxu0 %vm2208_vm0, %v548_v56  ;;  %7371 = vrot.lane.b32.xlu0 %v7370_v58, %s7995_s26  ;;  %v7088_v31 = vunpack.i.l.bf16 %v7087_v20  ;;  %v7089_v46 = vunpack.i.h.bf16 %v7087_v20  ;;  %v7410_v56 = vpack.i.bf16 %v339_v45, %v338_v44  ;;  %v41_v58 = vld [vmem:[%s11991_s0 + $0x58] sm:$0xff] }
  0x8d   :  { %7376 = vrot.lane.b32.xlu1 %v7375_v61, %s7994_s25  ;;  %v2344_v36 = vsel %vm2337_vm1, %v2215_v24, %v7083_v19  ;;  %v2345_v52 = vsel %vm2337_vm1, %v2216_v40, %v7084_v35  ;;  %v213_v61 = vld [vmem:[%s11991_s0 + $0x211] sm:$0xff]  ;;  %v342_v27 = vld [vmem:[%s11991_s0 + $0x21a] sm:$0xff] }
  0x8e   :  { %v7092_v26 = vpop.permute.xlu0 %7091  ;;  %v2473_v47 = vsel %vm2466_vm2, %v2344_v36, %v7088_v31  ;;  %v2474_v63 = vsel %vm2466_vm2, %v2345_v52, %v7089_v46  ;;  %v470_v31 = vld [vmem:[%s11991_s0 + $0x21b] sm:$0xff]  ;;  %v344_v46 = vld [vmem:[%s11991_s0 + $0x232] sm:$0xff] }
  0x8f   :  { %3108 = vmatmul.mubr.f32.gmra.mrb[8].mxu0 %v2471_v16  ;;  %v7097_v37 = vpop.permute.xlu1 %7096  ;;  %v7093_v38 = vunpack.i.l.bf16 %v7092_v26  ;;  %v7094_v53 = vunpack.i.h.bf16 %v7092_v26  ;;  %v215_v16 = vld [vmem:[%s11991_s0 + $0x221] sm:$0xff]  ;;  %v44_v40 = vld [vmem:[%s11991_s0 + $0x78] sm:$0xff] }
  0x90   :  { %6365 = vmatprep.mubr.msk.f32.mxu0 %vm2208_vm0, %v549_v8  ;;  %7381 = vrot.lane.b32.xlu0 %v7380_v10, %s7996_s14  ;;  %v7098_v50 = vunpack.i.l.bf16 %v7097_v37  ;;  %v7099_v2 = vunpack.i.h.bf16 %v7097_v37  ;;  %v7420_v8 = vpack.i.bf16 %v213_v61, %v212_v60  ;;  %v7425_v10 = vpack.i.bf16 %v341_v1, %v340_v0  ;;  %v555_v37 = vld [vmem:[%s11991_s0 + $0x6c] sm:$0xff]  ;;  %v556_v52 = vld [vmem:[%s11991_s0 + $0x7c] sm:$0xff] }
  0x91   :  { %7386 = vrot.lane.b32.xlu1 %v7385_v12, %s7995_s26  ;;  %v2217_v55 = vsel %vm2208_vm0, %v40_v42, %v7093_v38  ;;  %v2218_v7 = vsel %vm2208_vm0, %v41_v58, %v7094_v53  ;;  %v469_v12 = vld [vmem:[%s11991_s0 + $0x213] sm:$0xff]  ;;  %v7435_v26 = vpack.i.bf16 %v215_v16, %v214_v15 }
  0x92   :  { %v7102_v51 = vpop.permute.xlu0 %7101  ;;  %v2346_v3 = vsel %vm2337_vm1, %v2217_v55, %v7098_v50  ;;  %v2347_v19 = vsel %vm2337_vm1, %v2218_v7, %v7099_v2  ;;  %v216_v42 = vld [vmem:[%s11991_s0 + $0x231] sm:$0xff]  ;;  %v46_v7 = vld [vmem:[%s11991_s0 + $0x88] sm:$0xff] }
  0x93   :  { %3114 = vmatmul.mubr.f32.gmra.mrb[10].mxu0 %v2472_v32  ;;  %v7107_v57 = vpop.permute.xlu1 %7106  ;;  %v7103_v62 = vunpack.i.l.bf16 %v7102_v51  ;;  %v7104_v13 = vunpack.i.h.bf16 %v7102_v51  ;;  %v471_v32 = vld [vmem:[%s11991_s0 + $0x223] sm:$0xff]  ;;  %v472_v58 = vld [vmem:[%s11991_s0 + $0x233] sm:$0xff] }
  0x94   :  { %6366 = vmatprep.mubr.msk.f32.mxu0 %vm2208_vm0, %v550_v23  ;;  %7391 = vrot.lane.b32.xlu0 %v7390_v25, %s7994_s25  ;;  %v7108_v5 = vunpack.i.l.bf16 %v7107_v57  ;;  %v7109_v20 = vunpack.i.h.bf16 %v7107_v57  ;;  %v7430_v23 = vpack.i.bf16 %v469_v12, %v468_v11  ;;  %v43_v25 = vld [vmem:[%s11991_s0 + $0x68] sm:$0xff] }
  0x95   :  { %7396 = vrot.lane.b32.xlu1 %v7395_v28, %s7996_s14  ;;  %v2475_v14 = vsel %vm2466_vm2, %v2346_v3, %v7103_v62  ;;  %v343_v28 = vld [vmem:[%s11991_s0 + $0x222] sm:$0xff]  ;;  %v2476_v30 = vsel %vm2466_vm2, %v2347_v19, %v7104_v13  ;;  %v558_v19 = vld [vmem:[%s11991_s0 + $0x8c] sm:$0xff] }
  0x96   :  { %v7112_v4 = vpop.permute.xlu0 %7111  ;;  %v2219_v22 = vsel %vm2208_vm0, %v42_v9, %v7108_v5  ;;  %v2220_v38 = vsel %vm2208_vm0, %v43_v25, %v7109_v20  ;;  %v218_v62 = vld [vmem:[%s11991_s0 + $0x241] sm:$0xff]  ;;  %v220_v25 = vld [vmem:[%s11991_s0 + $0x259] sm:$0xff] }
  0x97   :  { %3120 = vmatmul.mubr.f32.gmra.mrb[12].mxu0 %v2473_v47  ;;  %v7113_v17 = vunpack.i.l.bf16 %v7112_v4  ;;  %v7117_v18 = vpop.permute.xlu1 %7116  ;;  %v7114_v33 = vunpack.i.h.bf16 %v7112_v4  ;;  %v345_v47 = vld [vmem:[%s11991_s0 + $0x23a] sm:$0xff]  ;;  %v557_v4 = vld [vmem:[%s11991_s0 + $0x84] sm:$0xff] }
  0x98   :  { %6367 = vmatprep.mubr.msk.f32.mxu0 %vm2208_vm0, %v551_v39  ;;  %7401 = vrot.lane.b32.xlu0 %v7400_v41, %s7995_s26  ;;  %v7118_v29 = vunpack.i.l.bf16 %v7117_v18  ;;  %v7440_v39 = vpack.i.bf16 %v343_v28, %v342_v27  ;;  %v7445_v41 = vpack.i.bf16 %v471_v32, %v470_v31  ;;  %v7119_v44 = vunpack.i.h.bf16 %v7117_v18  ;;  %v346_v9 = vld [vmem:[%s11991_s0 + $0x242] sm:$0xff] }
  0x99   :  { %7406 = vrot.lane.b32.xlu1 %v7405_v43, %s7994_s25  ;;  %v2348_v34 = vsel %vm2337_vm1, %v2219_v22, %v7113_v17  ;;  %v217_v43 = vld [vmem:[%s11991_s0 + $0x239] sm:$0xff]  ;;  %v2349_v50 = vsel %vm2337_vm1, %v2220_v38, %v7114_v33  ;;  %v7455_v57 = vpack.i.bf16 %v345_v47, %v344_v46  ;;  %v474_v13 = vld [vmem:[%s11991_s0 + $0x243] sm:$0xff] }
  0x9a   :  { %v7122_v24 = vpop.permute.xlu0 %7121  ;;  %v2477_v45 = vsel %vm2466_vm2, %v2348_v34, %v7118_v29  ;;  %v2478_v61 = vsel %vm2466_vm2, %v2349_v50, %v7119_v44  ;;  %v348_v29 = vld [vmem:[%s11991_s0 + $0x25a] sm:$0xff]  ;;  %v4787_v46 = vld [vmem:[%s11993_s3 + $0x8] sm:$0xff] }
  0x9b   :  { %3126 = vmatmul.mubr.f32.gmra.mrb[14].mxu0 %v2474_v63  ;;  %v7127_v35 = vpop.permute.xlu1 %7126  ;;  %v7123_v36 = vunpack.i.l.bf16 %v7122_v24  ;;  %v7124_v51 = vunpack.i.h.bf16 %v7122_v24  ;;  %v219_v63 = vld [vmem:[%s11991_s0 + $0x249] sm:$0xff]  ;;  %v4789_v47 = vld [vmem:[%s11993_s3 + $0x18] sm:$0xff] }
  0x9c   :  { %6368 = vmatprep.mubr.msk.f32.mxu0 %vm2208_vm0, %v552_v54  ;;  %7411 = vrot.lane.b32.xlu0 %v7410_v56, %s7996_s14  ;;  %v7128_v48 = vunpack.i.l.bf16 %v7127_v35  ;;  %v7450_v54 = vpack.i.bf16 %v217_v43, %v216_v42  ;;  %v45_v56 = vld [vmem:[%s11991_s0 + $0x80] sm:$0xff]  ;;  %v7129_v0 = vunpack.i.h.bf16 %v7127_v35  ;;  %v559_v35 = vld [vmem:[%s11991_s0 + $0x94] sm:$0xff]  ;;  %v222_v42 = vld [vmem:[%s11991_s0 + $0x269] sm:$0xff] }
  0x9d   :  { %7416 = vrot.lane.b32.xlu1 %v7415_v59, %s7995_s26  ;;  %v2221_v53 = vsel %vm2208_vm0, %v44_v40, %v7123_v36  ;;  %v473_v59 = vld [vmem:[%s11991_s0 + $0x23b] sm:$0xff]  ;;  %v2222_v5 = vsel %vm2208_vm0, %v45_v56, %v7124_v51  ;;  %v6658_v51 = vpack.c.bf16 %v4789_v47, %v4787_v46  ;;  %v4799_v47 = vld [vmem:[%s11993_s3 + $0x68] sm:$0xff] }
  0x9e   :  { %v7132_v49 = vpop.permute.xlu0 %7131  ;;  %v2350_v1 = vsel %vm2337_vm1, %v2221_v53, %v7128_v48  ;;  %v2351_v17 = vsel %vm2337_vm1, %v2222_v5, %v7129_v0  ;;  %v476_v40 = vld [vmem:[%s11991_s0 + $0x25b] sm:$0xff]  ;;  %v4788_v53 = vld [vmem:[%s11993_s3 + $0x10] sm:$0xff] }
  0x9f   :  { %3132 = vmatmul.mubr.f32.gmra.mrb[16].mxu0 %v2475_v14  ;;  %v7137_v55 = vpop.permute.xlu1 %7136  ;;  %v7133_v60 = vunpack.i.l.bf16 %v7132_v49  ;;  %v7134_v11 = vunpack.i.h.bf16 %v7132_v49  ;;  %v475_v14 = vld [vmem:[%s11991_s0 + $0x24b] sm:$0xff]  ;;  %6659 = vmatprep.subr.bf16.mxu1 %v6658_v51  ;;  %v4793_v5 = vld [vmem:[%s11993_s3 + $0x38] sm:$0xff] }
  0xa0   :  { %6369 = vmatprep.mubr.msk.f32.mxu0 %vm2208_vm0, %v553_v6  ;;  %7421 = vrot.lane.b32.xlu0 %v7420_v8, %s7994_s25  ;;  %v7138_v3 = vunpack.i.l.bf16 %v7137_v55  ;;  %v7460_v6 = vpack.i.bf16 %v473_v59, %v472_v58  ;;  %v7465_v8 = vpack.i.bf16 %v219_v63, %v218_v62  ;;  %v7139_v18 = vunpack.i.h.bf16 %v7137_v55  ;;  %v560_v55 = vld [vmem:[%s11991_s0 + $0xa4] sm:$0xff]  ;;  %v351_v63 = vld [vmem:[%s11991_s0 + $0x272] sm:$0xff] }
  0xa1   :  { %7426 = vrot.lane.b32.xlu1 %v7425_v10, %s7996_s14  ;;  %v347_v10 = vld [vmem:[%s11991_s0 + $0x24a] sm:$0xff]  ;;  %v2479_v12 = vsel %vm2466_vm2, %v2350_v1, %v7133_v60  ;;  %v7475_v24 = vpack.i.bf16 %v475_v14, %v474_v13  ;;  %v2480_v28 = vsel %vm2466_vm2, %v2351_v17, %v7134_v11  ;;  %v227_v46 = vld [vmem:[%s11991_s0 + $0x299] sm:$0xff] }
  0xa2   :  { %v8911_v2 = vpop.permute.xlu0 %7141  ;;  %v2223_v20 = vsel %vm2208_vm0, %v46_v7, %v7138_v3  ;;  %v350_v62 = vld [vmem:[%s11991_s0 + $0x26a] sm:$0xff]  ;;  %v479_v3 = vld [vmem:[%s11991_s0 + $0x273] sm:$0xff] }
  0xa3   :  { %3138 = vmatmul.mubr.f32.gmra.mrb[18].mxu0 %v2476_v30  ;;  %v7143_v15 = vunpack.i.l.bf16 %v8911_v2  ;;  %v8937_v16 = vpop.permute.xlu1 %7146  ;;  %v349_v30 = vld [vmem:[%s11991_s0 + $0x262] sm:$0xff]  ;;  %v7144_v31 = vunpack.i.h.bf16 %v8911_v2  ;;  %v478_v0 = vld [vmem:[%s11991_s0 + $0x26b] sm:$0xff] }
  0xa4   :  { %6370 = vmatprep.mubr.msk.f32.mxu0 %vm2208_vm0, %v554_v21  ;;  %7431 = vrot.lane.b32.xlu0 %v7430_v23, %s7995_s26  ;;  %v7470_v21 = vpack.i.bf16 %v347_v10, %v346_v9  ;;  %v47_v23 = vld [vmem:[%s11991_s0 + $0x90] sm:$0xff]  ;;  %v7148_v27 = vunpack.i.l.bf16 %v8937_v16  ;;  %v7149_v43 = vunpack.i.h.bf16 %v8937_v16  ;;  %v4790_v10 = vld [vmem:[%s11993_s3 + $0x20] sm:$0xff]  ;;  %v7500_v16 = vpack.i.bf16 %v351_v63, %v350_v62 }
  0xa5   :  { %7436 = vrot.lane.b32.xlu1 %v7435_v26, %s7994_s25  ;;  %v221_v26 = vld [vmem:[%s11991_s0 + $0x261] sm:$0xff]  ;;  %v2352_v32 = vsel %vm2337_vm1, %v2223_v20, %v7143_v15  ;;  %v2224_v36 = vsel %vm2208_vm0, %v47_v23, %v7139_v18  ;;  %v4792_v11 = vld [vmem:[%s11993_s3 + $0x30] sm:$0xff]  ;;  %v7505_v18 = vpack.i.bf16 %v479_v3, %v478_v0 }
  0xa6   :  { %v8946_v22 = vpop.permute.xlu0 %7151  ;;  %v7480_v38 = vpack.i.bf16 %v221_v26, %v220_v25  ;;  %v2481_v44 = vsel %vm2466_vm2, %v2352_v32, %v7148_v27  ;;  %v2353_v50 = vsel %vm2337_vm1, %v2224_v36, %v7144_v31  ;;  %v561_v13 = vld [vmem:[%s11991_s0 + $0xac] sm:$0xff]  ;;  %v6664_v17 = vpack.c.bf16 %v4792_v11, %v4790_v10  ;;  %v4797_v26 = vld [vmem:[%s11993_s3 + $0x58] sm:$0xff]  ;;  %v4794_v31 = vld [vmem:[%s11993_s3 + $0x40] sm:$0xff] }
  0xa7   :  { %3144 = vmatmul.mubr.f32.gmra.mrb[20].mxu0 %v2477_v45  ;;  %v8968_v33 = vpop.permute.xlu1 %7156  ;;  %v7153_v34 = vunpack.i.l.bf16 %v8946_v22  ;;  %v223_v45 = vld [vmem:[%s11991_s0 + $0x271] sm:$0xff]  ;;  %v2482_v2 = vsel %vm2466_vm2, %v2353_v50, %v7149_v43  ;;  %v225_v20 = vld [vmem:[%s11991_s0 + $0x289] sm:$0xff]  ;;  %v355_v63 = vld [vmem:[%s11991_s0 + $0x29a] sm:$0xff] }
  0xa8   :  { %6371 = vmatprep.mubr.msk.f32.mxu0 %vm2208_vm0, %v555_v37  ;;  %7441 = vrot.lane.b32.xlu0 %v7440_v39, %s7996_s14  ;;  %v48_v37 = vld [vmem:[%s11991_s0 + $0xa0] sm:$0xff]  ;;  %v7485_v39 = vpack.i.bf16 %v349_v30, %v348_v29  ;;  %v7158_v48 = vunpack.i.l.bf16 %v8968_v33  ;;  %v50_v15 = vld [vmem:[%s11991_s0 + $0xb0] sm:$0xff]  ;;  %v4795_v25 = vld [vmem:[%s11993_s3 + $0x48] sm:$0xff] }
  0xa9   :  { %7446 = vrot.lane.b32.xlu1 %v7445_v41, %s7995_s26  ;;  %v477_v41 = vld [vmem:[%s11991_s0 + $0x263] sm:$0xff]  ;;  %v2225_v56 = vsel %vm2208_vm0, %v48_v37, %v7153_v34  ;;  %v6666_v30 = vpack.c.bf16 %v4797_v26, %v4795_v25  ;;  %v4796_v32 = vld [vmem:[%s11993_s3 + $0x50] sm:$0xff]  ;;  %v51_v36 = vld [vmem:[%s11991_s0 + $0xb8] sm:$0xff] }
  0xaa   :  { %v9002_v49 = vpop.permute.xlu0 %7161  ;;  %v7490_v58 = vpack.i.bf16 %v477_v41, %v476_v40  ;;  %v2354_v7 = vsel %vm2337_vm1, %v2225_v56, %v7158_v48  ;;  %v562_v34 = vld [vmem:[%s11991_s0 + $0xb4] sm:$0xff]  ;;  %v480_v41 = vld [vmem:[%s11991_s0 + $0x283] sm:$0xff] }
  0xab   :  { %3150 = vmatmul.mubr.f32.gmra.mrb[22].mxu0 %v2478_v61  ;;  %v9021_v60 = vpop.permute.xlu1 %7166  ;;  %v7495_v61 = vpack.i.bf16 %v223_v45, %v222_v42  ;;  %v7163_v1 = vunpack.i.l.bf16 %v9002_v49  ;;  %v481_v42 = vld [vmem:[%s11991_s0 + $0x28b] sm:$0xff]  ;;  %v4801_v48 = vld [vmem:[%s11993_s3 + $0x78] sm:$0xff]  ;;  %v4802_v10 = vld [vmem:[%s11993_s3 + $0x80] sm:$0xff] }
  0xac   :  { %6372 = vmatprep.mubr.msk.f32.mxu0 %vm2208_vm0, %v556_v52  ;;  %7451 = vrot.lane.b32.xlu0 %v7450_v54, %s7994_s25  ;;  %v4786_v52 = vld [vmem:[%s11993_s3] sm:$0xff]  ;;  %v7154_v54 = vunpack.i.h.bf16 %v8946_v22  ;;  %v7164_v22 = vunpack.i.h.bf16 %v9002_v49  ;;  %v226_v43 = vld [vmem:[%s11991_s0 + $0x291] sm:$0xff]  ;;  %v4807_v26 = vld [vmem:[%s11993_s3 + $0xa8] sm:$0xff] }
  0xad   :  { %7456 = vrot.lane.b32.xlu1 %v7455_v57, %s7996_s14  ;;  %v49_v57 = vld [vmem:[%s11991_s0 + $0xa8] sm:$0xff]  ;;  %v6660_v59 = vpack.c.bf16 %v4788_v53, %v4786_v52  ;;  %v2483_v23 = vsel %vm2466_vm2, %v2354_v7, %v7163_v1  ;;  %v6670_v52 = vpack.c.bf16 %v4801_v48, %v4799_v47  ;;  %v4798_v53 = vld [vmem:[%s11993_s3 + $0x60] sm:$0xff]  ;;  %v354_v62 = vld [vmem:[%s11991_s0 + $0x292] sm:$0xff] }
  0xae   :  { %v2226_v14 = vsel %vm2208_vm0, %v49_v57, %v7154_v54  ;;  %v4800_v54 = vld [vmem:[%s11993_s3 + $0x70] sm:$0xff]  ;;  %v563_v56 = vld [vmem:[%s11991_s0 + $0xbc] sm:$0xff]  ;;  %v4811_v47 = vld [vmem:[%s11993_s3 + $0xc8] sm:$0xff] }
  0xaf   :  { %3156 = vmatmul.mubr.f32.gmra.mrb[24].mxu0 %v2479_v12  ;;  %6661 = vmatpush1.bf16.msra.mxu1 %v6660_v59  ;;  %v7168_v12 = vunpack.i.l.bf16 %v9021_v60  ;;  %v7520_v59 = vpack.i.bf16 %v481_v42, %v480_v41  ;;  %v482_v0 = vld [vmem:[%s11991_s0 + $0x293] sm:$0xff]  ;;  %v483_v3 = vld [vmem:[%s11991_s0 + $0x29b] sm:$0xff]  ;;  %v484_v41 = vld [vmem:[%s11991_s0 + $0x2ab] sm:$0xff] }
  0xb0   :  { %6373 = vmatprep.mubr.msk.f32.mxu0 %vm2208_vm0, %v557_v4  ;;  %7461 = vrot.lane.b32.xlu0 %v7460_v6, %s7995_s26  ;;  %v4791_v4 = vld [vmem:[%s11993_s3 + $0x28] sm:$0xff]  ;;  %v7159_v6 = vunpack.i.h.bf16 %v8968_v33  ;;  %v7169_v33 = vunpack.i.h.bf16 %v9021_v60  ;;  %v6672_v60 = vpack.c.bf16 %v4800_v54, %v4798_v53  ;;  %v4804_v11 = vld [vmem:[%s11993_s3 + $0x90] sm:$0xff]  ;;  %v4813_v48 = vld [vmem:[%s11993_s3 + $0xd8] sm:$0xff] }
  0xb1   :  { %7466 = vrot.lane.b32.xlu1 %v7465_v8, %s7994_s25  ;;  %v9046_v8 = vpop.permute.xlu0 %7171  ;;  %v6662_v9 = vpack.c.bf16 %v4793_v5, %v4791_v4  ;;  %v4803_v4 = vld [vmem:[%s11993_s3 + $0x88] sm:$0xff]  ;;  %v4805_v5 = vld [vmem:[%s11993_s3 + $0x98] sm:$0xff]  ;;  %v4810_v53 = vld [vmem:[%s11993_s3 + $0xc0] sm:$0xff] }
  0xb2   :  { %v7173_v27 = vunpack.i.l.bf16 %v9046_v8  ;;  %v2355_v29 = vsel %vm2337_vm1, %v2226_v14, %v7159_v6  ;;  %v7174_v49 = vunpack.i.h.bf16 %v9046_v8  ;;  %v2228_v57 = vsel %vm2208_vm0, %v51_v36, %v7169_v33  ;;  %v357_v25 = vld [vmem:[%s11991_s0 + $0x2b2] sm:$0xff] }
  0xb3   :  { %3162 = vmatmul.mubr.f32.gmra.mrb[26].mxu0 %v2480_v28  ;;  %6663 = vmatprep.subr.bf16.mxu1 %v6662_v9  ;;  %v9086_v28 = vpop.permute.xlu1 %7176  ;;  %v2484_v45 = vsel %vm2466_vm2, %v2355_v29, %v7164_v22  ;;  %v6674_v9 = vpack.c.bf16 %v4805_v5, %v4803_v4  ;;  %v356_v22 = vld [vmem:[%s11991_s0 + $0x2aa] sm:$0xff]  ;;  %v485_v42 = vld [vmem:[%s11991_s0 + $0x2b3] sm:$0xff] }
  0xb4   :  { %6374 = vmatprep.mubr.msk.f32.mxu0 %vm2208_vm0, %v558_v19  ;;  %7471 = vrot.lane.b32.xlu0 %v7470_v21, %s7996_s14  ;;  %v224_v19 = vld [vmem:[%s11991_s0 + $0x281] sm:$0xff]  ;;  %v7179_v1 = vunpack.i.h.bf16 %v9086_v28  ;;  %v2357_v8 = vsel %vm2337_vm1, %v2228_v57, %v7174_v49  ;;  %v4808_v33 = vld [vmem:[%s11993_s3 + $0xb0] sm:$0xff] }
  0xb5   :  { %7476 = vrot.lane.b32.xlu1 %v7475_v24, %s7995_s26  ;;  %v352_v21 = vld [vmem:[%s11991_s0 + $0x282] sm:$0xff]  ;;  %v353_v24 = vld [vmem:[%s11991_s0 + $0x28a] sm:$0xff]  ;;  %6665 = vmatpush1.bf16.msra.mxu1 %v6664_v17  ;;  %v7510_v37 = vpack.i.bf16 %v225_v20, %v224_v19  ;;  %v6676_v17 = vpack.c.bf16 %v4804_v11, %v4802_v10  ;;  %v7535_v19 = vpack.i.bf16 %v483_v3, %v482_v0 }
  0xb6   :  { %v7515_v40 = vpack.i.bf16 %v353_v24, %v352_v21  ;;  %6667 = vmatprep.subr.bf16.mxu1 %v6666_v30  ;;  %v228_v20 = vld [vmem:[%s11991_s0 + $0x2a9] sm:$0xff]  ;;  %v229_v21 = vld [vmem:[%s11991_s0 + $0x2b1] sm:$0xff]  ;;  %v2486_v24 = vsel %vm2466_vm2, %v2357_v8, %v7179_v1  ;;  %v486_v1 = vld [vmem:[%s11991_s0 + $0x2bb] sm:$0xff] }
  0xb7   :  { %3168 = vmatmul.mubr.f32.gmra.mrb[28].mxu0 %v2481_v44  ;;  %v7178_v44 = vunpack.i.l.bf16 %v9086_v28  ;;  %v9130_v51 = vpop.permute.xlu1 %7186  ;;  %v4812_v54 = vld [vmem:[%s11993_s3 + $0xd0] sm:$0xff]  ;;  %v359_v0 = vld [vmem:[%s11991_s0 + $0x2c2] sm:$0xff] }
  0xb8   :  { %6375 = vmatprep.mubr.msk.f32.mxu0 %vm2208_vm0, %v559_v35  ;;  %7481 = vrot.lane.b32.xlu0 %v7480_v38, %s7994_s25  ;;  %v2227_v35 = vsel %vm2208_vm0, %v50_v15, %v7168_v12  ;;  %v6668_v38 = vpack.c.bf16 %v4796_v32, %v4794_v31  ;;  %v7188_v6 = vunpack.i.l.bf16 %v9130_v51  ;;  %v53_v15 = vld [vmem:[%s11991_s0 + $0xd0] sm:$0xff]  ;;  %v7189_v28 = vunpack.i.h.bf16 %v9130_v51  ;;  %v4806_v32 = vld [vmem:[%s11993_s3 + $0xa0] sm:$0xff]  ;;  %v4815_v5 = vld [vmem:[%s11993_s3 + $0xe8] sm:$0xff] }
  0xb9   :  { %7486 = vrot.lane.b32.xlu1 %v7485_v39, %s7996_s14  ;;  %v9105_v39 = vpop.permute.xlu0 %7181  ;;  %v2356_v50 = vsel %vm2337_vm1, %v2227_v35, %v7173_v27  ;;  %v4809_v27 = vld [vmem:[%s11993_s3 + $0xb8] sm:$0xff]  ;;  %v487_v4 = vld [vmem:[%s11991_s0 + $0x2c3] sm:$0xff] }
  0xba   :  { %6669 = vmatpush1.bf16.msra.mxu1 %v6668_v38  ;;  %v7184_v12 = vunpack.i.h.bf16 %v9105_v39  ;;  %v6678_v31 = vpack.c.bf16 %v4809_v27, %v4807_v26  ;;  %v565_v35 = vld [vmem:[%s11991_s0 + $0xd4] sm:$0xff]  ;;  %v7540_v38 = vpack.i.bf16 %v229_v21, %v228_v20  ;;  %v4814_v11 = vld [vmem:[%s11993_s3 + $0xe0] sm:$0xff]  ;;  %v4819_v26 = vld [vmem:[%s11993_s3 + $0x108] sm:$0xff] }
  0xbb   :  { %3174 = vmatmul.mubr.f32.gmra.mrb[30].mxu0 %v2482_v2  ;;  %6671 = vmatprep.subr.bf16.mxu1 %v6670_v52  ;;  %v2485_v2 = vsel %vm2466_vm2, %v2356_v50, %v7178_v44  ;;  %v6682_v52 = vpack.c.bf16 %v4813_v48, %v4811_v47  ;;  %v232_v20 = vld [vmem:[%s11991_s0 + $0x2d1] sm:$0xff]  ;;  %v233_v21 = vld [vmem:[%s11991_s0 + $0x2d9] sm:$0xff]  ;;  %v235_v47 = vld [vmem:[%s11991_s0 + $0x2e9] sm:$0xff] }
  0xbc   :  { %6376 = vmatprep.mubr.msk.f32.mxu0 %vm2208_vm0, %v560_v55  ;;  %7491 = vrot.lane.b32.xlu0 %v7490_v58, %s7995_s26  ;;  %v7183_v55 = vunpack.i.l.bf16 %v9105_v39  ;;  %v52_v58 = vld [vmem:[%s11991_s0 + $0xc8] sm:$0xff]  ;;  %v2230_v36 = vsel %vm2208_vm0, %v53_v15, %v7184_v12  ;;  %v6680_v39 = vpack.c.bf16 %v4808_v33, %v4806_v32  ;;  %v4816_v12 = vld [vmem:[%s11993_s3 + $0xf0] sm:$0xff]  ;;  %v4821_v27 = vld [vmem:[%s11993_s3 + $0x118] sm:$0xff] }
  0xbd   :  { %7496 = vrot.lane.b32.xlu1 %v7495_v61, %s7994_s25  ;;  %v7525_v61 = vpack.i.bf16 %v227_v46, %v226_v43  ;;  %v9170_v7 = vpop.permute.xlu0 %7191  ;;  %v230_v43 = vld [vmem:[%s11991_s0 + $0x2b9] sm:$0xff]  ;;  %v231_v46 = vld [vmem:[%s11991_s0 + $0x2c1] sm:$0xff]  ;;  %v2359_v51 = vsel %vm2337_vm1, %v2230_v36, %v7189_v28  ;;  %v4820_v33 = vld [vmem:[%s11993_s3 + $0x110] sm:$0xff] }
  0xbe   :  { %6673 = vmatpush1.bf16.msra.mxu1 %v6672_v60  ;;  %v2229_v14 = vsel %vm2208_vm0, %v52_v58, %v7183_v55  ;;  %v7194_v44 = vunpack.i.h.bf16 %v9170_v7  ;;  %v55_v58 = vld [vmem:[%s11991_s0 + $0xe0] sm:$0xff]  ;;  %v6684_v60 = vpack.c.bf16 %v4812_v54, %v4810_v53  ;;  %v4823_v48 = vld [vmem:[%s11993_s3 + $0x128] sm:$0xff] }
  0xbf   :  { %3180 = vmatmul.mubr.f32.gmra.mrb[32].mxu0 %v2483_v23  ;;  %6675 = vmatprep.subr.bf16.mxu1 %v6674_v9  ;;  %v7193_v23 = vunpack.i.l.bf16 %v9170_v7  ;;  %v2358_v29 = vsel %vm2337_vm1, %v2229_v14, %v7188_v6  ;;  %v4817_v6 = vld [vmem:[%s11993_s3 + $0xf8] sm:$0xff]  ;;  %v567_v14 = vld [vmem:[%s11991_s0 + $0xe4] sm:$0xff] }
  0xc0   :  { %6377 = vmatprep.mubr.msk.f32.mxu0 %vm2208_vm0, %v561_v13  ;;  %7501 = vrot.lane.b32.xlu0 %v7500_v16, %s7996_s14  ;;  %v564_v13 = vld [vmem:[%s11991_s0 + $0xcc] sm:$0xff]  ;;  %v7530_v16 = vpack.i.bf16 %v355_v63, %v354_v62  ;;  %v7555_v62 = vpack.i.bf16 %v231_v46, %v230_v43  ;;  %v358_v63 = vld [vmem:[%s11991_s0 + $0x2ba] sm:$0xff]  ;;  %v2488_v3 = vsel %vm2466_vm2, %v2359_v51, %v7194_v44 }
  0xc1   :  { %7506 = vrot.lane.b32.xlu1 %v7505_v18, %s7995_s26  ;;  %v9189_v18 = vpop.permute.xlu1 %7196  ;;  %v9214_v30 = vpop.permute.xlu0 %7201  ;;  %v6686_v10 = vpack.c.bf16 %v4817_v6, %v4815_v5  ;;  %v4818_v32 = vld [vmem:[%s11993_s3 + $0x100] sm:$0xff]  ;;  %v4827_v5 = vld [vmem:[%s11993_s3 + $0x148] sm:$0xff]  ;;  %v4829_v6 = vld [vmem:[%s11993_s3 + $0x158] sm:$0xff] }
  0xc2   :  { %6677 = vmatpush1.bf16.msra.mxu1 %v6676_v17  ;;  %v7203_v49 = vunpack.i.l.bf16 %v9214_v30  ;;  %v7199_v55 = vunpack.i.h.bf16 %v9189_v18  ;;  %v7204_v7 = vunpack.i.h.bf16 %v9214_v30  ;;  %v7560_v17 = vpack.i.bf16 %v359_v0, %v358_v63  ;;  %v489_v43 = vld [vmem:[%s11991_s0 + $0x2db] sm:$0xff]  ;;  %v363_v0 = vld [vmem:[%s11991_s0 + $0x2ea] sm:$0xff] }
  0xc3   :  { %3186 = vmatmul.mubr.f32.gmra.mrb[34].mxu0 %v2484_v45  ;;  %6679 = vmatprep.subr.bf16.mxu1 %v6678_v31  ;;  %v2487_v45 = vsel %vm2466_vm2, %v2358_v29, %v7193_v23  ;;  %v6690_v31 = vpack.c.bf16 %v4821_v27, %v4819_v26  ;;  %v234_v44 = vld [vmem:[%s11991_s0 + $0x2e1] sm:$0xff] }
  0xc4   :  { %6378 = vmatprep.mubr.msk.f32.mxu0 %vm2208_vm0, %v562_v34  ;;  %7511 = vrot.lane.b32.xlu0 %v7510_v37, %s7994_s25  ;;  %v7198_v34 = vunpack.i.l.bf16 %v9189_v18  ;;  %v54_v37 = vld [vmem:[%s11991_s0 + $0xd8] sm:$0xff]  ;;  %v2232_v15 = vsel %vm2208_vm0, %v55_v58, %v7199_v55  ;;  %v6688_v18 = vpack.c.bf16 %v4816_v12, %v4814_v11  ;;  %v4822_v54 = vld [vmem:[%s11993_s3 + $0x120] sm:$0xff]  ;;  %v4824_v55 = vld [vmem:[%s11993_s3 + $0x130] sm:$0xff] }
  0xc5   :  { %7516 = vrot.lane.b32.xlu1 %v7515_v40, %s7996_s14  ;;  %v7545_v40 = vpack.i.bf16 %v357_v25, %v356_v22  ;;  %v9254_v50 = vpop.permute.xlu1 %7206  ;;  %v360_v22 = vld [vmem:[%s11991_s0 + $0x2d2] sm:$0xff]  ;;  %v361_v25 = vld [vmem:[%s11991_s0 + $0x2da] sm:$0xff]  ;;  %v2361_v30 = vsel %vm2337_vm1, %v2232_v15, %v7204_v7  ;;  %v362_v63 = vld [vmem:[%s11991_s0 + $0x2e2] sm:$0xff] }
  0xc6   :  { %6681 = vmatpush1.bf16.msra.mxu1 %v6680_v39  ;;  %v2231_v57 = vsel %vm2208_vm0, %v54_v37, %v7198_v34  ;;  %v7209_v23 = vunpack.i.h.bf16 %v9254_v50  ;;  %v57_v37 = vld [vmem:[%s11991_s0 + $0xf8] sm:$0xff]  ;;  %v6692_v39 = vpack.c.bf16 %v4820_v33, %v4818_v32  ;;  %v4826_v11 = vld [vmem:[%s11993_s3 + $0x140] sm:$0xff]  ;;  %v4828_v12 = vld [vmem:[%s11993_s3 + $0x150] sm:$0xff] }
  0xc7   :  { %3192 = vmatmul.mubr.f32.gmra.mrb[36].mxu0 %v2485_v2  ;;  %6683 = vmatprep.subr.bf16.mxu1 %v6682_v52  ;;  %v7208_v2 = vunpack.i.l.bf16 %v9254_v50  ;;  %v2360_v8 = vsel %vm2337_vm1, %v2231_v57, %v7203_v49  ;;  %v4825_v49 = vld [vmem:[%s11993_s3 + $0x138] sm:$0xff]  ;;  %v365_v26 = vld [vmem:[%s11991_s0 + $0x302] sm:$0xff] }
  0xc8   :  { %6379 = vmatprep.mubr.msk.f32.mxu0 %vm2208_vm0, %v563_v56  ;;  %7521 = vrot.lane.b32.xlu0 %v7520_v59, %s7995_s26  ;;  %v566_v56 = vld [vmem:[%s11991_s0 + $0xdc] sm:$0xff]  ;;  %v7550_v59 = vpack.i.bf16 %v485_v42, %v484_v41  ;;  %v7575_v41 = vpack.i.bf16 %v361_v25, %v360_v22  ;;  %v488_v42 = vld [vmem:[%s11991_s0 + $0x2d3] sm:$0xff]  ;;  %v2490_v46 = vsel %vm2466_vm2, %v2361_v30, %v7209_v23  ;;  %v4831_v27 = vld [vmem:[%s11993_s3 + $0x168] sm:$0xff] }
  0xc9   :  { %7526 = vrot.lane.b32.xlu1 %v7525_v61, %s7994_s25  ;;  %v9273_v61 = vpop.permute.xlu0 %7211  ;;  %v9298_v9 = vpop.permute.xlu1 %7216  ;;  %v6694_v53 = vpack.c.bf16 %v4825_v49, %v4823_v48  ;;  %v569_v57 = vld [vmem:[%s11991_s0 + $0xfc] sm:$0xff]  ;;  %v4835_v48 = vld [vmem:[%s11993_s3 + $0x188] sm:$0xff] }
  0xca   :  { %6685 = vmatpush1.bf16.msra.mxu1 %v6684_v60  ;;  %v7218_v28 = vunpack.i.l.bf16 %v9298_v9  ;;  %v7214_v34 = vunpack.i.h.bf16 %v9273_v61  ;;  %v7219_v50 = vunpack.i.h.bf16 %v9298_v9  ;;  %v7580_v60 = vpack.i.bf16 %v489_v43, %v488_v42  ;;  %v237_v22 = vld [vmem:[%s11991_s0 + $0x301] sm:$0xff]  ;;  %v4837_v49 = vld [vmem:[%s11993_s3 + $0x198] sm:$0xff] }
  0xcb   :  { %3198 = vmatmul.mubr.f32.gmra.mrb[38].mxu0 %v2486_v24  ;;  %6687 = vmatprep.subr.bf16.mxu1 %v6686_v10  ;;  %v2489_v24 = vsel %vm2466_vm2, %v2360_v8, %v7208_v2  ;;  %v6698_v10 = vpack.c.bf16 %v4829_v6, %v4827_v5  ;;  %v364_v23 = vld [vmem:[%s11991_s0 + $0x2fa] sm:$0xff]  ;;  %v493_v43 = vld [vmem:[%s11991_s0 + $0x303] sm:$0xff] }
  0xcc   :  { %6380 = vmatprep.mubr.msk.f32.mxu0 %vm2208_vm0, %v564_v13  ;;  %7531 = vrot.lane.b32.xlu0 %v7530_v16, %s7996_s14  ;;  %v7213_v13 = vunpack.i.l.bf16 %v9273_v61  ;;  %v56_v16 = vld [vmem:[%s11991_s0 + $0xf0] sm:$0xff]  ;;  %v2234_v58 = vsel %vm2208_vm0, %v57_v37, %v7214_v34  ;;  %v6696_v61 = vpack.c.bf16 %v4824_v55, %v4822_v54  ;;  %v4830_v33 = vld [vmem:[%s11993_s3 + $0x160] sm:$0xff]  ;;  %v4839_v6 = vld [vmem:[%s11993_s3 + $0x1a8] sm:$0xff] }
  0xcd   :  { %7536 = vrot.lane.b32.xlu1 %v7535_v19, %s7995_s26  ;;  %v7565_v19 = vpack.i.bf16 %v487_v4, %v486_v1  ;;  %v9338_v29 = vpop.permute.xlu0 %7221  ;;  %v490_v1 = vld [vmem:[%s11991_s0 + $0x2e3] sm:$0xff]  ;;  %v491_v4 = vld [vmem:[%s11991_s0 + $0x2eb] sm:$0xff]  ;;  %v2363_v9 = vsel %vm2337_vm1, %v2234_v58, %v7219_v50  ;;  %v492_v42 = vld [vmem:[%s11991_s0 + $0x2fb] sm:$0xff] }
  0xce   :  { %6689 = vmatpush1.bf16.msra.mxu1 %v6688_v18  ;;  %v2233_v36 = vsel %vm2208_vm0, %v56_v16, %v7213_v13  ;;  %v7224_v2 = vunpack.i.h.bf16 %v9338_v29  ;;  %v59_v16 = vld [vmem:[%s11991_s0 + $0x108] sm:$0xff]  ;;  %v6700_v18 = vpack.c.bf16 %v4828_v12, %v4826_v11  ;;  %v4832_v34 = vld [vmem:[%s11993_s3 + $0x170] sm:$0xff]  ;;  %v4834_v54 = vld [vmem:[%s11993_s3 + $0x180] sm:$0xff] }
  0xcf   :  { %3204 = vmatmul.mubr.f32.gmra.mrb[40].mxu0 %v2487_v45  ;;  %6691 = vmatprep.subr.bf16.mxu1 %v6690_v31  ;;  %v7223_v45 = vunpack.i.l.bf16 %v9338_v29  ;;  %v2362_v51 = vsel %vm2337_vm1, %v2233_v36, %v7218_v28  ;;  %v4833_v28 = vld [vmem:[%s11993_s3 + $0x178] sm:$0xff]  ;;  %v571_v36 = vld [vmem:[%s11991_s0 + $0x10c] sm:$0xff]  ;;  %v4838_v12 = vld [vmem:[%s11993_s3 + $0x1a0] sm:$0xff] }
  0xd0   :  { %6381 = vmatprep.mubr.msk.f32.mxu0 %vm2208_vm0, %v565_v35  ;;  %7541 = vrot.lane.b32.xlu0 %v7540_v38, %s7994_s25  ;;  %v568_v35 = vld [vmem:[%s11991_s0 + $0xf4] sm:$0xff]  ;;  %v7570_v38 = vpack.i.bf16 %v233_v21, %v232_v20  ;;  %v7595_v20 = vpack.i.bf16 %v491_v4, %v490_v1  ;;  %v2492_v25 = vsel %vm2466_vm2, %v2363_v9, %v7224_v2  ;;  %v494_v2 = vld [vmem:[%s11991_s0 + $0x30b] sm:$0xff] }
  0xd1   :  { %7546 = vrot.lane.b32.xlu1 %v7545_v40, %s7996_s14  ;;  %v9357_v40 = vpop.permute.xlu1 %7226  ;;  %v9382_v52 = vpop.permute.xlu0 %7231  ;;  %v236_v21 = vld [vmem:[%s11991_s0 + $0x2f9] sm:$0xff]  ;;  %v6702_v32 = vpack.c.bf16 %v4833_v28, %v4831_v27  ;;  %v4836_v55 = vld [vmem:[%s11993_s3 + $0x190] sm:$0xff]  ;;  %v4843_v27 = vld [vmem:[%s11993_s3 + $0x1c8] sm:$0xff] }
  0xd2   :  { %6693 = vmatpush1.bf16.msra.mxu1 %v6692_v39  ;;  %v7233_v7 = vunpack.i.l.bf16 %v9382_v52  ;;  %v7229_v13 = vunpack.i.h.bf16 %v9357_v40  ;;  %v7234_v29 = vunpack.i.h.bf16 %v9382_v52  ;;  %v7600_v39 = vpack.i.bf16 %v237_v22, %v236_v21  ;;  %v367_v1 = vld [vmem:[%s11991_s0 + $0x312] sm:$0xff]  ;;  %v240_v21 = vld [vmem:[%s11991_s0 + $0x321] sm:$0xff]  ;;  %v241_v22 = vld [vmem:[%s11991_s0 + $0x329] sm:$0xff] }
  0xd3   :  { %3210 = vmatmul.mubr.f32.gmra.mrb[42].mxu0 %v2488_v3  ;;  %6695 = vmatprep.subr.bf16.mxu1 %v6694_v53  ;;  %v2491_v3 = vsel %vm2466_vm2, %v2362_v51, %v7223_v45  ;;  %v6706_v53 = vpack.c.bf16 %v4837_v49, %v4835_v48  ;;  %v495_v5 = vld [vmem:[%s11991_s0 + $0x313] sm:$0xff]  ;;  %v4847_v49 = vld [vmem:[%s11993_s3 + $0x1e8] sm:$0xff] }
  0xd4   :  { %6382 = vmatprep.mubr.msk.f32.mxu0 %vm2208_vm0, %v566_v56  ;;  %7551 = vrot.lane.b32.xlu0 %v7550_v59, %s7995_s26  ;;  %v7228_v56 = vunpack.i.l.bf16 %v9357_v40  ;;  %v58_v59 = vld [vmem:[%s11991_s0 + $0x100] sm:$0xff]  ;;  %v2236_v37 = vsel %vm2208_vm0, %v59_v16, %v7229_v13  ;;  %v6704_v40 = vpack.c.bf16 %v4832_v34, %v4830_v33  ;;  %v4840_v13 = vld [vmem:[%s11993_s3 + $0x1b0] sm:$0xff]  ;;  %v4845_v28 = vld [vmem:[%s11993_s3 + $0x1d8] sm:$0xff] }
  0xd5   :  { %7556 = vrot.lane.b32.xlu1 %v7555_v62, %s7994_s25  ;;  %v7585_v62 = vpack.i.bf16 %v235_v47, %v234_v44  ;;  %v9422_v8 = vpop.permute.xlu1 %7236  ;;  %v238_v44 = vld [vmem:[%s11991_s0 + $0x309] sm:$0xff]  ;;  %v239_v47 = vld [vmem:[%s11991_s0 + $0x311] sm:$0xff]  ;;  %v2365_v52 = vsel %vm2337_vm1, %v2236_v37, %v7234_v29  ;;  %v4842_v33 = vld [vmem:[%s11993_s3 + $0x1c0] sm:$0xff] }
  0xd6   :  { %6697 = vmatpush1.bf16.msra.mxu1 %v6696_v61  ;;  %v2235_v15 = vsel %vm2208_vm0, %v58_v59, %v7228_v56  ;;  %v7239_v45 = vunpack.i.h.bf16 %v9422_v8  ;;  %v61_v59 = vld [vmem:[%s11991_s0 + $0x120] sm:$0xff]  ;;  %v6708_v61 = vpack.c.bf16 %v4836_v55, %v4834_v54  ;;  %v4844_v34 = vld [vmem:[%s11993_s3 + $0x1d0] sm:$0xff] }
  0xd7   :  { %3216 = vmatmul.mubr.f32.gmra.mrb[44].mxu0 %v2489_v24  ;;  %6699 = vmatprep.subr.bf16.mxu1 %v6698_v10  ;;  %v7238_v24 = vunpack.i.l.bf16 %v9422_v8  ;;  %v2364_v30 = vsel %vm2337_vm1, %v2235_v15, %v7233_v7  ;;  %v4841_v7 = vld [vmem:[%s11993_s3 + $0x1b8] sm:$0xff]  ;;  %v573_v15 = vld [vmem:[%s11991_s0 + $0x124] sm:$0xff] }
  0xd8   :  { %6383 = vmatprep.mubr.msk.f32.mxu0 %vm2208_vm0, %v567_v14  ;;  %7561 = vrot.lane.b32.xlu0 %v7560_v17, %s7996_s14  ;;  %v570_v14 = vld [vmem:[%s11991_s0 + $0x104] sm:$0xff]  ;;  %v7590_v17 = vpack.i.bf16 %v363_v0, %v362_v63  ;;  %v7615_v63 = vpack.i.bf16 %v239_v47, %v238_v44  ;;  %v2494_v4 = vsel %vm2466_vm2, %v2365_v52, %v7239_v45  ;;  %v242_v45 = vld [vmem:[%s11991_s0 + $0x331] sm:$0xff]  ;;  %v243_v48 = vld [vmem:[%s11991_s0 + $0x339] sm:$0xff] }
  0xd9   :  { %7566 = vrot.lane.b32.xlu1 %v7565_v19, %s7995_s26  ;;  %v9441_v19 = vpop.permute.xlu0 %7241  ;;  %v9466_v31 = vpop.permute.xlu1 %7246  ;;  %v366_v0 = vld [vmem:[%s11991_s0 + $0x30a] sm:$0xff]  ;;  %v6710_v11 = vpack.c.bf16 %v4841_v7, %v4839_v6  ;;  %v4846_v55 = vld [vmem:[%s11993_s3 + $0x1e0] sm:$0xff] }
  0xda   :  { %6701 = vmatpush1.bf16.msra.mxu1 %v6700_v18  ;;  %v7248_v50 = vunpack.i.l.bf16 %v9466_v31  ;;  %v7244_v56 = vunpack.i.h.bf16 %v9441_v19  ;;  %v7249_v8 = vunpack.i.h.bf16 %v9466_v31  ;;  %v7620_v18 = vpack.i.bf16 %v367_v1, %v366_v0  ;;  %v497_v44 = vld [vmem:[%s11991_s0 + $0x32b] sm:$0xff]  ;;  %v371_v1 = vld [vmem:[%s11991_s0 + $0x33a] sm:$0xff] }
  0xdb   :  { %3222 = vmatmul.mubr.f32.gmra.mrb[46].mxu0 %v2490_v46  ;;  %6703 = vmatprep.subr.bf16.mxu1 %v6702_v32  ;;  %v2493_v46 = vsel %vm2466_vm2, %v2364_v30, %v7238_v24  ;;  %v6714_v32 = vpack.c.bf16 %v4845_v28, %v4843_v27  ;;  %v370_v0 = vld [vmem:[%s11991_s0 + $0x332] sm:$0xff] }
  0xdc   :  { %6384 = vmatprep.mubr.msk.f32.mxu0 %vm2208_vm0, %v568_v35  ;;  %7571 = vrot.lane.b32.xlu0 %v7570_v38, %s7994_s25  ;;  %v7243_v35 = vunpack.i.l.bf16 %v9441_v19  ;;  %v60_v38 = vld [vmem:[%s11991_s0 + $0x118] sm:$0xff]  ;;  %v2238_v16 = vsel %vm2208_vm0, %v61_v59, %v7244_v56  ;;  %v6712_v19 = vpack.c.bf16 %v4840_v13, %v4838_v12  ;;  %v4848_v56 = vld [vmem:[%s11993_s3 + $0x1f0] sm:$0xff]  ;;  %v7650_v12 = vpack.i.bf16 %v371_v1, %v370_v0 }
  0xdd   :  { %7576 = vrot.lane.b32.xlu1 %v7575_v41, %s7996_s14  ;;  %v7605_v41 = vpack.i.bf16 %v365_v26, %v364_v23  ;;  %v9506_v51 = vpop.permute.xlu0 %7251  ;;  %v368_v23 = vld [vmem:[%s11991_s0 + $0x322] sm:$0xff]  ;;  %v369_v26 = vld [vmem:[%s11991_s0 + $0x32a] sm:$0xff]  ;;  %v2367_v31 = vsel %vm2337_vm1, %v2238_v16, %v7249_v8 }
  0xde   :  { %6705 = vmatpush1.bf16.msra.mxu1 %v6704_v40  ;;  %v2237_v58 = vsel %vm2208_vm0, %v60_v38, %v7243_v35  ;;  %v7254_v24 = vunpack.i.h.bf16 %v9506_v51  ;;  %v63_v38 = vld [vmem:[%s11991_s0 + $0x130] sm:$0xff]  ;;  %v6716_v40 = vpack.c.bf16 %v4844_v34, %v4842_v33 }
  0xdf   :  { %3228 = vmatmul.mubr.f32.gmra.mrb[48].mxu0 %v2491_v3  ;;  %6707 = vmatprep.subr.bf16.mxu1 %v6706_v53  ;;  %v7253_v3 = vunpack.i.l.bf16 %v9506_v51  ;;  %v2366_v9 = vsel %vm2337_vm1, %v2237_v58, %v7248_v50  ;;  %v4849_v50 = vld [vmem:[%s11993_s3 + $0x1f8] sm:$0xff]  ;;  %v244_v16 = vld [vmem:[%s11991_s0 + $0x349] sm:$0xff] }
  0xe0   :  { %6385 = vmatprep.mubr.msk.f32.mxu0 %vm2208_vm0, %v569_v57  ;;  %7581 = vrot.lane.b32.xlu0 %v7580_v60, %s7995_s26  ;;  %v572_v57 = vld [vmem:[%s11991_s0 + $0x11c] sm:$0xff]  ;;  %v7610_v60 = vpack.i.bf16 %v493_v43, %v492_v42  ;;  %v7635_v42 = vpack.i.bf16 %v369_v26, %v368_v23  ;;  %v2496_v47 = vsel %vm2466_vm2, %v2367_v31, %v7254_v24  ;;  %v575_v58 = vld [vmem:[%s11991_s0 + $0x134] sm:$0xff]  ;;  %v577_v26 = vld [vmem:[%s11991_s0 + $0x14c] sm:$0xff] }
  0xe1   :  { %7586 = vrot.lane.b32.xlu1 %v7585_v62, %s7994_s25  ;;  %v9525_v62 = vpop.permute.xlu1 %7256  ;;  %v9550_v10 = vpop.permute.xlu0 %7261  ;;  %v496_v43 = vld [vmem:[%s11991_s0 + $0x323] sm:$0xff]  ;;  %v6718_v54 = vpack.c.bf16 %v4849_v50, %v4847_v49  ;;  %v500_v31 = vld [vmem:[%s11991_s0 + $0x34b] sm:$0xff] }
  0xe2   :  { %6709 = vmatpush1.bf16.msra.mxu1 %v6708_v61  ;;  %v7263_v29 = vunpack.i.l.bf16 %v9550_v10  ;;  %v7259_v35 = vunpack.i.h.bf16 %v9525_v62  ;;  %v7264_v51 = vunpack.i.h.bf16 %v9550_v10  ;;  %v6720_v61 = vpack.c.bf16 %v4848_v56, %v4846_v55 }
  0xe3   :  { %3234 = vmatmul.mubr.f32.gmra.mrb[50].mxu0 %v2492_v25  ;;  %6711 = vmatprep.subr.bf16.mxu1 %v6710_v11  ;;  %v2495_v25 = vsel %vm2466_vm2, %v2366_v9, %v7253_v3  ;;  %v65_v11 = vld [vmem:[%s11991_s0 + $0x148] sm:$0xff] }
  0xe4   :  { %6386 = vmatprep.mubr.msk.f32.mxu0 %vm2208_vm0, %v570_v14  ;;  %7591 = vrot.lane.b32.xlu0 %v7590_v17, %s7996_s14  ;;  %v7258_v14 = vunpack.i.l.bf16 %v9525_v62  ;;  %v62_v17 = vld [vmem:[%s11991_s0 + $0x128] sm:$0xff]  ;;  %v2240_v59 = vsel %vm2208_vm0, %v63_v38, %v7259_v35  ;;  %v64_v62 = vld [vmem:[%s11991_s0 + $0x140] sm:$0xff] }
  0xe5   :  { %7596 = vrot.lane.b32.xlu1 %v7595_v20, %s7995_s26  ;;  %v7625_v20 = vpack.i.bf16 %v495_v5, %v494_v2  ;;  %v9590_v30 = vpop.permute.xlu1 %7266  ;;  %v499_v5 = vld [vmem:[%s11991_s0 + $0x33b] sm:$0xff]  ;;  %v2369_v8 = vsel %vm2337_vm1, %v2240_v59, %v7264_v51 }
  0xe6   :  { %6713 = vmatpush1.bf16.msra.mxu1 %v6712_v19  ;;  %v2239_v37 = vsel %vm2208_vm0, %v62_v17, %v7258_v14  ;;  %v7269_v2 = vunpack.i.h.bf16 %v9590_v30  ;;  %v576_v14 = vld [vmem:[%s11991_s0 + $0x144] sm:$0xff]  ;;  %v245_v17 = vld [vmem:[%s11991_s0 + $0x351] sm:$0xff]  ;;  %v246_v35 = vld [vmem:[%s11991_s0 + $0x359] sm:$0xff] }
  0xe7   :  { %3240 = vmatmul.mubr.f32.gmra.mrb[52].mxu0 %v2493_v46  ;;  %6715 = vmatprep.subr.bf16.mxu1 %v6714_v32  ;;  %v7268_v46 = vunpack.i.l.bf16 %v9590_v30  ;;  %v2368_v52 = vsel %vm2337_vm1, %v2239_v37, %v7263_v29  ;;  %v7660_v28 = vpack.i.bf16 %v245_v17, %v244_v16  ;;  %v66_v29 = vld [vmem:[%s11991_s0 + $0x150] sm:$0xff]  ;;  %v502_v51 = vld [vmem:[%s11991_s0 + $0x35b] sm:$0xff] }
  0xe8   :  { %6387 = vmatprep.mubr.msk.f32.mxu0 %vm2208_vm0, %v571_v36  ;;  %7601 = vrot.lane.b32.xlu0 %v7600_v39, %s7994_s25  ;;  %v574_v36 = vld [vmem:[%s11991_s0 + $0x12c] sm:$0xff]  ;;  %v7630_v39 = vpack.i.bf16 %v241_v22, %v240_v21  ;;  %v2498_v19 = vsel %vm2466_vm2, %v2369_v8, %v7269_v2 }
  0xe9   :  { %7606 = vrot.lane.b32.xlu1 %v7605_v41, %s7996_s14  ;;  %v9609_v41 = vpop.permute.xlu0 %7271  ;;  %v9634_v53 = vpop.permute.xlu1 %7276  ;;  %v2497_v3 = vsel %vm2466_vm2, %v2368_v52, %v7268_v46  ;;  %v373_v21 = vld [vmem:[%s11991_s0 + $0x352] sm:$0xff]  ;;  %v503_v52 = vld [vmem:[%s11991_s0 + $0x363] sm:$0xff] }
  0xea   :  { %6717 = vmatpush1.bf16.msra.mxu1 %v6716_v40  ;;  %v7278_v6 = vunpack.i.l.bf16 %v9634_v53  ;;  %v7274_v9 = vunpack.i.h.bf16 %v9609_v41  ;;  %v7279_v22 = vunpack.i.h.bf16 %v9634_v53  ;;  %v501_v32 = vld [vmem:[%s11991_s0 + $0x353] sm:$0xff] }
  0xeb   :  { %3246 = vmatmul.mubr.f32.gmra.mrb[54].mxu0 %v2494_v4  ;;  %6719 = vmatprep.subr.bf16.mxu1 %v6718_v54  ;;  %v498_v4 = vld [vmem:[%s11991_s0 + $0x333] sm:$0xff] }
  0xec   :  { %6388 = vmatprep.mubr.msk.f32.mxu0 %vm2208_vm0, %v572_v57  ;;  %7611 = vrot.lane.b32.xlu0 %v7610_v60, %s7995_s26  ;;  %v7273_v57 = vunpack.i.l.bf16 %v9609_v41  ;;  %v7640_v60 = vpack.i.bf16 %v497_v44, %v496_v43  ;;  %v2242_v27 = vsel %vm2208_vm0, %v65_v11, %v7274_v9  ;;  %v7670_v43 = vpack.i.bf16 %v501_v32, %v500_v31  ;;  %v376_v2 = vld [vmem:[%s11991_s0 + $0x372] sm:$0xff] }
  0xed   :  { %7616 = vrot.lane.b32.xlu1 %v7615_v63, %s7994_s25  ;;  %v7645_v63 = vpack.i.bf16 %v243_v48, %v242_v45  ;;  %v7282_v7 = vpop.permute.xlu0 %7281  ;;  %v7287_v13 = vpop.permute.xlu1 %7286  ;;  %v578_v45 = vld [vmem:[%s11991_s0 + $0x154] sm:$0xff]  ;;  %v375_v48 = vld [vmem:[%s11991_s0 + $0x362] sm:$0xff] }
  0xee   :  { %6721 = vmatpush1.bf16.msra.mxu1 %v6720_v61  ;;  %v2241_v10 = vsel %vm2208_vm0, %v64_v62, %v7273_v57  ;;  %v7284_v33 = vunpack.i.h.bf16 %v7282_v7  ;;  %v7289_v40 = vunpack.i.h.bf16 %v7287_v13  ;;  %v579_v57 = vld [vmem:[%s11991_s0 + $0x15c] sm:$0xff]  ;;  %v7685_v61 = vpack.i.bf16 %v503_v52, %v502_v51  ;;  %v248_v62 = vld [vmem:[%s11991_s0 + $0x371] sm:$0xff] }
  0xef   :  { %3252 = vmatmul.mubr.f32.gmra.mrb[56].mxu0 %v2495_v25  ;;  %v2370_v23 = vsel %vm2337_vm1, %v2241_v10, %v7278_v6  ;;  %v7288_v25 = vunpack.i.l.bf16 %v7287_v13  ;;  %v69_v9 = vld [vmem:[%s11991_s0 + $0x170] sm:$0xff] }
  0xf0   :  { %6389 = vmatprep.mubr.msk.f32.mxu0 %vm2208_vm0, %v573_v15  ;;  %7621 = vrot.lane.b32.xlu0 %v7620_v18, %s7996_s14  ;;  %v7655_v15 = vpack.i.bf16 %v499_v5, %v498_v4  ;;  %v7283_v18 = vunpack.i.l.bf16 %v7282_v7 }
  0xf1   :  { %7626 = vrot.lane.b32.xlu1 %v7625_v20, %s7995_s26  ;;  %v372_v20 = vld [vmem:[%s11991_s0 + $0x34a] sm:$0xff]  ;;  %v7292_v24 = vpop.permute.xlu0 %7291  ;;  %v7297_v38 = vpop.permute.xlu1 %7296  ;;  %v2243_v41 = vsel %vm2208_vm0, %v66_v29, %v7288_v25  ;;  %v378_v29 = vld [vmem:[%s11991_s0 + $0x382] sm:$0xff] }
  0xf2   :  { %v7665_v30 = vpack.i.bf16 %v373_v21, %v372_v20  ;;  %v2499_v34 = vsel %vm2466_vm2, %v2370_v23, %v7283_v18  ;;  %v7293_v37 = vunpack.i.l.bf16 %v7292_v24  ;;  %v7298_v49 = vunpack.i.l.bf16 %v7297_v38  ;;  %v250_v18 = vld [vmem:[%s11991_s0 + $0x381] sm:$0xff] }
  0xf3   :  { %3258 = vmatmul.mubr.f32.gmra.mrb[58].mxu0 %v2496_v47  ;;  %v374_v47 = vld [vmem:[%s11991_s0 + $0x35a] sm:$0xff]  ;;  %v7294_v53 = vunpack.i.h.bf16 %v7292_v24  ;;  %v7299_v0 = vunpack.i.h.bf16 %v7297_v38 }
  0xf4   :  { %6390 = vmatprep.mubr.msk.f32.mxu0 %vm2208_vm0, %v574_v36  ;;  %7631 = vrot.lane.b32.xlu0 %v7630_v39, %s7994_s25  ;;  %v247_v36 = vld [vmem:[%s11991_s0 + $0x361] sm:$0xff]  ;;  %v2371_v39 = vsel %vm2337_vm1, %v2242_v27, %v7279_v22  ;;  %v2372_v54 = vsel %vm2337_vm1, %v2243_v41, %v7293_v37  ;;  %v7680_v59 = vpack.i.bf16 %v375_v48, %v374_v47  ;;  %v581_v24 = vld [vmem:[%s11991_s0 + $0x174] sm:$0xff] }
  0xf5   :  { %7636 = vrot.lane.b32.xlu1 %v7635_v42, %s7996_s14  ;;  %v67_v42 = vld [vmem:[%s11991_s0 + $0x158] sm:$0xff]  ;;  %v7302_v44 = vpop.permute.xlu0 %7301  ;;  %v7675_v46 = vpack.i.bf16 %v247_v36, %v246_v35  ;;  %v2500_v50 = vsel %vm2466_vm2, %v2371_v39, %v7284_v33  ;;  %v7307_v55 = vpop.permute.xlu1 %7306  ;;  %v2501_v1 = vsel %vm2466_vm2, %v2372_v54, %v7298_v49  ;;  %v506_v33 = vld [vmem:[%s11991_s0 + $0x383] sm:$0xff] }
  0xf6   :  { %v7303_v56 = vunpack.i.l.bf16 %v7302_v44  ;;  %v7308_v4 = vunpack.i.l.bf16 %v7307_v55  ;;  %v7304_v7 = vunpack.i.h.bf16 %v7302_v44  ;;  %v7309_v20 = vunpack.i.h.bf16 %v7307_v55  ;;  %v70_v27 = vld [vmem:[%s11991_s0 + $0x178] sm:$0xff]  ;;  %v583_v55 = vld [vmem:[%s11991_s0 + $0x184] sm:$0xff] }
  0xf7   :  { %3264 = vmatmul.mubr.f32.gmra.mrb[60].mxu0 %v2497_v3  ;;  %v377_v3 = vld [vmem:[%s11991_s0 + $0x37a] sm:$0xff] }
  0xf8   :  { %6391 = vmatprep.mubr.msk.f32.mxu0 %vm2208_vm0, %v575_v58  ;;  %7641 = vrot.lane.b32.xlu0 %v7640_v60, %s7995_s26  ;;  %v2244_v58 = vsel %vm2208_vm0, %v67_v42, %v7289_v40  ;;  %v68_v60 = vld [vmem:[%s11991_s0 + $0x168] sm:$0xff]  ;;  %v7695_v13 = vpack.i.bf16 %v377_v3, %v376_v2  ;;  %v2246_v25 = vsel %vm2208_vm0, %v69_v9, %v7304_v7  ;;  %v71_v40 = vld [vmem:[%s11991_s0 + $0x180] sm:$0xff]  ;;  %v73_v7 = vld [vmem:[%s11991_s0 + $0x198] sm:$0xff] }
  0xf9   :  { %7646 = vrot.lane.b32.xlu1 %v7645_v63, %s7994_s25  ;;  %v249_v63 = vld [vmem:[%s11991_s0 + $0x379] sm:$0xff]  ;;  %v7312_v5 = vpop.permute.xlu0 %7311  ;;  %v2373_v6 = vsel %vm2337_vm1, %v2244_v58, %v7294_v53  ;;  %v2245_v8 = vsel %vm2208_vm0, %v68_v60, %v7303_v56  ;;  %v7317_v11 = vpop.permute.xlu1 %7316  ;;  %v2375_v37 = vsel %vm2337_vm1, %v2246_v25, %v7309_v20  ;;  %v72_v58 = vld [vmem:[%s11991_s0 + $0x190] sm:$0xff] }
  0xfa   :  { %v7690_v10 = vpack.i.bf16 %v249_v63, %v248_v62  ;;  %v7313_v16 = vunpack.i.l.bf16 %v7312_v5  ;;  %v2502_v17 = vsel %vm2466_vm2, %v2373_v6, %v7299_v0  ;;  %v2374_v21 = vsel %vm2337_vm1, %v2245_v8, %v7308_v4  ;;  %v380_v49 = vld [vmem:[%s11991_s0 + $0x39a] sm:$0xff]  ;;  %v254_v0 = vld [vmem:[%s11991_s0 + $0x3a9] sm:$0xff] }
  0xfb   :  { %3270 = vmatmul.mubr.f32.gmra.mrb[62].mxu0 %v2498_v19  ;;  %v251_v19 = vld [vmem:[%s11991_s0 + $0x389] sm:$0xff]  ;;  %v7318_v23 = vunpack.i.l.bf16 %v7317_v11  ;;  %v7314_v31 = vunpack.i.h.bf16 %v7312_v5  ;;  %v7319_v38 = vunpack.i.h.bf16 %v7317_v11  ;;  %v508_v60 = vld [vmem:[%s11991_s0 + $0x39b] sm:$0xff] }
  0xfc   :  { %6392 = vmatprep.mubr.msk.f32.mxu0 %vm2208_vm0, %v576_v14  ;;  %7651 = vrot.lane.b32.xlu0 %v7650_v12, %s7996_s14  ;;  %v580_v12 = vld [vmem:[%s11991_s0 + $0x16c] sm:$0xff]  ;;  %v2503_v32 = vsel %vm2466_vm2, %v2374_v21, %v7313_v16  ;;  %v74_v25 = vld [vmem:[%s11991_s0 + $0x1a0] sm:$0xff] }
  0xfd   :  { %7656 = vrot.lane.b32.xlu1 %v7655_v15, %s7995_s26  ;;  %v504_v14 = vld [vmem:[%s11991_s0 + $0x373] sm:$0xff]  ;;  %v505_v15 = vld [vmem:[%s11991_s0 + $0x37b] sm:$0xff]  ;;  %v7322_v22 = vpop.permute.xlu0 %7321  ;;  %v7327_v36 = vpop.permute.xlu1 %7326  ;;  %v2247_v39 = vsel %vm2208_vm0, %v70_v27, %v7318_v23  ;;  %v2504_v48 = vsel %vm2466_vm2, %v2375_v37, %v7314_v31  ;;  %v2248_v56 = vsel %vm2208_vm0, %v71_v40, %v7319_v38  ;;  %v510_v16 = vld [vmem:[%s11991_s0 + $0x3ab] sm:$0xff] }
  0xfe   :  { %v7323_v35 = vunpack.i.l.bf16 %v7322_v22  ;;  %v7328_v47 = vunpack.i.l.bf16 %v7327_v36  ;;  %v7324_v51 = vunpack.i.h.bf16 %v7322_v22  ;;  %v7329_v62 = vunpack.i.h.bf16 %v7327_v36  ;;  %v585_v22 = vld [vmem:[%s11991_s0 + $0x19c] sm:$0xff]  ;;  %v75_v38 = vld [vmem:[%s11991_s0 + $0x1a8] sm:$0xff] }
  0xff   :  { %3276 = vmatmul.mubr.f32.gmra.mrb[64].mxu0 %v2499_v34  ;;  %v507_v34 = vld [vmem:[%s11991_s0 + $0x38b] sm:$0xff]  ;;  %v256_v27 = vld [vmem:[%s11991_s0 + $0x3c1] sm:$0xff] }
 0x100   :  { %6393 = vmatprep.mubr.msk.f32.mxu0 %vm2208_vm0, %v577_v26  ;;  %7661 = vrot.lane.b32.xlu0 %v7660_v28, %s7994_s25  ;;  %v7700_v26 = vpack.i.bf16 %v505_v15, %v504_v14  ;;  %v7705_v28 = vpack.i.bf16 %v251_v19, %v250_v18  ;;  %v7715_v44 = vpack.i.bf16 %v507_v34, %v506_v33  ;;  %v384_v31 = vld [vmem:[%s11991_s0 + $0x3c2] sm:$0xff] }
 0x101   :  { %7666 = vrot.lane.b32.xlu1 %v7665_v30, %s7996_s14  ;;  %v379_v30 = vld [vmem:[%s11991_s0 + $0x38a] sm:$0xff]  ;;  %v7332_v42 = vpop.permute.xlu0 %7331  ;;  %v2376_v52 = vsel %vm2337_vm1, %v2247_v39, %v7323_v35  ;;  %v7337_v53 = vpop.permute.xlu1 %7336  ;;  %v2377_v4 = vsel %vm2337_vm1, %v2248_v56, %v7324_v51  ;;  %v76_v56 = vld [vmem:[%s11991_s0 + $0x1b8] sm:$0xff] }
 0x102   :  { %v7710_v41 = vpack.i.bf16 %v379_v30, %v378_v29  ;;  %v7333_v54 = vunpack.i.l.bf16 %v7332_v42  ;;  %v2505_v63 = vsel %vm2466_vm2, %v2376_v52, %v7328_v47  ;;  %v7338_v2 = vunpack.i.l.bf16 %v7337_v53  ;;  %v258_v47 = vld [vmem:[%s11991_s0 + $0x3d1] sm:$0xff] }
 0x103   :  { %3282 = vmatmul.mubr.f32.gmra.mrb[66].mxu0 %v2500_v50  ;;  %v381_v50 = vld [vmem:[%s11991_s0 + $0x3a2] sm:$0xff]  ;;  %v7334_v5 = vunpack.i.h.bf16 %v7332_v42  ;;  %v2506_v15 = vsel %vm2466_vm2, %v2377_v4, %v7329_v62  ;;  %v7339_v18 = vunpack.i.h.bf16 %v7337_v53  ;;  %v587_v53 = vld [vmem:[%s11991_s0 + $0x1ac] sm:$0xff] }
 0x104   :  { %6394 = vmatprep.mubr.msk.f32.mxu0 %vm2208_vm0, %v578_v45  ;;  %7671 = vrot.lane.b32.xlu0 %v7670_v43, %s7995_s26  ;;  %v582_v43 = vld [vmem:[%s11991_s0 + $0x17c] sm:$0xff]  ;;  %v2249_v6 = vsel %vm2208_vm0, %v72_v58, %v7333_v54  ;;  %v386_v58 = vld [vmem:[%s11991_s0 + $0x3d2] sm:$0xff] }
 0x105   :  { %7676 = vrot.lane.b32.xlu1 %v7675_v46, %s7994_s25  ;;  %v252_v45 = vld [vmem:[%s11991_s0 + $0x399] sm:$0xff]  ;;  %v253_v46 = vld [vmem:[%s11991_s0 + $0x3a1] sm:$0xff]  ;;  %v7342_v3 = vpop.permute.xlu0 %7341  ;;  %v7347_v9 = vpop.permute.xlu1 %7346  ;;  %v2378_v19 = vsel %vm2337_vm1, %v2249_v6, %v7338_v2  ;;  %v2250_v23 = vsel %vm2208_vm0, %v73_v7, %v7334_v5 }
 0x106   :  { %v7343_v14 = vunpack.i.l.bf16 %v7342_v3  ;;  %v7348_v21 = vunpack.i.l.bf16 %v7347_v9  ;;  %v7344_v29 = vunpack.i.h.bf16 %v7342_v3  ;;  %v2379_v35 = vsel %vm2337_vm1, %v2250_v23, %v7339_v18  ;;  %v514_v62 = vld [vmem:[%s11991_s0 + $0x3d3] sm:$0xff]  ;;  %v77_v5 = vld [vmem:[%s11991_s0 + $0x1c0] sm:$0xff]  ;;  %v78_v23 = vld [vmem:[%s11991_s0 + $0x1c8] sm:$0xff] }
 0x107   :  { %3288 = vmatmul.mubr.f32.gmra.mrb[68].mxu0 %v2501_v1  ;;  %v255_v1 = vld [vmem:[%s11991_s0 + $0x3b1] sm:$0xff]  ;;  %v7349_v36 = vunpack.i.h.bf16 %v7347_v9 }
 0x108   :  { %6395 = vmatprep.mubr.msk.f32.mxu0 %vm2208_vm0, %v579_v57  ;;  %7681 = vrot.lane.b32.xlu0 %v7680_v59, %s7996_s14  ;;  %v7720_v57 = vpack.i.bf16 %v253_v46, %v252_v45  ;;  %v7725_v59 = vpack.i.bf16 %v381_v50, %v380_v49  ;;  %v7735_v11 = vpack.i.bf16 %v255_v1, %v254_v0 }
 0x109   :  { %7686 = vrot.lane.b32.xlu1 %v7685_v61, %s7995_s26  ;;  %v509_v61 = vld [vmem:[%s11991_s0 + $0x3a3] sm:$0xff]  ;;  %v7352_v20 = vpop.permute.xlu0 %7351  ;;  %v2507_v30 = vsel %vm2466_vm2, %v2378_v19, %v7343_v14  ;;  %v7357_v34 = vpop.permute.xlu1 %7356  ;;  %v2251_v37 = vsel %vm2208_vm0, %v74_v25, %v7348_v21  ;;  %v2508_v46 = vsel %vm2466_vm2, %v2379_v35, %v7344_v29  ;;  %v2252_v54 = vsel %vm2208_vm0, %v75_v38, %v7349_v36  ;;  %v516_v25 = vld [vmem:[%s11991_s0 + $0x3eb] sm:$0xff]  ;;  %v262_v29 = vld [vmem:[%s11991_s0 + $0x3f9] sm:$0xff] }
 0x10a   :  { %v7730_v8 = vpack.i.bf16 %v509_v61, %v508_v60  ;;  %v7353_v33 = vunpack.i.l.bf16 %v7352_v20  ;;  %v7358_v45 = vunpack.i.l.bf16 %v7357_v34  ;;  %v7354_v49 = vunpack.i.h.bf16 %v7352_v20  ;;  %v388_v14 = vld [vmem:[%s11991_s0 + $0x3ea] sm:$0xff] }
 0x10b   :  { %3294 = vmatmul.mubr.f32.gmra.mrb[70].mxu0 %v2502_v17  ;;  %v511_v17 = vld [vmem:[%s11991_s0 + $0x3b3] sm:$0xff]  ;;  %v7359_v60 = vunpack.i.h.bf16 %v7357_v34  ;;  %v589_v20 = vld [vmem:[%s11991_s0 + $0x1c4] sm:$0xff] }
 0x10c   :  { %6396 = vmatprep.mubr.msk.f32.mxu0 %vm2208_vm0, %v580_v12  ;;  %7691 = vrot.lane.b32.xlu0 %v7690_v10, %s7994_s25  ;;  %v584_v10 = vld [vmem:[%s11991_s0 + $0x194] sm:$0xff]  ;;  %v382_v12 = vld [vmem:[%s11991_s0 + $0x3aa] sm:$0xff]  ;;  %v2380_v50 = vsel %vm2337_vm1, %v2251_v37, %v7353_v33  ;;  %v2381_v2 = vsel %vm2337_vm1, %v2252_v54, %v7354_v49  ;;  %v80_v54 = vld [vmem:[%s11991_s0 + $0x1e0] sm:$0xff] }
 0x10d   :  { %7696 = vrot.lane.b32.xlu1 %v7695_v13, %s7996_s14  ;;  %v383_v13 = vld [vmem:[%s11991_s0 + $0x3b2] sm:$0xff]  ;;  %v7362_v40 = vpop.permute.xlu0 %7361  ;;  %v7367_v51 = vpop.permute.xlu1 %7366  ;;  %v2509_v61 = vsel %vm2466_vm2, %v2380_v50, %v7358_v45  ;;  %v518_v45 = vld [vmem:[%s11991_s0 + $0x3fb] sm:$0xff] }
 0x10e   :  { %v7363_v52 = vunpack.i.l.bf16 %v7362_v40  ;;  %v7368_v0 = vunpack.i.l.bf16 %v7367_v51  ;;  %v7364_v3 = vunpack.i.h.bf16 %v7362_v40  ;;  %v79_v36 = vld [vmem:[%s11991_s0 + $0x1d0] sm:$0xff] }
 0x10f   :  { %3300 = vmatmul.mubr.f32.gmra.mrb[72].mxu0 %v2503_v32  ;;  %v385_v32 = vld [vmem:[%s11991_s0 + $0x3ca] sm:$0xff] }
 0x110   :  { %6397 = vmatprep.mubr.msk.f32.mxu0 %vm2208_vm0, %v581_v24  ;;  %7701 = vrot.lane.b32.xlu0 %v7700_v26, %s7995_s26  ;;  %v7740_v24 = vpack.i.bf16 %v383_v13, %v382_v12  ;;  %v7745_v26 = vpack.i.bf16 %v511_v17, %v510_v16  ;;  %v7755_v42 = vpack.i.bf16 %v385_v32, %v384_v31  ;;  %v7369_v16 = vunpack.i.h.bf16 %v7367_v51  ;;  %v591_v51 = vld [vmem:[%s11991_s0 + $0x1d4] sm:$0xff] }
 0x111   :  { %7706 = vrot.lane.b32.xlu1 %v7705_v28, %s7994_s25  ;;  %v257_v28 = vld [vmem:[%s11991_s0 + $0x3c9] sm:$0xff]  ;;  %v7372_v1 = vpop.permute.xlu0 %7371  ;;  %v2253_v4 = vsel %vm2208_vm0, %v76_v56, %v7363_v52  ;;  %v7377_v7 = vpop.permute.xlu1 %7376  ;;  %v2510_v13 = vsel %vm2466_vm2, %v2381_v2, %v7359_v60  ;;  %v2254_v21 = vsel %vm2208_vm0, %v77_v5, %v7364_v3  ;;  %v264_v56 = vld [vmem:[%s11991_s0 + $0x411] sm:$0xff] }
 0x112   :  { %v7750_v39 = vpack.i.bf16 %v257_v28, %v256_v27  ;;  %v7373_v12 = vunpack.i.l.bf16 %v7372_v1  ;;  %v2382_v17 = vsel %vm2337_vm1, %v2253_v4, %v7368_v0  ;;  %v7378_v19 = vunpack.i.l.bf16 %v7377_v7  ;;  %v392_v60 = vld [vmem:[%s11991_s0 + $0x412] sm:$0xff]  ;;  %v81_v3 = vld [vmem:[%s11991_s0 + $0x1e8] sm:$0xff] }
 0x113   :  { %3306 = vmatmul.mubr.f32.gmra.mrb[74].mxu0 %v2504_v48  ;;  %v259_v48 = vld [vmem:[%s11991_s0 + $0x3d9] sm:$0xff]  ;;  %v7374_v27 = vunpack.i.h.bf16 %v7372_v1  ;;  %v2383_v33 = vsel %vm2337_vm1, %v2254_v21, %v7369_v16  ;;  %v7379_v34 = vunpack.i.h.bf16 %v7377_v7  ;;  %v82_v21 = vld [vmem:[%s11991_s0 + $0x1f0] sm:$0xff] }
 0x114   :  { %6398 = vmatprep.mubr.msk.f32.mxu0 %vm2208_vm0, %v582_v43  ;;  %7711 = vrot.lane.b32.xlu0 %v7710_v41, %s7996_s14  ;;  %v586_v41 = vld [vmem:[%s11991_s0 + $0x1a4] sm:$0xff]  ;;  %v2511_v28 = vsel %vm2466_vm2, %v2382_v17, %v7373_v12  ;;  %v2255_v35 = vsel %vm2208_vm0, %v78_v23, %v7378_v19 }
 0x115   :  { %7716 = vrot.lane.b32.xlu1 %v7715_v44, %s7995_s26  ;;  %v512_v43 = vld [vmem:[%s11991_s0 + $0x3c3] sm:$0xff]  ;;  %v513_v44 = vld [vmem:[%s11991_s0 + $0x3cb] sm:$0xff]  ;;  %v7382_v18 = vpop.permute.xlu0 %7381  ;;  %v7387_v32 = vpop.permute.xlu1 %7386  ;;  %v2256_v52 = vsel %vm2208_vm0, %v79_v36, %v7379_v34  ;;  %v83_v34 = vld [vmem:[%s11991_s0 + $0x1f8] sm:$0xff] }
 0x116   :  { %v7383_v31 = vunpack.i.l.bf16 %v7382_v18  ;;  %v266_v12 = vld [vmem:[%s11991_s0 + $0x421] sm:$0xff] }
 0x117   :  { %3312 = vmatmul.mubr.f32.gmra.mrb[76].mxu0 %v2505_v63  ;;  %v515_v63 = vld [vmem:[%s11991_s0 + $0x3db] sm:$0xff] }
 0x118   :  { %6399 = vmatprep.mubr.msk.f32.mxu0 %vm2208_vm0, %v583_v55  ;;  %7721 = vrot.lane.b32.xlu0 %v7720_v57, %s7994_s25  ;;  %v7760_v55 = vpack.i.bf16 %v513_v44, %v512_v43  ;;  %v7765_v57 = vpack.i.bf16 %v259_v48, %v258_v47  ;;  %v7775_v9 = vpack.i.bf16 %v515_v63, %v514_v62  ;;  %v7388_v43 = vunpack.i.l.bf16 %v7387_v32  ;;  %v394_v23 = vld [vmem:[%s11991_s0 + $0x422] sm:$0xff] }
 0x119   :  { %7726 = vrot.lane.b32.xlu1 %v7725_v59, %s7996_s14  ;;  %v387_v59 = vld [vmem:[%s11991_s0 + $0x3da] sm:$0xff]  ;;  %v7392_v38 = vpop.permute.xlu0 %7391  ;;  %v2512_v44 = vsel %vm2466_vm2, %v2383_v33, %v7374_v27  ;;  %v7384_v47 = vunpack.i.h.bf16 %v7382_v18  ;;  %v2384_v48 = vsel %vm2337_vm1, %v2255_v35, %v7383_v31  ;;  %v7397_v49 = vpop.permute.xlu1 %7396  ;;  %v593_v18 = vld [vmem:[%s11991_s0 + $0x1ec] sm:$0xff]  ;;  %v522_v27 = vld [vmem:[%s11991_s0 + $0x423] sm:$0xff] }
 0x11a   :  { %v7770_v6 = vpack.i.bf16 %v387_v59, %v386_v58  ;;  %v7393_v50 = vunpack.i.l.bf16 %v7392_v38  ;;  %v7389_v58 = vunpack.i.h.bf16 %v7387_v32  ;;  %v2513_v59 = vsel %vm2466_vm2, %v2384_v48, %v7388_v43  ;;  %v396_v43 = vld [vmem:[%s11991_s0 + $0x43a] sm:$0xff] }
 0x11b   :  { %3318 = vmatmul.mubr.f32.gmra.mrb[78].mxu0 %v2506_v15  ;;  %v389_v15 = vld [vmem:[%s11991_s0 + $0x3f2] sm:$0xff]  ;;  %v7398_v62 = vunpack.i.l.bf16 %v7397_v49  ;;  %v2385_v0 = vsel %vm2337_vm1, %v2256_v52, %v7384_v47  ;;  %v7394_v1 = vunpack.i.h.bf16 %v7392_v38  ;;  %v84_v52 = vld [vmem:[%s11991_s0 + $0x208] sm:$0xff] }
 0x11c   :  { %6400 = vmatprep.mubr.msk.f32.mxu0 %vm2208_vm0, %v584_v10  ;;  %7731 = vrot.lane.b32.xlu0 %v7730_v8, %s7995_s26  ;;  %v588_v8 = vld [vmem:[%s11991_s0 + $0x1bc] sm:$0xff]  ;;  %v260_v10 = vld [vmem:[%s11991_s0 + $0x3e9] sm:$0xff]  ;;  %v2257_v2 = vsel %vm2208_vm0, %v80_v54, %v7393_v50 }
 0x11d   :  { %7736 = vrot.lane.b32.xlu1 %v7735_v11, %s7994_s25  ;;  %v261_v11 = vld [vmem:[%s11991_s0 + $0x3f1] sm:$0xff]  ;;  %v7402_v63 = vpop.permute.xlu0 %7401  ;;  %v7407_v5 = vpop.permute.xlu1 %7406  ;;  %v2258_v19 = vsel %vm2208_vm0, %v81_v3, %v7394_v1  ;;  %v524_v54 = vld [vmem:[%s11991_s0 + $0x43b] sm:$0xff] }
 0x11e   :  { %v7408_v17 = vunpack.i.l.bf16 %v7407_v5  ;;  %v7409_v32 = vunpack.i.h.bf16 %v7407_v5  ;;  %v85_v1 = vld [vmem:[%s11991_s0 + $0x210] sm:$0xff] }
 0x11f   :  { %3324 = vmatmul.mubr.f32.gmra.mrb[80].mxu0 %v2507_v30  ;;  %v263_v30 = vld [vmem:[%s11991_s0 + $0x401] sm:$0xff] }
 0x120   :  { %6401 = vmatprep.mubr.msk.f32.mxu0 %vm2208_vm0, %v585_v22  ;;  %7741 = vrot.lane.b32.xlu0 %v7740_v24, %s7996_s14  ;;  %v7780_v22 = vpack.i.bf16 %v261_v11, %v260_v10  ;;  %v7785_v24 = vpack.i.bf16 %v389_v15, %v388_v14  ;;  %v7795_v40 = vpack.i.bf16 %v263_v30, %v262_v29  ;;  %v7403_v10 = vunpack.i.l.bf16 %v7402_v63 }
 0x121   :  { %7746 = vrot.lane.b32.xlu1 %v7745_v26, %s7995_s26  ;;  %v517_v26 = vld [vmem:[%s11991_s0 + $0x3f3] sm:$0xff]  ;;  %v2514_v11 = vsel %vm2466_vm2, %v2385_v0, %v7389_v58  ;;  %v7399_v14 = vunpack.i.h.bf16 %v7397_v49  ;;  %v2386_v15 = vsel %vm2337_vm1, %v2257_v2, %v7398_v62  ;;  %v7412_v16 = vpop.permute.xlu0 %7411  ;;  %v7417_v30 = vpop.permute.xlu1 %7416  ;;  %v2259_v33 = vsel %vm2208_vm0, %v82_v21, %v7408_v17  ;;  %v595_v49 = vld [vmem:[%s11991_s0 + $0x1fc] sm:$0xff]  ;;  %v270_v58 = vld [vmem:[%s11991_s0 + $0x449] sm:$0xff] }
 0x122   :  { %v7790_v37 = vpack.i.bf16 %v517_v26, %v516_v25  ;;  %v7404_v25 = vunpack.i.h.bf16 %v7402_v63  ;;  %v2515_v26 = vsel %vm2466_vm2, %v2386_v15, %v7403_v10  ;;  %v7413_v29 = vunpack.i.l.bf16 %v7412_v16  ;;  %v526_v10 = vld [vmem:[%s11991_s0 + $0x44b] sm:$0xff]  ;;  %v272_v21 = vld [vmem:[%s11991_s0 + $0x461] sm:$0xff] }
 0x123   :  { %3330 = vmatmul.mubr.f32.gmra.mrb[82].mxu0 %v2508_v46  ;;  %v519_v46 = vld [vmem:[%s11991_s0 + $0x403] sm:$0xff]  ;;  %v2387_v31 = vsel %vm2337_vm1, %v2258_v19, %v7399_v14  ;;  %v2260_v50 = vsel %vm2208_vm0, %v83_v34, %v7409_v32  ;;  %v86_v19 = vld [vmem:[%s11991_s0 + $0x218] sm:$0xff] }
 0x124   :  { %6402 = vmatprep.mubr.msk.f32.mxu0 %vm2208_vm0, %v586_v41  ;;  %7751 = vrot.lane.b32.xlu0 %v7750_v39, %s7994_s25  ;;  %v590_v39 = vld [vmem:[%s11991_s0 + $0x1cc] sm:$0xff]  ;;  %v390_v41 = vld [vmem:[%s11991_s0 + $0x3fa] sm:$0xff] }
 0x125   :  { %7756 = vrot.lane.b32.xlu1 %v7755_v42, %s7996_s14  ;;  %v391_v42 = vld [vmem:[%s11991_s0 + $0x402] sm:$0xff]  ;;  %v7422_v36 = vpop.permute.xlu0 %7421  ;;  %v7427_v47 = vpop.permute.xlu1 %7426 }
 0x126   :  { %v7423_v48 = vunpack.i.l.bf16 %v7422_v36  ;;  %v7424_v63 = vunpack.i.h.bf16 %v7422_v36  ;;  %v87_v32 = vld [vmem:[%s11991_s0 + $0x220] sm:$0xff] }
 0x127   :  { %3336 = vmatmul.mubr.f32.gmra.mrb[84].mxu0 %v2509_v61  ;;  %v393_v61 = vld [vmem:[%s11991_s0 + $0x41a] sm:$0xff] }
 0x128   :  { %6403 = vmatprep.mubr.msk.f32.mxu0 %vm2208_vm0, %v587_v53  ;;  %7761 = vrot.lane.b32.xlu0 %v7760_v55, %s7995_s26  ;;  %v7800_v53 = vpack.i.bf16 %v391_v42, %v390_v41  ;;  %v7805_v55 = vpack.i.bf16 %v519_v46, %v518_v45  ;;  %v7815_v7 = vpack.i.bf16 %v393_v61, %v392_v60  ;;  %v7418_v41 = vunpack.i.l.bf16 %v7417_v30 }
 0x129   :  { %7766 = vrot.lane.b32.xlu1 %v7765_v57, %s7994_s25  ;;  %v265_v57 = vld [vmem:[%s11991_s0 + $0x419] sm:$0xff]  ;;  %v2516_v42 = vsel %vm2466_vm2, %v2387_v31, %v7404_v25  ;;  %v7414_v45 = vunpack.i.h.bf16 %v7412_v16  ;;  %v2388_v46 = vsel %vm2337_vm1, %v2259_v33, %v7413_v29  ;;  %v7428_v60 = vunpack.i.l.bf16 %v7427_v47  ;;  %v7432_v61 = vpop.permute.xlu0 %7431  ;;  %v7437_v3 = vpop.permute.xlu1 %7436  ;;  %v400_v25 = vld [vmem:[%s11991_s0 + $0x462] sm:$0xff] }
 0x12a   :  { %v7810_v4 = vpack.i.bf16 %v265_v57, %v264_v56  ;;  %v7419_v56 = vunpack.i.h.bf16 %v7417_v30  ;;  %v2517_v57 = vsel %vm2466_vm2, %v2388_v46, %v7418_v41  ;;  %v2261_v0 = vsel %vm2208_vm0, %v84_v52, %v7423_v48  ;;  %v597_v16 = vld [vmem:[%s11991_s0 + $0x214] sm:$0xff] }
 0x12b   :  { %3342 = vmatmul.mubr.f32.gmra.mrb[86].mxu0 %v2510_v13  ;;  %v267_v13 = vld [vmem:[%s11991_s0 + $0x429] sm:$0xff]  ;;  %v2389_v62 = vsel %vm2337_vm1, %v2260_v50, %v7414_v45  ;;  %v7438_v15 = vunpack.i.l.bf16 %v7437_v3  ;;  %v2262_v17 = vsel %vm2208_vm0, %v85_v1, %v7424_v63  ;;  %v7439_v30 = vunpack.i.h.bf16 %v7437_v3 }
 0x12c   :  { %6404 = vmatprep.mubr.msk.f32.mxu0 %vm2208_vm0, %v588_v8  ;;  %7771 = vrot.lane.b32.xlu0 %v7770_v6, %s7996_s14  ;;  %v592_v6 = vld [vmem:[%s11991_s0 + $0x1e4] sm:$0xff]  ;;  %v520_v8 = vld [vmem:[%s11991_s0 + $0x413] sm:$0xff] }
 0x12d   :  { %7776 = vrot.lane.b32.xlu1 %v7775_v9, %s7995_s26  ;;  %v521_v9 = vld [vmem:[%s11991_s0 + $0x41b] sm:$0xff]  ;;  %v10175_v14 = vpop.permute.xlu0 %7441  ;;  %v2263_v31 = vsel %vm2208_vm0, %v86_v19, %v7438_v15  ;;  %v599_v50 = vld [vmem:[%s11991_s0 + $0x224] sm:$0xff] }
 0x12e   :  { %v404_v15 = vld [vmem:[%s11991_s0 + $0x48a] sm:$0xff] }
 0x12f   :  { %3348 = vmatmul.mubr.f32.gmra.mrb[88].mxu0 %v2511_v28  ;;  %v523_v28 = vld [vmem:[%s11991_s0 + $0x42b] sm:$0xff] }
 0x130   :  { %6405 = vmatprep.mubr.msk.f32.mxu0 %vm2208_vm0, %v589_v20  ;;  %7781 = vrot.lane.b32.xlu0 %v7780_v22, %s7994_s25  ;;  %v7820_v20 = vpack.i.bf16 %v521_v9, %v520_v8  ;;  %v7825_v22 = vpack.i.bf16 %v267_v13, %v266_v12  ;;  %v7835_v38 = vpack.i.bf16 %v523_v28, %v522_v27  ;;  %v7433_v8 = vunpack.i.l.bf16 %v7432_v61  ;;  %v10201_v28 = vpop.permute.xlu1 %7446 }
 0x131   :  { %7786 = vrot.lane.b32.xlu1 %v7785_v24, %s7996_s14  ;;  %v395_v24 = vld [vmem:[%s11991_s0 + $0x42a] sm:$0xff]  ;;  %v2518_v9 = vsel %vm2466_vm2, %v2389_v62, %v7419_v56  ;;  %v7429_v12 = vunpack.i.h.bf16 %v7427_v47  ;;  %v2390_v13 = vsel %vm2337_vm1, %v2261_v0, %v7428_v60  ;;  %v7443_v27 = vunpack.i.l.bf16 %v10175_v14  ;;  %v10210_v34 = vpop.permute.xlu0 %7451  ;;  %v403_v56 = vld [vmem:[%s11991_s0 + $0x47a] sm:$0xff] }
 0x132   :  { %v7830_v35 = vpack.i.bf16 %v395_v24, %v394_v23  ;;  %v7434_v23 = vunpack.i.h.bf16 %v7432_v61  ;;  %v2519_v24 = vsel %vm2466_vm2, %v2390_v13, %v7433_v8  ;;  %v530_v60 = vld [vmem:[%s11991_s0 + $0x473] sm:$0xff]  ;;  %v531_v61 = vld [vmem:[%s11991_s0 + $0x47b] sm:$0xff] }
 0x133   :  { %3354 = vmatmul.mubr.f32.gmra.mrb[90].mxu0 %v2512_v44  ;;  %v397_v44 = vld [vmem:[%s11991_s0 + $0x442] sm:$0xff]  ;;  %v2391_v29 = vsel %vm2337_vm1, %v2262_v17, %v7429_v12  ;;  %v2392_v46 = vsel %vm2337_vm1, %v2263_v31, %v7443_v27  ;;  %v600_v8 = vld [vmem:[%s11991_s0 + $0x234] sm:$0xff] }
 0x134   :  { %6406 = vmatprep.mubr.msk.f32.mxu0 %vm2208_vm0, %v590_v39  ;;  %7791 = vrot.lane.b32.xlu0 %v7790_v37, %s7995_s26  ;;  %v594_v37 = vld [vmem:[%s11991_s0 + $0x1f4] sm:$0xff]  ;;  %v2520_v41 = vsel %vm2466_vm2, %v2391_v29, %v7434_v23  ;;  %v10232_v47 = vpop.permute.xlu1 %7456  ;;  %v601_v23 = vld [vmem:[%s11991_s0 + $0x23c] sm:$0xff] }
 0x135   :  { %7796 = vrot.lane.b32.xlu1 %v7795_v40, %s7994_s25  ;;  %v268_v39 = vld [vmem:[%s11991_s0 + $0x439] sm:$0xff]  ;;  %v269_v40 = vld [vmem:[%s11991_s0 + $0x441] sm:$0xff]  ;;  %v7458_v63 = vunpack.i.l.bf16 %v10232_v47  ;;  %v10260_v0 = vpop.permute.xlu0 %7461  ;;  %v7459_v17 = vunpack.i.h.bf16 %v10232_v47 }
 0x136   :  { %v7463_v12 = vunpack.i.l.bf16 %v10260_v0  ;;  %v533_v29 = vld [vmem:[%s11991_s0 + $0x493] sm:$0xff] }
 0x137   :  { %3360 = vmatmul.mubr.f32.gmra.mrb[92].mxu0 %v2513_v59  ;;  %v271_v59 = vld [vmem:[%s11991_s0 + $0x451] sm:$0xff] }
 0x138   :  { %6407 = vmatprep.mubr.msk.f32.mxu0 %vm2208_vm0, %v591_v51  ;;  %7801 = vrot.lane.b32.xlu0 %v7800_v53, %s7996_s14  ;;  %v7840_v51 = vpack.i.bf16 %v269_v40, %v268_v39  ;;  %v7845_v53 = vpack.i.bf16 %v397_v44, %v396_v43  ;;  %v7855_v5 = vpack.i.bf16 %v271_v59, %v270_v58  ;;  %v7448_v39 = vunpack.i.l.bf16 %v10201_v28  ;;  %v275_v43 = vld [vmem:[%s11991_s0 + $0x479] sm:$0xff] }
 0x139   :  { %7806 = vrot.lane.b32.xlu1 %v7805_v55, %s7995_s26  ;;  %v525_v55 = vld [vmem:[%s11991_s0 + $0x443] sm:$0xff]  ;;  %v7444_v44 = vunpack.i.h.bf16 %v10175_v14 }
 0x13a   :  { %v7850_v2 = vpack.i.bf16 %v525_v55, %v524_v54  ;;  %v402_v55 = vld [vmem:[%s11991_s0 + $0x472] sm:$0xff]  ;;  %v2521_v59 = vsel %vm2466_vm2, %v2392_v46, %v7448_v39  ;;  %v406_v46 = vld [vmem:[%s11991_s0 + $0x49a] sm:$0xff] }
 0x13b   :  { %3366 = vmatmul.mubr.f32.gmra.mrb[94].mxu0 %v2514_v11  ;;  %v527_v11 = vld [vmem:[%s11991_s0 + $0x453] sm:$0xff] }
 0x13c   :  { %6408 = vmatprep.mubr.msk.f32.mxu0 %vm2208_vm0, %v592_v6  ;;  %7811 = vrot.lane.b32.xlu0 %v7810_v4, %s7994_s25  ;;  %v596_v4 = vld [vmem:[%s11991_s0 + $0x20c] sm:$0xff] }
 0x13d   :  { %7816 = vrot.lane.b32.xlu1 %v7815_v7, %s7996_s14  ;;  %v398_v6 = vld [vmem:[%s11991_s0 + $0x44a] sm:$0xff]  ;;  %v399_v7 = vld [vmem:[%s11991_s0 + $0x452] sm:$0xff] }
 0x13f   :  { %3372 = vmatmul.mubr.f32.gmra.mrb[96].mxu0 %v2515_v26  ;;  %v401_v26 = vld [vmem:[%s11991_s0 + $0x46a] sm:$0xff] }
 0x140   :  { %6409 = vmatprep.mubr.msk.f32.mxu0 %vm2208_vm0, %v593_v18  ;;  %7821 = vrot.lane.b32.xlu0 %v7820_v20, %s7995_s26  ;;  %v7860_v18 = vpack.i.bf16 %v399_v7, %v398_v6  ;;  %v7865_v20 = vpack.i.bf16 %v527_v11, %v526_v10  ;;  %v7875_v36 = vpack.i.bf16 %v401_v26, %v400_v25  ;;  %v10270_v7 = vpop.permute.xlu1 %7466  ;;  %v276_v10 = vld [vmem:[%s11991_s0 + $0x489] sm:$0xff]  ;;  %v277_v11 = vld [vmem:[%s11991_s0 + $0x491] sm:$0xff]  ;;  %v90_v26 = vld [vmem:[%s11991_s0 + $0x240] sm:$0xff] }
 0x141   :  { %7826 = vrot.lane.b32.xlu1 %v7825_v22, %s7994_s25  ;;  %v273_v22 = vld [vmem:[%s11991_s0 + $0x469] sm:$0xff]  ;;  %v7890_v6 = vpack.i.bf16 %v403_v56, %v402_v55  ;;  %v7900_v25 = vpack.i.bf16 %v277_v11, %v276_v10  ;;  %v534_v56 = vld [vmem:[%s11991_s0 + $0x49b] sm:$0xff] }
 0x142   :  { %v7870_v33 = vpack.i.bf16 %v273_v22, %v272_v21  ;;  %v7468_v22 = vunpack.i.l.bf16 %v10270_v7 }
 0x143   :  { %3378 = vmatmul.mubr.f32.gmra.mrb[98].mxu0 %v2516_v42  ;;  %v274_v42 = vld [vmem:[%s11991_s0 + $0x471] sm:$0xff] }
 0x144   :  { %6410 = vmatprep.mubr.msk.f32.mxu0 %vm2208_vm0, %v594_v37  ;;  %7831 = vrot.lane.b32.xlu0 %v7830_v35, %s7996_s14  ;;  %v598_v35 = vld [vmem:[%s11991_s0 + $0x21c] sm:$0xff]  ;;  %v7885_v54 = vpack.i.bf16 %v275_v43, %v274_v42  ;;  %v602_v42 = vld [vmem:[%s11991_s0 + $0x244] sm:$0xff]  ;;  %v2267_v43 = vsel %vm2208_vm0, %v90_v26, %v7468_v22 }
 0x145   :  { %7836 = vrot.lane.b32.xlu1 %v7835_v38, %s7995_s26  ;;  %v528_v37 = vld [vmem:[%s11991_s0 + $0x463] sm:$0xff]  ;;  %v529_v38 = vld [vmem:[%s11991_s0 + $0x46b] sm:$0xff] }
 0x146   :  { %v7880_v52 = vpack.i.bf16 %v529_v38, %v528_v37  ;;  %v10321_v38 = vpop.permute.xlu1 %7476  ;;  %v93_v22 = vld [vmem:[%s11991_s0 + $0x260] sm:$0xff] }
 0x147   :  { %3384 = vmatmul.mubr.f32.gmra.mrb[100].mxu0 %v2517_v57  ;;  %v7449_v57 = vunpack.i.h.bf16 %v10201_v28  ;;  %v532_v28 = vld [vmem:[%s11991_s0 + $0x48b] sm:$0xff] }
 0x148   :  { %6411 = vmatprep.mubr.msk.f32.mxu0 %vm2208_vm0, %v595_v49  ;;  %7841 = vrot.lane.b32.xlu0 %v7840_v51, %s7994_s25  ;;  %v7453_v49 = vunpack.i.l.bf16 %v10210_v34  ;;  %v2264_v51 = vsel %vm2208_vm0, %v87_v32, %v7439_v30  ;;  %v7464_v30 = vunpack.i.h.bf16 %v10260_v0 }
 0x149   :  { %7846 = vrot.lane.b32.xlu1 %v7845_v53, %s7996_s14  ;;  %v88_v53 = vld [vmem:[%s11991_s0 + $0x230] sm:$0xff]  ;;  %v2393_v1 = vsel %vm2337_vm1, %v2264_v51, %v7444_v44  ;;  %v10335_v44 = vld [vmem:[%s11994_s2] ss:$0 sm:$0xff]  ;;  %v407_v51 = vld [vmem:[%s11991_s0 + $0x4a2] sm:$0xff] }
 0x14a   :  { %v2522_v14 = vsel %vm2466_vm2, %v2393_v1, %v7449_v57  ;;  %v535_v57 = vld [vmem:[%s11991_s0 + $0x4a3] sm:$0xff]  ;;  %v603_v1 = vld [vmem:[%s11991_s0 + $0x24c] sm:$0xff] }
 0x14b   :  { %3390 = vmatmul.mubr.f32.gmra.mrb[102].mxu0 %v2518_v9  ;;  %v7895_v9 = vpack.i.bf16 %v531_v61, %v530_v60  ;;  %v10357_v61 = vpop.permute.xlu1 %7486 }
 0x14c   :  { %6412 = vmatprep.mubr.msk.f32.mxu0 %vm2208_vm0, %v596_v4  ;;  %7851 = vrot.lane.b32.xlu0 %v7850_v2, %s7995_s26  ;;  %v7454_v2 = vunpack.i.h.bf16 %v10210_v34  ;;  %v2265_v4 = vsel %vm2208_vm0, %v88_v53, %v7453_v49  ;;  %v279_v34 = vld [vmem:[%s11991_s0 + $0x4a1] sm:$0xff]  ;;  %v7478_v53 = vunpack.i.l.bf16 %v10321_v38 }
 0x14d   :  { %7856 = vrot.lane.b32.xlu1 %v7855_v5, %s7994_s25  ;;  %v89_v5 = vld [vmem:[%s11991_s0 + $0x238] sm:$0xff]  ;;  %v2394_v19 = vsel %vm2337_vm1, %v2265_v4, %v7458_v63 }
 0x14e   :  { %v2523_v32 = vsel %vm2466_vm2, %v2394_v19, %v7463_v12  ;;  %v92_v4 = vld [vmem:[%s11991_s0 + $0x258] sm:$0xff] }
 0x14f   :  { %3396 = vmatmul.mubr.f32.gmra.mrb[104].mxu0 %v2519_v24  ;;  %v2266_v24 = vsel %vm2208_vm0, %v89_v5, %v7454_v2  ;;  %v7925_v5 = vpack.i.bf16 %v535_v57, %v534_v56  ;;  %v408_v12 = vld [vmem:[%s11991_s0 + $0x4b2] sm:$0xff] }
 0x150   :  { %6413 = vmatprep.mubr.msk.f32.mxu0 %vm2208_vm0, %v597_v16  ;;  %7861 = vrot.lane.b32.xlu0 %v7860_v18, %s7996_s14  ;;  %v405_v16 = vld [vmem:[%s11991_s0 + $0x492] sm:$0xff]  ;;  %v2395_v39 = vsel %vm2337_vm1, %v2266_v24, %v7459_v17 }
 0x151   :  { %7866 = vrot.lane.b32.xlu1 %v7865_v20, %s7995_s26  ;;  %v10292_v20 = vpop.permute.xlu0 %7471  ;;  %v7905_v27 = vpack.i.bf16 %v405_v16, %v404_v15  ;;  %v2524_v55 = vsel %vm2466_vm2, %v2395_v39, %v7464_v30  ;;  %v7488_v16 = vunpack.i.l.bf16 %v10357_v61  ;;  %v536_v24 = vld [vmem:[%s11991_s0 + $0x4b3] sm:$0xff]  ;;  %v539_v56 = vld [vmem:[%s11991_s0 + $0x4cb] sm:$0xff] }
 0x152   :  { %v3085_v40 = vpop.f32.mrb[0].mxu0  ;;  %v7473_v37 = vunpack.i.l.bf16 %v10292_v20 }
 0x153   :  { %v3087_v45 = vpop.f32.mrb[1].mxu0  ;;  %3402 = vmatmul.mubr.f32.gmra.mrb[106].mxu0 %v2520_v41 }
 0x154   :  { %v3852_v48 = vmax.f32 %v3085_v40, %v3087_v45  ;;  %6414 = vmatprep.mubr.msk.f32.mxu0 %vm2208_vm0, %v598_v35  ;;  %7871 = vrot.lane.b32.xlu0 %v7870_v33, %s7994_s25  ;;  %v278_v33 = vld [vmem:[%s11991_s0 + $0x499] sm:$0xff]  ;;  %v7469_v35 = vunpack.i.h.bf16 %v10270_v7  ;;  %v91_v40 = vld [vmem:[%s11991_s0 + $0x248] sm:$0xff]  ;;  %v7910_v45 = vpack.i.bf16 %v533_v29, %v532_v28  ;;  %v2396_v60 = vsel %vm2337_vm1, %v2267_v43, %v7473_v37 }
 0x155   :  { %7876 = vrot.lane.b32.xlu1 %v7875_v36, %s7996_s14  ;;  %v10341_v49 = vpop.permute.xlu0 %7481  ;;  %v281_v7 = vld [vmem:[%s11991_s0 + $0x4b9] sm:$0xff]  ;;  %v2525_v10 = vsel %vm2466_vm2, %v2396_v60, %v7478_v53  ;;  %v605_v43 = vld [vmem:[%s11991_s0 + $0x264] sm:$0xff] }
 0x156   :  { %3980 = vst [vmem:[#allocation2] sm:$0xff] %v3852_v48  ;;  %v3091_v58 = vpop.f32.mrb[2].mxu0  ;;  %v7483_v0 = vunpack.i.l.bf16 %v10341_v49  ;;  %v537_v29 = vld [vmem:[%s11991_s0 + $0x4bb] sm:$0xff] }
 0x157   :  { %v3093_v62 = vpop.f32.mrb[3].mxu0  ;;  %3408 = vmatmul.mubr.f32.gmra.mrb[108].mxu0 %v2521_v59 }
 0x158   :  { %v3853_v3 = vmax.f32 %v3091_v58, %v3093_v62  ;;  %6415 = vmatprep.mubr.msk.f32.mxu0 %vm2208_vm0, %v599_v50  ;;  %7881 = vrot.lane.b32.xlu0 %v7880_v52, %s7995_s26  ;;  %v7915_v50 = vpack.i.bf16 %v279_v34, %v278_v33  ;;  %v7474_v58 = vunpack.i.h.bf16 %v10292_v20  ;;  %v2268_v62 = vsel %vm2208_vm0, %v91_v40, %v7469_v35  ;;  %v604_v20 = vld [vmem:[%s11991_s0 + $0x25c] sm:$0xff]  ;;  %v283_v35 = vld [vmem:[%s11991_s0 + $0x4c9] sm:$0xff] }
 0x159   :  { %7886 = vrot.lane.b32.xlu1 %v7885_v54, %s7994_s25  ;;  %v10390_v17 = vpop.permute.xlu0 %7491  ;;  %v282_v34 = vld [vmem:[%s11991_s0 + $0x4c1] sm:$0xff] }
 0x15a   :  { %3981 = vst [vmem:[#allocation2 + $0x8] sm:$0xff] %v3853_v3  ;;  %v3097_v13 = vpop.f32.mrb[4].mxu0  ;;  %v7920_v3 = vpack.i.bf16 %v407_v51, %v406_v46  ;;  %v7940_v46 = vpack.i.bf16 %v537_v29, %v536_v24  ;;  %v7494_v51 = vunpack.i.h.bf16 %v10390_v17 }
 0x15b   :  { %v3099_v18 = vpop.f32.mrb[5].mxu0  ;;  %3414 = vmatmul.mubr.f32.gmra.mrb[110].mxu0 %v2522_v14  ;;  %v7484_v14 = vunpack.i.h.bf16 %v10341_v49  ;;  %v410_v49 = vld [vmem:[%s11991_s0 + $0x4c2] sm:$0xff] }
 0x15c   :  { %v3854_v21 = vmax.f32 %v3097_v13, %v3099_v18  ;;  %6416 = vmatprep.mubr.msk.f32.mxu0 %vm2208_vm0, %v600_v8  ;;  %7891 = vrot.lane.b32.xlu0 %v7890_v6, %s7996_s14  ;;  %v280_v6 = vld [vmem:[%s11991_s0 + $0x4b1] sm:$0xff]  ;;  %v7479_v8 = vunpack.i.h.bf16 %v10321_v38  ;;  %v409_v13 = vld [vmem:[%s11991_s0 + $0x4ba] sm:$0xff]  ;;  %v2397_v18 = vsel %vm2337_vm1, %v2268_v62, %v7474_v58 }
 0x15d   :  { %7896 = vrot.lane.b32.xlu1 %v7895_v9, %s7995_s26  ;;  %v7935_v28 = vpack.i.bf16 %v409_v13, %v408_v12  ;;  %v10423_v39 = vpop.permute.xlu0 %7501  ;;  %v2270_v40 = vsel %vm2208_vm0, %v93_v22, %v7484_v14  ;;  %v284_v13 = vld [vmem:[%s11991_s0 + $0x4d9] sm:$0xff]  ;;  %v285_v14 = vld [vmem:[%s11991_s0 + $0x4e1] sm:$0xff] }
 0x15e   :  { %3982 = vst [vmem:[#allocation2 + $0x10] sm:$0xff] %v3854_v21  ;;  %v3103_v31 = vpop.f32.mrb[6].mxu0  ;;  %v2269_v21 = vsel %vm2208_vm0, %v92_v4, %v7483_v0  ;;  %v2526_v33 = vsel %vm2466_vm2, %v2397_v18, %v7479_v8  ;;  %v7503_v58 = vunpack.i.l.bf16 %v10423_v39  ;;  %v95_v0 = vld [vmem:[%s11991_s0 + $0x270] sm:$0xff] }
 0x15f   :  { %v3105_v36 = vpop.f32.mrb[7].mxu0  ;;  %3420 = vmatmul.mubr.f32.gmra.mrb[112].mxu0 %v2523_v32  ;;  %v2398_v38 = vsel %vm2337_vm1, %v2269_v21, %v7488_v16 }
 0x160   :  { %v3855_v41 = vmax.f32 %v3103_v31, %v3105_v36  ;;  %6417 = vmatprep.mubr.msk.f32.mxu0 %vm2208_vm0, %v601_v23  ;;  %7901 = vrot.lane.b32.xlu0 %v7900_v25, %s7994_s25  ;;  %v7930_v23 = vpack.i.bf16 %v281_v7, %v280_v6  ;;  %v7493_v31 = vunpack.i.l.bf16 %v10390_v17  ;;  %v7489_v36 = vunpack.i.h.bf16 %v10357_v61  ;;  %v606_v6 = vld [vmem:[%s11991_s0 + $0x26c] sm:$0xff] }
 0x161   :  { %v4108_v47 = vld [vmem:[#allocation2] ss:$2 sm:$0xff]  ;;  %v4236_v48 = vld [vmem:[#allocation2 + $0x1] ss:$2 sm:$0xff]  ;;  %7906 = vrot.lane.b32.xlu1 %v7905_v27, %s7996_s14  ;;  %v10407_v27 = vpop.permute.xlu1 %7496 }
 0x162   :  { %v4363_v52 = vmax.f32 %v4108_v47, %v4236_v48  ;;  %3983 = vst [vmem:[#allocation2 + $0x18] sm:$0xff] %v3855_v41  ;;  %v3109_v54 = vpop.f32.mrb[8].mxu0  ;;  %v94_v47 = vld [vmem:[%s11991_s0 + $0x268] sm:$0xff]  ;;  %v7945_v48 = vpack.i.bf16 %v283_v35, %v282_v34  ;;  %v2527_v53 = vsel %vm2466_vm2, %v2398_v38, %v7493_v31  ;;  %v2399_v60 = vsel %vm2337_vm1, %v2270_v40, %v7489_v36 }
 0x163   :  { %v3111_v59 = vpop.f32.mrb[9].mxu0  ;;  %3426 = vmatmul.mubr.f32.gmra.mrb[114].mxu0 %v2524_v55  ;;  %v538_v55 = vld [vmem:[%s11991_s0 + $0x4c3] sm:$0xff]  ;;  %v7499_v61 = vunpack.i.h.bf16 %v10407_v27  ;;  %v2528_v12 = vsel %vm2466_vm2, %v2399_v60, %v7494_v51 }
 0x164   :  { %v3856_v63 = vmax.f32 %v3109_v54, %v3111_v59  ;;  %6418 = vmatprep.mubr.msk.f32.mxu0 %vm2208_vm0, %v602_v42  ;;  %v10366_v2 = vadd.f32 %v10335_v44, %v4363_v52  ;;  %7911 = vrot.lane.b32.xlu0 %v7910_v45, %s7995_s26  ;;  %v7498_v42 = vunpack.i.l.bf16 %v10407_v27  ;;  %v7955_v7 = vpack.i.bf16 %v539_v56, %v538_v55  ;;  %v541_v34 = vld [vmem:[%s11991_s0 + $0x4e3] sm:$0xff] }
 0x165   :  { %7916 = vrot.lane.b32.xlu1 %v7915_v50, %s7994_s25  ;;  %v411_v50 = vld [vmem:[%s11991_s0 + $0x4ca] sm:$0xff]  ;;  %v10452_v59 = vpop.permute.xlu1 %7506  ;;  %v7960_v27 = vpack.i.bf16 %v285_v14, %v284_v13  ;;  %v99_v14 = vld [vmem:[%s11991_s0 + $0x298] sm:$0xff] }
 0x166   :  { %3984 = vst [vmem:[#allocation2 + $0x20] sm:$0xff] %v3856_v63  ;;  %v3115_v9 = vpop.f32.mrb[10].mxu0  ;;  %v4498_v11 = vmax.f32 %v10366_v2, 0.0  ;;  %v2271_v63 = vsel %vm2208_vm0, %v94_v47, %v7498_v42  ;;  %v286_v56 = vld [vmem:[%s11991_s0 + $0x4e9] sm:$0xff] }
 0x167   :  { %v3117_v15 = vpop.f32.mrb[11].mxu0  ;;  %3432 = vmatmul.mubr.f32.gmra.mrb[116].mxu0 %v2525_v10  ;;  %v2400_v17 = vsel %vm2337_vm1, %v2271_v63, %v7503_v58 }
 0x168   :  { %v3857_v19 = vmax.f32 %v3115_v9, %v3117_v15  ;;  %6419 = vmatprep.mubr.msk.f32.mxu0 %vm2208_vm0, %v603_v1  ;;  %4562 = vst [vmem:[#allocation3] sm:$0xff] %v4498_v11  ;;  %7921 = vrot.lane.b32.xlu0 %v7920_v3, %s7996_s14  ;;  %v7950_v1 = vpack.i.bf16 %v411_v50, %v410_v49  ;;  %v7508_v9 = vunpack.i.l.bf16 %v10452_v59  ;;  %v7504_v15 = vunpack.i.h.bf16 %v10423_v39 }
 0x169   :  { %v4110_v25 = vld [vmem:[#allocation2 + $0x10] ss:$2 sm:$0xff]  ;;  %v4238_v26 = vld [vmem:[#allocation2 + $0x11] ss:$2 sm:$0xff]  ;;  %7926 = vrot.lane.b32.xlu1 %v7925_v5, %s7995_s26  ;;  %v10462_v5 = vpop.permute.xlu0 %7511  ;;  %v10478_v18 = vpop.permute.xlu1 %7516 }
 0x16a   :  { %v4364_v30 = vmax.f32 %v4110_v25, %v4238_v26  ;;  %3985 = vst [vmem:[#allocation2 + $0x28] sm:$0xff] %v3857_v19  ;;  %v3121_v32 = vpop.f32.mrb[12].mxu0  ;;  %v412_v19 = vld [vmem:[%s11991_s0 + $0x4da] sm:$0xff]  ;;  %v7513_v22 = vunpack.i.l.bf16 %v10462_v5  ;;  %v7518_v36 = vunpack.i.l.bf16 %v10478_v18  ;;  %v7514_v40 = vunpack.i.h.bf16 %v10462_v5 }
 0x16b   :  { %v3123_v37 = vpop.f32.mrb[13].mxu0  ;;  %3438 = vmatmul.mubr.f32.gmra.mrb[118].mxu0 %v2526_v33  ;;  %v607_v25 = vld [vmem:[%s11991_s0 + $0x274] sm:$0xff]  ;;  %v96_v26 = vld [vmem:[%s11991_s0 + $0x280] sm:$0xff]  ;;  %v7519_v2 = vunpack.i.h.bf16 %v10478_v18 }
 0x16c   :  { %v3858_v41 = vmax.f32 %v3121_v32, %v3123_v37  ;;  %6420 = vmatprep.mubr.msk.f32.mxu0 %vm2208_vm0, %v604_v20  ;;  %v4435_v45 = vadd.f32 %v10335_v44, %v4364_v30  ;;  %7931 = vrot.lane.b32.xlu0 %v7930_v23, %s7994_s25  ;;  %v413_v20 = vld [vmem:[%s11991_s0 + $0x4e2] sm:$0xff]  ;;  %v2272_v23 = vsel %vm2208_vm0, %v95_v0, %v7499_v61  ;;  %v609_v61 = vld [vmem:[%s11991_s0 + $0x28c] sm:$0xff]  ;;  %v610_v18 = vld [vmem:[%s11991_s0 + $0x294] sm:$0xff] }
 0x16d   :  { %7936 = vrot.lane.b32.xlu1 %v7935_v28, %s7996_s14  ;;  %v7509_v28 = vunpack.i.h.bf16 %v10452_v59  ;;  %v2529_v30 = vsel %vm2466_vm2, %v2400_v17, %v7508_v9  ;;  %v7965_v32 = vpack.i.bf16 %v413_v20, %v412_v19  ;;  %v540_v33 = vld [vmem:[%s11991_s0 + $0x4db] sm:$0xff]  ;;  %v10510_v38 = vpop.permute.xlu0 %7521  ;;  %v2401_v39 = vsel %vm2337_vm1, %v2272_v23, %v7504_v15  ;;  %v10523_v47 = vpop.permute.xlu1 %7526  ;;  %v542_v9 = vld [vmem:[%s11991_s0 + $0x4eb] sm:$0xff] }
 0x16e   :  { %3986 = vst [vmem:[#allocation2 + $0x30] sm:$0xff] %v3858_v41  ;;  %v3127_v52 = vpop.f32.mrb[14].mxu0  ;;  %v4499_v54 = vmax.f32 %v4435_v45, 0.0  ;;  %v2273_v42 = vsel %vm2208_vm0, %v96_v26, %v7513_v22  ;;  %v7970_v49 = vpack.i.bf16 %v541_v34, %v540_v33  ;;  %v7523_v51 = vunpack.i.l.bf16 %v10510_v38  ;;  %v287_v23 = vld [vmem:[%s11991_s0 + $0x4f1] sm:$0xff] }
 0x16f   :  { %v3129_v57 = vpop.f32.mrb[15].mxu0  ;;  %3444 = vmatmul.mubr.f32.gmra.mrb[120].mxu0 %v2527_v53  ;;  %v2530_v53 = vsel %vm2466_vm2, %v2401_v39, %v7509_v28  ;;  %v7528_v58 = vunpack.i.l.bf16 %v10523_v47  ;;  %v7524_v63 = vunpack.i.h.bf16 %v10510_v38 }
 0x170   :  { %v3859_v62 = vmax.f32 %v3127_v52, %v3129_v57  ;;  %6421 = vmatprep.mubr.msk.f32.mxu0 %vm2208_vm0, %v605_v43  ;;  %4563 = vst [vmem:[#allocation3 + $0x8] sm:$0xff] %v4499_v54  ;;  %7941 = vrot.lane.b32.xlu0 %v7940_v46, %s7995_s26  ;;  %v97_v43 = vld [vmem:[%s11991_s0 + $0x288] sm:$0xff]  ;;  %v2402_v54 = vsel %vm2337_vm1, %v2273_v42, %v7518_v36 }
 0x171   :  { %v4112_v3 = vld [vmem:[#allocation2 + $0x20] ss:$2 sm:$0xff]  ;;  %v4240_v4 = vld [vmem:[#allocation2 + $0x21] ss:$2 sm:$0xff]  ;;  %7946 = vrot.lane.b32.xlu1 %v7945_v48, %s7994_s25  ;;  %v10534_v55 = vpop.permute.xlu0 %7531  ;;  %v2274_v59 = vsel %vm2208_vm0, %v97_v43, %v7514_v40 }
 0x172   :  { %v4365_v8 = vmax.f32 %v4112_v3, %v4240_v4  ;;  %3987 = vst [vmem:[#allocation2 + $0x38] sm:$0xff] %v3859_v62  ;;  %v3133_v10 = vpop.f32.mrb[16].mxu0  ;;  %v608_v48 = vld [vmem:[%s11991_s0 + $0x284] sm:$0xff]  ;;  %v98_v62 = vld [vmem:[%s11991_s0 + $0x290] sm:$0xff] }
 0x173   :  { %v3135_v16 = vpop.f32.mrb[17].mxu0  ;;  %3450 = vmatmul.mubr.f32.gmra.mrb[122].mxu0 %v2528_v12  ;;  %v414_v4 = vld [vmem:[%s11991_s0 + $0x4ea] sm:$0xff]  ;;  %v2275_v13 = vsel %vm2208_vm0, %v98_v62, %v7528_v58 }
 0x174   :  { %v3860_v21 = vmax.f32 %v3133_v10, %v3135_v16  ;;  %6422 = vmatprep.mubr.msk.f32.mxu0 %vm2208_vm0, %v606_v6  ;;  %v10490_v24 = vadd.f32 %v10335_v44, %v4365_v8  ;;  %7951 = vrot.lane.b32.xlu0 %v7950_v1, %s7996_s14  ;;  %v2531_v1 = vsel %vm2466_vm2, %v2402_v54, %v7523_v51  ;;  %v7533_v6 = vunpack.i.l.bf16 %v10534_v55  ;;  %v100_v36 = vld [vmem:[%s11991_s0 + $0x2a8] sm:$0xff]  ;;  %v101_v51 = vld [vmem:[%s11991_s0 + $0x2b0] sm:$0xff] }
 0x175   :  { %7956 = vrot.lane.b32.xlu1 %v7955_v7, %s7995_s26  ;;  %v10557_v7 = vpop.permute.xlu1 %7536  ;;  %v2403_v8 = vsel %vm2337_vm1, %v2274_v59, %v7519_v2  ;;  %v7529_v10 = vunpack.i.h.bf16 %v10523_v47  ;;  %v10569_v17 = vpop.permute.xlu0 %7541 }
 0x176   :  { %3988 = vst [vmem:[#allocation2 + $0x40] sm:$0xff] %v3860_v21  ;;  %v3139_v29 = vpop.f32.mrb[18].mxu0  ;;  %v4500_v31 = vmax.f32 %v10490_v24, 0.0  ;;  %v7538_v20 = vunpack.i.l.bf16 %v10557_v7  ;;  %v2532_v22 = vsel %vm2466_vm2, %v2403_v8, %v7524_v63 }
 0x177   :  { %v3141_v35 = vpop.f32.mrb[19].mxu0  ;;  %3456 = vmatmul.mubr.f32.gmra.mrb[124].mxu0 %v2529_v30  ;;  %v4658_v37 = vld [vmem:[#allocation3 + $0x1] sm:$0xff]  ;;  %v2276_v33 = vsel %vm2208_vm0, %v99_v14, %v7529_v10 }
 0x178   :  { %v3861_v41 = vmax.f32 %v3139_v29, %v3141_v35  ;;  %5010 = vmatprep.mubr.f32.mxu1 %v4658_v37  ;;  %6423 = vmatprep.mubr.msk.f32.mxu0 %vm2208_vm0, %v607_v25  ;;  %4564 = vst [vmem:[#allocation3 + $0x10] sm:$0xff] %v4500_v31  ;;  %v7534_v25 = vunpack.i.h.bf16 %v10534_v55  ;;  %v415_v29 = vld [vmem:[%s11991_s0 + $0x4f2] sm:$0xff]  ;;  %v611_v35 = vld [vmem:[%s11991_s0 + $0x29c] sm:$0xff]  ;;  %v7539_v37 = vunpack.i.h.bf16 %v10557_v7 }
 0x179   :  { %v4114_v45 = vld [vmem:[#allocation2 + $0x30] ss:$2 sm:$0xff]  ;;  %v4242_v46 = vld [vmem:[#allocation2 + $0x31] ss:$2 sm:$0xff]  ;;  %5011 = vmatmul.mubr.f32.vlgmr.msra.gmra.mrb[0].mxu1 %v4498_v11  ;;  %7961 = vrot.lane.b32.xlu0 %v7960_v27, %s7994_s25  ;;  %v2404_v27 = vsel %vm2337_vm1, %v2275_v13, %v7533_v6  ;;  %v10583_v28 = vpop.permute.xlu1 %7546 }
 0x17a   :  { %v4366_v50 = vmax.f32 %v4114_v45, %v4242_v46  ;;  %3989 = vst [vmem:[#allocation2 + $0x48] sm:$0xff] %v3861_v41  ;;  %v3145_v52 = vpop.f32.mrb[20].mxu0  ;;  %7966 = vrot.lane.b32.xlu1 %v7965_v32, %s7996_s14  ;;  %v7543_v32 = vunpack.i.l.bf16 %v10569_v17  ;;  %v2533_v39 = vsel %vm2466_vm2, %v2404_v27, %v7538_v20  ;;  %v543_v41 = vld [vmem:[%s11991_s0 + $0x4f3] sm:$0xff]  ;;  %v7548_v43 = vunpack.i.l.bf16 %v10583_v28  ;;  %v7552_v46 = vpop.permute.xlu0 %7551 }
 0x17b   :  { %v3147_v11 = vpop.f32.mrb[21].mxu0  ;;  %3462 = vmatmul.mubr.f32.gmra.mrb[126].mxu0 %v2530_v53  ;;  %v2405_v47 = vsel %vm2337_vm1, %v2276_v33, %v7534_v25  ;;  %v7553_v55 = vunpack.i.l.bf16 %v7552_v46  ;;  %v7549_v58 = vunpack.i.h.bf16 %v10583_v28 }
 0x17c   :  { %v3862_v57 = vmax.f32 %v3145_v52, %v3147_v11  ;;  %6424 = vmatprep.mubr.msk.f32.mxu0 %vm2208_vm0, %v608_v48  ;;  %v4437_v60 = vadd.f32 %v10335_v44, %v4366_v50  ;;  %v7544_v48 = vunpack.i.h.bf16 %v10569_v17  ;;  %v2277_v50 = vsel %vm2208_vm0, %v100_v36, %v7543_v32  ;;  %v612_v11 = vld [vmem:[%s11991_s0 + $0x2ac] sm:$0xff] }
 0x17d   :  { %7971 = vrot.lane.b32.xlu0 %v7970_v49, %s7995_s26  ;;  %v7557_v2 = vpop.permute.xlu1 %7556  ;;  %v2406_v24 = vsel %vm2337_vm1, %v2277_v50, %v7548_v43  ;;  %v104_v36 = vld [vmem:[%s11991_s0 + $0x2d0] sm:$0xff] }
 0x17e   :  { %3990 = vst [vmem:[#allocation2 + $0x50] sm:$0xff] %v3862_v57  ;;  %v3151_v0 = vpop.f32.mrb[22].mxu0  ;;  %v4501_v3 = vmax.f32 %v4437_v60, 0.0  ;;  %1052 = vrot.lane.b32.xlu1 %v286_v56, %s7994_s25  ;;  %v2534_v57 = vsel %vm2466_vm2, %v2405_v47, %v7539_v37  ;;  %v2278_v62 = vsel %vm2208_vm0, %v101_v51, %v7544_v48  ;;  %v105_v51 = vld [vmem:[%s11991_s0 + $0x2d8] sm:$0xff] }
 0x17f   :  { %v3153_v5 = vpop.f32.mrb[23].mxu0  ;;  %3468 = vmatmul.mubr.f32.gmra.mrb[128].mxu0 %v2531_v1  ;;  %v102_v1 = vld [vmem:[%s11991_s0 + $0x2b8] sm:$0xff]  ;;  %v2407_v10 = vsel %vm2337_vm1, %v2278_v62, %v7549_v58 }
 0x180   :  { %v3863_v12 = vmax.f32 %v3151_v0, %v3153_v5  ;;  %6425 = vmatprep.mubr.msk.f32.mxu0 %vm2208_vm0, %v609_v61  ;;  %4565 = vst [vmem:[#allocation3 + $0x18] sm:$0xff] %v4501_v3  ;;  %v7558_v61 = vunpack.i.l.bf16 %v7557_v2  ;;  %v613_v0 = vld [vmem:[%s11991_s0 + $0x2b4] sm:$0xff]  ;;  %v7554_v3 = vunpack.i.h.bf16 %v7552_v46  ;;  %v2535_v5 = vsel %vm2466_vm2, %v2406_v24, %v7553_v55  ;;  %v617_v62 = vld [vmem:[%s11991_s0 + $0x2dc] sm:$0xff] }
 0x181   :  { %v4116_v15 = vld [vmem:[#allocation2 + $0x40] ss:$2 sm:$0xff]  ;;  %v4244_v16 = vld [vmem:[#allocation2 + $0x41] ss:$2 sm:$0xff]  ;;  %1564 = vrot.lane.b32.xlu0 %v414_v4, %s7996_s14 }
 0x182   :  { %v4367_v19 = vmax.f32 %v4116_v15, %v4244_v16  ;;  %3991 = vst [vmem:[#allocation2 + $0x58] sm:$0xff] %v3863_v12  ;;  %v3157_v21 = vpop.f32.mrb[24].mxu0  ;;  %2076 = vrot.lane.b32.xlu1 %v542_v9, %s7995_s26  ;;  %v7567_v9 = vpop.permute.xlu1 %7566  ;;  %v7559_v12 = vunpack.i.h.bf16 %v7557_v2  ;;  %v2279_v14 = vsel %vm2208_vm0, %v102_v1, %v7558_v61  ;;  %v103_v15 = vld [vmem:[%s11991_s0 + $0x2c0] sm:$0xff] }
 0x183   :  { %v3159_v26 = vpop.f32.mrb[25].mxu0  ;;  %3474 = vmatmul.mubr.f32.gmra.mrb[130].mxu0 %v2532_v22  ;;  %v7569_v37 = vunpack.i.h.bf16 %v7567_v9 }
 0x184   :  { %v3864_v30 = vmax.f32 %v3157_v21, %v3159_v26  ;;  %6426 = vmatprep.mubr.msk.f32.mxu0 %vm2208_vm0, %v610_v18  ;;  %v10592_v34 = vadd.f32 %v10335_v44, %v4367_v19  ;;  %v614_v19 = vld [vmem:[%s11991_s0 + $0x2bc] sm:$0xff]  ;;  %v7568_v21 = vunpack.i.l.bf16 %v7567_v9  ;;  %v2280_v32 = vsel %vm2208_vm0, %v103_v15, %v7559_v12 }
 0x185   :  { %1054 = vrot.lane.b32.xlu0 %v287_v23, %s7994_s25  ;;  %v2536_v23 = vsel %vm2466_vm2, %v2407_v10, %v7554_v3 }
 0x186   :  { %3992 = vst [vmem:[#allocation2 + $0x60] sm:$0xff] %v3864_v30  ;;  %v3163_v38 = vpop.f32.mrb[26].mxu0  ;;  %v4502_v40 = vmax.f32 %v10592_v34, 0.0  ;;  %1566 = vrot.lane.b32.xlu1 %v415_v29, %s7996_s14  ;;  %v7577_v28 = vpop.permute.xlu1 %7576 }
 0x187   :  { %v3165_v42 = vpop.f32.mrb[27].mxu0  ;;  %3480 = vmatmul.mubr.f32.gmra.mrb[132].mxu0 %v2533_v39  ;;  %v4659_v45 = vld [vmem:[#allocation3 + $0x11] sm:$0xff]  ;;  %v7578_v43 = vunpack.i.l.bf16 %v7577_v28  ;;  %v7579_v58 = vunpack.i.h.bf16 %v7577_v28 }
 0x188   :  { %v3865_v49 = vmax.f32 %v3163_v38, %v3165_v42  ;;  %5016 = vmatprep.mubr.f32.mxu1 %v4659_v45  ;;  %6427 = vmatprep.mubr.msk.f32.mxu0 %vm2208_vm0, %v611_v35  ;;  %4566 = vst [vmem:[#allocation3 + $0x20] sm:$0xff] %v4502_v40  ;;  %v615_v35 = vld [vmem:[%s11991_s0 + $0x2c4] sm:$0xff] }
 0x189   :  { %v4118_v52 = vld [vmem:[#allocation2 + $0x50] ss:$2 sm:$0xff]  ;;  %v4246_v53 = vld [vmem:[#allocation2 + $0x51] ss:$2 sm:$0xff]  ;;  %5017 = vmatmul.mubr.f32.gmra.mrb[2].mxu1 %v4500_v31  ;;  %2078 = vrot.lane.b32.xlu0 %v543_v41, %s7995_s26  ;;  %v7562_v31 = vpop.permute.xlu0 %7561 }
 0x18a   :  { %v4368_v54 = vmax.f32 %v4118_v52, %v4246_v53  ;;  %3993 = vst [vmem:[#allocation2 + $0x68] sm:$0xff] %v3865_v49  ;;  %v3169_v56 = vpop.f32.mrb[28].mxu0  ;;  %v7563_v8 = vunpack.i.l.bf16 %v7562_v31  ;;  %v7564_v25 = vunpack.i.h.bf16 %v7562_v31  ;;  %v7587_v2 = vpop.permute.xlu1 %7586 }
 0x18b   :  { %v3171_v59 = vpop.f32.mrb[29].mxu0  ;;  %3486 = vmatmul.mubr.f32.gmra.mrb[134].mxu0 %v2534_v57  ;;  %v7588_v34 = vunpack.i.l.bf16 %v7587_v2  ;;  %v7589_v9 = vunpack.i.h.bf16 %v7587_v2 }
 0x18c   :  { %v3866_v60 = vmax.f32 %v3169_v56, %v3171_v59  ;;  %6428 = vmatprep.mubr.msk.f32.mxu0 %vm2208_vm0, %v612_v11  ;;  %v4439_v63 = vadd.f32 %v10335_v44, %v4368_v54  ;;  %v2408_v27 = vsel %vm2337_vm1, %v2279_v14, %v7563_v8  ;;  %v2409_v47 = vsel %vm2337_vm1, %v2280_v32, %v7564_v25  ;;  %v616_v11 = vld [vmem:[%s11991_s0 + $0x2d4] sm:$0xff]  ;;  %v619_v32 = vld [vmem:[%s11991_s0 + $0x2ec] sm:$0xff] }
 0x18d   :  { %v7572_v18 = vpop.permute.xlu0 %7571  ;;  %v2537_v39 = vsel %vm2466_vm2, %v2408_v27, %v7568_v21  ;;  %v2538_v57 = vsel %vm2466_vm2, %v2409_v47, %v7569_v37 }
 0x18e   :  { %3994 = vst [vmem:[#allocation2 + $0x70] sm:$0xff] %v3866_v60  ;;  %v3175_v4 = vpop.f32.mrb[30].mxu0  ;;  %v4503_v6 = vmax.f32 %v4439_v63, 0.0  ;;  %v7573_v30 = vunpack.i.l.bf16 %v7572_v18  ;;  %v7574_v48 = vunpack.i.h.bf16 %v7572_v18  ;;  %v106_v63 = vld [vmem:[%s11991_s0 + $0x2e0] sm:$0xff] }
 0x18f   :  { %v3177_v7 = vpop.f32.mrb[31].mxu0  ;;  %3492 = vmatmul.mubr.f32.gmra.mrb[136].mxu0 %v2535_v5  ;;  %v2283_v12 = vsel %vm2208_vm0, %v106_v63, %v7588_v34 }
 0x190   :  { %v3867_v13 = vmax.f32 %v3175_v4, %v3177_v7  ;;  %6429 = vmatprep.mubr.msk.f32.mxu0 %vm2208_vm0, %v613_v0  ;;  %4567 = vst [vmem:[#allocation3 + $0x28] sm:$0xff] %v4503_v6  ;;  %v2281_v50 = vsel %vm2208_vm0, %v104_v36, %v7573_v30  ;;  %v7597_v7 = vpop.permute.xlu1 %7596 }
 0x191   :  { %v4120_v16 = vld [vmem:[#allocation2 + $0x60] ss:$2 sm:$0xff]  ;;  %v4248_v17 = vld [vmem:[#allocation2 + $0x61] ss:$2 sm:$0xff]  ;;  %v7582_v46 = vpop.permute.xlu0 %7581  ;;  %v2410_v24 = vsel %vm2337_vm1, %v2281_v50, %v7578_v43  ;;  %v7599_v36 = vunpack.i.h.bf16 %v7597_v7 }
 0x192   :  { %v4369_v20 = vmax.f32 %v4120_v16, %v4248_v17  ;;  %3995 = vst [vmem:[#allocation2 + $0x78] sm:$0xff] %v3867_v13  ;;  %v3181_v22 = vpop.f32.mrb[32].mxu0  ;;  %v7583_v55 = vunpack.i.l.bf16 %v7582_v46  ;;  %v7584_v0 = vunpack.i.h.bf16 %v7582_v46  ;;  %v107_v13 = vld [vmem:[%s11991_s0 + $0x2e8] sm:$0xff] }
 0x193   :  { %v3183_v26 = vpop.f32.mrb[33].mxu0  ;;  %3498 = vmatmul.mubr.f32.gmra.mrb[138].mxu0 %v2536_v23  ;;  %v618_v17 = vld [vmem:[%s11991_s0 + $0x2e4] sm:$0xff] }
 0x194   :  { %v3868_v29 = vmax.f32 %v3181_v22, %v3183_v26  ;;  %6430 = vmatprep.mubr.msk.f32.mxu0 %vm2208_vm0, %v614_v19  ;;  %v10651_v33 = vadd.f32 %v10335_v44, %v4369_v20  ;;  %v2539_v3 = vsel %vm2466_vm2, %v2410_v24, %v7583_v55  ;;  %v7598_v19 = vunpack.i.l.bf16 %v7597_v7  ;;  %v7607_v26 = vpop.permute.xlu1 %7606 }
 0x195   :  { %v7592_v31 = vpop.permute.xlu0 %7591  ;;  %v7608_v43 = vunpack.i.l.bf16 %v7607_v26 }
 0x196   :  { %3996 = vst [vmem:[#allocation2 + $0x80] sm:$0xff] %v3868_v29  ;;  %v3187_v38 = vpop.f32.mrb[34].mxu0  ;;  %v4504_v41 = vmax.f32 %v10651_v33, 0.0  ;;  %v7593_v6 = vunpack.i.l.bf16 %v7592_v31  ;;  %v7594_v22 = vunpack.i.h.bf16 %v7592_v31  ;;  %v2284_v29 = vsel %vm2208_vm0, %v107_v13, %v7589_v9 }
 0x197   :  { %v3189_v42 = vpop.f32.mrb[35].mxu0  ;;  %3504 = vmatmul.mubr.f32.gmra.mrb[140].mxu0 %v2537_v39  ;;  %v4660_v45 = vld [vmem:[#allocation3 + $0x21] sm:$0xff] }
 0x198   :  { %v3869_v49 = vmax.f32 %v3187_v38, %v3189_v42  ;;  %5022 = vmatprep.mubr.f32.mxu1 %v4660_v45  ;;  %6431 = vmatprep.mubr.msk.f32.mxu0 %vm2208_vm0, %v615_v35  ;;  %4568 = vst [vmem:[#allocation3 + $0x30] sm:$0xff] %v4504_v41  ;;  %v2412_v25 = vsel %vm2337_vm1, %v2283_v12, %v7593_v6  ;;  %v108_v35 = vld [vmem:[%s11991_s0 + $0x2f8] sm:$0xff]  ;;  %v7617_v2 = vpop.permute.xlu1 %7616 }
 0x199   :  { %v4122_v52 = vld [vmem:[#allocation2 + $0x70] ss:$2 sm:$0xff]  ;;  %v4250_v53 = vld [vmem:[#allocation2 + $0x71] ss:$2 sm:$0xff]  ;;  %5023 = vmatmul.mubr.f32.gmra.mrb[4].mxu1 %v4502_v40  ;;  %v2282_v40 = vsel %vm2208_vm0, %v105_v51, %v7574_v48  ;;  %v7602_v16 = vpop.permute.xlu0 %7601  ;;  %v2541_v38 = vsel %vm2466_vm2, %v2412_v25, %v7598_v19  ;;  %v2413_v47 = vsel %vm2337_vm1, %v2284_v29, %v7594_v22  ;;  %v109_v51 = vld [vmem:[%s11991_s0 + $0x300] sm:$0xff]  ;;  %v7618_v33 = vunpack.i.l.bf16 %v7617_v2 }
 0x19a   :  { %v4370_v54 = vmax.f32 %v4122_v52, %v4250_v53  ;;  %3997 = vst [vmem:[#allocation2 + $0x88] sm:$0xff] %v3869_v49  ;;  %v3193_v56 = vpop.f32.mrb[36].mxu0  ;;  %v2411_v8 = vsel %vm2337_vm1, %v2282_v40, %v7579_v58  ;;  %v7603_v28 = vunpack.i.l.bf16 %v7602_v16  ;;  %v7604_v48 = vunpack.i.h.bf16 %v7602_v16  ;;  %v621_v40 = vld [vmem:[%s11991_s0 + $0x304] sm:$0xff]  ;;  %v623_v29 = vld [vmem:[%s11991_s0 + $0x314] sm:$0xff] }
 0x19b   :  { %v3195_v59 = vpop.f32.mrb[37].mxu0  ;;  %3510 = vmatmul.mubr.f32.gmra.mrb[142].mxu0 %v2538_v57  ;;  %v2540_v21 = vsel %vm2466_vm2, %v2411_v8, %v7584_v0  ;;  %v2542_v57 = vsel %vm2466_vm2, %v2413_v47, %v7599_v36  ;;  %v7609_v58 = vunpack.i.h.bf16 %v7607_v26  ;;  %v7619_v7 = vunpack.i.h.bf16 %v7617_v2 }
 0x19c   :  { %v3870_v60 = vmax.f32 %v3193_v56, %v3195_v59  ;;  %6432 = vmatprep.mubr.msk.f32.mxu0 %vm2208_vm0, %v616_v11  ;;  %v4441_v61 = vadd.f32 %v10335_v44, %v4370_v54  ;;  %v2285_v50 = vsel %vm2208_vm0, %v108_v35, %v7603_v28  ;;  %v620_v11 = vld [vmem:[%s11991_s0 + $0x2fc] sm:$0xff] }
 0x19d   :  { %v7612_v46 = vpop.permute.xlu0 %7611  ;;  %v2414_v24 = vsel %vm2337_vm1, %v2285_v50, %v7608_v43 }
 0x19e   :  { %3998 = vst [vmem:[#allocation2 + $0x90] sm:$0xff] %v3870_v60  ;;  %v3199_v1 = vpop.f32.mrb[38].mxu0  ;;  %v4505_v4 = vmax.f32 %v4441_v61, 0.0  ;;  %v7613_v55 = vunpack.i.l.bf16 %v7612_v46  ;;  %v110_v61 = vld [vmem:[%s11991_s0 + $0x308] sm:$0xff] }
 0x19f   :  { %v3201_v5 = vpop.f32.mrb[39].mxu0  ;;  %3516 = vmatmul.mubr.f32.gmra.mrb[144].mxu0 %v2539_v3  ;;  %v2287_v9 = vsel %vm2208_vm0, %v110_v61, %v7618_v33 }
 0x1a0   :  { %v3871_v10 = vmax.f32 %v3199_v1, %v3201_v5  ;;  %6433 = vmatprep.mubr.msk.f32.mxu0 %vm2208_vm0, %v617_v62  ;;  %4569 = vst [vmem:[#allocation3 + $0x38] sm:$0xff] %v4505_v4  ;;  %v7614_v62 = vunpack.i.h.bf16 %v7612_v46  ;;  %v2543_v0 = vsel %vm2466_vm2, %v2414_v24, %v7613_v55  ;;  %v7627_v5 = vpop.permute.xlu1 %7626 }
 0x1a1   :  { %v4124_v14 = vld [vmem:[#allocation2 + $0x80] ss:$2 sm:$0xff]  ;;  %v4252_v15 = vld [vmem:[#allocation2 + $0x81] ss:$2 sm:$0xff]  ;;  %v7622_v31 = vpop.permute.xlu0 %7621  ;;  %v7629_v35 = vunpack.i.h.bf16 %v7627_v5 }
 0x1a2   :  { %v4371_v18 = vmax.f32 %v4124_v14, %v4252_v15  ;;  %3999 = vst [vmem:[#allocation2 + $0x98] sm:$0xff] %v3871_v10  ;;  %v3205_v20 = vpop.f32.mrb[40].mxu0  ;;  %v7623_v4 = vunpack.i.l.bf16 %v7622_v31  ;;  %v111_v10 = vld [vmem:[%s11991_s0 + $0x310] sm:$0xff] }
 0x1a3   :  { %v3207_v23 = vpop.f32.mrb[41].mxu0  ;;  %3522 = vmatmul.mubr.f32.gmra.mrb[146].mxu0 %v2540_v21  ;;  %v622_v15 = vld [vmem:[%s11991_s0 + $0x30c] sm:$0xff] }
 0x1a4   :  { %v3872_v27 = vmax.f32 %v3205_v20, %v3207_v23  ;;  %6434 = vmatprep.mubr.msk.f32.mxu0 %vm2208_vm0, %v618_v17  ;;  %v10700_v30 = vadd.f32 %v10335_v44, %v4371_v18  ;;  %v7628_v17 = vunpack.i.l.bf16 %v7627_v5  ;;  %v7624_v20 = vunpack.i.h.bf16 %v7622_v31  ;;  %v7637_v23 = vpop.permute.xlu1 %7636 }
 0x1a5   :  { %v7632_v14 = vpop.permute.xlu0 %7631  ;;  %v2416_v22 = vsel %vm2337_vm1, %v2287_v9, %v7623_v4  ;;  %v7638_v43 = vunpack.i.l.bf16 %v7637_v23 }
 0x1a6   :  { %4000 = vst [vmem:[#allocation2 + $0xa0] sm:$0xff] %v3872_v27  ;;  %v3211_v37 = vpop.f32.mrb[42].mxu0  ;;  %v4506_v39 = vmax.f32 %v10700_v30, 0.0  ;;  %v7633_v26 = vunpack.i.l.bf16 %v7632_v14  ;;  %v2288_v27 = vsel %vm2208_vm0, %v111_v10, %v7619_v7  ;;  %v115_v7 = vld [vmem:[%s11991_s0 + $0x338] sm:$0xff] }
 0x1a7   :  { %v3213_v42 = vpop.f32.mrb[43].mxu0  ;;  %3528 = vmatmul.mubr.f32.gmra.mrb[148].mxu0 %v2541_v38  ;;  %v4661_v45 = vld [vmem:[#allocation3 + $0x31] sm:$0xff]  ;;  %v2417_v47 = vsel %vm2337_vm1, %v2288_v27, %v7624_v20  ;;  %v627_v27 = vld [vmem:[%s11991_s0 + $0x33c] sm:$0xff] }
 0x1a8   :  { %v3873_v49 = vmax.f32 %v3211_v37, %v3213_v42  ;;  %5028 = vmatprep.mubr.f32.mxu1 %v4661_v45  ;;  %6435 = vmatprep.mubr.msk.f32.mxu0 %vm2208_vm0, %v619_v32  ;;  %4570 = vst [vmem:[#allocation3 + $0x40] sm:$0xff] %v4506_v39  ;;  %v112_v32 = vld [vmem:[%s11991_s0 + $0x320] sm:$0xff]  ;;  %v2545_v37 = vsel %vm2466_vm2, %v2416_v22, %v7628_v17  ;;  %v7647_v2 = vpop.permute.xlu1 %7646 }
 0x1a9   :  { %v4126_v52 = vld [vmem:[#allocation2 + $0x90] ss:$2 sm:$0xff]  ;;  %v4254_v53 = vld [vmem:[#allocation2 + $0x91] ss:$2 sm:$0xff]  ;;  %5029 = vmatmul.mubr.f32.gmra.mrb[6].mxu1 %v4504_v41  ;;  %v2286_v41 = vsel %vm2208_vm0, %v109_v51, %v7604_v48  ;;  %v7642_v46 = vpop.permute.xlu0 %7641  ;;  %v7634_v48 = vunpack.i.h.bf16 %v7632_v14  ;;  %v2289_v50 = vsel %vm2208_vm0, %v112_v32, %v7633_v26  ;;  %v113_v51 = vld [vmem:[%s11991_s0 + $0x328] sm:$0xff]  ;;  %v7648_v30 = vunpack.i.l.bf16 %v7647_v2 }
 0x1aa   :  { %v4372_v54 = vmax.f32 %v4126_v52, %v4254_v53  ;;  %4001 = vst [vmem:[#allocation2 + $0xa8] sm:$0xff] %v3873_v49  ;;  %v3217_v56 = vpop.f32.mrb[44].mxu0  ;;  %v2415_v6 = vsel %vm2337_vm1, %v2286_v41, %v7609_v58  ;;  %v7643_v55 = vunpack.i.l.bf16 %v7642_v46  ;;  %v7639_v58 = vunpack.i.h.bf16 %v7637_v23  ;;  %v625_v41 = vld [vmem:[%s11991_s0 + $0x32c] sm:$0xff] }
 0x1ab   :  { %v3219_v59 = vpop.f32.mrb[45].mxu0  ;;  %3534 = vmatmul.mubr.f32.gmra.mrb[150].mxu0 %v2542_v57  ;;  %v2544_v19 = vsel %vm2466_vm2, %v2415_v6, %v7614_v62  ;;  %v2546_v57 = vsel %vm2466_vm2, %v2417_v47, %v7629_v35  ;;  %v2418_v24 = vsel %vm2337_vm1, %v2289_v50, %v7638_v43  ;;  %v7649_v4 = vunpack.i.h.bf16 %v7647_v2 }
 0x1ac   :  { %v3874_v60 = vmax.f32 %v3217_v56, %v3219_v59  ;;  %6436 = vmatprep.mubr.msk.f32.mxu0 %vm2208_vm0, %v620_v11  ;;  %v4443_v34 = vadd.f32 %v10335_v44, %v4372_v54  ;;  %v624_v11 = vld [vmem:[%s11991_s0 + $0x324] sm:$0xff]  ;;  %v2547_v62 = vsel %vm2466_vm2, %v2418_v24, %v7643_v55 }
 0x1ad   :  { %v7652_v31 = vpop.permute.xlu0 %7651  ;;  %v2292_v23 = vsel %vm2208_vm0, %v115_v7, %v7649_v4 }
 0x1ae   :  { %4002 = vst [vmem:[#allocation2 + $0xb0] sm:$0xff] %v3874_v60  ;;  %v3223_v63 = vpop.f32.mrb[46].mxu0  ;;  %v4507_v1 = vmax.f32 %v4443_v34, 0.0  ;;  %v114_v34 = vld [vmem:[%s11991_s0 + $0x330] sm:$0xff]  ;;  %v7654_v17 = vunpack.i.h.bf16 %v7652_v31 }
 0x1af   :  { %v3225_v3 = vpop.f32.mrb[47].mxu0  ;;  %3540 = vmatmul.mubr.f32.gmra.mrb[152].mxu0 %v2543_v0  ;;  %v2291_v6 = vsel %vm2208_vm0, %v114_v34, %v7648_v30 }
 0x1b0   :  { %v3875_v8 = vmax.f32 %v3223_v63, %v3225_v3  ;;  %6437 = vmatprep.mubr.msk.f32.mxu0 %vm2208_vm0, %v621_v40  ;;  %4571 = vst [vmem:[#allocation3 + $0x48] sm:$0xff] %v4507_v1  ;;  %v7644_v40 = vunpack.i.h.bf16 %v7642_v46  ;;  %v7653_v1 = vunpack.i.l.bf16 %v7652_v31  ;;  %v7657_v3 = vpop.permute.xlu1 %7656  ;;  %v2421_v47 = vsel %vm2337_vm1, %v2292_v23, %v7654_v17  ;;  %v631_v23 = vld [vmem:[%s11991_s0 + $0x364] sm:$0xff] }
 0x1b1   :  { %v4128_v12 = vld [vmem:[#allocation2 + $0xa0] ss:$2 sm:$0xff]  ;;  %v4256_v13 = vld [vmem:[#allocation2 + $0xa1] ss:$2 sm:$0xff]  ;;  %v7662_v10 = vpop.permute.xlu0 %7661  ;;  %v7658_v14 = vunpack.i.l.bf16 %v7657_v3  ;;  %v7659_v32 = vunpack.i.h.bf16 %v7657_v3 }
 0x1b2   :  { %v4373_v16 = vmax.f32 %v4128_v12, %v4256_v13  ;;  %4003 = vst [vmem:[#allocation2 + $0xb8] sm:$0xff] %v3875_v8  ;;  %v3229_v18 = vpop.f32.mrb[48].mxu0  ;;  %v626_v12 = vld [vmem:[%s11991_s0 + $0x334] sm:$0xff]  ;;  %v7663_v22 = vunpack.i.l.bf16 %v7662_v10 }
 0x1b3   :  { %v3231_v21 = vpop.f32.mrb[49].mxu0  ;;  %3546 = vmatmul.mubr.f32.gmra.mrb[154].mxu0 %v2544_v19  ;;  %v2420_v19 = vsel %vm2337_vm1, %v2291_v6, %v7653_v1 }
 0x1b4   :  { %v3876_v25 = vmax.f32 %v3229_v18, %v3231_v21  ;;  %6438 = vmatprep.mubr.msk.f32.mxu0 %vm2208_vm0, %v622_v15  ;;  %v10749_v28 = vadd.f32 %v10335_v44, %v4373_v16  ;;  %v7667_v20 = vpop.permute.xlu1 %7666 }
 0x1b5   :  { %v7668_v43 = vunpack.i.l.bf16 %v7667_v20  ;;  %v7672_v46 = vpop.permute.xlu0 %7671 }
 0x1b6   :  { %4004 = vst [vmem:[#allocation2 + $0xc0] sm:$0xff] %v3876_v25  ;;  %v3235_v36 = vpop.f32.mrb[50].mxu0  ;;  %v4508_v38 = vmax.f32 %v10749_v28, 0.0  ;;  %v10800_v25 = vld [vmem:[%s11994_s2] ss:$0 sm:$0xff]  ;;  %v7673_v55 = vunpack.i.l.bf16 %v7672_v46 }
 0x1b7   :  { %v3237_v42 = vpop.f32.mrb[51].mxu0  ;;  %3552 = vmatmul.mubr.f32.gmra.mrb[156].mxu0 %v2545_v37  ;;  %v4662_v45 = vld [vmem:[#allocation3 + $0x41] sm:$0xff] }
 0x1b8   :  { %v3877_v49 = vmax.f32 %v3235_v36, %v3237_v42  ;;  %5034 = vmatprep.mubr.f32.mxu1 %v4662_v45  ;;  %6439 = vmatprep.mubr.msk.f32.mxu0 %vm2208_vm0, %v623_v29  ;;  %4572 = vst [vmem:[#allocation3 + $0x50] sm:$0xff] %v4508_v38  ;;  %v116_v29 = vld [vmem:[%s11991_s0 + $0x348] sm:$0xff]  ;;  %v2549_v36 = vsel %vm2466_vm2, %v2420_v19, %v7658_v14  ;;  %v7677_v2 = vpop.permute.xlu1 %7676 }
 0x1b9   :  { %v4130_v52 = vld [vmem:[#allocation2 + $0xb0] ss:$2 sm:$0xff]  ;;  %v4258_v53 = vld [vmem:[#allocation2 + $0xb1] ss:$2 sm:$0xff]  ;;  %5035 = vmatmul.mubr.f32.gmra.mrb[8].mxu1 %v4506_v39  ;;  %v2290_v39 = vsel %vm2208_vm0, %v113_v51, %v7634_v48  ;;  %v7664_v48 = vunpack.i.h.bf16 %v7662_v10  ;;  %v2293_v50 = vsel %vm2208_vm0, %v116_v29, %v7663_v22  ;;  %v7682_v31 = vpop.permute.xlu0 %7681  ;;  %v7678_v28 = vunpack.i.l.bf16 %v7677_v2 }
 0x1ba   :  { %v4374_v54 = vmax.f32 %v4130_v52, %v4258_v53  ;;  %4005 = vst [vmem:[#allocation2 + $0xc8] sm:$0xff] %v3877_v49  ;;  %v3241_v56 = vpop.f32.mrb[52].mxu0  ;;  %v117_v51 = vld [vmem:[%s11991_s0 + $0x350] sm:$0xff]  ;;  %v2422_v24 = vsel %vm2337_vm1, %v2293_v50, %v7668_v43  ;;  %v7679_v3 = vunpack.i.h.bf16 %v7677_v2 }
 0x1bb   :  { %v3243_v59 = vpop.f32.mrb[53].mxu0  ;;  %3558 = vmatmul.mubr.f32.gmra.mrb[158].mxu0 %v2546_v57  ;;  %v2550_v57 = vsel %vm2466_vm2, %v2421_v47, %v7659_v32 }
 0x1bc   :  { %v3878_v60 = vmax.f32 %v3241_v56, %v3243_v59  ;;  %6440 = vmatprep.mubr.msk.f32.mxu0 %vm2208_vm0, %v624_v11  ;;  %v4445_v33 = vadd.f32 %v10335_v44, %v4374_v54  ;;  %v2419_v44 = vsel %vm2337_vm1, %v2290_v39, %v7639_v58  ;;  %v628_v11 = vld [vmem:[%s11991_s0 + $0x34c] sm:$0xff]  ;;  %v7669_v58 = vunpack.i.h.bf16 %v7667_v20  ;;  %v629_v39 = vld [vmem:[%s11991_s0 + $0x354] sm:$0xff] }
 0x1bd   :  { %v2548_v16 = vsel %vm2466_vm2, %v2419_v44, %v7644_v40  ;;  %v2551_v40 = vsel %vm2466_vm2, %v2422_v24, %v7673_v55 }
 0x1be   :  { %4006 = vst [vmem:[#allocation2 + $0xd0] sm:$0xff] %v3878_v60  ;;  %v3247_v61 = vpop.f32.mrb[54].mxu0  ;;  %v4509_v63 = vmax.f32 %v4445_v33, 0.0  ;;  %v118_v33 = vld [vmem:[%s11991_s0 + $0x358] sm:$0xff] }
 0x1bf   :  { %v3249_v0 = vpop.f32.mrb[55].mxu0  ;;  %3564 = vmatmul.mubr.f32.gmra.mrb[160].mxu0 %v2547_v62  ;;  %v2295_v4 = vsel %vm2208_vm0, %v118_v33, %v7678_v28 }
 0x1c0   :  { %v3879_v5 = vmax.f32 %v3247_v61, %v3249_v0  ;;  %6441 = vmatprep.mubr.msk.f32.mxu0 %vm2208_vm0, %v625_v41  ;;  %4573 = vst [vmem:[#allocation3 + $0x58] sm:$0xff] %v4509_v63  ;;  %v7674_v41 = vunpack.i.h.bf16 %v7672_v46  ;;  %v7683_v63 = vunpack.i.l.bf16 %v7682_v31  ;;  %v7687_v0 = vpop.permute.xlu1 %7686 }
 0x1c1   :  { %v4132_v8 = vld [vmem:[#allocation2 + $0xc0] ss:$2 sm:$0xff]  ;;  %v4260_v9 = vld [vmem:[#allocation2 + $0xc1] ss:$2 sm:$0xff]  ;;  %v7689_v29 = vunpack.i.h.bf16 %v7687_v0 }
 0x1c2   :  { %v4375_v13 = vmax.f32 %v4132_v8, %v4260_v9  ;;  %4007 = vst [vmem:[#allocation2 + $0xd8] sm:$0xff] %v3879_v5  ;;  %v3253_v15 = vpop.f32.mrb[56].mxu0  ;;  %v119_v5 = vld [vmem:[%s11991_s0 + $0x360] sm:$0xff]  ;;  %v7692_v8 = vpop.permute.xlu0 %7691  ;;  %v2424_v17 = vsel %vm2337_vm1, %v2295_v4, %v7683_v63 }
 0x1c3   :  { %v3255_v18 = vpop.f32.mrb[57].mxu0  ;;  %3570 = vmatmul.mubr.f32.gmra.mrb[162].mxu0 %v2548_v16  ;;  %v630_v9 = vld [vmem:[%s11991_s0 + $0x35c] sm:$0xff]  ;;  %v7693_v20 = vunpack.i.l.bf16 %v7692_v8 }
 0x1c4   :  { %v3880_v21 = vmax.f32 %v3253_v15, %v3255_v18  ;;  %6442 = vmatprep.mubr.msk.f32.mxu0 %vm2208_vm0, %v626_v12  ;;  %v10803_v26 = vadd.f32 %v10800_v25, %v4375_v13  ;;  %v7688_v12 = vunpack.i.l.bf16 %v7687_v0  ;;  %v7684_v15 = vunpack.i.h.bf16 %v7682_v31  ;;  %v7697_v18 = vpop.permute.xlu1 %7696 }
 0x1c5   :  { %v7698_v43 = vunpack.i.l.bf16 %v7697_v18 }
 0x1c6   :  { %4008 = vst [vmem:[#allocation2 + $0xe0] sm:$0xff] %v3880_v21  ;;  %v3259_v35 = vpop.f32.mrb[58].mxu0  ;;  %v4510_v37 = vmax.f32 %v10803_v26, 0.0  ;;  %v2296_v21 = vsel %vm2208_vm0, %v119_v5, %v7679_v3  ;;  %v7702_v46 = vpop.permute.xlu0 %7701 }
 0x1c7   :  { %v3261_v42 = vpop.f32.mrb[59].mxu0  ;;  %3576 = vmatmul.mubr.f32.gmra.mrb[164].mxu0 %v2549_v36  ;;  %v4663_v45 = vld [vmem:[#allocation3 + $0x51] sm:$0xff]  ;;  %v2425_v47 = vsel %vm2337_vm1, %v2296_v21, %v7684_v15  ;;  %v7703_v55 = vunpack.i.l.bf16 %v7702_v46 }
 0x1c8   :  { %v3881_v49 = vmax.f32 %v3259_v35, %v3261_v42  ;;  %5040 = vmatprep.mubr.f32.mxu1 %v4663_v45  ;;  %6443 = vmatprep.mubr.msk.f32.mxu0 %vm2208_vm0, %v627_v27  ;;  %4574 = vst [vmem:[#allocation3 + $0x60] sm:$0xff] %v4510_v37  ;;  %v120_v27 = vld [vmem:[%s11991_s0 + $0x370] sm:$0xff]  ;;  %v2553_v35 = vsel %vm2466_vm2, %v2424_v17, %v7688_v12  ;;  %v7707_v2 = vpop.permute.xlu1 %7706 }
 0x1c9   :  { %v4134_v52 = vld [vmem:[#allocation2 + $0xd0] ss:$2 sm:$0xff]  ;;  %v4262_v53 = vld [vmem:[#allocation2 + $0xd1] ss:$2 sm:$0xff]  ;;  %5041 = vmatmul.mubr.f32.gmra.mrb[10].mxu1 %v4508_v38  ;;  %v2294_v38 = vsel %vm2208_vm0, %v117_v51, %v7664_v48  ;;  %v7694_v48 = vunpack.i.h.bf16 %v7692_v8  ;;  %v2297_v50 = vsel %vm2208_vm0, %v120_v27, %v7693_v20  ;;  %v7708_v26 = vunpack.i.l.bf16 %v7707_v2 }
 0x1ca   :  { %v4376_v54 = vmax.f32 %v4134_v52, %v4262_v53  ;;  %4009 = vst [vmem:[#allocation2 + $0xe8] sm:$0xff] %v3881_v49  ;;  %v3265_v56 = vpop.f32.mrb[60].mxu0  ;;  %v2423_v1 = vsel %vm2337_vm1, %v2294_v38, %v7669_v58  ;;  %v121_v51 = vld [vmem:[%s11991_s0 + $0x378] sm:$0xff]  ;;  %v7699_v58 = vunpack.i.h.bf16 %v7697_v18  ;;  %v2426_v24 = vsel %vm2337_vm1, %v2297_v50, %v7698_v43  ;;  %v7712_v31 = vpop.permute.xlu0 %7711  ;;  %v635_v21 = vld [vmem:[%s11991_s0 + $0x38c] sm:$0xff] }
 0x1cb   :  { %v3267_v59 = vpop.f32.mrb[61].mxu0  ;;  %3582 = vmatmul.mubr.f32.gmra.mrb[166].mxu0 %v2550_v57  ;;  %v2552_v14 = vsel %vm2466_vm2, %v2423_v1, %v7674_v41  ;;  %v2554_v57 = vsel %vm2466_vm2, %v2425_v47, %v7689_v29  ;;  %v633_v38 = vld [vmem:[%s11991_s0 + $0x37c] sm:$0xff]  ;;  %v2555_v41 = vsel %vm2466_vm2, %v2426_v24, %v7703_v55  ;;  %v7709_v0 = vunpack.i.h.bf16 %v7707_v2 }
 0x1cc   :  { %v3882_v60 = vmax.f32 %v3265_v56, %v3267_v59  ;;  %6444 = vmatprep.mubr.msk.f32.mxu0 %vm2208_vm0, %v628_v11  ;;  %v4447_v30 = vadd.f32 %v10800_v25, %v4376_v54  ;;  %v632_v11 = vld [vmem:[%s11991_s0 + $0x374] sm:$0xff] }
 0x1ce   :  { %4010 = vst [vmem:[#allocation2 + $0xf0] sm:$0xff] %v3882_v60  ;;  %v3271_v34 = vpop.f32.mrb[62].mxu0  ;;  %v4511_v61 = vmax.f32 %v4447_v30, 0.0  ;;  %v122_v30 = vld [vmem:[%s11991_s0 + $0x380] sm:$0xff] }
 0x1cf   :  { %v3273_v62 = vpop.f32.mrb[63].mxu0  ;;  %3588 = vmatmul.mubr.f32.gmra.mrb[168].mxu0 %v2551_v40  ;;  %v2299_v3 = vsel %vm2208_vm0, %v122_v30, %v7708_v26 }
 0x1d0   :  { %v3883_v44 = vmax.f32 %v3271_v34, %v3273_v62  ;;  %6445 = vmatprep.mubr.msk.f32.mxu0 %vm2208_vm0, %v629_v39  ;;  %4575 = vst [vmem:[#allocation3 + $0x68] sm:$0xff] %v4511_v61  ;;  %v7704_v39 = vunpack.i.h.bf16 %v7702_v46  ;;  %v7713_v61 = vunpack.i.l.bf16 %v7712_v31  ;;  %v7717_v62 = vpop.permute.xlu1 %7716 }
 0x1d1   :  { %v4136_v6 = vld [vmem:[#allocation2 + $0xe0] ss:$2 sm:$0xff]  ;;  %v4264_v7 = vld [vmem:[#allocation2 + $0xe1] ss:$2 sm:$0xff]  ;;  %v7719_v27 = vunpack.i.h.bf16 %v7717_v62 }
 0x1d2   :  { %v4377_v10 = vmax.f32 %v4136_v6, %v4264_v7  ;;  %4011 = vst [vmem:[#allocation2 + $0xf8] sm:$0xff] %v3883_v44  ;;  %v3277_v13 = vpop.f32.mrb[64].mxu0  ;;  %v123_v44 = vld [vmem:[%s11991_s0 + $0x388] sm:$0xff]  ;;  %v7722_v6 = vpop.permute.xlu0 %7721  ;;  %v2428_v15 = vsel %vm2337_vm1, %v2299_v3, %v7713_v61 }
 0x1d3   :  { %v3279_v16 = vpop.f32.mrb[65].mxu0  ;;  %3594 = vmatmul.mubr.f32.gmra.mrb[170].mxu0 %v2552_v14  ;;  %v634_v7 = vld [vmem:[%s11991_s0 + $0x384] sm:$0xff]  ;;  %v7723_v18 = vunpack.i.l.bf16 %v7722_v6 }
 0x1d4   :  { %v3884_v19 = vmax.f32 %v3277_v13, %v3279_v16  ;;  %6446 = vmatprep.mubr.msk.f32.mxu0 %vm2208_vm0, %v630_v9  ;;  %v10852_v22 = vadd.f32 %v10800_v25, %v4377_v10  ;;  %v7718_v9 = vunpack.i.l.bf16 %v7717_v62  ;;  %v7714_v13 = vunpack.i.h.bf16 %v7712_v31  ;;  %v7727_v16 = vpop.permute.xlu1 %7726 }
 0x1d5   :  { %v7728_v43 = vunpack.i.l.bf16 %v7727_v16 }
 0x1d6   :  { %4012 = vst [vmem:[#allocation2 + $0x100] sm:$0xff] %v3884_v19  ;;  %v3283_v32 = vpop.f32.mrb[66].mxu0  ;;  %v4512_v36 = vmax.f32 %v10852_v22, 0.0  ;;  %v2300_v19 = vsel %vm2208_vm0, %v123_v44, %v7709_v0  ;;  %v7732_v46 = vpop.permute.xlu0 %7731 }
 0x1d7   :  { %v3285_v42 = vpop.f32.mrb[67].mxu0  ;;  %3600 = vmatmul.mubr.f32.gmra.mrb[172].mxu0 %v2553_v35  ;;  %v4664_v45 = vld [vmem:[#allocation3 + $0x61] sm:$0xff]  ;;  %v2429_v47 = vsel %vm2337_vm1, %v2300_v19, %v7714_v13  ;;  %v7733_v55 = vunpack.i.l.bf16 %v7732_v46  ;;  %v639_v19 = vld [vmem:[%s11991_s0 + $0x3b4] sm:$0xff] }
 0x1d8   :  { %v3885_v49 = vmax.f32 %v3283_v32, %v3285_v42  ;;  %5046 = vmatprep.mubr.f32.mxu1 %v4664_v45  ;;  %6447 = vmatprep.mubr.msk.f32.mxu0 %vm2208_vm0, %v631_v23  ;;  %4576 = vst [vmem:[#allocation3 + $0x70] sm:$0xff] %v4512_v36  ;;  %v124_v23 = vld [vmem:[%s11991_s0 + $0x398] sm:$0xff]  ;;  %v2557_v32 = vsel %vm2466_vm2, %v2428_v15, %v7718_v9  ;;  %v7737_v2 = vpop.permute.xlu1 %7736 }
 0x1d9   :  { %v4138_v52 = vld [vmem:[#allocation2 + $0xf0] ss:$2 sm:$0xff]  ;;  %v4266_v53 = vld [vmem:[#allocation2 + $0xf1] ss:$2 sm:$0xff]  ;;  %5047 = vmatmul.mubr.f32.gmra.mrb[12].mxu1 %v4510_v37  ;;  %v2298_v37 = vsel %vm2208_vm0, %v121_v51, %v7694_v48  ;;  %v7724_v48 = vunpack.i.h.bf16 %v7722_v6  ;;  %v2301_v50 = vsel %vm2208_vm0, %v124_v23, %v7723_v18  ;;  %v125_v51 = vld [vmem:[%s11991_s0 + $0x3a0] sm:$0xff]  ;;  %v7738_v22 = vunpack.i.l.bf16 %v7737_v2 }
 0x1da   :  { %v4378_v54 = vmax.f32 %v4138_v52, %v4266_v53  ;;  %4013 = vst [vmem:[#allocation2 + $0x108] sm:$0xff] %v3885_v49  ;;  %v3289_v56 = vpop.f32.mrb[68].mxu0  ;;  %v2427_v63 = vsel %vm2337_vm1, %v2298_v37, %v7699_v58  ;;  %v7729_v58 = vunpack.i.h.bf16 %v7727_v16  ;;  %v2430_v24 = vsel %vm2337_vm1, %v2301_v50, %v7728_v43  ;;  %v7742_v31 = vpop.permute.xlu0 %7741  ;;  %v637_v37 = vld [vmem:[%s11991_s0 + $0x3a4] sm:$0xff] }
 0x1db   :  { %v3291_v59 = vpop.f32.mrb[69].mxu0  ;;  %3606 = vmatmul.mubr.f32.gmra.mrb[174].mxu0 %v2554_v57  ;;  %v2556_v12 = vsel %vm2466_vm2, %v2427_v63, %v7704_v39  ;;  %v2558_v57 = vsel %vm2466_vm2, %v2429_v47, %v7719_v27  ;;  %v2559_v39 = vsel %vm2466_vm2, %v2430_v24, %v7733_v55  ;;  %v7739_v62 = vunpack.i.h.bf16 %v7737_v2 }
 0x1dc   :  { %v3886_v60 = vmax.f32 %v3289_v56, %v3291_v59  ;;  %6448 = vmatprep.mubr.msk.f32.mxu0 %vm2208_vm0, %v632_v11  ;;  %v4449_v28 = vadd.f32 %v10800_v25, %v4378_v54  ;;  %v636_v11 = vld [vmem:[%s11991_s0 + $0x39c] sm:$0xff] }
 0x1de   :  { %4014 = vst [vmem:[#allocation2 + $0x110] sm:$0xff] %v3886_v60  ;;  %v3295_v33 = vpop.f32.mrb[70].mxu0  ;;  %v4513_v34 = vmax.f32 %v4449_v28, 0.0  ;;  %v126_v28 = vld [vmem:[%s11991_s0 + $0x3a8] sm:$0xff] }
 0x1df   :  { %v3297_v40 = vpop.f32.mrb[71].mxu0  ;;  %3612 = vmatmul.mubr.f32.gmra.mrb[176].mxu0 %v2555_v41  ;;  %v2303_v0 = vsel %vm2208_vm0, %v126_v28, %v7738_v22 }
 0x1e0   :  { %v3887_v1 = vmax.f32 %v3295_v33, %v3297_v40  ;;  %6449 = vmatprep.mubr.msk.f32.mxu0 %vm2208_vm0, %v633_v38  ;;  %4577 = vst [vmem:[#allocation3 + $0x78] sm:$0xff] %v4513_v34  ;;  %v7734_v38 = vunpack.i.h.bf16 %v7732_v46  ;;  %v7743_v34 = vunpack.i.l.bf16 %v7742_v31  ;;  %v7747_v40 = vpop.permute.xlu1 %7746 }
 0x1e1   :  { %v4140_v4 = vld [vmem:[#allocation2 + $0x100] ss:$2 sm:$0xff]  ;;  %v4268_v5 = vld [vmem:[#allocation2 + $0x101] ss:$2 sm:$0xff]  ;;  %v7749_v23 = vunpack.i.h.bf16 %v7747_v40 }
 0x1e2   :  { %v4379_v8 = vmax.f32 %v4140_v4, %v4268_v5  ;;  %4015 = vst [vmem:[#allocation2 + $0x118] sm:$0xff] %v3887_v1  ;;  %v3301_v10 = vpop.f32.mrb[72].mxu0  ;;  %v127_v1 = vld [vmem:[%s11991_s0 + $0x3b0] sm:$0xff]  ;;  %v7752_v4 = vpop.permute.xlu0 %7751  ;;  %v2432_v13 = vsel %vm2337_vm1, %v2303_v0, %v7743_v34 }
 0x1e3   :  { %v3303_v14 = vpop.f32.mrb[73].mxu0  ;;  %3618 = vmatmul.mubr.f32.gmra.mrb[178].mxu0 %v2556_v12  ;;  %v638_v5 = vld [vmem:[%s11991_s0 + $0x3ac] sm:$0xff]  ;;  %v7753_v16 = vunpack.i.l.bf16 %v7752_v4 }
 0x1e4   :  { %v3888_v17 = vmax.f32 %v3301_v10, %v3303_v14  ;;  %6450 = vmatprep.mubr.msk.f32.mxu0 %vm2208_vm0, %v634_v7  ;;  %v10901_v20 = vadd.f32 %v10800_v25, %v4379_v8  ;;  %v7748_v7 = vunpack.i.l.bf16 %v7747_v40  ;;  %v7744_v10 = vunpack.i.h.bf16 %v7742_v31  ;;  %v7757_v14 = vpop.permute.xlu1 %7756 }
 0x1e5   :  { %v7758_v43 = vunpack.i.l.bf16 %v7757_v14 }
 0x1e6   :  { %4016 = vst [vmem:[#allocation2 + $0x120] sm:$0xff] %v3888_v17  ;;  %v3307_v29 = vpop.f32.mrb[74].mxu0  ;;  %v4514_v35 = vmax.f32 %v10901_v20, 0.0  ;;  %v2304_v17 = vsel %vm2208_vm0, %v127_v1, %v7739_v62  ;;  %v7762_v46 = vpop.permute.xlu0 %7761 }
 0x1e7   :  { %v3309_v42 = vpop.f32.mrb[75].mxu0  ;;  %3624 = vmatmul.mubr.f32.gmra.mrb[180].mxu0 %v2557_v32  ;;  %v4665_v45 = vld [vmem:[#allocation3 + $0x71] sm:$0xff]  ;;  %v2433_v47 = vsel %vm2337_vm1, %v2304_v17, %v7744_v10  ;;  %v7763_v55 = vunpack.i.l.bf16 %v7762_v46  ;;  %v643_v17 = vld [vmem:[%s11991_s0 + $0x3dc] sm:$0xff] }
 0x1e8   :  { %v3889_v49 = vmax.f32 %v3307_v29, %v3309_v42  ;;  %5052 = vmatprep.mubr.f32.mxu1 %v4665_v45  ;;  %6451 = vmatprep.mubr.msk.f32.mxu0 %vm2208_vm0, %v635_v21  ;;  %4578 = vst [vmem:[#allocation3 + $0x80] sm:$0xff] %v4514_v35  ;;  %v128_v21 = vld [vmem:[%s11991_s0 + $0x3c0] sm:$0xff]  ;;  %v2561_v29 = vsel %vm2466_vm2, %v2432_v13, %v7748_v7  ;;  %v7767_v2 = vpop.permute.xlu1 %7766 }
 0x1e9   :  { %v4142_v52 = vld [vmem:[#allocation2 + $0x110] ss:$2 sm:$0xff]  ;;  %v4270_v53 = vld [vmem:[#allocation2 + $0x111] ss:$2 sm:$0xff]  ;;  %5053 = vmatmul.mubr.f32.gmra.mrb[14].mxu1 %v4512_v36  ;;  %v2302_v36 = vsel %vm2208_vm0, %v125_v51, %v7724_v48  ;;  %v7754_v48 = vunpack.i.h.bf16 %v7752_v4  ;;  %v2305_v50 = vsel %vm2208_vm0, %v128_v21, %v7753_v16  ;;  %v129_v51 = vld [vmem:[%s11991_s0 + $0x3c8] sm:$0xff]  ;;  %v7768_v20 = vunpack.i.l.bf16 %v7767_v2 }
 0x1ea   :  { %v4380_v54 = vmax.f32 %v4142_v52, %v4270_v53  ;;  %4017 = vst [vmem:[#allocation2 + $0x128] sm:$0xff] %v3889_v49  ;;  %v3313_v56 = vpop.f32.mrb[76].mxu0  ;;  %v2431_v61 = vsel %vm2337_vm1, %v2302_v36, %v7729_v58  ;;  %v7759_v58 = vunpack.i.h.bf16 %v7757_v14  ;;  %v2434_v24 = vsel %vm2337_vm1, %v2305_v50, %v7758_v43  ;;  %v7772_v31 = vpop.permute.xlu0 %7771  ;;  %v641_v36 = vld [vmem:[%s11991_s0 + $0x3cc] sm:$0xff] }
 0x1eb   :  { %v3315_v59 = vpop.f32.mrb[77].mxu0  ;;  %3630 = vmatmul.mubr.f32.gmra.mrb[182].mxu0 %v2558_v57  ;;  %v2560_v9 = vsel %vm2466_vm2, %v2431_v61, %v7734_v38  ;;  %v2562_v57 = vsel %vm2466_vm2, %v2433_v47, %v7749_v23  ;;  %v2563_v38 = vsel %vm2466_vm2, %v2434_v24, %v7763_v55  ;;  %v7769_v40 = vunpack.i.h.bf16 %v7767_v2 }
 0x1ec   :  { %v3890_v60 = vmax.f32 %v3313_v56, %v3315_v59  ;;  %6452 = vmatprep.mubr.msk.f32.mxu0 %vm2208_vm0, %v636_v11  ;;  %v4451_v26 = vadd.f32 %v10800_v25, %v4380_v54  ;;  %v640_v11 = vld [vmem:[%s11991_s0 + $0x3c4] sm:$0xff] }
 0x1ee   :  { %4018 = vst [vmem:[#allocation2 + $0x130] sm:$0xff] %v3890_v60  ;;  %v3319_v30 = vpop.f32.mrb[78].mxu0  ;;  %v4515_v33 = vmax.f32 %v4451_v26, 0.0  ;;  %v130_v26 = vld [vmem:[%s11991_s0 + $0x3d0] sm:$0xff] }
 0x1ef   :  { %v3321_v41 = vpop.f32.mrb[79].mxu0  ;;  %3636 = vmatmul.mubr.f32.gmra.mrb[184].mxu0 %v2559_v39  ;;  %v2307_v62 = vsel %vm2208_vm0, %v130_v26, %v7768_v20 }
 0x1f0   :  { %v3891_v63 = vmax.f32 %v3319_v30, %v3321_v41  ;;  %6453 = vmatprep.mubr.msk.f32.mxu0 %vm2208_vm0, %v637_v37  ;;  %4579 = vst [vmem:[#allocation3 + $0x88] sm:$0xff] %v4515_v33  ;;  %v7764_v37 = vunpack.i.h.bf16 %v7762_v46  ;;  %v7773_v33 = vunpack.i.l.bf16 %v7772_v31  ;;  %v7777_v41 = vpop.permute.xlu1 %7776 }
 0x1f1   :  { %v4144_v3 = vld [vmem:[#allocation2 + $0x120] ss:$2 sm:$0xff]  ;;  %v4272_v44 = vld [vmem:[#allocation2 + $0x121] ss:$2 sm:$0xff]  ;;  %v7779_v21 = vunpack.i.h.bf16 %v7777_v41 }
 0x1f2   :  { %v4381_v6 = vmax.f32 %v4144_v3, %v4272_v44  ;;  %4019 = vst [vmem:[#allocation2 + $0x138] sm:$0xff] %v3891_v63  ;;  %v3325_v8 = vpop.f32.mrb[80].mxu0  ;;  %v131_v63 = vld [vmem:[%s11991_s0 + $0x3d8] sm:$0xff]  ;;  %v7782_v3 = vpop.permute.xlu0 %7781  ;;  %v2436_v10 = vsel %vm2337_vm1, %v2307_v62, %v7773_v33 }
 0x1f3   :  { %v3327_v12 = vpop.f32.mrb[81].mxu0  ;;  %3642 = vmatmul.mubr.f32.gmra.mrb[186].mxu0 %v2560_v9  ;;  %v642_v44 = vld [vmem:[%s11991_s0 + $0x3d4] sm:$0xff]  ;;  %v7783_v14 = vunpack.i.l.bf16 %v7782_v3 }
 0x1f4   :  { %v3892_v15 = vmax.f32 %v3325_v8, %v3327_v12  ;;  %6454 = vmatprep.mubr.msk.f32.mxu0 %vm2208_vm0, %v638_v5  ;;  %v10950_v18 = vadd.f32 %v10800_v25, %v4381_v6  ;;  %v7778_v5 = vunpack.i.l.bf16 %v7777_v41  ;;  %v7774_v8 = vunpack.i.h.bf16 %v7772_v31  ;;  %v7787_v12 = vpop.permute.xlu1 %7786 }
 0x1f5   :  { %v7788_v43 = vunpack.i.l.bf16 %v7787_v12 }
 0x1f6   :  { %4020 = vst [vmem:[#allocation2 + $0x140] sm:$0xff] %v3892_v15  ;;  %v3331_v27 = vpop.f32.mrb[82].mxu0  ;;  %v4516_v32 = vmax.f32 %v10950_v18, 0.0  ;;  %v2308_v15 = vsel %vm2208_vm0, %v131_v63, %v7769_v40  ;;  %v7792_v46 = vpop.permute.xlu0 %7791 }
 0x1f7   :  { %v3333_v42 = vpop.f32.mrb[83].mxu0  ;;  %3648 = vmatmul.mubr.f32.gmra.mrb[188].mxu0 %v2561_v29  ;;  %v4666_v45 = vld [vmem:[#allocation3 + $0x81] sm:$0xff]  ;;  %v2437_v47 = vsel %vm2337_vm1, %v2308_v15, %v7774_v8  ;;  %v7793_v55 = vunpack.i.l.bf16 %v7792_v46 }
 0x1f8   :  { %v3893_v49 = vmax.f32 %v3331_v27, %v3333_v42  ;;  %5058 = vmatprep.mubr.f32.mxu1 %v4666_v45  ;;  %6455 = vmatprep.mubr.msk.f32.mxu0 %vm2208_vm0, %v639_v19  ;;  %4580 = vst [vmem:[#allocation3 + $0x90] sm:$0xff] %v4516_v32  ;;  %v132_v19 = vld [vmem:[%s11991_s0 + $0x3e8] sm:$0xff]  ;;  %v2565_v27 = vsel %vm2466_vm2, %v2436_v10, %v7778_v5  ;;  %v7797_v2 = vpop.permute.xlu1 %7796 }
 0x1f9   :  { %v4146_v52 = vld [vmem:[#allocation2 + $0x130] ss:$2 sm:$0xff]  ;;  %v4274_v53 = vld [vmem:[#allocation2 + $0x131] ss:$2 sm:$0xff]  ;;  %5059 = vmatmul.mubr.f32.gmra.mrb[16].mxu1 %v4514_v35  ;;  %v2306_v35 = vsel %vm2208_vm0, %v129_v51, %v7754_v48  ;;  %v7784_v48 = vunpack.i.h.bf16 %v7782_v3  ;;  %v2309_v50 = vsel %vm2208_vm0, %v132_v19, %v7783_v14  ;;  %v7798_v18 = vunpack.i.l.bf16 %v7797_v2  ;;  %v647_v15 = vld [vmem:[%s11991_s0 + $0x404] sm:$0xff] }
 0x1fa   :  { %v4382_v54 = vmax.f32 %v4146_v52, %v4274_v53  ;;  %4021 = vst [vmem:[#allocation2 + $0x148] sm:$0xff] %v3893_v49  ;;  %v3337_v56 = vpop.f32.mrb[84].mxu0  ;;  %v2435_v34 = vsel %vm2337_vm1, %v2306_v35, %v7759_v58  ;;  %v133_v51 = vld [vmem:[%s11991_s0 + $0x3f0] sm:$0xff]  ;;  %v7789_v58 = vunpack.i.h.bf16 %v7787_v12  ;;  %v2438_v24 = vsel %vm2337_vm1, %v2309_v50, %v7788_v43  ;;  %v7802_v31 = vpop.permute.xlu0 %7801 }
 0x1fb   :  { %v3339_v59 = vpop.f32.mrb[85].mxu0  ;;  %3654 = vmatmul.mubr.f32.gmra.mrb[190].mxu0 %v2562_v57  ;;  %v2564_v7 = vsel %vm2466_vm2, %v2435_v34, %v7764_v37  ;;  %v2566_v57 = vsel %vm2466_vm2, %v2437_v47, %v7779_v21  ;;  %v645_v35 = vld [vmem:[%s11991_s0 + $0x3f4] sm:$0xff]  ;;  %v2567_v37 = vsel %vm2466_vm2, %v2438_v24, %v7793_v55  ;;  %v7799_v41 = vunpack.i.h.bf16 %v7797_v2 }
 0x1fc   :  { %v3894_v60 = vmax.f32 %v3337_v56, %v3339_v59  ;;  %6456 = vmatprep.mubr.msk.f32.mxu0 %vm2208_vm0, %v640_v11  ;;  %v4453_v22 = vadd.f32 %v10800_v25, %v4382_v54  ;;  %v644_v11 = vld [vmem:[%s11991_s0 + $0x3ec] sm:$0xff] }
 0x1fe   :  { %4022 = vst [vmem:[#allocation2 + $0x150] sm:$0xff] %v3894_v60  ;;  %v3343_v28 = vpop.f32.mrb[86].mxu0  ;;  %v4517_v30 = vmax.f32 %v4453_v22, 0.0  ;;  %v134_v22 = vld [vmem:[%s11991_s0 + $0x3f8] sm:$0xff] }
 0x1ff   :  { %v3345_v39 = vpop.f32.mrb[87].mxu0  ;;  %3660 = vmatmul.mubr.f32.gmra.mrb[192].mxu0 %v2563_v38  ;;  %v2311_v40 = vsel %vm2208_vm0, %v134_v22, %v7798_v18 }
 0x200   :  { %v3895_v61 = vmax.f32 %v3343_v28, %v3345_v39  ;;  %6457 = vmatprep.mubr.msk.f32.mxu0 %vm2208_vm0, %v641_v36  ;;  %4581 = vst [vmem:[#allocation3 + $0x98] sm:$0xff] %v4517_v30  ;;  %v7794_v36 = vunpack.i.h.bf16 %v7792_v46  ;;  %v7803_v30 = vunpack.i.l.bf16 %v7802_v31  ;;  %v7807_v39 = vpop.permute.xlu1 %7806 }
 0x201   :  { %v4148_v0 = vld [vmem:[#allocation2 + $0x140] ss:$2 sm:$0xff]  ;;  %v4276_v1 = vld [vmem:[#allocation2 + $0x141] ss:$2 sm:$0xff]  ;;  %v7809_v19 = vunpack.i.h.bf16 %v7807_v39 }
 0x202   :  { %v4383_v4 = vmax.f32 %v4148_v0, %v4276_v1  ;;  %4023 = vst [vmem:[#allocation2 + $0x158] sm:$0xff] %v3895_v61  ;;  %v3349_v6 = vpop.f32.mrb[88].mxu0  ;;  %v135_v61 = vld [vmem:[%s11991_s0 + $0x400] sm:$0xff]  ;;  %v7812_v0 = vpop.permute.xlu0 %7811  ;;  %v2440_v8 = vsel %vm2337_vm1, %v2311_v40, %v7803_v30 }
 0x203   :  { %v3351_v9 = vpop.f32.mrb[89].mxu0  ;;  %3666 = vmatmul.mubr.f32.gmra.mrb[194].mxu0 %v2564_v7  ;;  %v646_v1 = vld [vmem:[%s11991_s0 + $0x3fc] sm:$0xff]  ;;  %v7813_v12 = vunpack.i.l.bf16 %v7812_v0 }
 0x204   :  { %v3896_v13 = vmax.f32 %v3349_v6, %v3351_v9  ;;  %6458 = vmatprep.mubr.msk.f32.mxu0 %vm2208_vm0, %v642_v44  ;;  %v10999_v16 = vadd.f32 %v10800_v25, %v4383_v4  ;;  %v7808_v44 = vunpack.i.l.bf16 %v7807_v39  ;;  %v7804_v6 = vunpack.i.h.bf16 %v7802_v31  ;;  %v7817_v9 = vpop.permute.xlu1 %7816 }
 0x205   :  { %v7818_v43 = vunpack.i.l.bf16 %v7817_v9 }
 0x206   :  { %4024 = vst [vmem:[#allocation2 + $0x160] sm:$0xff] %v3896_v13  ;;  %v3355_v23 = vpop.f32.mrb[90].mxu0  ;;  %v4518_v29 = vmax.f32 %v10999_v16, 0.0  ;;  %v2312_v13 = vsel %vm2208_vm0, %v135_v61, %v7799_v41  ;;  %v7822_v46 = vpop.permute.xlu0 %7821 }
 0x207   :  { %v3357_v42 = vpop.f32.mrb[91].mxu0  ;;  %3672 = vmatmul.mubr.f32.gmra.mrb[196].mxu0 %v2565_v27  ;;  %v4667_v45 = vld [vmem:[#allocation3 + $0x91] sm:$0xff]  ;;  %v2441_v47 = vsel %vm2337_vm1, %v2312_v13, %v7804_v6  ;;  %v7823_v55 = vunpack.i.l.bf16 %v7822_v46 }
 0x208   :  { %v3897_v49 = vmax.f32 %v3355_v23, %v3357_v42  ;;  %5064 = vmatprep.mubr.f32.mxu1 %v4667_v45  ;;  %6459 = vmatprep.mubr.msk.f32.mxu0 %vm2208_vm0, %v643_v17  ;;  %4582 = vst [vmem:[#allocation3 + $0xa0] sm:$0xff] %v4518_v29  ;;  %v136_v17 = vld [vmem:[%s11991_s0 + $0x410] sm:$0xff]  ;;  %v2569_v23 = vsel %vm2466_vm2, %v2440_v8, %v7808_v44  ;;  %v7827_v2 = vpop.permute.xlu1 %7826 }
 0x209   :  { %v4150_v52 = vld [vmem:[#allocation2 + $0x150] ss:$2 sm:$0xff]  ;;  %v4278_v53 = vld [vmem:[#allocation2 + $0x151] ss:$2 sm:$0xff]  ;;  %5065 = vmatmul.mubr.f32.gmra.mrb[18].mxu1 %v4516_v32  ;;  %v2310_v32 = vsel %vm2208_vm0, %v133_v51, %v7784_v48  ;;  %v7814_v48 = vunpack.i.h.bf16 %v7812_v0  ;;  %v2313_v50 = vsel %vm2208_vm0, %v136_v17, %v7813_v12  ;;  %v7828_v16 = vunpack.i.l.bf16 %v7827_v2 }
 0x20a   :  { %v4384_v54 = vmax.f32 %v4150_v52, %v4278_v53  ;;  %4025 = vst [vmem:[#allocation2 + $0x168] sm:$0xff] %v3897_v49  ;;  %v3361_v56 = vpop.f32.mrb[92].mxu0  ;;  %v2439_v33 = vsel %vm2337_vm1, %v2310_v32, %v7789_v58  ;;  %v137_v51 = vld [vmem:[%s11991_s0 + $0x418] sm:$0xff]  ;;  %v7819_v58 = vunpack.i.h.bf16 %v7817_v9  ;;  %v2442_v24 = vsel %vm2337_vm1, %v2313_v50, %v7818_v43  ;;  %v7832_v31 = vpop.permute.xlu0 %7831  ;;  %v651_v13 = vld [vmem:[%s11991_s0 + $0x42c] sm:$0xff] }
 0x20b   :  { %v3363_v59 = vpop.f32.mrb[93].mxu0  ;;  %3678 = vmatmul.mubr.f32.gmra.mrb[198].mxu0 %v2566_v57  ;;  %v2568_v5 = vsel %vm2466_vm2, %v2439_v33, %v7794_v36  ;;  %v2570_v57 = vsel %vm2466_vm2, %v2441_v47, %v7809_v19  ;;  %v649_v32 = vld [vmem:[%s11991_s0 + $0x41c] sm:$0xff]  ;;  %v2571_v36 = vsel %vm2466_vm2, %v2442_v24, %v7823_v55  ;;  %v7829_v39 = vunpack.i.h.bf16 %v7827_v2 }
 0x20c   :  { %v3898_v60 = vmax.f32 %v3361_v56, %v3363_v59  ;;  %6460 = vmatprep.mubr.msk.f32.mxu0 %vm2208_vm0, %v644_v11  ;;  %v4455_v20 = vadd.f32 %v10800_v25, %v4384_v54  ;;  %v648_v11 = vld [vmem:[%s11991_s0 + $0x414] sm:$0xff] }
 0x20e   :  { %4026 = vst [vmem:[#allocation2 + $0x170] sm:$0xff] %v3898_v60  ;;  %v3367_v26 = vpop.f32.mrb[94].mxu0  ;;  %v4519_v28 = vmax.f32 %v4455_v20, 0.0  ;;  %v138_v20 = vld [vmem:[%s11991_s0 + $0x420] sm:$0xff] }
 0x20f   :  { %v3369_v38 = vpop.f32.mrb[95].mxu0  ;;  %3684 = vmatmul.mubr.f32.gmra.mrb[200].mxu0 %v2567_v37  ;;  %v2315_v41 = vsel %vm2208_vm0, %v138_v20, %v7828_v16 }
 0x210   :  { %v3899_v34 = vmax.f32 %v3367_v26, %v3369_v38  ;;  %6461 = vmatprep.mubr.msk.f32.mxu0 %vm2208_vm0, %v645_v35  ;;  %4583 = vst [vmem:[#allocation3 + $0xa8] sm:$0xff] %v4519_v28  ;;  %v7824_v35 = vunpack.i.h.bf16 %v7822_v46  ;;  %v7833_v28 = vunpack.i.l.bf16 %v7832_v31  ;;  %v7837_v38 = vpop.permute.xlu1 %7836 }
 0x211   :  { %v4152_v62 = vld [vmem:[#allocation2 + $0x160] ss:$2 sm:$0xff]  ;;  %v4280_v63 = vld [vmem:[#allocation2 + $0x161] ss:$2 sm:$0xff]  ;;  %v7839_v17 = vunpack.i.h.bf16 %v7837_v38 }
 0x212   :  { %v4385_v3 = vmax.f32 %v4152_v62, %v4280_v63  ;;  %4027 = vst [vmem:[#allocation2 + $0x178] sm:$0xff] %v3899_v34  ;;  %v3373_v4 = vpop.f32.mrb[96].mxu0  ;;  %v139_v34 = vld [vmem:[%s11991_s0 + $0x428] sm:$0xff]  ;;  %v7842_v62 = vpop.permute.xlu0 %7841  ;;  %v2444_v6 = vsel %vm2337_vm1, %v2315_v41, %v7833_v28 }
 0x213   :  { %v3375_v7 = vpop.f32.mrb[97].mxu0  ;;  %3690 = vmatmul.mubr.f32.gmra.mrb[202].mxu0 %v2568_v5  ;;  %v650_v63 = vld [vmem:[%s11991_s0 + $0x424] sm:$0xff]  ;;  %v7843_v9 = vunpack.i.l.bf16 %v7842_v62 }
 0x214   :  { %v3900_v10 = vmax.f32 %v3373_v4, %v3375_v7  ;;  %6462 = vmatprep.mubr.msk.f32.mxu0 %vm2208_vm0, %v646_v1  ;;  %v11048_v14 = vadd.f32 %v10800_v25, %v4385_v3  ;;  %v7838_v1 = vunpack.i.l.bf16 %v7837_v38  ;;  %v7834_v4 = vunpack.i.h.bf16 %v7832_v31  ;;  %v7847_v7 = vpop.permute.xlu1 %7846 }
 0x215   :  { %v7848_v43 = vunpack.i.l.bf16 %v7847_v7 }
 0x216   :  { %4028 = vst [vmem:[#allocation2 + $0x180] sm:$0xff] %v3900_v10  ;;  %v3379_v21 = vpop.f32.mrb[98].mxu0  ;;  %v4520_v27 = vmax.f32 %v11048_v14, 0.0  ;;  %v2316_v10 = vsel %vm2208_vm0, %v139_v34, %v7829_v39  ;;  %v7852_v46 = vpop.permute.xlu0 %7851  ;;  %v143_v39 = vld [vmem:[%s11991_s0 + $0x450] sm:$0xff] }
 0x217   :  { %v3381_v42 = vpop.f32.mrb[99].mxu0  ;;  %3696 = vmatmul.mubr.f32.gmra.mrb[204].mxu0 %v2569_v23  ;;  %v4668_v45 = vld [vmem:[#allocation3 + $0xa1] sm:$0xff]  ;;  %v2445_v47 = vsel %vm2337_vm1, %v2316_v10, %v7834_v4  ;;  %v7853_v55 = vunpack.i.l.bf16 %v7852_v46  ;;  %v655_v10 = vld [vmem:[%s11991_s0 + $0x454] sm:$0xff] }
 0x218   :  { %v3901_v49 = vmax.f32 %v3379_v21, %v3381_v42  ;;  %5070 = vmatprep.mubr.f32.mxu1 %v4668_v45  ;;  %6463 = vmatprep.mubr.msk.f32.mxu0 %vm2208_vm0, %v647_v15  ;;  %4584 = vst [vmem:[#allocation3 + $0xb0] sm:$0xff] %v4520_v27  ;;  %v140_v15 = vld [vmem:[%s11991_s0 + $0x438] sm:$0xff]  ;;  %v2573_v21 = vsel %vm2466_vm2, %v2444_v6, %v7838_v1  ;;  %v7857_v2 = vpop.permute.xlu1 %7856 }
 0x219   :  { %v4154_v52 = vld [vmem:[#allocation2 + $0x170] ss:$2 sm:$0xff]  ;;  %v4282_v53 = vld [vmem:[#allocation2 + $0x171] ss:$2 sm:$0xff]  ;;  %5071 = vmatmul.mubr.f32.gmra.mrb[20].mxu1 %v4518_v29  ;;  %v2314_v29 = vsel %vm2208_vm0, %v137_v51, %v7814_v48  ;;  %v7844_v48 = vunpack.i.h.bf16 %v7842_v62  ;;  %v2317_v50 = vsel %vm2208_vm0, %v140_v15, %v7843_v9  ;;  %v141_v51 = vld [vmem:[%s11991_s0 + $0x440] sm:$0xff]  ;;  %v7858_v14 = vunpack.i.l.bf16 %v7857_v2 }
 0x21a   :  { %v4386_v54 = vmax.f32 %v4154_v52, %v4282_v53  ;;  %4029 = vst [vmem:[#allocation2 + $0x188] sm:$0xff] %v3901_v49  ;;  %v3385_v56 = vpop.f32.mrb[100].mxu0  ;;  %v2443_v30 = vsel %vm2337_vm1, %v2314_v29, %v7819_v58  ;;  %v7849_v58 = vunpack.i.h.bf16 %v7847_v7  ;;  %v2446_v24 = vsel %vm2337_vm1, %v2317_v50, %v7848_v43  ;;  %v7862_v31 = vpop.permute.xlu0 %7861  ;;  %v653_v29 = vld [vmem:[%s11991_s0 + $0x444] sm:$0xff] }
 0x21b   :  { %v3387_v59 = vpop.f32.mrb[101].mxu0  ;;  %3702 = vmatmul.mubr.f32.gmra.mrb[206].mxu0 %v2570_v57  ;;  %v2572_v44 = vsel %vm2466_vm2, %v2443_v30, %v7824_v35  ;;  %v2574_v57 = vsel %vm2466_vm2, %v2445_v47, %v7839_v17  ;;  %v2575_v35 = vsel %vm2466_vm2, %v2446_v24, %v7853_v55  ;;  %v7859_v28 = vunpack.i.h.bf16 %v7857_v2 }
 0x21c   :  { %v3902_v60 = vmax.f32 %v3385_v56, %v3387_v59  ;;  %6464 = vmatprep.mubr.msk.f32.mxu0 %vm2208_vm0, %v648_v11  ;;  %v4457_v18 = vadd.f32 %v10800_v25, %v4386_v54  ;;  %v652_v11 = vld [vmem:[%s11991_s0 + $0x43c] sm:$0xff]  ;;  %v7864_v1 = vunpack.i.h.bf16 %v7862_v31 }
 0x21d   :  { %v2320_v7 = vsel %vm2208_vm0, %v143_v39, %v7859_v28 }
 0x21e   :  { %4030 = vst [vmem:[#allocation2 + $0x190] sm:$0xff] %v3902_v60  ;;  %v3391_v22 = vpop.f32.mrb[102].mxu0  ;;  %v4521_v26 = vmax.f32 %v4457_v18, 0.0  ;;  %v142_v18 = vld [vmem:[%s11991_s0 + $0x448] sm:$0xff]  ;;  %v7872_v34 = vpop.permute.xlu0 %7871  ;;  %v2449_v47 = vsel %vm2337_vm1, %v2320_v7, %v7864_v1  ;;  %v659_v7 = vld [vmem:[%s11991_s0 + $0x47c] sm:$0xff] }
 0x21f   :  { %v3393_v37 = vpop.f32.mrb[103].mxu0  ;;  %3708 = vmatmul.mubr.f32.gmra.mrb[208].mxu0 %v2571_v36  ;;  %v2319_v30 = vsel %vm2208_vm0, %v142_v18, %v7858_v14  ;;  %v7873_v6 = vunpack.i.l.bf16 %v7872_v34 }
 0x220   :  { %v3903_v33 = vmax.f32 %v3391_v22, %v3393_v37  ;;  %6465 = vmatprep.mubr.msk.f32.mxu0 %vm2208_vm0, %v649_v32  ;;  %4585 = vst [vmem:[#allocation3 + $0xb8] sm:$0xff] %v4521_v26  ;;  %v7854_v32 = vunpack.i.h.bf16 %v7852_v46  ;;  %v7863_v26 = vunpack.i.l.bf16 %v7862_v31  ;;  %v7867_v37 = vpop.permute.xlu1 %7866 }
 0x221   :  { %v4156_v40 = vld [vmem:[#allocation2 + $0x180] ss:$2 sm:$0xff]  ;;  %v4284_v61 = vld [vmem:[#allocation2 + $0x181] ss:$2 sm:$0xff]  ;;  %v7868_v62 = vunpack.i.l.bf16 %v7867_v37  ;;  %v7869_v15 = vunpack.i.h.bf16 %v7867_v37 }
 0x222   :  { %v4387_v0 = vmax.f32 %v4156_v40, %v4284_v61  ;;  %4031 = vst [vmem:[#allocation2 + $0x198] sm:$0xff] %v3903_v33  ;;  %v3397_v3 = vpop.f32.mrb[104].mxu0  ;;  %v654_v40 = vld [vmem:[%s11991_s0 + $0x44c] sm:$0xff]  ;;  %v7882_v46 = vpop.permute.xlu0 %7881 }
 0x223   :  { %v3399_v5 = vpop.f32.mrb[105].mxu0  ;;  %3714 = vmatmul.mubr.f32.gmra.mrb[210].mxu0 %v2572_v44  ;;  %v2448_v44 = vsel %vm2337_vm1, %v2319_v30, %v7863_v26  ;;  %v7883_v55 = vunpack.i.l.bf16 %v7882_v46 }
 0x224   :  { %v3904_v8 = vmax.f32 %v3397_v3, %v3399_v5  ;;  %6466 = vmatprep.mubr.msk.f32.mxu0 %vm2208_vm0, %v650_v63  ;;  %v11097_v12 = vadd.f32 %v10800_v25, %v4387_v0  ;;  %v7877_v4 = vpop.permute.xlu1 %7876 }
 0x225   :  { %v7878_v43 = vunpack.i.l.bf16 %v7877_v4 }
 0x226   :  { %4032 = vst [vmem:[#allocation2 + $0x1a0] sm:$0xff] %v3904_v8  ;;  %v3403_v19 = vpop.f32.mrb[106].mxu0  ;;  %v4522_v23 = vmax.f32 %v11097_v12, 0.0  ;;  %v11148_v8 = vld [vmem:[%s11994_s2] ss:$0 sm:$0xff]  ;;  %v7892_v31 = vpop.permute.xlu0 %7891 }
 0x227   :  { %v3405_v42 = vpop.f32.mrb[107].mxu0  ;;  %3720 = vmatmul.mubr.f32.gmra.mrb[212].mxu0 %v2573_v21  ;;  %v4669_v45 = vld [vmem:[#allocation3 + $0xb1] sm:$0xff] }
 0x228   :  { %v3905_v49 = vmax.f32 %v3403_v19, %v3405_v42  ;;  %5076 = vmatprep.mubr.f32.mxu1 %v4669_v45  ;;  %6467 = vmatprep.mubr.msk.f32.mxu0 %vm2208_vm0, %v651_v13  ;;  %4586 = vst [vmem:[#allocation3 + $0xc0] sm:$0xff] %v4522_v23  ;;  %v144_v13 = vld [vmem:[%s11991_s0 + $0x460] sm:$0xff]  ;;  %v2577_v19 = vsel %vm2466_vm2, %v2448_v44, %v7868_v62  ;;  %v7887_v2 = vpop.permute.xlu1 %7886 }
 0x229   :  { %v4158_v52 = vld [vmem:[#allocation2 + $0x190] ss:$2 sm:$0xff]  ;;  %v4286_v53 = vld [vmem:[#allocation2 + $0x191] ss:$2 sm:$0xff]  ;;  %5077 = vmatmul.mubr.f32.gmra.mrb[22].mxu1 %v4520_v27  ;;  %v2318_v27 = vsel %vm2208_vm0, %v141_v51, %v7844_v48  ;;  %v7874_v48 = vunpack.i.h.bf16 %v7872_v34  ;;  %v2321_v50 = vsel %vm2208_vm0, %v144_v13, %v7873_v6  ;;  %v145_v51 = vld [vmem:[%s11991_s0 + $0x468] sm:$0xff]  ;;  %v7888_v12 = vunpack.i.l.bf16 %v7887_v2 }
 0x22a   :  { %v4388_v54 = vmax.f32 %v4158_v52, %v4286_v53  ;;  %4033 = vst [vmem:[#allocation2 + $0x1a8] sm:$0xff] %v3905_v49  ;;  %v3409_v56 = vpop.f32.mrb[108].mxu0  ;;  %v2450_v24 = vsel %vm2337_vm1, %v2321_v50, %v7878_v43  ;;  %v7889_v37 = vunpack.i.h.bf16 %v7887_v2 }
 0x22b   :  { %v3411_v59 = vpop.f32.mrb[109].mxu0  ;;  %3726 = vmatmul.mubr.f32.gmra.mrb[214].mxu0 %v2574_v57  ;;  %v2578_v57 = vsel %vm2466_vm2, %v2449_v47, %v7869_v15 }
 0x22c   :  { %v3906_v60 = vmax.f32 %v3409_v56, %v3411_v59  ;;  %6468 = vmatprep.mubr.msk.f32.mxu0 %vm2208_vm0, %v652_v11  ;;  %v4459_v16 = vadd.f32 %v10800_v25, %v4388_v54  ;;  %v2447_v25 = vsel %vm2337_vm1, %v2318_v27, %v7849_v58  ;;  %v656_v11 = vld [vmem:[%s11991_s0 + $0x464] sm:$0xff]  ;;  %v7879_v58 = vunpack.i.h.bf16 %v7877_v4  ;;  %v657_v27 = vld [vmem:[%s11991_s0 + $0x46c] sm:$0xff] }
 0x22d   :  { %v2576_v0 = vsel %vm2466_vm2, %v2447_v25, %v7854_v32  ;;  %v2579_v32 = vsel %vm2466_vm2, %v2450_v24, %v7883_v55 }
 0x22e   :  { %4034 = vst [vmem:[#allocation2 + $0x1b0] sm:$0xff] %v3906_v60  ;;  %v3415_v20 = vpop.f32.mrb[110].mxu0  ;;  %v4523_v22 = vmax.f32 %v4459_v16, 0.0  ;;  %v146_v16 = vld [vmem:[%s11991_s0 + $0x470] sm:$0xff] }
 0x22f   :  { %v3417_v36 = vpop.f32.mrb[111].mxu0  ;;  %3732 = vmatmul.mubr.f32.gmra.mrb[216].mxu0 %v2575_v35  ;;  %v2323_v28 = vsel %vm2208_vm0, %v146_v16, %v7888_v12 }
 0x230   :  { %v3907_v38 = vmax.f32 %v3415_v20, %v3417_v36  ;;  %6469 = vmatprep.mubr.msk.f32.mxu0 %vm2208_vm0, %v653_v29  ;;  %4587 = vst [vmem:[#allocation3 + $0xc8] sm:$0xff] %v4523_v22  ;;  %v7884_v29 = vunpack.i.h.bf16 %v7882_v46  ;;  %v7893_v22 = vunpack.i.l.bf16 %v7892_v31  ;;  %v7897_v36 = vpop.permute.xlu1 %7896 }
 0x231   :  { %v4160_v33 = vld [vmem:[#allocation2 + $0x1a0] ss:$2 sm:$0xff]  ;;  %v4288_v41 = vld [vmem:[#allocation2 + $0x1a1] ss:$2 sm:$0xff]  ;;  %v7899_v13 = vunpack.i.h.bf16 %v7897_v36 }
 0x232   :  { %v4389_v61 = vmax.f32 %v4160_v33, %v4288_v41  ;;  %4035 = vst [vmem:[#allocation2 + $0x1b8] sm:$0xff] %v3907_v38  ;;  %v3421_v63 = vpop.f32.mrb[112].mxu0  ;;  %v147_v38 = vld [vmem:[%s11991_s0 + $0x478] sm:$0xff]  ;;  %v7902_v33 = vpop.permute.xlu0 %7901  ;;  %v2452_v1 = vsel %vm2337_vm1, %v2323_v28, %v7893_v22 }
 0x233   :  { %v3423_v3 = vpop.f32.mrb[113].mxu0  ;;  %3738 = vmatmul.mubr.f32.gmra.mrb[218].mxu0 %v2576_v0  ;;  %v658_v41 = vld [vmem:[%s11991_s0 + $0x474] sm:$0xff]  ;;  %v7903_v4 = vunpack.i.l.bf16 %v7902_v33 }
 0x234   :  { %v3908_v5 = vmax.f32 %v3421_v63, %v3423_v3  ;;  %6470 = vmatprep.mubr.msk.f32.mxu0 %vm2208_vm0, %v654_v40  ;;  %v11151_v9 = vadd.f32 %v11148_v8, %v4389_v61  ;;  %v7898_v40 = vunpack.i.l.bf16 %v7897_v36  ;;  %v7894_v63 = vunpack.i.h.bf16 %v7892_v31  ;;  %v7907_v3 = vpop.permute.xlu1 %7906 }
 0x235   :  { %v7908_v43 = vunpack.i.l.bf16 %v7907_v3 }
 0x236   :  { %4036 = vst [vmem:[#allocation2 + $0x1c0] sm:$0xff] %v3908_v5  ;;  %v3427_v17 = vpop.f32.mrb[114].mxu0  ;;  %v4524_v21 = vmax.f32 %v11151_v9, 0.0  ;;  %v2324_v5 = vsel %vm2208_vm0, %v147_v38, %v7889_v37  ;;  %v7912_v46 = vpop.permute.xlu0 %7911 }
 0x237   :  { %v3429_v42 = vpop.f32.mrb[115].mxu0  ;;  %3744 = vmatmul.mubr.f32.gmra.mrb[220].mxu0 %v2577_v19  ;;  %v4670_v45 = vld [vmem:[#allocation3 + $0xc1] sm:$0xff]  ;;  %v2453_v47 = vsel %vm2337_vm1, %v2324_v5, %v7894_v63  ;;  %v7913_v55 = vunpack.i.l.bf16 %v7912_v46 }
 0x238   :  { %v3909_v49 = vmax.f32 %v3427_v17, %v3429_v42  ;;  %5082 = vmatprep.mubr.f32.mxu1 %v4670_v45  ;;  %6471 = vmatprep.mubr.msk.f32.mxu0 %vm2208_vm0, %v655_v10  ;;  %4588 = vst [vmem:[#allocation3 + $0xd0] sm:$0xff] %v4524_v21  ;;  %v148_v10 = vld [vmem:[%s11991_s0 + $0x488] sm:$0xff]  ;;  %v2581_v17 = vsel %vm2466_vm2, %v2452_v1, %v7898_v40  ;;  %v7917_v2 = vpop.permute.xlu1 %7916 }
 0x239   :  { %v4162_v52 = vld [vmem:[#allocation2 + $0x1b0] ss:$2 sm:$0xff]  ;;  %v4290_v53 = vld [vmem:[#allocation2 + $0x1b1] ss:$2 sm:$0xff]  ;;  %5083 = vmatmul.mubr.f32.gmra.mrb[24].mxu1 %v4522_v23  ;;  %v2322_v23 = vsel %vm2208_vm0, %v145_v51, %v7874_v48  ;;  %v7904_v48 = vunpack.i.h.bf16 %v7902_v33  ;;  %v2325_v50 = vsel %vm2208_vm0, %v148_v10, %v7903_v4  ;;  %v7918_v9 = vunpack.i.l.bf16 %v7917_v2  ;;  %v663_v5 = vld [vmem:[%s11991_s0 + $0x4a4] sm:$0xff] }
 0x23a   :  { %v4390_v54 = vmax.f32 %v4162_v52, %v4290_v53  ;;  %4037 = vst [vmem:[#allocation2 + $0x1c8] sm:$0xff] %v3909_v49  ;;  %v3433_v56 = vpop.f32.mrb[116].mxu0  ;;  %v2451_v26 = vsel %vm2337_vm1, %v2322_v23, %v7879_v58  ;;  %v149_v51 = vld [vmem:[%s11991_s0 + $0x490] sm:$0xff]  ;;  %v7909_v58 = vunpack.i.h.bf16 %v7907_v3  ;;  %v2454_v24 = vsel %vm2337_vm1, %v2325_v50, %v7908_v43  ;;  %v7922_v31 = vpop.permute.xlu0 %7921 }
 0x23b   :  { %v3435_v59 = vpop.f32.mrb[117].mxu0  ;;  %3750 = vmatmul.mubr.f32.gmra.mrb[222].mxu0 %v2578_v57  ;;  %v2580_v62 = vsel %vm2466_vm2, %v2451_v26, %v7884_v29  ;;  %v2582_v57 = vsel %vm2466_vm2, %v2453_v47, %v7899_v13  ;;  %v661_v23 = vld [vmem:[%s11991_s0 + $0x494] sm:$0xff]  ;;  %v2583_v29 = vsel %vm2466_vm2, %v2454_v24, %v7913_v55  ;;  %v7919_v36 = vunpack.i.h.bf16 %v7917_v2 }
 0x23c   :  { %v3910_v60 = vmax.f32 %v3433_v56, %v3435_v59  ;;  %6472 = vmatprep.mubr.msk.f32.mxu0 %vm2208_vm0, %v656_v11  ;;  %v4461_v14 = vadd.f32 %v11148_v8, %v4390_v54  ;;  %v660_v11 = vld [vmem:[%s11991_s0 + $0x48c] sm:$0xff] }
 0x23e   :  { %4038 = vst [vmem:[#allocation2 + $0x1d0] sm:$0xff] %v3910_v60  ;;  %v3439_v18 = vpop.f32.mrb[118].mxu0  ;;  %v4525_v20 = vmax.f32 %v4461_v14, 0.0  ;;  %v150_v14 = vld [vmem:[%s11991_s0 + $0x498] sm:$0xff] }
 0x23f   :  { %v3441_v35 = vpop.f32.mrb[119].mxu0  ;;  %3756 = vmatmul.mubr.f32.gmra.mrb[224].mxu0 %v2579_v32  ;;  %v2327_v37 = vsel %vm2208_vm0, %v150_v14, %v7918_v9 }
 0x240   :  { %v3911_v25 = vmax.f32 %v3439_v18, %v3441_v35  ;;  %6473 = vmatprep.mubr.msk.f32.mxu0 %vm2208_vm0, %v657_v27  ;;  %4589 = vst [vmem:[#allocation3 + $0xd8] sm:$0xff] %v4525_v20  ;;  %v7914_v27 = vunpack.i.h.bf16 %v7912_v46  ;;  %v7923_v20 = vunpack.i.l.bf16 %v7922_v31  ;;  %v7927_v35 = vpop.permute.xlu1 %7926 }
 0x241   :  { %v4164_v30 = vld [vmem:[#allocation2 + $0x1c0] ss:$2 sm:$0xff]  ;;  %v4292_v39 = vld [vmem:[#allocation2 + $0x1c1] ss:$2 sm:$0xff]  ;;  %v7929_v10 = vunpack.i.h.bf16 %v7927_v35 }
 0x242   :  { %v4391_v34 = vmax.f32 %v4164_v30, %v4292_v39  ;;  %4039 = vst [vmem:[#allocation2 + $0x1d8] sm:$0xff] %v3911_v25  ;;  %v3445_v61 = vpop.f32.mrb[120].mxu0  ;;  %v151_v25 = vld [vmem:[%s11991_s0 + $0x4a0] sm:$0xff]  ;;  %v7932_v30 = vpop.permute.xlu0 %7931  ;;  %v2456_v63 = vsel %vm2337_vm1, %v2327_v37, %v7923_v20 }
 0x243   :  { %v3447_v0 = vpop.f32.mrb[121].mxu0  ;;  %3762 = vmatmul.mubr.f32.gmra.mrb[226].mxu0 %v2580_v62  ;;  %v662_v39 = vld [vmem:[%s11991_s0 + $0x49c] sm:$0xff]  ;;  %v7933_v3 = vunpack.i.l.bf16 %v7932_v30 }
 0x244   :  { %v3912_v44 = vmax.f32 %v3445_v61, %v3447_v0  ;;  %6474 = vmatprep.mubr.msk.f32.mxu0 %vm2208_vm0, %v658_v41  ;;  %v11200_v6 = vadd.f32 %v11148_v8, %v4391_v34  ;;  %v7928_v41 = vunpack.i.l.bf16 %v7927_v35  ;;  %v7924_v61 = vunpack.i.h.bf16 %v7922_v31  ;;  %v7937_v0 = vpop.permute.xlu1 %7936 }
 0x245   :  { %v7938_v43 = vunpack.i.l.bf16 %v7937_v0 }
 0x246   :  { %4040 = vst [vmem:[#allocation2 + $0x1e0] sm:$0xff] %v3912_v44  ;;  %v3451_v15 = vpop.f32.mrb[122].mxu0  ;;  %v4526_v19 = vmax.f32 %v11200_v6, 0.0  ;;  %v2328_v44 = vsel %vm2208_vm0, %v151_v25, %v7919_v36  ;;  %v7942_v46 = vpop.permute.xlu0 %7941 }
 0x247   :  { %v3453_v42 = vpop.f32.mrb[123].mxu0  ;;  %3768 = vmatmul.mubr.f32.gmra.mrb[228].mxu0 %v2581_v17  ;;  %v4671_v45 = vld [vmem:[#allocation3 + $0xd1] sm:$0xff]  ;;  %v2457_v47 = vsel %vm2337_vm1, %v2328_v44, %v7924_v61  ;;  %v7943_v55 = vunpack.i.l.bf16 %v7942_v46 }
 0x248   :  { %v3913_v49 = vmax.f32 %v3451_v15, %v3453_v42  ;;  %5088 = vmatprep.mubr.f32.mxu1 %v4671_v45  ;;  %6475 = vmatprep.mubr.msk.f32.mxu0 %vm2208_vm0, %v659_v7  ;;  %4590 = vst [vmem:[#allocation3 + $0xe0] sm:$0xff] %v4526_v19  ;;  %v152_v7 = vld [vmem:[%s11991_s0 + $0x4b0] sm:$0xff]  ;;  %v2585_v15 = vsel %vm2466_vm2, %v2456_v63, %v7928_v41  ;;  %v7947_v2 = vpop.permute.xlu1 %7946 }
 0x249   :  { %v4166_v52 = vld [vmem:[#allocation2 + $0x1d0] ss:$2 sm:$0xff]  ;;  %v4294_v53 = vld [vmem:[#allocation2 + $0x1d1] ss:$2 sm:$0xff]  ;;  %5089 = vmatmul.mubr.f32.gmra.mrb[26].mxu1 %v4524_v21  ;;  %v2326_v21 = vsel %vm2208_vm0, %v149_v51, %v7904_v48  ;;  %v7934_v48 = vunpack.i.h.bf16 %v7932_v30  ;;  %v2329_v50 = vsel %vm2208_vm0, %v152_v7, %v7933_v3  ;;  %v7948_v6 = vunpack.i.l.bf16 %v7947_v2 }
 0x24a   :  { %v4392_v54 = vmax.f32 %v4166_v52, %v4294_v53  ;;  %4041 = vst [vmem:[#allocation2 + $0x1e8] sm:$0xff] %v3913_v49  ;;  %v3457_v56 = vpop.f32.mrb[124].mxu0  ;;  %v2455_v22 = vsel %vm2337_vm1, %v2326_v21, %v7909_v58  ;;  %v153_v51 = vld [vmem:[%s11991_s0 + $0x4b8] sm:$0xff]  ;;  %v7939_v58 = vunpack.i.h.bf16 %v7937_v0  ;;  %v2458_v24 = vsel %vm2337_vm1, %v2329_v50, %v7938_v43  ;;  %v7952_v31 = vpop.permute.xlu0 %7951  ;;  %v667_v44 = vld [vmem:[%s11991_s0 + $0x4cc] sm:$0xff] }
 0x24b   :  { %v3459_v59 = vpop.f32.mrb[125].mxu0  ;;  %3774 = vmatmul.mubr.f32.gmra.mrb[230].mxu0 %v2582_v57  ;;  %v2584_v40 = vsel %vm2466_vm2, %v2455_v22, %v7914_v27  ;;  %v2586_v57 = vsel %vm2466_vm2, %v2457_v47, %v7929_v10  ;;  %v665_v21 = vld [vmem:[%s11991_s0 + $0x4bc] sm:$0xff]  ;;  %v2587_v27 = vsel %vm2466_vm2, %v2458_v24, %v7943_v55  ;;  %v7949_v35 = vunpack.i.h.bf16 %v7947_v2 }
 0x24c   :  { %v3914_v60 = vmax.f32 %v3457_v56, %v3459_v59  ;;  %6476 = vmatprep.mubr.msk.f32.mxu0 %vm2208_vm0, %v660_v11  ;;  %v4463_v12 = vadd.f32 %v11148_v8, %v4392_v54  ;;  %v664_v11 = vld [vmem:[%s11991_s0 + $0x4b4] sm:$0xff] }
 0x24e   :  { %4042 = vst [vmem:[#allocation2 + $0x1f0] sm:$0xff] %v3914_v60  ;;  %v3463_v16 = vpop.f32.mrb[126].mxu0  ;;  %v4527_v18 = vmax.f32 %v4463_v12, 0.0  ;;  %v154_v12 = vld [vmem:[%s11991_s0 + $0x4c0] sm:$0xff] }
 0x24f   :  { %v3465_v32 = vpop.f32.mrb[127].mxu0  ;;  %3780 = vmatmul.mubr.f32.gmra.mrb[232].mxu0 %v2583_v29  ;;  %v2331_v36 = vsel %vm2208_vm0, %v154_v12, %v7948_v6  ;;  %v158_v6 = vld [vmem:[%s11991_s0 + $0x4e8] sm:$0xff] }
 0x250   :  { %v3915_v26 = vmax.f32 %v3463_v16, %v3465_v32  ;;  %6477 = vmatprep.mubr.msk.f32.mxu0 %vm2208_vm0, %v661_v23  ;;  %4591 = vst [vmem:[#allocation3 + $0xe8] sm:$0xff] %v4527_v18  ;;  %v7944_v23 = vunpack.i.h.bf16 %v7942_v46  ;;  %v7953_v18 = vunpack.i.l.bf16 %v7952_v31  ;;  %v7957_v32 = vpop.permute.xlu1 %7956 }
 0x251   :  { %v4168_v28 = vld [vmem:[#allocation2 + $0x1e0] ss:$2 sm:$0xff]  ;;  %v4296_v38 = vld [vmem:[#allocation2 + $0x1e1] ss:$2 sm:$0xff]  ;;  %v7959_v7 = vunpack.i.h.bf16 %v7957_v32 }
 0x252   :  { %v4393_v33 = vmax.f32 %v4168_v28, %v4296_v38  ;;  %4043 = vst [vmem:[#allocation2 + $0x1f8] sm:$0xff] %v3915_v26  ;;  %v3469_v34 = vpop.f32.mrb[128].mxu0  ;;  %v155_v26 = vld [vmem:[%s11991_s0 + $0x4c8] sm:$0xff]  ;;  %v7962_v28 = vpop.permute.xlu0 %7961  ;;  %v2460_v61 = vsel %vm2337_vm1, %v2331_v36, %v7953_v18 }
 0x253   :  { %v3471_v62 = vpop.f32.mrb[129].mxu0  ;;  %3786 = vmatmul.mubr.f32.gmra.mrb[234].mxu0 %v2584_v40  ;;  %v666_v38 = vld [vmem:[%s11991_s0 + $0x4c4] sm:$0xff]  ;;  %v7963_v63 = vunpack.i.l.bf16 %v7962_v28  ;;  %v670_v36 = vld [vmem:[%s11991_s0 + $0x4ec] sm:$0xff] }
 0x254   :  { %v3916_v1 = vmax.f32 %v3469_v34, %v3471_v62  ;;  %6478 = vmatprep.mubr.msk.f32.mxu0 %vm2208_vm0, %v662_v39  ;;  %v11249_v4 = vadd.f32 %v11148_v8, %v4393_v33  ;;  %v7958_v39 = vunpack.i.l.bf16 %v7957_v32  ;;  %v7954_v34 = vunpack.i.h.bf16 %v7952_v31  ;;  %v7967_v0 = vpop.permute.xlu1 %7966  ;;  %v159_v32 = vld [vmem:[%s11991_s0 + $0x4f0] sm:$0xff] }
 0x255   :  { %v7968_v43 = vunpack.i.l.bf16 %v7967_v0 }
 0x256   :  { %4044 = vst [vmem:[#allocation2 + $0x200] sm:$0xff] %v3916_v1  ;;  %v3475_v13 = vpop.f32.mrb[130].mxu0  ;;  %v4528_v17 = vmax.f32 %v11249_v4, 0.0  ;;  %v2332_v1 = vsel %vm2208_vm0, %v155_v26, %v7949_v35  ;;  %v7972_v46 = vpop.permute.xlu0 %7971 }
 0x257   :  { %v3477_v42 = vpop.f32.mrb[131].mxu0  ;;  %3792 = vmatmul.mubr.f32.gmra.mrb[236].mxu0 %v2585_v15  ;;  %v4672_v45 = vld [vmem:[#allocation3 + $0xe1] sm:$0xff]  ;;  %v2461_v47 = vsel %vm2337_vm1, %v2332_v1, %v7954_v34  ;;  %v7973_v55 = vunpack.i.l.bf16 %v7972_v46  ;;  %v4852_v34 = vld [vmem:[%s11993_s3 + $0x210] sm:$0xff] }
 0x258   :  { %v3917_v49 = vmax.f32 %v3475_v13, %v3477_v42  ;;  %5094 = vmatprep.mubr.f32.mxu1 %v4672_v45  ;;  %6479 = vmatprep.mubr.msk.f32.mxu0 %vm2208_vm0, %v663_v5  ;;  %4592 = vst [vmem:[#allocation3 + $0xf0] sm:$0xff] %v4528_v17  ;;  %v156_v5 = vld [vmem:[%s11991_s0 + $0x4d8] sm:$0xff]  ;;  %v2589_v13 = vsel %vm2466_vm2, %v2460_v61, %v7958_v39  ;;  %v1053_v50 = vpop.permute.xlu1 %1052 }
 0x259   :  { %v4170_v52 = vld [vmem:[#allocation2 + $0x1f0] ss:$2 sm:$0xff]  ;;  %v4298_v53 = vld [vmem:[#allocation2 + $0x1f1] ss:$2 sm:$0xff]  ;;  %5095 = vmatmul.mubr.f32.gmra.mrb[28].mxu1 %v4526_v19  ;;  %v2330_v19 = vsel %vm2208_vm0, %v153_v51, %v7934_v48  ;;  %v7964_v48 = vunpack.i.h.bf16 %v7962_v28  ;;  %v2333_v51 = vsel %vm2208_vm0, %v156_v5, %v7963_v63  ;;  %v4851_v28 = vld [vmem:[%s11993_s3 + $0x208] sm:$0xff] }
 0x25a   :  { %v4394_v54 = vmax.f32 %v4170_v52, %v4298_v53  ;;  %4045 = vst [vmem:[#allocation2 + $0x208] sm:$0xff] %v3917_v49  ;;  %v3481_v56 = vpop.f32.mrb[132].mxu0  ;;  %v2459_v20 = vsel %vm2337_vm1, %v2330_v19, %v7939_v58  ;;  %v157_v52 = vld [vmem:[%s11991_s0 + $0x4e0] sm:$0xff]  ;;  %v7969_v58 = vunpack.i.h.bf16 %v7967_v0  ;;  %v1565_v24 = vpop.permute.xlu0 %1564  ;;  %v2462_v31 = vsel %vm2337_vm1, %v2333_v51, %v7968_v43  ;;  %v671_v1 = vld [vmem:[%s11991_s0 + $0x4f4] sm:$0xff]  ;;  %v4855_v51 = vld [vmem:[%s11993_s3 + $0x228] sm:$0xff] }
 0x25b   :  { %v3483_v59 = vpop.f32.mrb[133].mxu0  ;;  %3798 = vmatmul.mubr.f32.gmra.mrb[238].mxu0 %v2586_v57  ;;  %v2588_v41 = vsel %vm2466_vm2, %v2459_v20, %v7944_v23  ;;  %v2590_v57 = vsel %vm2466_vm2, %v2461_v47, %v7959_v7  ;;  %v2334_v4 = vsel %vm2208_vm0, %v157_v52, %v7964_v48  ;;  %v669_v19 = vld [vmem:[%s11991_s0 + $0x4e4] sm:$0xff]  ;;  %v2591_v12 = vsel %vm2466_vm2, %v2462_v31, %v7973_v55  ;;  %v4857_v52 = vld [vmem:[%s11993_s3 + $0x238] sm:$0xff] }
 0x25c   :  { %v3918_v60 = vmax.f32 %v3481_v56, %v3483_v59  ;;  %6480 = vmatprep.mubr.msk.f32.mxu0 %vm2208_vm0, %v664_v11  ;;  %v4465_v9 = vadd.f32 %v11148_v8, %v4394_v54  ;;  %v668_v11 = vld [vmem:[%s11991_s0 + $0x4dc] sm:$0xff]  ;;  %v2077_v23 = vpop.permute.xlu1 %2076 }
 0x25e   :  { %4046 = vst [vmem:[#allocation2 + $0x210] sm:$0xff] %v3918_v60  ;;  %v3487_v14 = vpop.f32.mrb[134].mxu0  ;;  %v4529_v16 = vmax.f32 %v4465_v9, 0.0  ;;  %v7974_v9 = vunpack.i.h.bf16 %v7972_v46 }
 0x25f   :  { %v3489_v29 = vpop.f32.mrb[135].mxu0  ;;  %3804 = vmatmul.mubr.f32.gmra.mrb[240].mxu0 %v2587_v27 }
 0x260   :  { %v3919_v22 = vmax.f32 %v3487_v14, %v3489_v29  ;;  %6481 = vmatprep.mubr.msk.f32.mxu0 %vm2208_vm0, %v665_v21  ;;  %4593 = vst [vmem:[#allocation3 + $0xf8] sm:$0xff] %v4529_v16  ;;  %v2463_v16 = vsel %vm2337_vm1, %v2334_v4, %v7969_v58  ;;  %v2335_v29 = vsel %vm2208_vm0, %v158_v6, %v1053_v50  ;;  %v4861_v6 = vld [vmem:[%s11993_s3 + $0x258] sm:$0xff] }
 0x261   :  { %v4172_v37 = vld [vmem:[#allocation2 + $0x200] ss:$2 sm:$0xff]  ;;  %v4300_v25 = vld [vmem:[#allocation2 + $0x201] ss:$2 sm:$0xff]  ;;  %v2464_v39 = vsel %vm2337_vm1, %v2335_v29, %v1565_v24 }
 0x262   :  { %v4395_v30 = vmax.f32 %v4172_v37, %v4300_v25  ;;  %4047 = vst [vmem:[#allocation2 + $0x218] sm:$0xff] %v3919_v22  ;;  %v3493_v33 = vpop.f32.mrb[136].mxu0  ;;  %v1055_v22 = vpop.permute.xlu0 %1054  ;;  %v2592_v25 = vsel %vm2466_vm2, %v2463_v16, %v7974_v9  ;;  %v2593_v5 = vsel %vm2466_vm2, %v2464_v39, %v2077_v23  ;;  %v4864_v39 = vld [vmem:[%s11993_s3 + $0x270] sm:$0xff] }
 0x263   :  { %v3495_v40 = vpop.f32.mrb[137].mxu0  ;;  %3810 = vmatmul.mubr.f32.gmra.mrb[242].mxu0 %v2588_v41 }
 0x264   :  { %v3920_v62 = vmax.f32 %v3493_v33, %v3495_v40  ;;  %6482 = vmatprep.mubr.msk.f32.mxu0 %vm2208_vm0, %v666_v38  ;;  %v11298_v3 = vadd.f32 %v11148_v8, %v4395_v30  ;;  %v4853_v38 = vld [vmem:[%s11993_s3 + $0x218] sm:$0xff]  ;;  %v4850_v30 = vld [vmem:[%s11993_s3 + $0x200] sm:$0xff]  ;;  %v2336_v40 = vsel %vm2208_vm0, %v159_v32, %v1055_v22 }
 0x265   :  { %v6722_v41 = vpack.c.bf16 %v4853_v38, %v4851_v28  ;;  %v6724_v0 = vpack.c.bf16 %v4852_v34, %v4850_v30  ;;  %v4862_v28 = vld [vmem:[%s11993_s3 + $0x260] sm:$0xff] }
 0x266   :  { %4048 = vst [vmem:[#allocation2 + $0x220] sm:$0xff] %v3920_v62  ;;  %v3499_v10 = vpop.f32.mrb[138].mxu0  ;;  %v4530_v15 = vmax.f32 %v11298_v3, 0.0  ;;  %v1567_v62 = vpop.permute.xlu1 %1566  ;;  %v6726_v3 = vpack.c.bf16 %v4857_v52, %v4855_v51  ;;  %v6736_v34 = vpack.c.bf16 %v4864_v39, %v4862_v28 }
 0x267   :  { %v3501_v42 = vpop.f32.mrb[139].mxu0  ;;  %3816 = vmatmul.mubr.f32.gmra.mrb[244].mxu0 %v2589_v13  ;;  %v4673_v45 = vld [vmem:[#allocation3 + $0xf1] sm:$0xff]  ;;  %6723 = vmatprep.subr.bf16.mxu1 %v6722_v41  ;;  %v2079_v13 = vpop.permute.xlu0 %2078 }
 0x268   :  { %v3921_v49 = vmax.f32 %v3499_v10, %v3501_v42  ;;  %5100 = vmatprep.mubr.f32.mxu1 %v4673_v45  ;;  %6483 = vmatprep.mubr.msk.f32.mxu0 %vm2208_vm0, %v667_v44  ;;  %4594 = vst [vmem:[#allocation3 + $0x100] sm:$0xff] %v4530_v15  ;;  %v2465_v10 = vsel %vm2337_vm1, %v2336_v40, %v1567_v62 }
 0x269   :  { %v4174_v53 = vld [vmem:[#allocation2 + $0x210] ss:$2 sm:$0xff]  ;;  %v4302_v2 = vld [vmem:[#allocation2 + $0x211] ss:$2 sm:$0xff]  ;;  %5101 = vmatmul.mubr.f32.gmra.mrb[30].mxu1 %v4528_v17  ;;  %v2594_v50 = vsel %vm2466_vm2, %v2465_v10, %v2079_v13  ;;  %v4866_v13 = vld [vmem:[%s11993_s3 + $0x280] sm:$0xff] }
 0x26a   :  { %v4396_v54 = vmax.f32 %v4174_v53, %v4302_v2  ;;  %4049 = vst [vmem:[#allocation2 + $0x228] sm:$0xff] %v3921_v49  ;;  %v3505_v56 = vpop.f32.mrb[140].mxu0  ;;  %6725 = vmatpush1.bf16.msra.mxu1 %v6724_v0  ;;  %v4854_v53 = vld [vmem:[%s11993_s3 + $0x220] sm:$0xff]  ;;  %v4869_v10 = vld [vmem:[%s11993_s3 + $0x298] sm:$0xff] }
 0x26b   :  { %v3507_v59 = vpop.f32.mrb[141].mxu0  ;;  %3822 = vmatmul.mubr.f32.gmra.mrb[246].mxu0 %v2590_v57  ;;  %6727 = vmatprep.subr.bf16.mxu1 %v6726_v3 }
 0x26c   :  { %v3922_v60 = vmax.f32 %v3505_v56, %v3507_v59  ;;  %6484 = vmatprep.mubr.msk.f32.mxu0 %vm2208_vm0, %v668_v11  ;;  %v4467_v17 = vadd.f32 %v11148_v8, %v4396_v54 }
 0x26e   :  { %4050 = vst [vmem:[#allocation2 + $0x230] sm:$0xff] %v3922_v60  ;;  %v3511_v21 = vpop.f32.mrb[142].mxu0  ;;  %v4531_v14 = vmax.f32 %v4467_v17, 0.0  ;;  %v4859_v17 = vld [vmem:[%s11993_s3 + $0x248] sm:$0xff] }
 0x26f   :  { %v3513_v27 = vpop.f32.mrb[143].mxu0  ;;  %3828 = vmatmul.mubr.f32.gmra.mrb[248].mxu0 %v2591_v12  ;;  %v4860_v12 = vld [vmem:[%s11993_s3 + $0x250] sm:$0xff] }
 0x270   :  { %v3923_v18 = vmax.f32 %v3511_v21, %v3513_v27  ;;  %6485 = vmatprep.mubr.msk.f32.mxu0 %vm2208_vm0, %v669_v19  ;;  %4595 = vst [vmem:[#allocation3 + $0x108] sm:$0xff] %v4531_v14  ;;  %v4858_v19 = vld [vmem:[%s11993_s3 + $0x240] sm:$0xff]  ;;  %v6730_v21 = vpack.c.bf16 %v4861_v6, %v4859_v17 }
 0x271   :  { %v4176_v20 = vld [vmem:[#allocation2 + $0x220] ss:$2 sm:$0xff]  ;;  %v4304_v35 = vld [vmem:[#allocation2 + $0x221] ss:$2 sm:$0xff]  ;;  %v6732_v27 = vpack.c.bf16 %v4860_v12, %v4858_v19 }
 0x272   :  { %v4397_v26 = vmax.f32 %v4176_v20, %v4304_v35  ;;  %4051 = vst [vmem:[#allocation2 + $0x238] sm:$0xff] %v3923_v18  ;;  %v3517_v37 = vpop.f32.mrb[144].mxu0 }
 0x273   :  { %v3519_v33 = vpop.f32.mrb[145].mxu0  ;;  %3834 = vmatmul.mubr.f32.gmra.mrb[250].mxu0 %v2592_v25  ;;  %v4865_v25 = vld [vmem:[%s11993_s3 + $0x278] sm:$0xff] }
 0x274   :  { %v3924_v61 = vmax.f32 %v3517_v37, %v3519_v33  ;;  %6486 = vmatprep.mubr.msk.f32.mxu0 %vm2208_vm0, %v670_v36  ;;  %v11359_v63 = vadd.f32 %v11148_v8, %v4397_v26  ;;  %v4863_v37 = vld [vmem:[%s11993_s3 + $0x268] sm:$0xff] }
 0x275   :  { %v6734_v30 = vpack.c.bf16 %v4865_v25, %v4863_v37 }
 0x276   :  { %4052 = vst [vmem:[#allocation2 + $0x240] sm:$0xff] %v3924_v61  ;;  %v3523_v44 = vpop.f32.mrb[146].mxu0  ;;  %v4532_v7 = vmax.f32 %v11359_v63, 0.0 }
 0x277   :  { %v3525_v42 = vpop.f32.mrb[147].mxu0  ;;  %3840 = vmatmul.mubr.f32.gmra.mrb[252].mxu0 %v2593_v5  ;;  %v4674_v43 = vld [vmem:[#allocation3 + $0x101] sm:$0xff] }
 0x278   :  { %v3925_v45 = vmax.f32 %v3523_v44, %v3525_v42  ;;  %5106 = vmatprep.mubr.f32.mxu1 %v4674_v43  ;;  %6487 = vmatprep.mubr.msk.f32.mxu0 %vm2208_vm0, %v671_v1  ;;  %4596 = vst [vmem:[#allocation3 + $0x110] sm:$0xff] %v4532_v7 }
 0x279   :  { %v4178_v46 = vld [vmem:[#allocation2 + $0x230] ss:$2 sm:$0xff]  ;;  %v4306_v47 = vld [vmem:[#allocation2 + $0x231] ss:$2 sm:$0xff]  ;;  %5107 = vmatmul.mubr.f32.gmra.mrb[32].mxu1 %v4530_v15 }
 0x27a   :  { %v4398_v48 = vmax.f32 %v4178_v46, %v4306_v47  ;;  %4053 = vst [vmem:[#allocation2 + $0x248] sm:$0xff] %v3925_v45  ;;  %v3529_v49 = vpop.f32.mrb[148].mxu0  ;;  %v4856_v15 = vld [vmem:[%s11993_s3 + $0x230] sm:$0xff] }
 0x27b   :  { %v3531_v2 = vpop.f32.mrb[149].mxu0  ;;  %3846 = vmatmul.mubr.f32.gmra.mrb[254].mxu0 %v2594_v50  ;;  %v6728_v55 = vpack.c.bf16 %v4856_v15, %v4854_v53  ;;  %v4868_v45 = vld [vmem:[%s11993_s3 + $0x290] sm:$0xff] }
 0x27c   :  { %v3926_v11 = vmax.f32 %v3529_v49, %v3531_v2  ;;  %v4469_v54 = vadd.f32 %v11148_v8, %v4398_v48  ;;  %v6740_v48 = vpack.c.bf16 %v4868_v45, %v4866_v13 }
 0x27d   :  { %6729 = vmatpush1.bf16.msra.mxu1 %v6728_v55  ;;  %v4873_v55 = vld [vmem:[%s11993_s3 + $0x2b8] sm:$0xff] }
 0x27e   :  { %4054 = vst [vmem:[#allocation2 + $0x250] sm:$0xff] %v3926_v11  ;;  %v3535_v56 = vpop.f32.mrb[150].mxu0  ;;  %v4533_v57 = vmax.f32 %v4469_v54, 0.0  ;;  %6731 = vmatprep.subr.bf16.mxu1 %v6730_v21  ;;  %v4871_v54 = vld [vmem:[%s11993_s3 + $0x2a8] sm:$0xff] }
 0x27f   :  { %v3537_v58 = vpop.f32.mrb[151].mxu0 }
 0x280   :  { %v3927_v59 = vmax.f32 %v3535_v56, %v3537_v58  ;;  %4597 = vst [vmem:[#allocation3 + $0x118] sm:$0xff] %v4533_v57  ;;  %v4870_v56 = vld [vmem:[%s11993_s3 + $0x2a0] sm:$0xff]  ;;  %v6742_v58 = vpack.c.bf16 %v4873_v55, %v4871_v54 }
 0x281   :  { %v4180_v24 = vld [vmem:[#allocation2 + $0x240] ss:$2 sm:$0xff]  ;;  %v4308_v31 = vld [vmem:[#allocation2 + $0x241] ss:$2 sm:$0xff]  ;;  %6733 = vmatpush1.bf16.msra.mxu1 %v6732_v27  ;;  %v4877_v27 = vld [vmem:[%s11993_s3 + $0x2d8] sm:$0xff] }
 0x282   :  { %v4399_v60 = vmax.f32 %v4180_v24, %v4308_v31  ;;  %4055 = vst [vmem:[#allocation2 + $0x258] sm:$0xff] %v3927_v59  ;;  %v3541_v4 = vpop.f32.mrb[152].mxu0  ;;  %6735 = vmatprep.subr.bf16.mxu1 %v6734_v30  ;;  %v4872_v59 = vld [vmem:[%s11993_s3 + $0x2b0] sm:$0xff] }
 0x283   :  { %v3543_v9 = vpop.f32.mrb[153].mxu0 }
 0x284   :  { %v3928_v23 = vmax.f32 %v3541_v4, %v3543_v9  ;;  %v4470_v14 = vadd.f32 %v11148_v8, %v4399_v60  ;;  %v6744_v60 = vpack.c.bf16 %v4872_v59, %v4870_v56 }
 0x285   :  { %6737 = vmatpush1.bf16.msra.mxu1 %v6736_v34  ;;  %v4881_v34 = vld [vmem:[%s11993_s3 + $0x2f8] sm:$0xff] }
 0x286   :  { %4056 = vst [vmem:[#allocation2 + $0x260] sm:$0xff] %v3928_v23  ;;  %v3547_v16 = vpop.f32.mrb[154].mxu0  ;;  %v4534_v29 = vmax.f32 %v4470_v14, 0.0  ;;  %v4875_v14 = vld [vmem:[%s11993_s3 + $0x2c8] sm:$0xff] }
 0x287   :  { %v3549_v18 = vpop.f32.mrb[155].mxu0  ;;  %v4675_v32 = vld [vmem:[#allocation3 + $0x111] sm:$0xff] }
 0x288   :  { %v3929_v20 = vmax.f32 %v3547_v16, %v3549_v18  ;;  %5112 = vmatprep.mubr.f32.mxu1 %v4675_v32  ;;  %4598 = vst [vmem:[#allocation3 + $0x120] sm:$0xff] %v4534_v29  ;;  %v4874_v16 = vld [vmem:[%s11993_s3 + $0x2c0] sm:$0xff]  ;;  %v6746_v18 = vpack.c.bf16 %v4877_v27, %v4875_v14  ;;  %v4876_v32 = vld [vmem:[%s11993_s3 + $0x2d0] sm:$0xff] }
 0x289   :  { %v4182_v35 = vld [vmem:[#allocation2 + $0x250] ss:$2 sm:$0xff]  ;;  %v4310_v22 = vld [vmem:[#allocation2 + $0x251] ss:$2 sm:$0xff]  ;;  %5113 = vmatmul.mubr.f32.gmra.mrb[34].mxu1 %v4532_v7  ;;  %v4867_v7 = vld [vmem:[%s11993_s3 + $0x288] sm:$0xff] }
 0x28a   :  { %v4400_v36 = vmax.f32 %v4182_v35, %v4310_v22  ;;  %4057 = vst [vmem:[#allocation2 + $0x268] sm:$0xff] %v3929_v20  ;;  %v3553_v26 = vpop.f32.mrb[156].mxu0  ;;  %v6738_v43 = vpack.c.bf16 %v4869_v10, %v4867_v7  ;;  %v6748_v22 = vpack.c.bf16 %v4876_v32, %v4874_v16 }
 0x28b   :  { %v3555_v38 = vpop.f32.mrb[157].mxu0 }
 0x28c   :  { %v3930_v33 = vmax.f32 %v3553_v26, %v3555_v38  ;;  %v4471_v41 = vadd.f32 %v11148_v8, %v4400_v36  ;;  %6739 = vmatprep.subr.bf16.mxu1 %v6738_v43 }
 0x28d   :  { %6741 = vmatpush1.bf16.msra.mxu1 %v6740_v48  ;;  %v4885_v48 = vld [vmem:[%s11993_s3 + $0x318] sm:$0xff] }
 0x28e   :  { %4058 = vst [vmem:[#allocation2 + $0x270] sm:$0xff] %v3930_v33  ;;  %v3559_v40 = vpop.f32.mrb[158].mxu0  ;;  %v4535_v61 = vmax.f32 %v4471_v41, 0.0  ;;  %6743 = vmatprep.subr.bf16.mxu1 %v6742_v58  ;;  %v4879_v41 = vld [vmem:[%s11993_s3 + $0x2e8] sm:$0xff] }
 0x28f   :  { %v3561_v62 = vpop.f32.mrb[159].mxu0 }
 0x290   :  { %v3931_v63 = vmax.f32 %v3559_v40, %v3561_v62  ;;  %4599 = vst [vmem:[#allocation3 + $0x128] sm:$0xff] %v4535_v61  ;;  %v4878_v40 = vld [vmem:[%s11993_s3 + $0x2e0] sm:$0xff]  ;;  %v6750_v62 = vpack.c.bf16 %v4881_v34, %v4879_v41 }
 0x291   :  { %v4184_v0 = vld [vmem:[#allocation2 + $0x260] ss:$2 sm:$0xff]  ;;  %v4312_v1 = vld [vmem:[#allocation2 + $0x261] ss:$2 sm:$0xff]  ;;  %6745 = vmatpush1.bf16.msra.mxu1 %v6744_v60 }
 0x292   :  { %v4401_v44 = vmax.f32 %v4184_v0, %v4312_v1  ;;  %4059 = vst [vmem:[#allocation2 + $0x278] sm:$0xff] %v3931_v63  ;;  %v3565_v5 = vpop.f32.mrb[160].mxu0  ;;  %6747 = vmatprep.subr.bf16.mxu1 %v6746_v18  ;;  %v4880_v63 = vld [vmem:[%s11993_s3 + $0x2f0] sm:$0xff]  ;;  %v4886_v60 = vld [vmem:[%s11993_s3 + $0x320] sm:$0xff] }
 0x293   :  { %v3567_v42 = vpop.f32.mrb[161].mxu0 }
 0x294   :  { %v3932_v46 = vmax.f32 %v3565_v5, %v3567_v42  ;;  %v4472_v47 = vadd.f32 %v11148_v8, %v4401_v44  ;;  %v6752_v44 = vpack.c.bf16 %v4880_v63, %v4878_v40 }
 0x295   :  { %6749 = vmatpush1.bf16.msra.mxu1 %v6748_v22  ;;  %v4893_v22 = vld [vmem:[%s11993_s3 + $0x358] sm:$0xff] }
 0x296   :  { %4060 = vst [vmem:[#allocation2 + $0x280] sm:$0xff] %v3932_v46  ;;  %v3571_v49 = vpop.f32.mrb[162].mxu0  ;;  %v4536_v50 = vmax.f32 %v4472_v47, 0.0  ;;  %6751 = vmatprep.subr.bf16.mxu1 %v6750_v62  ;;  %v4883_v47 = vld [vmem:[%s11993_s3 + $0x308] sm:$0xff] }
 0x297   :  { %v3573_v51 = vpop.f32.mrb[163].mxu0  ;;  %v4676_v52 = vld [vmem:[#allocation3 + $0x121] sm:$0xff] }
 0x298   :  { %v3933_v53 = vmax.f32 %v3571_v49, %v3573_v51  ;;  %5118 = vmatprep.mubr.f32.mxu1 %v4676_v52  ;;  %4600 = vst [vmem:[#allocation3 + $0x130] sm:$0xff] %v4536_v50  ;;  %v4882_v49 = vld [vmem:[%s11993_s3 + $0x300] sm:$0xff]  ;;  %v6754_v51 = vpack.c.bf16 %v4885_v48, %v4883_v47  ;;  %v4884_v52 = vld [vmem:[%s11993_s3 + $0x310] sm:$0xff] }
 0x299   :  { %v4186_v2 = vld [vmem:[#allocation2 + $0x270] ss:$2 sm:$0xff]  ;;  %v4314_v3 = vld [vmem:[#allocation2 + $0x271] ss:$2 sm:$0xff]  ;;  %5119 = vmatmul.mubr.f32.gmra.mrb[36].mxu1 %v4534_v29 }
 0x29a   :  { %v4402_v15 = vmax.f32 %v4186_v2, %v4314_v3  ;;  %4061 = vst [vmem:[#allocation2 + $0x288] sm:$0xff] %v3933_v53  ;;  %v3577_v11 = vpop.f32.mrb[164].mxu0  ;;  %6753 = vmatpush1.bf16.msra.mxu1 %v6752_v44  ;;  %v6756_v3 = vpack.c.bf16 %v4884_v52, %v4882_v49  ;;  %v4897_v44 = vld [vmem:[%s11993_s3 + $0x378] sm:$0xff] }
 0x29b   :  { %v3579_v57 = vpop.f32.mrb[165].mxu0  ;;  %6755 = vmatprep.subr.bf16.mxu1 %v6754_v51 }
 0x29c   :  { %v3934_v24 = vmax.f32 %v3577_v11, %v3579_v57  ;;  %v4473_v31 = vadd.f32 %v11148_v8, %v4402_v15 }
 0x29e   :  { %4062 = vst [vmem:[#allocation2 + $0x290] sm:$0xff] %v3934_v24  ;;  %v3583_v4 = vpop.f32.mrb[166].mxu0  ;;  %v4537_v17 = vmax.f32 %v4473_v31, 0.0  ;;  %6757 = vmatpush1.bf16.msra.mxu1 %v6756_v3  ;;  %v4889_v31 = vld [vmem:[%s11993_s3 + $0x338] sm:$0xff] }
 0x29f   :  { %v3585_v6 = vpop.f32.mrb[167].mxu0  ;;  %v4901_v3 = vld [vmem:[%s11993_s3 + $0x398] sm:$0xff] }
 0x2a0   :  { %v3935_v19 = vmax.f32 %v3583_v4, %v3585_v6  ;;  %4601 = vst [vmem:[#allocation3 + $0x138] sm:$0xff] %v4537_v17  ;;  %v4888_v6 = vld [vmem:[%s11993_s3 + $0x330] sm:$0xff] }
 0x2a1   :  { %v4188_v9 = vld [vmem:[#allocation2 + $0x280] ss:$2 sm:$0xff]  ;;  %v4316_v21 = vld [vmem:[#allocation2 + $0x281] ss:$2 sm:$0xff] }
 0x2a2   :  { %v4403_v12 = vmax.f32 %v4188_v9, %v4316_v21  ;;  %4063 = vst [vmem:[#allocation2 + $0x298] sm:$0xff] %v3935_v19  ;;  %v3589_v23 = vpop.f32.mrb[168].mxu0  ;;  %v11490_v9 = vld [vmem:[%s11994_s2] ss:$0 sm:$0xff] }
 0x2a3   :  { %v3591_v29 = vpop.f32.mrb[169].mxu0 }
 0x2a4   :  { %v3936_v20 = vmax.f32 %v3589_v23, %v3591_v29  ;;  %v4474_v35 = vadd.f32 %v11148_v8, %v4403_v12  ;;  %v6760_v12 = vpack.c.bf16 %v4888_v6, %v4886_v60 }
 0x2a6   :  { %4064 = vst [vmem:[#allocation2 + $0x2a0] sm:$0xff] %v3936_v20  ;;  %v3595_v36 = vpop.f32.mrb[170].mxu0  ;;  %v4538_v26 = vmax.f32 %v4474_v35, 0.0  ;;  %v4891_v35 = vld [vmem:[%s11993_s3 + $0x348] sm:$0xff] }
 0x2a7   :  { %v3597_v37 = vpop.f32.mrb[171].mxu0  ;;  %v4677_v25 = vld [vmem:[#allocation3 + $0x131] sm:$0xff] }
 0x2a8   :  { %v3937_v28 = vmax.f32 %v3595_v36, %v3597_v37  ;;  %5124 = vmatprep.mubr.f32.mxu1 %v4677_v25  ;;  %4602 = vst [vmem:[#allocation3 + $0x140] sm:$0xff] %v4538_v26  ;;  %v4890_v36 = vld [vmem:[%s11993_s3 + $0x340] sm:$0xff]  ;;  %v6762_v37 = vpack.c.bf16 %v4893_v22, %v4891_v35  ;;  %v4892_v25 = vld [vmem:[%s11993_s3 + $0x350] sm:$0xff] }
 0x2a9   :  { %v4190_v38 = vld [vmem:[#allocation2 + $0x290] ss:$2 sm:$0xff]  ;;  %v4318_v30 = vld [vmem:[#allocation2 + $0x291] ss:$2 sm:$0xff]  ;;  %5125 = vmatmul.mubr.f32.gmra.mrb[38].mxu1 %v4536_v50 }
 0x2aa   :  { %v4404_v39 = vmax.f32 %v4190_v38, %v4318_v30  ;;  %4065 = vst [vmem:[#allocation2 + $0x2a8] sm:$0xff] %v3937_v28  ;;  %v3601_v33 = vpop.f32.mrb[172].mxu0  ;;  %v6764_v30 = vpack.c.bf16 %v4892_v25, %v4890_v36  ;;  %v4906_v36 = vld [vmem:[%s11993_s3 + $0x3c0] sm:$0xff]  ;;  %v4913_v25 = vld [vmem:[%s11993_s3 + $0x3f8] sm:$0xff] }
 0x2ab   :  { %v3603_v61 = vpop.f32.mrb[173].mxu0 }
 0x2ac   :  { %v3938_v0 = vmax.f32 %v3601_v33, %v3603_v61  ;;  %v4475_v1 = vadd.f32 %v11148_v8, %v4404_v39 }
 0x2ae   :  { %4066 = vst [vmem:[#allocation2 + $0x2b0] sm:$0xff] %v3938_v0  ;;  %v3607_v5 = vpop.f32.mrb[174].mxu0  ;;  %v4539_v7 = vmax.f32 %v4475_v1, 0.0  ;;  %v4895_v1 = vld [vmem:[%s11993_s3 + $0x368] sm:$0xff] }
 0x2af   :  { %v3609_v10 = vpop.f32.mrb[175].mxu0 }
 0x2b0   :  { %v3939_v13 = vmax.f32 %v3607_v5, %v3609_v10  ;;  %4603 = vst [vmem:[#allocation3 + $0x148] sm:$0xff] %v4539_v7  ;;  %v4894_v5 = vld [vmem:[%s11993_s3 + $0x360] sm:$0xff]  ;;  %v6766_v10 = vpack.c.bf16 %v4897_v44, %v4895_v1 }
 0x2b1   :  { %v4192_v42 = vld [vmem:[#allocation2 + $0x2a0] ss:$2 sm:$0xff]  ;;  %v4320_v43 = vld [vmem:[#allocation2 + $0x2a1] ss:$2 sm:$0xff] }
 0x2b2   :  { %v4405_v45 = vmax.f32 %v4192_v42, %v4320_v43  ;;  %4067 = vst [vmem:[#allocation2 + $0x2b8] sm:$0xff] %v3939_v13  ;;  %v3613_v46 = vpop.f32.mrb[176].mxu0  ;;  %v4896_v13 = vld [vmem:[%s11993_s3 + $0x370] sm:$0xff] }
 0x2b3   :  { %v3615_v50 = vpop.f32.mrb[177].mxu0 }
 0x2b4   :  { %v3940_v53 = vmax.f32 %v3613_v46, %v3615_v50  ;;  %v4476_v2 = vadd.f32 %v11148_v8, %v4405_v45  ;;  %v4887_v8 = vld [vmem:[%s11993_s3 + $0x328] sm:$0xff]  ;;  %v6768_v45 = vpack.c.bf16 %v4896_v13, %v4894_v5 }
 0x2b5   :  { %v6758_v17 = vpack.c.bf16 %v4889_v31, %v4887_v8 }
 0x2b6   :  { %4068 = vst [vmem:[#allocation2 + $0x2c0] sm:$0xff] %v3940_v53  ;;  %v3619_v15 = vpop.f32.mrb[178].mxu0  ;;  %v4540_v11 = vmax.f32 %v4476_v2, 0.0  ;;  %v4899_v2 = vld [vmem:[%s11993_s3 + $0x388] sm:$0xff] }
 0x2b7   :  { %v3621_v54 = vpop.f32.mrb[179].mxu0  ;;  %v4678_v55 = vld [vmem:[#allocation3 + $0x141] sm:$0xff]  ;;  %6759 = vmatprep.subr.bf16.mxu1 %v6758_v17 }
 0x2b8   :  { %v3941_v56 = vmax.f32 %v3619_v15, %v3621_v54  ;;  %5130 = vmatprep.mubr.f32.mxu1 %v4678_v55  ;;  %4604 = vst [vmem:[#allocation3 + $0x150] sm:$0xff] %v4540_v11  ;;  %6761 = vmatpush1.bf16.msra.mxu1 %v6760_v12  ;;  %v4898_v15 = vld [vmem:[%s11993_s3 + $0x380] sm:$0xff]  ;;  %v6770_v54 = vpack.c.bf16 %v4901_v3, %v4899_v2  ;;  %v4900_v55 = vld [vmem:[%s11993_s3 + $0x390] sm:$0xff]  ;;  %v4905_v12 = vld [vmem:[%s11993_s3 + $0x3b8] sm:$0xff] }
 0x2b9   :  { %v4194_v57 = vld [vmem:[#allocation2 + $0x2b0] ss:$2 sm:$0xff]  ;;  %v4322_v58 = vld [vmem:[#allocation2 + $0x2b1] ss:$2 sm:$0xff]  ;;  %5131 = vmatmul.mubr.f32.gmra.mrb[40].mxu1 %v4538_v26  ;;  %6763 = vmatprep.subr.bf16.mxu1 %v6762_v37  ;;  %v4911_v37 = vld [vmem:[%s11993_s3 + $0x3e8] sm:$0xff] }
 0x2ba   :  { %v4406_v59 = vmax.f32 %v4194_v57, %v4322_v58  ;;  %4069 = vst [vmem:[#allocation2 + $0x2c8] sm:$0xff] %v3941_v56  ;;  %v3625_v24 = vpop.f32.mrb[180].mxu0  ;;  %v6772_v58 = vpack.c.bf16 %v4900_v55, %v4898_v15 }
 0x2bb   :  { %v3627_v4 = vpop.f32.mrb[181].mxu0 }
 0x2bc   :  { %v3942_v19 = vmax.f32 %v3625_v24, %v3627_v4  ;;  %v4477_v21 = vadd.f32 %v11490_v9, %v4406_v59  ;;  %6765 = vmatpush1.bf16.msra.mxu1 %v6764_v30 }
 0x2bd   :  { %6767 = vmatprep.subr.bf16.mxu1 %v6766_v10 }
 0x2be   :  { %4070 = vst [vmem:[#allocation2 + $0x2d0] sm:$0xff] %v3942_v19  ;;  %v3631_v23 = vpop.f32.mrb[182].mxu0  ;;  %v4541_v14 = vmax.f32 %v4477_v21, 0.0  ;;  %v4903_v21 = vld [vmem:[%s11993_s3 + $0x3a8] sm:$0xff] }
 0x2bf   :  { %v3633_v27 = vpop.f32.mrb[183].mxu0 }
 0x2c0   :  { %v3943_v16 = vmax.f32 %v3631_v23, %v3633_v27  ;;  %4605 = vst [vmem:[#allocation3 + $0x158] sm:$0xff] %v4541_v14  ;;  %6769 = vmatpush1.bf16.msra.mxu1 %v6768_v45  ;;  %v4902_v23 = vld [vmem:[%s11993_s3 + $0x3a0] sm:$0xff]  ;;  %v6774_v27 = vpack.c.bf16 %v4905_v12, %v4903_v21 }
 0x2c1   :  { %v4196_v29 = vld [vmem:[#allocation2 + $0x2c0] ss:$2 sm:$0xff]  ;;  %v4324_v18 = vld [vmem:[#allocation2 + $0x2c1] ss:$2 sm:$0xff]  ;;  %6771 = vmatprep.subr.bf16.mxu1 %v6770_v54 }
 0x2c2   :  { %v4407_v32 = vmax.f32 %v4196_v29, %v4324_v18  ;;  %4071 = vst [vmem:[#allocation2 + $0x2d8] sm:$0xff] %v3943_v16  ;;  %v3637_v20 = vpop.f32.mrb[184].mxu0  ;;  %v4904_v16 = vld [vmem:[%s11993_s3 + $0x3b0] sm:$0xff]  ;;  %v4907_v29 = vld [vmem:[%s11993_s3 + $0x3c8] sm:$0xff]  ;;  %v4909_v18 = vld [vmem:[%s11993_s3 + $0x3d8] sm:$0xff] }
 0x2c3   :  { %v3639_v26 = vpop.f32.mrb[185].mxu0  ;;  %v6776_v35 = vpack.c.bf16 %v4904_v16, %v4902_v23  ;;  %v6778_v22 = vpack.c.bf16 %v4909_v18, %v4907_v29 }
 0x2c4   :  { %v3944_v28 = vmax.f32 %v3637_v20, %v3639_v26  ;;  %v4478_v38 = vadd.f32 %v11490_v9, %v4407_v32  ;;  %6773 = vmatpush1.bf16.msra.mxu1 %v6772_v58  ;;  %v4908_v26 = vld [vmem:[%s11993_s3 + $0x3d0] sm:$0xff] }
 0x2c5   :  { %6775 = vmatprep.subr.bf16.mxu1 %v6774_v27  ;;  %v6780_v30 = vpack.c.bf16 %v4908_v26, %v4906_v36 }
 0x2c6   :  { %4072 = vst [vmem:[#allocation2 + $0x2e0] sm:$0xff] %v3944_v28  ;;  %v3643_v39 = vpop.f32.mrb[186].mxu0  ;;  %v4542_v33 = vmax.f32 %v4478_v38, 0.0 }
 0x2c7   :  { %v3645_v41 = vpop.f32.mrb[187].mxu0  ;;  %v4679_v34 = vld [vmem:[#allocation3 + $0x151] sm:$0xff] }
 0x2c8   :  { %v3945_v40 = vmax.f32 %v3643_v39, %v3645_v41  ;;  %5136 = vmatprep.mubr.f32.mxu1 %v4679_v34  ;;  %4606 = vst [vmem:[#allocation3 + $0x160] sm:$0xff] %v4542_v33  ;;  %6777 = vmatpush1.bf16.msra.mxu1 %v6776_v35  ;;  %v4910_v41 = vld [vmem:[%s11993_s3 + $0x3e0] sm:$0xff]  ;;  %v4912_v34 = vld [vmem:[%s11993_s3 + $0x3f0] sm:$0xff] }
 0x2c9   :  { %v4198_v61 = vld [vmem:[#allocation2 + $0x2d0] ss:$2 sm:$0xff]  ;;  %v4326_v62 = vld [vmem:[#allocation2 + $0x2d1] ss:$2 sm:$0xff]  ;;  %5137 = vmatmul.mubr.f32.gmra.mrb[42].mxu1 %v4540_v11  ;;  %6779 = vmatprep.subr.bf16.mxu1 %v6778_v22  ;;  %v6784_v1 = vpack.c.bf16 %v4912_v34, %v4910_v41 }
 0x2ca   :  { %v4408_v63 = vmax.f32 %v4198_v61, %v4326_v62  ;;  %4073 = vst [vmem:[#allocation2 + $0x2e8] sm:$0xff] %v3945_v40  ;;  %v3649_v0 = vpop.f32.mrb[188].mxu0 }
 0x2cb   :  { %v3651_v7 = vpop.f32.mrb[189].mxu0 }
 0x2cc   :  { %v3946_v42 = vmax.f32 %v3649_v0, %v3651_v7  ;;  %v4479_v43 = vadd.f32 %v11490_v9, %v4408_v63  ;;  %6781 = vmatpush1.bf16.msra.mxu1 %v6780_v30 }
 0x2ce   :  { %4074 = vst [vmem:[#allocation2 + $0x2f0] sm:$0xff] %v3946_v42  ;;  %v3655_v46 = vpop.f32.mrb[190].mxu0  ;;  %v4543_v47 = vmax.f32 %v4479_v43, 0.0 }
 0x2cf   :  { %v3657_v48 = vpop.f32.mrb[191].mxu0 }
 0x2d0   :  { %v3947_v49 = vmax.f32 %v3655_v46, %v3657_v48  ;;  %4607 = vst [vmem:[#allocation3 + $0x168] sm:$0xff] %v4543_v47 }
 0x2d1   :  { %v4200_v50 = vld [vmem:[#allocation2 + $0x2e0] ss:$2 sm:$0xff]  ;;  %v4328_v51 = vld [vmem:[#allocation2 + $0x2e1] ss:$2 sm:$0xff] }
 0x2d2   :  { %v4409_v52 = vmax.f32 %v4200_v50, %v4328_v51  ;;  %4075 = vst [vmem:[#allocation2 + $0x2f8] sm:$0xff] %v3947_v49  ;;  %v3661_v53 = vpop.f32.mrb[192].mxu0  ;;  %v4915_v50 = vld [vmem:[%s11993_s3 + $0x408] sm:$0xff]  ;;  %v4917_v51 = vld [vmem:[%s11993_s3 + $0x418] sm:$0xff] }
 0x2d3   :  { %v3663_v11 = vpop.f32.mrb[193].mxu0 }
 0x2d4   :  { %v3948_v56 = vmax.f32 %v3661_v53, %v3663_v11  ;;  %v11532_v57 = vadd.f32 %v11490_v9, %v4409_v52  ;;  %v6786_v53 = vpack.c.bf16 %v4917_v51, %v4915_v50 }
 0x2d6   :  { %4076 = vst [vmem:[#allocation2 + $0x300] sm:$0xff] %v3948_v56  ;;  %v3667_v59 = vpop.f32.mrb[194].mxu0  ;;  %v4544_v24 = vmax.f32 %v11532_v57, 0.0 }
 0x2d7   :  { %v3669_v8 = vpop.f32.mrb[195].mxu0  ;;  %v4680_v31 = vld [vmem:[#allocation3 + $0x161] sm:$0xff] }
 0x2d8   :  { %v3949_v60 = vmax.f32 %v3667_v59, %v3669_v8  ;;  %5142 = vmatprep.mubr.f32.mxu1 %v4680_v31  ;;  %4608 = vst [vmem:[#allocation3 + $0x170] sm:$0xff] %v4544_v24 }
 0x2d9   :  { %v4202_v4 = vld [vmem:[#allocation2 + $0x2f0] ss:$2 sm:$0xff]  ;;  %v4330_v17 = vld [vmem:[#allocation2 + $0x2f1] ss:$2 sm:$0xff]  ;;  %5143 = vmatmul.mubr.f32.gmra.mrb[44].mxu1 %v4542_v33  ;;  %v6782_v33 = vpack.c.bf16 %v4913_v25, %v4911_v37 }
 0x2da   :  { %v4410_v6 = vmax.f32 %v4202_v4, %v4330_v17  ;;  %4077 = vst [vmem:[#allocation2 + $0x308] sm:$0xff] %v3949_v60  ;;  %v3673_v19 = vpop.f32.mrb[196].mxu0 }
 0x2db   :  { %v3675_v14 = vpop.f32.mrb[197].mxu0  ;;  %6783 = vmatprep.subr.bf16.mxu1 %v6782_v33 }
 0x2dc   :  { %v3950_v32 = vmax.f32 %v3673_v19, %v3675_v14  ;;  %v4481_v20 = vadd.f32 %v11490_v9, %v4410_v6  ;;  %6785 = vmatpush1.bf16.msra.mxu1 %v6784_v1 }
 0x2dd   :  { %6787 = vmatprep.subr.bf16.mxu1 %v6786_v53 }
 0x2de   :  { %4078 = vst [vmem:[#allocation2 + $0x310] sm:$0xff] %v3950_v32  ;;  %v3679_v28 = vpop.f32.mrb[198].mxu0  ;;  %v4545_v38 = vmax.f32 %v4481_v20, 0.0 }
 0x2df   :  { %v3681_v39 = vpop.f32.mrb[199].mxu0 }
 0x2e0   :  { %v3951_v40 = vmax.f32 %v3679_v28, %v3681_v39  ;;  %4609 = vst [vmem:[#allocation3 + $0x178] sm:$0xff] %v4545_v38 }
 0x2e1   :  { %v4204_v61 = vld [vmem:[#allocation2 + $0x300] ss:$2 sm:$0xff]  ;;  %v4332_v62 = vld [vmem:[#allocation2 + $0x301] ss:$2 sm:$0xff] }
 0x2e2   :  { %v4411_v63 = vmax.f32 %v4204_v61, %v4332_v62  ;;  %4079 = vst [vmem:[#allocation2 + $0x318] sm:$0xff] %v3951_v40  ;;  %v3685_v0 = vpop.f32.mrb[200].mxu0 }
 0x2e3   :  { %v3687_v44 = vpop.f32.mrb[201].mxu0 }
 0x2e4   :  { %v3952_v5 = vmax.f32 %v3685_v0, %v3687_v44  ;;  %v4482_v7 = vadd.f32 %v11490_v9, %v4411_v63 }
 0x2e6   :  { %4080 = vst [vmem:[#allocation2 + $0x320] sm:$0xff] %v3952_v5  ;;  %v3691_v10 = vpop.f32.mrb[202].mxu0  ;;  %v4546_v13 = vmax.f32 %v4482_v7, 0.0 }
 0x2e7   :  { %v3693_v42 = vpop.f32.mrb[203].mxu0  ;;  %v4681_v43 = vld [vmem:[#allocation3 + $0x171] sm:$0xff] }
 0x2e8   :  { %v3953_v45 = vmax.f32 %v3691_v10, %v3693_v42  ;;  %5148 = vmatprep.mubr.f32.mxu1 %v4681_v43  ;;  %4610 = vst [vmem:[#allocation3 + $0x180] sm:$0xff] %v4546_v13 }
 0x2e9   :  { %v4206_v46 = vld [vmem:[#allocation2 + $0x310] ss:$2 sm:$0xff]  ;;  %v4334_v47 = vld [vmem:[#allocation2 + $0x311] ss:$2 sm:$0xff]  ;;  %5149 = vmatmul.mubr.f32.gmra.mrb[46].mxu1 %v4544_v24 }
 0x2ea   :  { %v4412_v48 = vmax.f32 %v4206_v46, %v4334_v47  ;;  %4081 = vst [vmem:[#allocation2 + $0x328] sm:$0xff] %v3953_v45  ;;  %v3697_v49 = vpop.f32.mrb[204].mxu0 }
 0x2eb   :  { %v3699_v52 = vpop.f32.mrb[205].mxu0 }
 0x2ec   :  { %v3954_v2 = vmax.f32 %v3697_v49, %v3699_v52  ;;  %v4483_v3 = vadd.f32 %v11490_v9, %v4412_v48 }
 0x2ee   :  { %4082 = vst [vmem:[#allocation2 + $0x330] sm:$0xff] %v3954_v2  ;;  %v3703_v15 = vpop.f32.mrb[206].mxu0  ;;  %v4547_v11 = vmax.f32 %v4483_v3, 0.0 }
 0x2ef   :  { %v3705_v54 = vpop.f32.mrb[207].mxu0 }
 0x2f0   :  { %v3955_v55 = vmax.f32 %v3703_v15, %v3705_v54  ;;  %4611 = vst [vmem:[#allocation3 + $0x188] sm:$0xff] %v4547_v11 }
 0x2f1   :  { %v4208_v56 = vld [vmem:[#allocation2 + $0x320] ss:$2 sm:$0xff]  ;;  %v4336_v57 = vld [vmem:[#allocation2 + $0x321] ss:$2 sm:$0xff] }
 0x2f2   :  { %v4413_v58 = vmax.f32 %v4208_v56, %v4336_v57  ;;  %4083 = vst [vmem:[#allocation2 + $0x338] sm:$0xff] %v3955_v55  ;;  %v3709_v59 = vpop.f32.mrb[208].mxu0 }
 0x2f3   :  { %v3711_v24 = vpop.f32.mrb[209].mxu0 }
 0x2f4   :  { %v3956_v8 = vmax.f32 %v3709_v59, %v3711_v24  ;;  %v4484_v31 = vadd.f32 %v11490_v9, %v4413_v58 }
 0x2f6   :  { %4084 = vst [vmem:[#allocation2 + $0x340] sm:$0xff] %v3956_v8  ;;  %v3715_v60 = vpop.f32.mrb[210].mxu0  ;;  %v4548_v4 = vmax.f32 %v4484_v31, 0.0 }
 0x2f7   :  { %v3717_v17 = vpop.f32.mrb[211].mxu0  ;;  %v4682_v6 = vld [vmem:[#allocation3 + $0x181] sm:$0xff] }
 0x2f8   :  { %v3957_v19 = vmax.f32 %v3715_v60, %v3717_v17  ;;  %5154 = vmatprep.mubr.f32.mxu1 %v4682_v6  ;;  %4612 = vst [vmem:[#allocation3 + $0x190] sm:$0xff] %v4548_v4 }
 0x2f9   :  { %v4210_v21 = vld [vmem:[#allocation2 + $0x330] ss:$2 sm:$0xff]  ;;  %v4338_v12 = vld [vmem:[#allocation2 + $0x331] ss:$2 sm:$0xff]  ;;  %5155 = vmatmul.mubr.f32.gmra.mrb[48].mxu1 %v4546_v13 }
 0x2fa   :  { %v4414_v23 = vmax.f32 %v4210_v21, %v4338_v12  ;;  %4085 = vst [vmem:[#allocation2 + $0x348] sm:$0xff] %v3957_v19  ;;  %v3721_v14 = vpop.f32.mrb[212].mxu0 }
 0x2fb   :  { %v3723_v27 = vpop.f32.mrb[213].mxu0 }
 0x2fc   :  { %v3958_v16 = vmax.f32 %v3721_v14, %v3723_v27  ;;  %v4485_v29 = vadd.f32 %v11490_v9, %v4414_v23 }
 0x2fe   :  { %4086 = vst [vmem:[#allocation2 + $0x350] sm:$0xff] %v3958_v16  ;;  %v3727_v18 = vpop.f32.mrb[214].mxu0  ;;  %v4549_v32 = vmax.f32 %v4485_v29, 0.0 }
 0x2ff   :  { %v3729_v20 = vpop.f32.mrb[215].mxu0 }
 0x300   :  { %v3959_v35 = vmax.f32 %v3727_v18, %v3729_v20  ;;  %4613 = vst [vmem:[#allocation3 + $0x198] sm:$0xff] %v4549_v32 }
 0x301   :  { %v4212_v22 = vld [vmem:[#allocation2 + $0x340] ss:$2 sm:$0xff]  ;;  %v4340_v36 = vld [vmem:[#allocation2 + $0x341] ss:$2 sm:$0xff] }
 0x302   :  { %v4415_v26 = vmax.f32 %v4212_v22, %v4340_v36  ;;  %4087 = vst [vmem:[#allocation2 + $0x358] sm:$0xff] %v3959_v35  ;;  %v3733_v37 = vpop.f32.mrb[216].mxu0 }
 0x303   :  { %v3735_v25 = vpop.f32.mrb[217].mxu0 }
 0x304   :  { %v3960_v28 = vmax.f32 %v3733_v37, %v3735_v25  ;;  %v4486_v38 = vadd.f32 %v11490_v9, %v4415_v26 }
 0x306   :  { %4088 = vst [vmem:[#allocation2 + $0x360] sm:$0xff] %v3960_v28  ;;  %v3739_v30 = vpop.f32.mrb[218].mxu0  ;;  %v4550_v39 = vmax.f32 %v4486_v38, 0.0 }
 0x307   :  { %v3741_v33 = vpop.f32.mrb[219].mxu0  ;;  %v4683_v41 = vld [vmem:[#allocation3 + $0x191] sm:$0xff] }
 0x308   :  { %v3961_v34 = vmax.f32 %v3739_v30, %v3741_v33  ;;  %5160 = vmatprep.mubr.f32.mxu1 %v4683_v41  ;;  %4614 = vst [vmem:[#allocation3 + $0x1a0] sm:$0xff] %v4550_v39 }
 0x309   :  { %v4214_v40 = vld [vmem:[#allocation2 + $0x350] ss:$2 sm:$0xff]  ;;  %v4342_v61 = vld [vmem:[#allocation2 + $0x351] ss:$2 sm:$0xff]  ;;  %5161 = vmatmul.mubr.f32.gmra.mrb[50].mxu1 %v4548_v4 }
 0x30a   :  { %v4416_v62 = vmax.f32 %v4214_v40, %v4342_v61  ;;  %4089 = vst [vmem:[#allocation2 + $0x368] sm:$0xff] %v3961_v34  ;;  %v3745_v63 = vpop.f32.mrb[220].mxu0 }
 0x30b   :  { %v3747_v0 = vpop.f32.mrb[221].mxu0 }
 0x30c   :  { %v3962_v1 = vmax.f32 %v3745_v63, %v3747_v0  ;;  %v4487_v44 = vadd.f32 %v11490_v9, %v4416_v62 }
 0x30e   :  { %4090 = vst [vmem:[#allocation2 + $0x370] sm:$0xff] %v3962_v1  ;;  %v3751_v5 = vpop.f32.mrb[222].mxu0  ;;  %v4551_v7 = vmax.f32 %v4487_v44, 0.0 }
 0x30f   :  { %v3753_v10 = vpop.f32.mrb[223].mxu0 }
 0x310   :  { %v3963_v13 = vmax.f32 %v3751_v5, %v3753_v10  ;;  %4615 = vst [vmem:[#allocation3 + $0x1a8] sm:$0xff] %v4551_v7 }
 0x311   :  { %v4216_v42 = vld [vmem:[#allocation2 + $0x360] ss:$2 sm:$0xff]  ;;  %v4344_v43 = vld [vmem:[#allocation2 + $0x361] ss:$2 sm:$0xff] }
 0x312   :  { %v4417_v45 = vmax.f32 %v4216_v42, %v4344_v43  ;;  %4091 = vst [vmem:[#allocation2 + $0x378] sm:$0xff] %v3963_v13  ;;  %v3757_v46 = vpop.f32.mrb[224].mxu0 }
 0x313   :  { %v3759_v47 = vpop.f32.mrb[225].mxu0 }
 0x314   :  { %v3964_v48 = vmax.f32 %v3757_v46, %v3759_v47  ;;  %v4488_v49 = vadd.f32 %v11490_v9, %v4417_v45 }
 0x316   :  { %4092 = vst [vmem:[#allocation2 + $0x380] sm:$0xff] %v3964_v48  ;;  %v3763_v50 = vpop.f32.mrb[226].mxu0  ;;  %v4552_v51 = vmax.f32 %v4488_v49, 0.0 }
 0x317   :  { %v3765_v52 = vpop.f32.mrb[227].mxu0  ;;  %v4684_v53 = vld [vmem:[#allocation3 + $0x1a1] sm:$0xff] }
 0x318   :  { %v3965_v2 = vmax.f32 %v3763_v50, %v3765_v52  ;;  %5166 = vmatprep.mubr.f32.mxu1 %v4684_v53  ;;  %4616 = vst [vmem:[#allocation3 + $0x1b0] sm:$0xff] %v4552_v51 }
 0x319   :  { %v4218_v3 = vld [vmem:[#allocation2 + $0x370] ss:$2 sm:$0xff]  ;;  %v4346_v15 = vld [vmem:[#allocation2 + $0x371] ss:$2 sm:$0xff]  ;;  %5167 = vmatmul.mubr.f32.gmra.mrb[52].mxu1 %v4550_v39 }
 0x31a   :  { %v4418_v11 = vmax.f32 %v4218_v3, %v4346_v15  ;;  %4093 = vst [vmem:[#allocation2 + $0x388] sm:$0xff] %v3965_v2  ;;  %v3769_v54 = vpop.f32.mrb[228].mxu0 }
 0x31b   :  { %v3771_v55 = vpop.f32.mrb[229].mxu0 }
 0x31c   :  { %v3966_v56 = vmax.f32 %v3769_v54, %v3771_v55  ;;  %v4489_v57 = vadd.f32 %v11490_v9, %v4418_v11 }
 0x31e   :  { %4094 = vst [vmem:[#allocation2 + $0x390] sm:$0xff] %v3966_v56  ;;  %v3775_v58 = vpop.f32.mrb[230].mxu0  ;;  %v4553_v59 = vmax.f32 %v4489_v57, 0.0 }
 0x31f   :  { %v3777_v24 = vpop.f32.mrb[231].mxu0 }
 0x320   :  { %v3967_v8 = vmax.f32 %v3775_v58, %v3777_v24  ;;  %4617 = vst [vmem:[#allocation3 + $0x1b8] sm:$0xff] %v4553_v59 }
 0x321   :  { %v4220_v31 = vld [vmem:[#allocation2 + $0x380] ss:$2 sm:$0xff]  ;;  %v4348_v60 = vld [vmem:[#allocation2 + $0x381] ss:$2 sm:$0xff] }
 0x322   :  { %v4419_v4 = vmax.f32 %v4220_v31, %v4348_v60  ;;  %4095 = vst [vmem:[#allocation2 + $0x398] sm:$0xff] %v3967_v8  ;;  %v3781_v17 = vpop.f32.mrb[232].mxu0 }
 0x323   :  { %v3783_v6 = vpop.f32.mrb[233].mxu0 }
 0x324   :  { %v3968_v19 = vmax.f32 %v3781_v17, %v3783_v6  ;;  %v4490_v21 = vadd.f32 %v11490_v9, %v4419_v4 }
 0x326   :  { %4096 = vst [vmem:[#allocation2 + $0x3a0] sm:$0xff] %v3968_v19  ;;  %v3787_v12 = vpop.f32.mrb[234].mxu0  ;;  %v4554_v23 = vmax.f32 %v4490_v21, 0.0 }
 0x327   :  { %v3789_v14 = vpop.f32.mrb[235].mxu0  ;;  %v4685_v27 = vld [vmem:[#allocation3 + $0x1b1] sm:$0xff] }
 0x328   :  { %v3969_v16 = vmax.f32 %v3787_v12, %v3789_v14  ;;  %5172 = vmatprep.mubr.f32.mxu1 %v4685_v27  ;;  %4618 = vst [vmem:[#allocation3 + $0x1c0] sm:$0xff] %v4554_v23 }
 0x329   :  { %v4222_v29 = vld [vmem:[#allocation2 + $0x390] ss:$2 sm:$0xff]  ;;  %v4350_v18 = vld [vmem:[#allocation2 + $0x391] ss:$2 sm:$0xff]  ;;  %5173 = vmatmul.mubr.f32.gmra.mrb[54].mxu1 %v4552_v51 }
 0x32a   :  { %v4420_v32 = vmax.f32 %v4222_v29, %v4350_v18  ;;  %4097 = vst [vmem:[#allocation2 + $0x3a8] sm:$0xff] %v3969_v16  ;;  %v3793_v20 = vpop.f32.mrb[236].mxu0 }
 0x32b   :  { %v3795_v35 = vpop.f32.mrb[237].mxu0 }
 0x32c   :  { %v3970_v22 = vmax.f32 %v3793_v20, %v3795_v35  ;;  %v4491_v36 = vadd.f32 %v11490_v9, %v4420_v32 }
 0x32e   :  { %4098 = vst [vmem:[#allocation2 + $0x3b0] sm:$0xff] %v3970_v22  ;;  %v3799_v26 = vpop.f32.mrb[238].mxu0  ;;  %v4555_v37 = vmax.f32 %v4491_v36, 0.0  ;;  %v4914_v36 = vld [vmem:[%s11993_s3 + $0x400] sm:$0xff] }
 0x32f   :  { %v3801_v25 = vpop.f32.mrb[239].mxu0 }
 0x330   :  { %v3971_v28 = vmax.f32 %v3799_v26, %v3801_v25  ;;  %4619 = vst [vmem:[#allocation3 + $0x1c8] sm:$0xff] %v4555_v37  ;;  %v4916_v26 = vld [vmem:[%s11993_s3 + $0x410] sm:$0xff]  ;;  %v4919_v37 = vld [vmem:[%s11993_s3 + $0x428] sm:$0xff] }
 0x331   :  { %v4224_v38 = vld [vmem:[#allocation2 + $0x3a0] ss:$2 sm:$0xff]  ;;  %v4352_v30 = vld [vmem:[#allocation2 + $0x3a1] ss:$2 sm:$0xff] }
 0x332   :  { %v4421_v39 = vmax.f32 %v4224_v38, %v4352_v30  ;;  %4099 = vst [vmem:[#allocation2 + $0x3b8] sm:$0xff] %v3971_v28  ;;  %v3805_v33 = vpop.f32.mrb[240].mxu0  ;;  %v4722_v25 = vld [vmem:[#allocation3 + $0x3] sm:$0xff]  ;;  %v6788_v28 = vpack.c.bf16 %v4916_v26, %v4914_v36  ;;  %v4699_v36 = vld [vmem:[#allocation3 + $0x92] sm:$0xff] }
 0x333   :  { %v3807_v41 = vpop.f32.mrb[241].mxu0  ;;  %v4918_v30 = vld [vmem:[%s11993_s3 + $0x420] sm:$0xff] }
 0x334   :  { %v3972_v34 = vmax.f32 %v3805_v33, %v3807_v41  ;;  %v4492_v40 = vadd.f32 %v11490_v9, %v4421_v39  ;;  %v4920_v39 = vld [vmem:[%s11993_s3 + $0x430] sm:$0xff]  ;;  %v4690_v33 = vld [vmem:[#allocation3 + $0x2] sm:$0xff] }
 0x335   :  { %v4923_v41 = vld [vmem:[%s11993_s3 + $0x448] sm:$0xff] }
 0x336   :  { %4100 = vst [vmem:[#allocation2 + $0x3c0] sm:$0xff] %v3972_v34  ;;  %v3811_v61 = vpop.f32.mrb[242].mxu0  ;;  %v4556_v62 = vmax.f32 %v4492_v40, 0.0  ;;  %v4925_v34 = vld [vmem:[%s11993_s3 + $0x458] sm:$0xff]  ;;  %v4732_v26 = vld [vmem:[#allocation3 + $0xa3] sm:$0xff] }
 0x337   :  { %v3813_v63 = vpop.f32.mrb[243].mxu0  ;;  %v4686_v0 = vld [vmem:[#allocation3 + $0x1c1] sm:$0xff]  ;;  %v4723_v40 = vld [vmem:[#allocation3 + $0x13] sm:$0xff] }
 0x338   :  { %v3973_v1 = vmax.f32 %v3811_v61, %v3813_v63  ;;  %5178 = vmatprep.mubr.f32.mxu1 %v4686_v0  ;;  %4620 = vst [vmem:[#allocation3 + $0x1d0] sm:$0xff] %v4556_v62  ;;  %v6792_v61 = vpack.c.bf16 %v4920_v39, %v4918_v30  ;;  %v4922_v63 = vld [vmem:[%s11993_s3 + $0x440] sm:$0xff]  ;;  %v4924_v0 = vld [vmem:[%s11993_s3 + $0x450] sm:$0xff] }
 0x339   :  { %v4226_v44 = vld [vmem:[#allocation2 + $0x3b0] ss:$2 sm:$0xff]  ;;  %v4354_v5 = vld [vmem:[#allocation2 + $0x3b1] ss:$2 sm:$0xff]  ;;  %5179 = vmatmul.mubr.f32.gmra.mrb[56].mxu1 %v4554_v23 }
 0x33a   :  { %v4422_v7 = vmax.f32 %v4226_v44, %v4354_v5  ;;  %4101 = vst [vmem:[#allocation2 + $0x3c8] sm:$0xff] %v3973_v1  ;;  %v3817_v10 = vpop.f32.mrb[244].mxu0  ;;  %v4691_v1 = vld [vmem:[#allocation3 + $0x12] sm:$0xff]  ;;  %v4927_v44 = vld [vmem:[%s11993_s3 + $0x468] sm:$0xff] }
 0x33b   :  { %v3819_v13 = vpop.f32.mrb[245].mxu0  ;;  %v4929_v5 = vld [vmem:[%s11993_s3 + $0x478] sm:$0xff] }
 0x33c   :  { %v3974_v42 = vmax.f32 %v3817_v10, %v3819_v13  ;;  %v4493_v43 = vadd.f32 %v11490_v9, %v4422_v7  ;;  %v4724_v7 = vld [vmem:[#allocation3 + $0x23] sm:$0xff]  ;;  %v6796_v10 = vpack.c.bf16 %v4924_v0, %v4922_v63  ;;  %v6798_v13 = vpack.c.bf16 %v4929_v5, %v4927_v44  ;;  %v4735_v30 = vld [vmem:[#allocation3 + $0xd3] sm:$0xff] }
 0x33d   :  { %v4703_v39 = vld [vmem:[#allocation3 + $0xd2] sm:$0xff]  ;;  %v4708_v44 = vld [vmem:[#allocation3 + $0x122] sm:$0xff] }
 0x33e   :  { %4102 = vst [vmem:[#allocation2 + $0x3d0] sm:$0xff] %v3974_v42  ;;  %v3823_v45 = vpop.f32.mrb[246].mxu0  ;;  %v4557_v46 = vmax.f32 %v4493_v43, 0.0  ;;  %v4926_v42 = vld [vmem:[%s11993_s3 + $0x460] sm:$0xff]  ;;  %v4928_v43 = vld [vmem:[%s11993_s3 + $0x470] sm:$0xff] }
 0x33f   :  { %v3825_v47 = vpop.f32.mrb[247].mxu0  ;;  %v4739_v63 = vld [vmem:[#allocation3 + $0x113] sm:$0xff] }
 0x340   :  { %v3975_v48 = vmax.f32 %v3823_v45, %v3825_v47  ;;  %4621 = vst [vmem:[#allocation3 + $0x1d8] sm:$0xff] %v4557_v46  ;;  %v4692_v45 = vld [vmem:[#allocation3 + $0x22] sm:$0xff]  ;;  %v4933_v47 = vld [vmem:[%s11993_s3 + $0x498] sm:$0xff] }
 0x341   :  { %v4228_v49 = vld [vmem:[#allocation2 + $0x3c0] ss:$2 sm:$0xff]  ;;  %v4356_v50 = vld [vmem:[#allocation2 + $0x3c1] ss:$2 sm:$0xff]  ;;  %v4707_v0 = vld [vmem:[#allocation3 + $0x112] sm:$0xff] }
 0x342   :  { %v4423_v51 = vmax.f32 %v4228_v49, %v4356_v50  ;;  %4103 = vst [vmem:[#allocation2 + $0x3d8] sm:$0xff] %v3975_v48  ;;  %v3829_v52 = vpop.f32.mrb[248].mxu0  ;;  %v4931_v46 = vld [vmem:[%s11993_s3 + $0x488] sm:$0xff]  ;;  %v4725_v48 = vld [vmem:[#allocation3 + $0x33] sm:$0xff]  ;;  %v6800_v49 = vpack.c.bf16 %v4928_v43, %v4926_v42 }
 0x343   :  { %v3831_v53 = vpop.f32.mrb[249].mxu0  ;;  %v6802_v50 = vpack.c.bf16 %v4933_v47, %v4931_v46  ;;  %v4741_v5 = vld [vmem:[#allocation3 + $0x133] sm:$0xff]  ;;  %v4712_v46 = vld [vmem:[#allocation3 + $0x162] sm:$0xff] }
 0x344   :  { %v3976_v2 = vmax.f32 %v3829_v52, %v3831_v53  ;;  %v4494_v3 = vadd.f32 %v11490_v9, %v4423_v51  ;;  %v4930_v51 = vld [vmem:[%s11993_s3 + $0x480] sm:$0xff]  ;;  %v4932_v52 = vld [vmem:[%s11993_s3 + $0x490] sm:$0xff] }
 0x345   :  { %v4693_v53 = vld [vmem:[#allocation3 + $0x32] sm:$0xff] }
 0x346   :  { %4104 = vst [vmem:[#allocation2 + $0x3e0] sm:$0xff] %v3976_v2  ;;  %v3835_v15 = vpop.f32.mrb[250].mxu0  ;;  %v4558_v11 = vmax.f32 %v4494_v3, 0.0  ;;  %v4935_v2 = vld [vmem:[%s11993_s3 + $0x4a8] sm:$0xff]  ;;  %v4937_v3 = vld [vmem:[%s11993_s3 + $0x4b8] sm:$0xff] }
 0x347   :  { %v3837_v54 = vpop.f32.mrb[251].mxu0  ;;  %v4687_v55 = vld [vmem:[#allocation3 + $0x1d1] sm:$0xff] }
 0x348   :  { %v3977_v56 = vmax.f32 %v3835_v15, %v3837_v54  ;;  %5184 = vmatprep.mubr.f32.mxu1 %v4687_v55  ;;  %4622 = vst [vmem:[#allocation3 + $0x1e0] sm:$0xff] %v4558_v11  ;;  %v4726_v15 = vld [vmem:[#allocation3 + $0x43] sm:$0xff]  ;;  %v6806_v54 = vpack.c.bf16 %v4937_v3, %v4935_v2  ;;  %v4743_v42 = vld [vmem:[#allocation3 + $0x153] sm:$0xff] }
 0x349   :  { %v4230_v57 = vld [vmem:[#allocation2 + $0x3d0] ss:$2 sm:$0xff]  ;;  %v4358_v58 = vld [vmem:[#allocation2 + $0x3d1] ss:$2 sm:$0xff]  ;;  %5185 = vmatmul.mubr.f32.gmra.mrb[58].mxu1 %v4556_v62  ;;  %v6794_v62 = vpack.c.bf16 %v4925_v34, %v4923_v41  ;;  %v4934_v55 = vld [vmem:[%s11993_s3 + $0x4a0] sm:$0xff] }
 0x34a   :  { %v4424_v59 = vmax.f32 %v4230_v57, %v4358_v58  ;;  %4105 = vst [vmem:[#allocation2 + $0x3e8] sm:$0xff] %v3977_v56  ;;  %v3841_v24 = vpop.f32.mrb[252].mxu0  ;;  %v4936_v56 = vld [vmem:[%s11993_s3 + $0x4b0] sm:$0xff]  ;;  %v4694_v57 = vld [vmem:[#allocation3 + $0x42] sm:$0xff] }
 0x34b   :  { %v3843_v8 = vpop.f32.mrb[253].mxu0  ;;  %v4939_v58 = vld [vmem:[%s11993_s3 + $0x4c8] sm:$0xff]  ;;  %v4737_v34 = vld [vmem:[#allocation3 + $0xf3] sm:$0xff] }
 0x34c   :  { %v3978_v31 = vmax.f32 %v3841_v24, %v3843_v8  ;;  %v4495_v60 = vadd.f32 %v11490_v9, %v4424_v59  ;;  %v4941_v59 = vld [vmem:[%s11993_s3 + $0x4d8] sm:$0xff]  ;;  %v6808_v8 = vpack.c.bf16 %v4936_v56, %v4934_v55  ;;  %v4704_v41 = vld [vmem:[#allocation3 + $0xe2] sm:$0xff] }
 0x34d   :  { %v4727_v24 = vld [vmem:[#allocation3 + $0x53] sm:$0xff]  ;;  %v4716_v2 = vld [vmem:[#allocation3 + $0x1a2] sm:$0xff] }
 0x34e   :  { %4106 = vst [vmem:[#allocation2 + $0x3f0] sm:$0xff] %v3978_v31  ;;  %v3847_v4 = vpop.f32.mrb[254].mxu0  ;;  %v4559_v17 = vmax.f32 %v4495_v60, 0.0  ;;  %v6810_v31 = vpack.c.bf16 %v4941_v59, %v4939_v58  ;;  %v4938_v60 = vld [vmem:[%s11993_s3 + $0x4c0] sm:$0xff]  ;;  %v4711_v43 = vld [vmem:[#allocation3 + $0x152] sm:$0xff] }
 0x34f   :  { %v3849_v6 = vpop.f32.mrb[255].mxu0  ;;  %v4745_v47 = vld [vmem:[#allocation3 + $0x173] sm:$0xff] }
 0x350   :  { %v3979_v19 = vmax.f32 %v3847_v4, %v3849_v6  ;;  %4623 = vst [vmem:[#allocation3 + $0x1e8] sm:$0xff] %v4559_v17  ;;  %v4940_v4 = vld [vmem:[%s11993_s3 + $0x4d0] sm:$0xff]  ;;  %v4943_v6 = vld [vmem:[%s11993_s3 + $0x4e8] sm:$0xff] }
 0x351   :  { %v4232_v21 = vld [vmem:[#allocation2 + $0x3e0] ss:$2 sm:$0xff]  ;;  %v4360_v12 = vld [vmem:[#allocation2 + $0x3e1] ss:$2 sm:$0xff]  ;;  %v4695_v17 = vld [vmem:[#allocation3 + $0x52] sm:$0xff] }
 0x352   :  { %v4425_v23 = vmax.f32 %v4232_v21, %v4360_v12  ;;  %4107 = vst [vmem:[#allocation2 + $0x3f8] sm:$0xff] %v3979_v19  ;;  %v4945_v19 = vld [vmem:[%s11993_s3 + $0x4f8] sm:$0xff]  ;;  %v4728_v21 = vld [vmem:[#allocation3 + $0x63] sm:$0xff]  ;;  %v6812_v12 = vpack.c.bf16 %v4940_v4, %v4938_v60 }
 0x353   :  { %v4749_v3 = vld [vmem:[#allocation3 + $0x1b3] sm:$0xff]  ;;  %v5963_v60 = vld [vmem:[%s11995_s5 + $0x88] sm:$0xff]  ;;  %v5946_v4 = vld [vmem:[%s11995_s5] sm:$0xff] }
 0x354   :  { %v4496_v14 = vadd.f32 %v11490_v9, %v4425_v23  ;;  %v6814_v23 = vpack.c.bf16 %v4945_v19, %v4943_v6  ;;  %v4751_v55 = vld [vmem:[#allocation3 + $0x1d3] sm:$0xff]  ;;  %v5947_v6 = vld [vmem:[%s11995_s5 + $0x8] sm:$0xff] }
 0x355   :  { %v4719_v56 = vld [vmem:[#allocation3 + $0x1d2] sm:$0xff]  ;;  %v4754_v19 = vld [vmem:[#allocation3 + $0x4] sm:$0xff] }
 0x356   :  { %v4560_v27 = vmax.f32 %v4496_v14, 0.0  ;;  %v4942_v14 = vld [vmem:[%s11993_s3 + $0x4e0] sm:$0xff] }
 0x357   :  { %v4688_v16 = vld [vmem:[#allocation3 + $0x1e1] sm:$0xff] }
 0x358   :  { %5190 = vmatprep.mubr.f32.mxu1 %v4688_v16  ;;  %4624 = vst [vmem:[#allocation3 + $0x1f0] sm:$0xff] %v4560_v27  ;;  %v4696_v16 = vld [vmem:[#allocation3 + $0x62] sm:$0xff] }
 0x359   :  { %v4234_v29 = vld [vmem:[#allocation2 + $0x3f0] ss:$2 sm:$0xff]  ;;  %v4362_v18 = vld [vmem:[#allocation2 + $0x3f1] ss:$2 sm:$0xff]  ;;  %5191 = vmatmul.mubr.f32.gmra.mrb[60].mxu1 %v4558_v11  ;;  %v6804_v11 = vpack.c.bf16 %v4932_v52, %v4930_v51  ;;  %v4720_v58 = vld [vmem:[#allocation3 + $0x1e2] sm:$0xff] }
 0x35a   :  { %v4426_v32 = vmax.f32 %v4234_v29, %v4362_v18  ;;  %v4729_v29 = vld [vmem:[#allocation3 + $0x73] sm:$0xff] }
 0x35b   :  { %v4747_v51 = vld [vmem:[#allocation3 + $0x193] sm:$0xff] }
 0x35c   :  { %v4497_v20 = vadd.f32 %v11490_v9, %v4426_v32  ;;  %v4921_v9 = vld [vmem:[%s11993_s3 + $0x438] sm:$0xff] }
 0x35d   :  { %v6790_v38 = vpack.c.bf16 %v4921_v9, %v4919_v37  ;;  %v4697_v32 = vld [vmem:[#allocation3 + $0x72] sm:$0xff]  ;;  %v4700_v37 = vld [vmem:[#allocation3 + $0xa2] sm:$0xff] }
 0x35e   :  { %v4561_v35 = vmax.f32 %v4497_v20, 0.0  ;;  %v4730_v20 = vld [vmem:[#allocation3 + $0x83] sm:$0xff]  ;;  %v4733_v9 = vld [vmem:[#allocation3 + $0xb3] sm:$0xff] }
 0x35f   :  { %v4715_v52 = vld [vmem:[#allocation3 + $0x192] sm:$0xff] }
 0x360   :  { %4625 = vst [vmem:[#allocation3 + $0x1f8] sm:$0xff] %v4561_v35  ;;  %v4698_v35 = vld [vmem:[#allocation3 + $0x82] sm:$0xff] }
 0x367   :  { %v4689_v22 = vld [vmem:[#allocation3 + $0x1f1] sm:$0xff] }
 0x368   :  { %5196 = vmatprep.mubr.f32.mxu1 %v4689_v22  ;;  %v4731_v22 = vld [vmem:[#allocation3 + $0x93] sm:$0xff] }
 0x369   :  { %5197 = vmatmul.mubr.f32.gmra.mrb[62].mxu1 %v4560_v27  ;;  %v4944_v27 = vld [vmem:[%s11993_s3 + $0x4f0] sm:$0xff] }
 0x36a   :  { %5267 = vmatprep.mubr.f32.mxu1 %v4722_v25  ;;  %v6816_v18 = vpack.c.bf16 %v4944_v27, %v4942_v14  ;;  %v4701_v25 = vld [vmem:[#allocation3 + $0xb2] sm:$0xff]  ;;  %v4758_v27 = vld [vmem:[#allocation3 + $0x44] sm:$0xff] }
 0x36b   :  { %v4753_v59 = vld [vmem:[#allocation3 + $0x1f3] sm:$0xff] }
 0x36c   :  { %v4757_v14 = vld [vmem:[#allocation3 + $0x34] sm:$0xff] }
 0x36d   :  { %5268 = vmatmul.mubr.f32.vlgmr.msra.gmra.mrb[0].mxu1 %v4690_v33  ;;  %v4736_v33 = vld [vmem:[#allocation3 + $0xe3] sm:$0xff] }
 0x36e   :  { %6789 = vmatpush1.bf16.msra.mxu1 %v6788_v28  ;;  %5273 = vmatprep.mubr.f32.mxu1 %v4723_v40  ;;  %v4734_v28 = vld [vmem:[#allocation3 + $0xc3] sm:$0xff]  ;;  %v4705_v40 = vld [vmem:[#allocation3 + $0xf2] sm:$0xff] }
 0x36f   :  { %6791 = vmatprep.subr.bf16.mxu1 %v6790_v38  ;;  %v4702_v38 = vld [vmem:[#allocation3 + $0xc2] sm:$0xff] }
 0x371   :  { %5274 = vmatmul.mubr.f32.gmra.mrb[2].mxu1 %v4691_v1  ;;  %v4740_v1 = vld [vmem:[#allocation3 + $0x123] sm:$0xff] }
 0x372   :  { %5279 = vmatprep.mubr.f32.mxu1 %v4724_v7  ;;  %6793 = vmatpush1.bf16.msra.mxu1 %v6792_v61  ;;  %v4738_v61 = vld [vmem:[#allocation3 + $0x103] sm:$0xff]  ;;  %v4709_v7 = vld [vmem:[#allocation3 + $0x132] sm:$0xff] }
 0x373   :  { %6795 = vmatprep.subr.bf16.mxu1 %v6794_v62  ;;  %v4706_v62 = vld [vmem:[#allocation3 + $0x102] sm:$0xff] }
 0x375   :  { %5280 = vmatmul.mubr.f32.gmra.mrb[4].mxu1 %v4692_v45  ;;  %v4744_v45 = vld [vmem:[#allocation3 + $0x163] sm:$0xff] }
 0x376   :  { %5285 = vmatprep.mubr.f32.mxu1 %v4725_v48  ;;  %6797 = vmatpush1.bf16.msra.mxu1 %v6796_v10  ;;  %v4742_v10 = vld [vmem:[#allocation3 + $0x143] sm:$0xff]  ;;  %v4713_v48 = vld [vmem:[#allocation3 + $0x172] sm:$0xff] }
 0x377   :  { %6799 = vmatprep.subr.bf16.mxu1 %v6798_v13  ;;  %v4710_v13 = vld [vmem:[#allocation3 + $0x142] sm:$0xff] }
 0x379   :  { %5286 = vmatmul.mubr.f32.gmra.mrb[6].mxu1 %v4693_v53  ;;  %v4748_v53 = vld [vmem:[#allocation3 + $0x1a3] sm:$0xff] }
 0x37a   :  { %5291 = vmatprep.mubr.f32.mxu1 %v4726_v15  ;;  %6801 = vmatpush1.bf16.msra.mxu1 %v6800_v49  ;;  %v4746_v49 = vld [vmem:[#allocation3 + $0x183] sm:$0xff]  ;;  %v4717_v15 = vld [vmem:[#allocation3 + $0x1b2] sm:$0xff] }
 0x37b   :  { %6803 = vmatprep.subr.bf16.mxu1 %v6802_v50  ;;  %v4714_v50 = vld [vmem:[#allocation3 + $0x182] sm:$0xff] }
 0x37d   :  { %5292 = vmatmul.mubr.f32.gmra.mrb[8].mxu1 %v4694_v57  ;;  %v4752_v57 = vld [vmem:[#allocation3 + $0x1e3] sm:$0xff] }
 0x37e   :  { %5297 = vmatprep.mubr.f32.mxu1 %v4727_v24  ;;  %6805 = vmatpush1.bf16.msra.mxu1 %v6804_v11  ;;  %v4750_v11 = vld [vmem:[#allocation3 + $0x1c3] sm:$0xff]  ;;  %v4721_v24 = vld [vmem:[#allocation3 + $0x1f2] sm:$0xff] }
 0x37f   :  { %6807 = vmatprep.subr.bf16.mxu1 %v6806_v54  ;;  %v4718_v54 = vld [vmem:[#allocation3 + $0x1c2] sm:$0xff] }
 0x381   :  { %5298 = vmatmul.mubr.f32.gmra.mrb[10].mxu1 %v4695_v17 }
 0x382   :  { %5303 = vmatprep.mubr.f32.mxu1 %v4728_v21  ;;  %6809 = vmatpush1.bf16.msra.mxu1 %v6808_v8  ;;  %v7997_v8 = vmov 0.0   ;;  %v6820_v21 = vpack.c.bf16 %v5947_v6, %v5946_v4  ;;  %v5957_v4 = vld [vmem:[%s11995_s5 + $0x58] sm:$0xff]  ;;  %v5974_v6 = vld [vmem:[%s11995_s5 + $0xe0] sm:$0xff] }
 0x383   :  { %6811 = vmatprep.subr.bf16.mxu1 %v6810_v31  ;;  %v5962_v31 = vld [vmem:[%s11995_s5 + $0x80] sm:$0xff] }
 0x384   :  { %v6818_v17 = vpack.c.bf16 %v5963_v60, %v5962_v31  ;;  %v5956_v60 = vld [vmem:[%s11995_s5 + $0x50] sm:$0xff] }
 0x385   :  { %5304 = vmatmul.mubr.f32.gmra.mrb[12].mxu1 %v4696_v16  ;;  %v4759_v16 = vld [vmem:[#allocation3 + $0x54] sm:$0xff] }
 0x386   :  { %5309 = vmatprep.mubr.f32.mxu1 %v4729_v29  ;;  %6813 = vmatpush1.bf16.msra.mxu1 %v6812_v12  ;;  %v4755_v12 = vld [vmem:[#allocation3 + $0x14] sm:$0xff]  ;;  %v4760_v29 = vld [vmem:[#allocation3 + $0x64] sm:$0xff] }
 0x387   :  { %6815 = vmatprep.subr.bf16.mxu1 %v6814_v23  ;;  %v4756_v23 = vld [vmem:[#allocation3 + $0x24] sm:$0xff] }
 0x389   :  { %5310 = vmatmul.mubr.f32.gmra.mrb[14].mxu1 %v4697_v32  ;;  %v4762_v32 = vld [vmem:[#allocation3 + $0x84] sm:$0xff] }
 0x38a   :  { %5315 = vmatprep.mubr.f32.mxu1 %v4730_v20  ;;  %6817 = vmatpush1.bf16.msra.mxu1 %v6816_v18  ;;  %v4761_v18 = vld [vmem:[#allocation3 + $0x74] sm:$0xff] }
 0x38b   :  { %6819 = vmatprep.subr.bf16.mxu1 %v6818_v17  ;;  %v4763_v20 = vld [vmem:[#allocation3 + $0x94] sm:$0xff]  ;;  %v6840_v17 = vpack.c.bf16 %v5957_v4, %v5956_v60 }
 0x38d   :  { %5316 = vmatmul.mubr.f32.gmra.mrb[16].mxu1 %v4698_v35  ;;  %v4764_v35 = vld [vmem:[#allocation3 + $0xa4] sm:$0xff] }
 0x38e   :  { %5321 = vmatprep.mubr.f32.mxu1 %v4731_v22  ;;  %v4765_v22 = vld [vmem:[#allocation3 + $0xb4] sm:$0xff] }
 0x391   :  { %5322 = vmatmul.mubr.f32.gmra.mrb[18].mxu1 %v4699_v36  ;;  %v4766_v36 = vld [vmem:[#allocation3 + $0xc4] sm:$0xff] }
 0x392   :  { %5327 = vmatprep.mubr.f32.mxu1 %v4732_v26  ;;  %v4767_v26 = vld [vmem:[#allocation3 + $0xd4] sm:$0xff] }
 0x395   :  { %5328 = vmatmul.mubr.f32.gmra.mrb[20].mxu1 %v4700_v37  ;;  %v4768_v37 = vld [vmem:[#allocation3 + $0xe4] sm:$0xff] }
 0x396   :  { %5333 = vmatprep.mubr.f32.mxu1 %v4733_v9  ;;  %v4769_v9 = vld [vmem:[#allocation3 + $0xf4] sm:$0xff] }
 0x399   :  { %5334 = vmatmul.mubr.f32.gmra.mrb[22].mxu1 %v4701_v25  ;;  %v4770_v25 = vld [vmem:[#allocation3 + $0x104] sm:$0xff] }
 0x39a   :  { %5339 = vmatprep.mubr.f32.mxu1 %v4734_v28  ;;  %v4771_v28 = vld [vmem:[#allocation3 + $0x114] sm:$0xff] }
 0x39d   :  { %5340 = vmatmul.mubr.f32.gmra.mrb[24].mxu1 %v4702_v38  ;;  %v4772_v38 = vld [vmem:[#allocation3 + $0x124] sm:$0xff] }
 0x39e   :  { %5345 = vmatprep.mubr.f32.mxu1 %v4735_v30  ;;  %v4773_v30 = vld [vmem:[#allocation3 + $0x134] sm:$0xff] }
 0x3a1   :  { %5346 = vmatmul.mubr.f32.gmra.mrb[26].mxu1 %v4703_v39  ;;  %v4774_v39 = vld [vmem:[#allocation3 + $0x144] sm:$0xff] }
 0x3a2   :  { %5351 = vmatprep.mubr.f32.mxu1 %v4736_v33  ;;  %v4775_v33 = vld [vmem:[#allocation3 + $0x154] sm:$0xff] }
 0x3a5   :  { %5352 = vmatmul.mubr.f32.gmra.mrb[28].mxu1 %v4704_v41  ;;  %v4776_v41 = vld [vmem:[#allocation3 + $0x164] sm:$0xff] }
 0x3a6   :  { %5357 = vmatprep.mubr.f32.mxu1 %v4737_v34  ;;  %v4777_v34 = vld [vmem:[#allocation3 + $0x174] sm:$0xff] }
 0x3a9   :  { %5358 = vmatmul.mubr.f32.gmra.mrb[30].mxu1 %v4705_v40  ;;  %v4778_v40 = vld [vmem:[#allocation3 + $0x184] sm:$0xff] }
 0x3aa   :  { %5363 = vmatprep.mubr.f32.mxu1 %v4738_v61  ;;  %v4779_v61 = vld [vmem:[#allocation3 + $0x194] sm:$0xff] }
 0x3ad   :  { %5364 = vmatmul.mubr.f32.gmra.mrb[32].mxu1 %v4706_v62  ;;  %v5964_v62 = vld [vmem:[%s11995_s5 + $0x90] sm:$0xff] }
 0x3ae   :  { %5369 = vmatprep.mubr.f32.mxu1 %v4739_v63  ;;  %v5965_v63 = vld [vmem:[%s11995_s5 + $0x98] sm:$0xff] }
 0x3b1   :  { %5370 = vmatmul.mubr.f32.gmra.mrb[34].mxu1 %v4707_v0  ;;  %v5948_v0 = vld [vmem:[%s11995_s5 + $0x10] sm:$0xff] }
 0x3b2   :  { %5375 = vmatprep.mubr.f32.mxu1 %v4740_v1  ;;  %v6822_v1 = vpack.c.bf16 %v5965_v63, %v5964_v62  ;;  %v11825_v63 = vld [vmem:[%s11996_s4] ss:$0 sm:$0xff] }
 0x3b5   :  { %5376 = vmatmul.mubr.f32.gmra.mrb[36].mxu1 %v4708_v44  ;;  %v5949_v44 = vld [vmem:[%s11995_s5 + $0x18] sm:$0xff] }
 0x3b6   :  { %5381 = vmatprep.mubr.f32.mxu1 %v4741_v5  ;;  %v6824_v5 = vpack.c.bf16 %v5949_v44, %v5948_v0 }
 0x3b9   :  { %5382 = vmatmul.mubr.f32.gmra.mrb[38].mxu1 %v4709_v7  ;;  %v4780_v7 = vld [vmem:[#allocation3 + $0x1a4] sm:$0xff] }
 0x3ba   :  { %5387 = vmatprep.mubr.f32.mxu1 %v4742_v10  ;;  %v4781_v10 = vld [vmem:[#allocation3 + $0x1b4] sm:$0xff] }
 0x3bd   :  { %5388 = vmatmul.mubr.f32.gmra.mrb[40].mxu1 %v4710_v13  ;;  %v4782_v13 = vld [vmem:[#allocation3 + $0x1c4] sm:$0xff] }
 0x3be   :  { %5393 = vmatprep.mubr.f32.mxu1 %v4743_v42  ;;  %v5966_v42 = vld [vmem:[%s11995_s5 + $0xa0] sm:$0xff] }
 0x3c1   :  { %5394 = vmatmul.mubr.f32.gmra.mrb[42].mxu1 %v4711_v43  ;;  %v5967_v43 = vld [vmem:[%s11995_s5 + $0xa8] sm:$0xff] }
 0x3c2   :  { %5399 = vmatprep.mubr.f32.mxu1 %v4744_v45  ;;  %v6826_v45 = vpack.c.bf16 %v5967_v43, %v5966_v42 }
 0x3c5   :  { %5400 = vmatmul.mubr.f32.gmra.mrb[44].mxu1 %v4712_v46  ;;  %v5950_v46 = vld [vmem:[%s11995_s5 + $0x20] sm:$0xff] }
 0x3c6   :  { %5405 = vmatprep.mubr.f32.mxu1 %v4745_v47  ;;  %v5951_v47 = vld [vmem:[%s11995_s5 + $0x28] sm:$0xff] }
 0x3c9   :  { %5406 = vmatmul.mubr.f32.gmra.mrb[46].mxu1 %v4713_v48  ;;  %v6828_v48 = vpack.c.bf16 %v5951_v47, %v5950_v46 }
 0x3ca   :  { %5411 = vmatprep.mubr.f32.mxu1 %v4746_v49  ;;  %v4783_v49 = vld [vmem:[#allocation3 + $0x1d4] sm:$0xff] }
 0x3cd   :  { %5412 = vmatmul.mubr.f32.gmra.mrb[48].mxu1 %v4714_v50  ;;  %v5968_v50 = vld [vmem:[%s11995_s5 + $0xb0] sm:$0xff] }
 0x3ce   :  { %5417 = vmatprep.mubr.f32.mxu1 %v4747_v51  ;;  %v5969_v51 = vld [vmem:[%s11995_s5 + $0xb8] sm:$0xff] }
 0x3d1   :  { %5418 = vmatmul.mubr.f32.gmra.mrb[50].mxu1 %v4715_v52  ;;  %v6830_v52 = vpack.c.bf16 %v5969_v51, %v5968_v50 }
 0x3d2   :  { %5423 = vmatprep.mubr.f32.mxu1 %v4748_v53  ;;  %v5952_v53 = vld [vmem:[%s11995_s5 + $0x30] sm:$0xff] }
 0x3d5   :  { %5424 = vmatmul.mubr.f32.gmra.mrb[52].mxu1 %v4716_v2  ;;  %v5953_v2 = vld [vmem:[%s11995_s5 + $0x38] sm:$0xff] }
 0x3d6   :  { %5429 = vmatprep.mubr.f32.mxu1 %v4749_v3  ;;  %v6832_v3 = vpack.c.bf16 %v5953_v2, %v5952_v53 }
 0x3d9   :  { %5430 = vmatmul.mubr.f32.gmra.mrb[54].mxu1 %v4717_v15  ;;  %v4784_v15 = vld [vmem:[#allocation3 + $0x1e4] sm:$0xff] }
 0x3da   :  { %5435 = vmatprep.mubr.f32.mxu1 %v4750_v11  ;;  %v5970_v11 = vld [vmem:[%s11995_s5 + $0xc0] sm:$0xff] }
 0x3dd   :  { %5436 = vmatmul.mubr.f32.gmra.mrb[56].mxu1 %v4718_v54  ;;  %v5971_v54 = vld [vmem:[%s11995_s5 + $0xc8] sm:$0xff] }
 0x3de   :  { %5441 = vmatprep.mubr.f32.mxu1 %v4751_v55  ;;  %v6834_v55 = vpack.c.bf16 %v5971_v54, %v5970_v11 }
 0x3e1   :  { %5442 = vmatmul.mubr.f32.gmra.mrb[58].mxu1 %v4719_v56  ;;  %v5954_v56 = vld [vmem:[%s11995_s5 + $0x40] sm:$0xff] }
 0x3e2   :  { %5447 = vmatprep.mubr.f32.mxu1 %v4752_v57  ;;  %v5955_v57 = vld [vmem:[%s11995_s5 + $0x48] sm:$0xff] }
 0x3e5   :  { %5448 = vmatmul.mubr.f32.gmra.mrb[60].mxu1 %v4720_v58  ;;  %v6836_v58 = vpack.c.bf16 %v5955_v57, %v5954_v56 }
 0x3e6   :  { %5453 = vmatprep.mubr.f32.mxu1 %v4753_v59  ;;  %v4785_v59 = vld [vmem:[#allocation3 + $0x1f4] sm:$0xff] }
 0x3e9   :  { %5454 = vmatmul.mubr.f32.gmra.mrb[62].mxu1 %v4721_v24  ;;  %v5972_v24 = vld [vmem:[%s11995_s5 + $0xd0] sm:$0xff] }
 0x3ea   :  { %5524 = vmatprep.mubr.f32.mxu1 %v7997_v8 }
 0x3ed   :  { %5525 = vmatmul.mubr.f32.vlgmr.msra.gmra.mrb[0].mxu1 %v4754_v19  ;;  %v5975_v19 = vld [vmem:[%s11995_s5 + $0xe8] sm:$0xff] }
 0x3ee   :  { %5530 = vmatprep.mubr.f32.mxu1 %v7997_v8  ;;  %6821 = vmatpush3.bf16.msra.mxu1 %v6820_v21  ;;  %v6842_v21 = vpack.c.bf16 %v5975_v19, %v5974_v6 }
 0x3ef   :  { %6823 = vmatprep.subr.bf16.mxu1 %v6822_v1 }
 0x3f1   :  { %5531 = vmatmul.mubr.f32.gmra.mrb[2].mxu1 %v4755_v12  ;;  %v5958_v12 = vld [vmem:[%s11995_s5 + $0x60] sm:$0xff] }
 0x3f2   :  { %5536 = vmatprep.mubr.f32.mxu1 %v7997_v8  ;;  %6825 = vmatpush3.bf16.msra.mxu1 %v6824_v5 }
 0x3f3   :  { %6827 = vmatprep.subr.bf16.mxu1 %v6826_v45 }
 0x3f5   :  { %5537 = vmatmul.mubr.f32.gmra.mrb[4].mxu1 %v4756_v23  ;;  %v5959_v23 = vld [vmem:[%s11995_s5 + $0x68] sm:$0xff] }
 0x3f6   :  { %5542 = vmatprep.mubr.f32.mxu1 %v7997_v8  ;;  %6829 = vmatpush3.bf16.msra.mxu1 %v6828_v48 }
 0x3f7   :  { %6831 = vmatprep.subr.bf16.mxu1 %v6830_v52 }
 0x3f9   :  { %5543 = vmatmul.mubr.f32.gmra.mrb[6].mxu1 %v4757_v14  ;;  %v6844_v14 = vpack.c.bf16 %v5959_v23, %v5958_v12 }
 0x3fa   :  { %5548 = vmatprep.mubr.f32.mxu1 %v7997_v8  ;;  %6833 = vmatpush3.bf16.msra.mxu1 %v6832_v3 }
 0x3fb   :  { %6835 = vmatprep.subr.bf16.mxu1 %v6834_v55 }
 0x3fd   :  { %5549 = vmatmul.mubr.f32.gmra.mrb[8].mxu1 %v4758_v27  ;;  %v5976_v27 = vld [vmem:[%s11995_s5 + $0xf0] sm:$0xff] }
 0x3fe   :  { %5554 = vmatprep.mubr.f32.mxu1 %v7997_v8  ;;  %6837 = vmatpush3.bf16.msra.mxu1 %v6836_v58 }
 0x401   :  { %5555 = vmatmul.mubr.f32.gmra.mrb[10].mxu1 %v4759_v16  ;;  %v5977_v16 = vld [vmem:[%s11995_s5 + $0xf8] sm:$0xff] }
 0x402   :  { %5560 = vmatprep.mubr.f32.mxu1 %v7997_v8 }
 0x405   :  { %5561 = vmatmul.mubr.f32.gmra.mrb[12].mxu1 %v4760_v29  ;;  %v6846_v29 = vpack.c.bf16 %v5977_v16, %v5976_v27 }
 0x406   :  { %5566 = vmatprep.mubr.f32.mxu1 %v7997_v8 }
 0x409   :  { %5567 = vmatmul.mubr.f32.gmra.mrb[14].mxu1 %v4761_v18  ;;  %v5960_v18 = vld [vmem:[%s11995_s5 + $0x70] sm:$0xff] }
 0x40a   :  { %5572 = vmatprep.mubr.f32.mxu1 %v7997_v8 }
 0x40d   :  { %5573 = vmatmul.mubr.f32.gmra.mrb[16].mxu1 %v4762_v32  ;;  %v5961_v32 = vld [vmem:[%s11995_s5 + $0x78] sm:$0xff] }
 0x40e   :  { %5578 = vmatprep.mubr.f32.mxu1 %v7997_v8 }
 0x411   :  { %5579 = vmatmul.mubr.f32.gmra.mrb[18].mxu1 %v4763_v20  ;;  %v6848_v20 = vpack.c.bf16 %v5961_v32, %v5960_v18 }
 0x412   :  { %5584 = vmatprep.mubr.f32.mxu1 %v7997_v8 }
 0x415   :  { %5585 = vmatmul.mubr.f32.gmra.mrb[20].mxu1 %v4764_v35  ;;  %v5994_v35 = vld [vmem:[%s11995_s5 + $0x180] sm:$0xff] }
 0x416   :  { %5590 = vmatprep.mubr.f32.mxu1 %v7997_v8 }
 0x419   :  { %5591 = vmatmul.mubr.f32.gmra.mrb[22].mxu1 %v4765_v22  ;;  %v5995_v22 = vld [vmem:[%s11995_s5 + $0x188] sm:$0xff] }
 0x41a   :  { %5596 = vmatprep.mubr.f32.mxu1 %v7997_v8 }
 0x41d   :  { %5597 = vmatmul.mubr.f32.gmra.mrb[24].mxu1 %v4766_v36  ;;  %v6850_v36 = vpack.c.bf16 %v5995_v22, %v5994_v35  ;;  %v5978_v22 = vld [vmem:[%s11995_s5 + $0x100] sm:$0xff] }
 0x41e   :  { %5602 = vmatprep.mubr.f32.mxu1 %v7997_v8 }
 0x421   :  { %5603 = vmatmul.mubr.f32.gmra.mrb[26].mxu1 %v4767_v26 }
 0x422   :  { %5608 = vmatprep.mubr.f32.mxu1 %v7997_v8 }
 0x425   :  { %5609 = vmatmul.mubr.f32.gmra.mrb[28].mxu1 %v4768_v37 }
 0x426   :  { %5614 = vmatprep.mubr.f32.mxu1 %v7997_v8 }
 0x429   :  { %5615 = vmatmul.mubr.f32.gmra.mrb[30].mxu1 %v4769_v9 }
 0x42a   :  { %5620 = vmatprep.mubr.f32.mxu1 %v7997_v8 }
 0x42d   :  { %5621 = vmatmul.mubr.f32.gmra.mrb[32].mxu1 %v4770_v25 }
 0x42e   :  { %5626 = vmatprep.mubr.f32.mxu1 %v7997_v8 }
 0x431   :  { %5627 = vmatmul.mubr.f32.gmra.mrb[34].mxu1 %v4771_v28 }
 0x432   :  { %5632 = vmatprep.mubr.f32.mxu1 %v7997_v8 }
 0x435   :  { %5633 = vmatmul.mubr.f32.gmra.mrb[36].mxu1 %v4772_v38 }
 0x436   :  { %5638 = vmatprep.mubr.f32.mxu1 %v7997_v8 }
 0x439   :  { %5639 = vmatmul.mubr.f32.gmra.mrb[38].mxu1 %v4773_v30 }
 0x43a   :  { %5644 = vmatprep.mubr.f32.mxu1 %v7997_v8 }
 0x43d   :  { %5645 = vmatmul.mubr.f32.gmra.mrb[40].mxu1 %v4774_v39 }
 0x43e   :  { %5650 = vmatprep.mubr.f32.mxu1 %v7997_v8 }
 0x441   :  { %5651 = vmatmul.mubr.f32.gmra.mrb[42].mxu1 %v4775_v33 }
 0x442   :  { %5656 = vmatprep.mubr.f32.mxu1 %v7997_v8 }
 0x445   :  { %5657 = vmatmul.mubr.f32.gmra.mrb[44].mxu1 %v4776_v41 }
 0x446   :  { %5662 = vmatprep.mubr.f32.mxu1 %v7997_v8 }
 0x449   :  { %5663 = vmatmul.mubr.f32.gmra.mrb[46].mxu1 %v4777_v34 }
 0x44a   :  { %5668 = vmatprep.mubr.f32.mxu1 %v7997_v8 }
 0x44d   :  { %5669 = vmatmul.mubr.f32.gmra.mrb[48].mxu1 %v4778_v40 }
 0x44e   :  { %5674 = vmatprep.mubr.f32.mxu1 %v7997_v8 }
 0x451   :  { %5675 = vmatmul.mubr.f32.gmra.mrb[50].mxu1 %v4779_v61 }
 0x452   :  { %5680 = vmatprep.mubr.f32.mxu1 %v7997_v8 }
 0x455   :  { %5681 = vmatmul.mubr.f32.gmra.mrb[52].mxu1 %v4780_v7 }
 0x456   :  { %5686 = vmatprep.mubr.f32.mxu1 %v7997_v8 }
 0x459   :  { %5687 = vmatmul.mubr.f32.gmra.mrb[54].mxu1 %v4781_v10 }
 0x45a   :  { %5692 = vmatprep.mubr.f32.mxu1 %v7997_v8 }
 0x45d   :  { %5693 = vmatmul.mubr.f32.gmra.mrb[56].mxu1 %v4782_v13 }
 0x45e   :  { %5698 = vmatprep.mubr.f32.mxu1 %v7997_v8 }
 0x461   :  { %5699 = vmatmul.mubr.f32.gmra.mrb[58].mxu1 %v4783_v49 }
 0x462   :  { %5704 = vmatprep.mubr.f32.mxu1 %v7997_v8 }
 0x465   :  { %5705 = vmatmul.mubr.f32.gmra.mrb[60].mxu1 %v4784_v15 }
 0x466   :  { %5710 = vmatprep.mubr.f32.mxu1 %v7997_v8  ;;  %v5973_v8 = vld [vmem:[%s11995_s5 + $0xd8] sm:$0xff] }
 0x467   :  { %v6838_v31 = vpack.c.bf16 %v5973_v8, %v5972_v24 }
 0x469   :  { %5711 = vmatmul.mubr.f32.gmra.mrb[62].mxu1 %v4785_v59  ;;  %6839 = vmatprep.subr.bf16.mxu1 %v6838_v31 }
 0x46a   :  { %6841 = vmatpush3.bf16.msra.mxu1 %v6840_v17 }
 0x46b   :  { %6843 = vmatprep.subr.bf16.mxu1 %v6842_v21 }
 0x46e   :  { %6845 = vmatpush3.bf16.msra.mxu1 %v6844_v14 }
 0x46f   :  { %6847 = vmatprep.subr.bf16.mxu1 %v6846_v29 }
 0x472   :  { %6849 = vmatpush3.bf16.msra.mxu1 %v6848_v20 }
 0x473   :  { %6851 = vmatprep.subr.bf16.mxu1 %v6850_v36  ;;  %v5979_v36 = vld [vmem:[%s11995_s5 + $0x108] sm:$0xff] }
 0x4c0   :  { %v5526_v26 = vpop.f32.mrb[0].mxu1 }
 0x4c1   :  { %v5528_v37 = vpop.f32.mrb[1].mxu1 }
 0x4c2   :  { %v5717_v9 = vmax.f32 %v5526_v26, %v5528_v37 }
 0x4c4   :  { %5749 = vst [vmem:[#allocation4] sm:$0xff] %v5717_v9  ;;  %v5532_v25 = vpop.f32.mrb[2].mxu1  ;;  %v5996_v9 = vld [vmem:[%s11995_s5 + $0x190] sm:$0xff] }
 0x4c5   :  { %v5534_v28 = vpop.f32.mrb[3].mxu1 }
 0x4c6   :  { %v5718_v38 = vmax.f32 %v5532_v25, %v5534_v28  ;;  %v5997_v25 = vld [vmem:[%s11995_s5 + $0x198] sm:$0xff] }
 0x4c8   :  { %5750 = vst [vmem:[#allocation4 + $0x8] sm:$0xff] %v5718_v38  ;;  %v5538_v30 = vpop.f32.mrb[4].mxu1 }
 0x4c9   :  { %v5540_v39 = vpop.f32.mrb[5].mxu1 }
 0x4ca   :  { %v5719_v33 = vmax.f32 %v5538_v30, %v5540_v39  ;;  %v6852_v30 = vpack.c.bf16 %v5979_v36, %v5978_v22  ;;  %v5980_v39 = vld [vmem:[%s11995_s5 + $0x110] sm:$0xff]  ;;  %v6007_v22 = vld [vmem:[%s11995_s5 + $0x1e8] sm:$0xff] }
 0x4cc   :  { %5751 = vst [vmem:[#allocation4 + $0x10] sm:$0xff] %v5719_v33  ;;  %v5544_v41 = vpop.f32.mrb[6].mxu1 }
 0x4cd   :  { %v5546_v34 = vpop.f32.mrb[7].mxu1 }
 0x4ce   :  { %v5720_v40 = vmax.f32 %v5544_v41, %v5546_v34 }
 0x4cf   :  { %v5781_v61 = vld [vmem:[#allocation4] ss:$2 sm:$0xff]  ;;  %v5813_v62 = vld [vmem:[#allocation4 + $0x1] ss:$2 sm:$0xff] }
 0x4d0   :  { %v5844_v0 = vmax.f32 %v5781_v61, %v5813_v62  ;;  %5752 = vst [vmem:[#allocation4 + $0x18] sm:$0xff] %v5720_v40  ;;  %v5550_v1 = vpop.f32.mrb[8].mxu1  ;;  %v6854_v40 = vpack.c.bf16 %v5997_v25, %v5996_v9  ;;  %v5981_v61 = vld [vmem:[%s11995_s5 + $0x118] sm:$0xff] }
 0x4d1   :  { %v5552_v44 = vpop.f32.mrb[9].mxu1 }
 0x4d2   :  { %v5721_v5 = vmax.f32 %v5550_v1, %v5552_v44  ;;  %v5867_v7 = vadd.f32 %v11825_v63, %v5844_v0  ;;  %v5998_v0 = vld [vmem:[%s11995_s5 + $0x1a0] sm:$0xff]  ;;  %v5999_v1 = vld [vmem:[%s11995_s5 + $0x1a8] sm:$0xff] }
 0x4d4   :  { %5753 = vst [vmem:[#allocation4 + $0x20] sm:$0xff] %v5721_v5  ;;  %v5556_v10 = vpop.f32.mrb[10].mxu1  ;;  %v5883_v13 = vmax.f32 %v5867_v7, 0.0 }
 0x4d5   :  { %v5558_v42 = vpop.f32.mrb[11].mxu1 }
 0x4d6   :  { %v5722_v43 = vmax.f32 %v5556_v10, %v5558_v42  ;;  %5899 = vst [vmem:[#allocation5] sm:$0xff] %v5883_v13  ;;  %v6856_v13 = vpack.c.bf16 %v5981_v61, %v5980_v39  ;;  %v5991_v39 = vld [vmem:[%s11995_s5 + $0x168] sm:$0xff] }
 0x4d7   :  { %v5783_v45 = vld [vmem:[#allocation4 + $0x10] ss:$2 sm:$0xff]  ;;  %v5815_v46 = vld [vmem:[#allocation4 + $0x11] ss:$2 sm:$0xff] }
 0x4d8   :  { %v5845_v47 = vmax.f32 %v5783_v45, %v5815_v46  ;;  %5754 = vst [vmem:[#allocation4 + $0x28] sm:$0xff] %v5722_v43  ;;  %v5562_v48 = vpop.f32.mrb[12].mxu1  ;;  %v6858_v43 = vpack.c.bf16 %v5999_v1, %v5998_v0  ;;  %v5982_v45 = vld [vmem:[%s11995_s5 + $0x120] sm:$0xff]  ;;  %v5983_v46 = vld [vmem:[%s11995_s5 + $0x128] sm:$0xff] }
 0x4d9   :  { %v5564_v49 = vpop.f32.mrb[13].mxu1 }
 0x4da   :  { %v5723_v50 = vmax.f32 %v5562_v48, %v5564_v49  ;;  %v5868_v51 = vadd.f32 %v11825_v63, %v5845_v47  ;;  %v6000_v49 = vld [vmem:[%s11995_s5 + $0x1b0] sm:$0xff] }
 0x4dc   :  { %5755 = vst [vmem:[#allocation4 + $0x30] sm:$0xff] %v5723_v50  ;;  %v5568_v52 = vpop.f32.mrb[14].mxu1  ;;  %v5884_v53 = vmax.f32 %v5868_v51, 0.0  ;;  %v6001_v50 = vld [vmem:[%s11995_s5 + $0x1b8] sm:$0xff] }
 0x4dd   :  { %v5570_v2 = vpop.f32.mrb[15].mxu1 }
 0x4de   :  { %v5724_v3 = vmax.f32 %v5568_v52, %v5570_v2  ;;  %5900 = vst [vmem:[#allocation5 + $0x8] sm:$0xff] %v5884_v53  ;;  %v6860_v53 = vpack.c.bf16 %v5983_v46, %v5982_v45 }
 0x4df   :  { %v5785_v15 = vld [vmem:[#allocation4 + $0x20] ss:$2 sm:$0xff]  ;;  %v5817_v11 = vld [vmem:[#allocation4 + $0x21] ss:$2 sm:$0xff] }
 0x4e0   :  { %v5846_v54 = vmax.f32 %v5785_v15, %v5817_v11  ;;  %5756 = vst [vmem:[#allocation4 + $0x38] sm:$0xff] %v5724_v3  ;;  %v5574_v55 = vpop.f32.mrb[16].mxu1  ;;  %v6862_v3 = vpack.c.bf16 %v6001_v50, %v6000_v49  ;;  %v5984_v15 = vld [vmem:[%s11995_s5 + $0x130] sm:$0xff]  ;;  %v5985_v11 = vld [vmem:[%s11995_s5 + $0x138] sm:$0xff] }
 0x4e1   :  { %v5576_v56 = vpop.f32.mrb[17].mxu1 }
 0x4e2   :  { %v5725_v57 = vmax.f32 %v5574_v55, %v5576_v56  ;;  %v5869_v58 = vadd.f32 %v11825_v63, %v5846_v54  ;;  %v6002_v55 = vld [vmem:[%s11995_s5 + $0x1c0] sm:$0xff]  ;;  %v6003_v56 = vld [vmem:[%s11995_s5 + $0x1c8] sm:$0xff] }
 0x4e4   :  { %5757 = vst [vmem:[#allocation4 + $0x40] sm:$0xff] %v5725_v57  ;;  %v5580_v59 = vpop.f32.mrb[18].mxu1  ;;  %v5885_v24 = vmax.f32 %v5869_v58, 0.0 }
 0x4e5   :  { %v5582_v8 = vpop.f32.mrb[19].mxu1 }
 0x4e6   :  { %v5726_v31 = vmax.f32 %v5580_v59, %v5582_v8  ;;  %5901 = vst [vmem:[#allocation5 + $0x10] sm:$0xff] %v5885_v24  ;;  %v6864_v8 = vpack.c.bf16 %v5985_v11, %v5984_v15 }
 0x4e7   :  { %v5787_v60 = vld [vmem:[#allocation4 + $0x30] ss:$2 sm:$0xff]  ;;  %v5819_v4 = vld [vmem:[#allocation4 + $0x31] ss:$2 sm:$0xff] }
 0x4e8   :  { %v5847_v17 = vmax.f32 %v5787_v60, %v5819_v4  ;;  %5758 = vst [vmem:[#allocation4 + $0x48] sm:$0xff] %v5726_v31  ;;  %v5586_v6 = vpop.f32.mrb[20].mxu1  ;;  %v6866_v60 = vpack.c.bf16 %v6003_v56, %v6002_v55  ;;  %v5986_v4 = vld [vmem:[%s11995_s5 + $0x140] sm:$0xff] }
 0x4e9   :  { %v5588_v19 = vpop.f32.mrb[21].mxu1 }
 0x4ea   :  { %v5727_v21 = vmax.f32 %v5586_v6, %v5588_v19  ;;  %v5870_v12 = vadd.f32 %v11825_v63, %v5847_v17  ;;  %v5987_v17 = vld [vmem:[%s11995_s5 + $0x148] sm:$0xff] }
 0x4ec   :  { %5759 = vst [vmem:[#allocation4 + $0x50] sm:$0xff] %v5727_v21  ;;  %v5592_v23 = vpop.f32.mrb[22].mxu1  ;;  %v5886_v14 = vmax.f32 %v5870_v12, 0.0  ;;  %v6004_v21 = vld [vmem:[%s11995_s5 + $0x1d0] sm:$0xff]  ;;  %v6005_v12 = vld [vmem:[%s11995_s5 + $0x1d8] sm:$0xff] }
 0x4ed   :  { %v5594_v27 = vpop.f32.mrb[23].mxu1 }
 0x4ee   :  { %v5728_v16 = vmax.f32 %v5592_v23, %v5594_v27  ;;  %5902 = vst [vmem:[#allocation5 + $0x18] sm:$0xff] %v5886_v14  ;;  %v6868_v27 = vpack.c.bf16 %v5987_v17, %v5986_v4 }
 0x4ef   :  { %v5789_v29 = vld [vmem:[#allocation4 + $0x40] ss:$2 sm:$0xff]  ;;  %v5821_v18 = vld [vmem:[#allocation4 + $0x41] ss:$2 sm:$0xff] }
 0x4f0   :  { %v5848_v32 = vmax.f32 %v5789_v29, %v5821_v18  ;;  %5760 = vst [vmem:[#allocation4 + $0x58] sm:$0xff] %v5728_v16  ;;  %v5598_v20 = vpop.f32.mrb[24].mxu1  ;;  %v6870_v29 = vpack.c.bf16 %v6005_v12, %v6004_v21  ;;  %v5988_v18 = vld [vmem:[%s11995_s5 + $0x150] sm:$0xff] }
 0x4f1   :  { %v5600_v35 = vpop.f32.mrb[25].mxu1 }
 0x4f2   :  { %v5729_v26 = vmax.f32 %v5598_v20, %v5600_v35  ;;  %v5871_v37 = vadd.f32 %v11825_v63, %v5848_v32  ;;  %v5989_v32 = vld [vmem:[%s11995_s5 + $0x158] sm:$0xff]  ;;  %v6006_v35 = vld [vmem:[%s11995_s5 + $0x1e0] sm:$0xff] }
 0x4f3   :  { %v6872_v25 = vpack.c.bf16 %v5989_v32, %v5988_v18 }
 0x4f4   :  { %5761 = vst [vmem:[#allocation4 + $0x60] sm:$0xff] %v5729_v26  ;;  %v5604_v28 = vpop.f32.mrb[26].mxu1  ;;  %v5887_v38 = vmax.f32 %v5871_v37, 0.0 }
 0x4f5   :  { %v5606_v33 = vpop.f32.mrb[27].mxu1  ;;  %v5923_v41 = vld [vmem:[#allocation5 + $0x1] ss:$4 sm:$0xff]  ;;  %v5915_v34 = vld [vmem:[#allocation5] ss:$4 sm:$0xff] }
 0x4f6   :  { %v5730_v62 = vmax.f32 %v5604_v28, %v5606_v33  ;;  %6081 = vmatprep.mubr.f32.mxu1 %v5923_v41  ;;  %5903 = vst [vmem:[#allocation5 + $0x20] sm:$0xff] %v5887_v38  ;;  %v6874_v38 = vpack.c.bf16 %v6007_v22, %v6006_v35 }
 0x4f7   :  { %v5791_v44 = vld [vmem:[#allocation4 + $0x50] ss:$2 sm:$0xff]  ;;  %v5823_v5 = vld [vmem:[#allocation4 + $0x51] ss:$2 sm:$0xff]  ;;  %6082 = vmatmul.mubr.f32.vlgmr.msra.gmra.mrb[64].mxu1 %v5915_v34 }
 0x4f8   :  { %v5849_v7 = vmax.f32 %v5791_v44, %v5823_v5  ;;  %5762 = vst [vmem:[#allocation4 + $0x68] sm:$0xff] %v5730_v62  ;;  %v5610_v10 = vpop.f32.mrb[28].mxu1  ;;  %6853 = vmatpush3.bf16.msra.mxu1 %v6852_v30  ;;  %v5990_v30 = vld [vmem:[%s11995_s5 + $0x160] sm:$0xff]  ;;  %v6008_v34 = vld [vmem:[%s11995_s5 + $0x1f0] sm:$0xff] }
 0x4f9   :  { %v5612_v42 = vpop.f32.mrb[29].mxu1  ;;  %6855 = vmatprep.subr.bf16.mxu1 %v6854_v40  ;;  %v6009_v40 = vld [vmem:[%s11995_s5 + $0x1f8] sm:$0xff]  ;;  %v6876_v0 = vpack.c.bf16 %v5991_v39, %v5990_v30  ;;  %v5992_v5 = vld [vmem:[%s11995_s5 + $0x170] sm:$0xff] }
 0x4fa   :  { %v5731_v47 = vmax.f32 %v5610_v10, %v5612_v42  ;;  %v5872_v48 = vadd.f32 %v11825_v63, %v5849_v7  ;;  %v6878_v44 = vpack.c.bf16 %v6009_v40, %v6008_v34  ;;  %v5993_v7 = vld [vmem:[%s11995_s5 + $0x178] sm:$0xff] }
 0x4fb   :  { %v6880_v46 = vpack.c.bf16 %v5993_v7, %v5992_v5 }
 0x4fc   :  { %5763 = vst [vmem:[#allocation4 + $0x70] sm:$0xff] %v5731_v47  ;;  %v5616_v51 = vpop.f32.mrb[30].mxu1  ;;  %v5888_v52 = vmax.f32 %v5872_v48, 0.0  ;;  %6857 = vmatpush3.bf16.msra.mxu1 %v6856_v13 }
 0x4fd   :  { %v5618_v2 = vpop.f32.mrb[31].mxu1  ;;  %6859 = vmatprep.subr.bf16.mxu1 %v6858_v43 }
 0x4fe   :  { %v5732_v54 = vmax.f32 %v5616_v51, %v5618_v2  ;;  %5904 = vst [vmem:[#allocation5 + $0x28] sm:$0xff] %v5888_v52 }
 0x4ff   :  { %v5793_v57 = vld [vmem:[#allocation4 + $0x60] ss:$2 sm:$0xff]  ;;  %v5825_v58 = vld [vmem:[#allocation4 + $0x61] ss:$2 sm:$0xff] }
 0x500   :  { %v5850_v59 = vmax.f32 %v5793_v57, %v5825_v58  ;;  %5764 = vst [vmem:[#allocation4 + $0x78] sm:$0xff] %v5732_v54  ;;  %v5622_v24 = vpop.f32.mrb[32].mxu1  ;;  %6861 = vmatpush3.bf16.msra.mxu1 %v6860_v53 }
 0x501   :  { %v5624_v31 = vpop.f32.mrb[33].mxu1  ;;  %6863 = vmatprep.subr.bf16.mxu1 %v6862_v3 }
 0x502   :  { %v5733_v6 = vmax.f32 %v5622_v24, %v5624_v31  ;;  %v5873_v19 = vadd.f32 %v11825_v63, %v5850_v59 }
 0x504   :  { %5765 = vst [vmem:[#allocation4 + $0x80] sm:$0xff] %v5733_v6  ;;  %v5628_v23 = vpop.f32.mrb[34].mxu1  ;;  %v5889_v14 = vmax.f32 %v5873_v19, 0.0  ;;  %6865 = vmatpush3.bf16.msra.mxu1 %v6864_v8 }
 0x505   :  { %v5630_v16 = vpop.f32.mrb[35].mxu1  ;;  %6867 = vmatprep.subr.bf16.mxu1 %v6866_v60 }
 0x506   :  { %v5734_v20 = vmax.f32 %v5628_v23, %v5630_v16  ;;  %5905 = vst [vmem:[#allocation5 + $0x30] sm:$0xff] %v5889_v14 }
 0x507   :  { %v5795_v36 = vld [vmem:[#allocation4 + $0x70] ss:$2 sm:$0xff]  ;;  %v5827_v26 = vld [vmem:[#allocation4 + $0x71] ss:$2 sm:$0xff] }
 0x508   :  { %v5851_v37 = vmax.f32 %v5795_v36, %v5827_v26  ;;  %5766 = vst [vmem:[#allocation4 + $0x88] sm:$0xff] %v5734_v20  ;;  %v5634_v9 = vpop.f32.mrb[36].mxu1  ;;  %6869 = vmatpush3.bf16.msra.mxu1 %v6868_v27 }
 0x509   :  { %v5636_v28 = vpop.f32.mrb[37].mxu1  ;;  %6871 = vmatprep.subr.bf16.mxu1 %v6870_v29 }
 0x50a   :  { %v5735_v33 = vmax.f32 %v5634_v9, %v5636_v28  ;;  %v5874_v41 = vadd.f32 %v11825_v63, %v5851_v37 }
 0x50c   :  { %5767 = vst [vmem:[#allocation4 + $0x90] sm:$0xff] %v5735_v33  ;;  %v5640_v61 = vpop.f32.mrb[38].mxu1  ;;  %v5890_v62 = vmax.f32 %v5874_v41, 0.0  ;;  %6873 = vmatpush3.bf16.msra.mxu1 %v6872_v25 }
 0x50d   :  { %v5642_v1 = vpop.f32.mrb[39].mxu1  ;;  %6875 = vmatprep.subr.bf16.mxu1 %v6874_v38 }
 0x50e   :  { %v5736_v10 = vmax.f32 %v5640_v61, %v5642_v1  ;;  %5906 = vst [vmem:[#allocation5 + $0x38] sm:$0xff] %v5890_v62 }
 0x50f   :  { %v5797_v13 = vld [vmem:[#allocation4 + $0x80] ss:$2 sm:$0xff]  ;;  %v5829_v42 = vld [vmem:[#allocation4 + $0x81] ss:$2 sm:$0xff] }
 0x510   :  { %v5852_v43 = vmax.f32 %v5797_v13, %v5829_v42  ;;  %5768 = vst [vmem:[#allocation4 + $0x98] sm:$0xff] %v5736_v10  ;;  %v5646_v45 = vpop.f32.mrb[40].mxu1  ;;  %6877 = vmatpush3.bf16.msra.mxu1 %v6876_v0 }
 0x511   :  { %v5648_v47 = vpop.f32.mrb[41].mxu1  ;;  %6879 = vmatprep.subr.bf16.mxu1 %v6878_v44 }
 0x512   :  { %v5737_v48 = vmax.f32 %v5646_v45, %v5648_v47  ;;  %v5875_v49 = vadd.f32 %v11825_v63, %v5852_v43 }
 0x514   :  { %5769 = vst [vmem:[#allocation4 + $0xa0] sm:$0xff] %v5737_v48  ;;  %v5652_v50 = vpop.f32.mrb[42].mxu1  ;;  %v5891_v51 = vmax.f32 %v5875_v49, 0.0  ;;  %6881 = vmatpush3.bf16.msra.mxu1 %v6880_v46 }
 0x515   :  { %v5654_v52 = vpop.f32.mrb[43].mxu1  ;;  %v5925_v53 = vld [vmem:[#allocation5 + $0x21] ss:$4 sm:$0xff]  ;;  %v5917_v2 = vld [vmem:[#allocation5 + $0x20] ss:$4 sm:$0xff] }
 0x516   :  { %v5738_v3 = vmax.f32 %v5652_v50, %v5654_v52  ;;  %6086 = vmatprep.mubr.f32.mxu1 %v5925_v53  ;;  %5907 = vst [vmem:[#allocation5 + $0x40] sm:$0xff] %v5891_v51 }
 0x517   :  { %v5799_v15 = vld [vmem:[#allocation4 + $0x90] ss:$2 sm:$0xff]  ;;  %v5831_v11 = vld [vmem:[#allocation4 + $0x91] ss:$2 sm:$0xff]  ;;  %6087 = vmatmul.mubr.f32.gmra.mrb[66].mxu1 %v5917_v2 }
 0x518   :  { %v5853_v54 = vmax.f32 %v5799_v15, %v5831_v11  ;;  %5770 = vst [vmem:[#allocation4 + $0xa8] sm:$0xff] %v5738_v3  ;;  %v5658_v55 = vpop.f32.mrb[44].mxu1 }
 0x519   :  { %v5660_v56 = vpop.f32.mrb[45].mxu1 }
 0x51a   :  { %v5739_v57 = vmax.f32 %v5658_v55, %v5660_v56  ;;  %v5876_v58 = vadd.f32 %v11825_v63, %v5853_v54 }
 0x51c   :  { %5771 = vst [vmem:[#allocation4 + $0xb0] sm:$0xff] %v5739_v57  ;;  %v5664_v59 = vpop.f32.mrb[46].mxu1  ;;  %v5892_v24 = vmax.f32 %v5876_v58, 0.0  ;;  %v5939_v58 = vld [vmem:[#allocation5 + $0x3] ss:$4 sm:$0xff] }
 0x51d   :  { %v5666_v8 = vpop.f32.mrb[47].mxu1 }
 0x51e   :  { %v5740_v31 = vmax.f32 %v5664_v59, %v5666_v8  ;;  %5908 = vst [vmem:[#allocation5 + $0x48] sm:$0xff] %v5892_v24  ;;  %v5931_v59 = vld [vmem:[#allocation5 + $0x2] ss:$4 sm:$0xff]  ;;  %v5941_v24 = vld [vmem:[#allocation5 + $0x23] ss:$4 sm:$0xff] }
 0x51f   :  { %v5801_v60 = vld [vmem:[#allocation4 + $0xa0] ss:$2 sm:$0xff]  ;;  %v5833_v4 = vld [vmem:[#allocation4 + $0xa1] ss:$2 sm:$0xff] }
 0x520   :  { %v5854_v17 = vmax.f32 %v5801_v60, %v5833_v4  ;;  %5772 = vst [vmem:[#allocation4 + $0xb8] sm:$0xff] %v5740_v31  ;;  %v5670_v6 = vpop.f32.mrb[48].mxu1  ;;  %v5933_v8 = vld [vmem:[#allocation5 + $0x22] ss:$4 sm:$0xff] }
 0x521   :  { %v5672_v19 = vpop.f32.mrb[49].mxu1 }
 0x522   :  { %v5741_v21 = vmax.f32 %v5670_v6, %v5672_v19  ;;  %v5877_v12 = vadd.f32 %v11825_v63, %v5854_v17  ;;  %v6191_v17 = vld [vmem:[%s11997_s7] sm:$0xff]  ;;  %v6192_v6 = vld [vmem:[%s11997_s7 + $0x8] sm:$0xff] }
 0x523   :  { %v6882_v19 = vpack.c.bf16 %v6192_v6, %v6191_v17 }
 0x524   :  { %5773 = vst [vmem:[#allocation4 + $0xc0] sm:$0xff] %v5741_v21  ;;  %v5676_v23 = vpop.f32.mrb[50].mxu1  ;;  %v5893_v14 = vmax.f32 %v5877_v12, 0.0  ;;  %v6193_v21 = vld [vmem:[%s11997_s7 + $0x10] sm:$0xff]  ;;  %v6194_v12 = vld [vmem:[%s11997_s7 + $0x18] sm:$0xff] }
 0x525   :  { %v5678_v27 = vpop.f32.mrb[51].mxu1  ;;  %6883 = vmatprep.subr.bf16.mxu1 %v6882_v19 }
 0x526   :  { %v5742_v16 = vmax.f32 %v5676_v23, %v5678_v27  ;;  %5909 = vst [vmem:[#allocation5 + $0x50] sm:$0xff] %v5893_v14  ;;  %v6886_v23 = vpack.c.bf16 %v6194_v12, %v6193_v21  ;;  %v6195_v14 = vld [vmem:[%s11997_s7 + $0x20] sm:$0xff]  ;;  %v6196_v27 = vld [vmem:[%s11997_s7 + $0x28] sm:$0xff] }
 0x527   :  { %v5803_v29 = vld [vmem:[#allocation4 + $0xb0] ss:$2 sm:$0xff]  ;;  %v5835_v18 = vld [vmem:[#allocation4 + $0xb1] ss:$2 sm:$0xff] }
 0x528   :  { %v5855_v32 = vmax.f32 %v5803_v29, %v5835_v18  ;;  %5774 = vst [vmem:[#allocation4 + $0xc8] sm:$0xff] %v5742_v16  ;;  %v5682_v20 = vpop.f32.mrb[52].mxu1  ;;  %v6890_v16 = vpack.c.bf16 %v6196_v27, %v6195_v14  ;;  %v6197_v29 = vld [vmem:[%s11997_s7 + $0x30] sm:$0xff]  ;;  %v6198_v18 = vld [vmem:[%s11997_s7 + $0x38] sm:$0xff] }
 0x529   :  { %v5684_v35 = vpop.f32.mrb[53].mxu1 }
 0x52a   :  { %v5743_v22 = vmax.f32 %v5682_v20, %v5684_v35  ;;  %v5878_v36 = vadd.f32 %v11825_v63, %v5855_v32  ;;  %v6894_v32 = vpack.c.bf16 %v6198_v18, %v6197_v29 }
 0x52c   :  { %5775 = vst [vmem:[#allocation4 + $0xd0] sm:$0xff] %v5743_v22  ;;  %v5688_v26 = vpop.f32.mrb[54].mxu1  ;;  %v5894_v37 = vmax.f32 %v5878_v36, 0.0 }
 0x52d   :  { %v5690_v9 = vpop.f32.mrb[55].mxu1 }
 0x52e   :  { %v5744_v25 = vmax.f32 %v5688_v26, %v5690_v9  ;;  %5910 = vst [vmem:[#allocation5 + $0x58] sm:$0xff] %v5894_v37 }
 0x52f   :  { %v5805_v28 = vld [vmem:[#allocation4 + $0xc0] ss:$2 sm:$0xff]  ;;  %v5837_v38 = vld [vmem:[#allocation4 + $0xc1] ss:$2 sm:$0xff] }
 0x530   :  { %v5856_v30 = vmax.f32 %v5805_v28, %v5837_v38  ;;  %5776 = vst [vmem:[#allocation4 + $0xd8] sm:$0xff] %v5744_v25  ;;  %v5694_v39 = vpop.f32.mrb[56].mxu1 }
 0x531   :  { %v5696_v33 = vpop.f32.mrb[57].mxu1 }
 0x532   :  { %v5745_v41 = vmax.f32 %v5694_v39, %v5696_v33  ;;  %v5879_v34 = vadd.f32 %v11825_v63, %v5856_v30  ;;  %v6490_v33 = vld [vmem:[%s11998_s6] ss:$0 sm:$0xff] }
 0x534   :  { %5777 = vst [vmem:[#allocation4 + $0xe0] sm:$0xff] %v5745_v41  ;;  %v5700_v40 = vpop.f32.mrb[58].mxu1  ;;  %v5895_v61 = vmax.f32 %v5879_v34, 0.0 }
 0x535   :  { %v5702_v62 = vpop.f32.mrb[59].mxu1  ;;  %v5927_v0 = vld [vmem:[#allocation5 + $0x41] ss:$4 sm:$0xff]  ;;  %v5919_v1 = vld [vmem:[#allocation5 + $0x40] ss:$4 sm:$0xff] }
 0x536   :  { %v5746_v44 = vmax.f32 %v5700_v40, %v5702_v62  ;;  %6091 = vmatprep.mubr.f32.mxu1 %v5927_v0  ;;  %5911 = vst [vmem:[#allocation5 + $0x60] sm:$0xff] %v5895_v61  ;;  %v5943_v31 = vld [vmem:[#allocation5 + $0x43] ss:$4 sm:$0xff]  ;;  %v5935_v60 = vld [vmem:[#allocation5 + $0x42] ss:$4 sm:$0xff] }
 0x537   :  { %v5807_v5 = vld [vmem:[#allocation4 + $0xd0] ss:$2 sm:$0xff]  ;;  %v5839_v7 = vld [vmem:[#allocation4 + $0xd1] ss:$2 sm:$0xff]  ;;  %6092 = vmatmul.mubr.f32.gmra.mrb[68].mxu1 %v5919_v1 }
 0x538   :  { %v5857_v10 = vmax.f32 %v5807_v5, %v5839_v7  ;;  %5778 = vst [vmem:[#allocation4 + $0xe8] sm:$0xff] %v5746_v44  ;;  %v5706_v13 = vpop.f32.mrb[60].mxu1 }
 0x539   :  { %v5708_v42 = vpop.f32.mrb[61].mxu1 }
 0x53a   :  { %v5747_v43 = vmax.f32 %v5706_v13, %v5708_v42  ;;  %v5880_v45 = vadd.f32 %v11825_v63, %v5857_v10 }
 0x53c   :  { %5779 = vst [vmem:[#allocation4 + $0xf0] sm:$0xff] %v5747_v43  ;;  %v5712_v46 = vpop.f32.mrb[62].mxu1  ;;  %v5896_v47 = vmax.f32 %v5880_v45, 0.0 }
 0x53d   :  { %v5714_v48 = vpop.f32.mrb[63].mxu1 }
 0x53e   :  { %v5748_v49 = vmax.f32 %v5712_v46, %v5714_v48  ;;  %5912 = vst [vmem:[#allocation5 + $0x68] sm:$0xff] %v5896_v47 }
 0x53f   :  { %v5809_v50 = vld [vmem:[#allocation4 + $0xe0] ss:$2 sm:$0xff]  ;;  %v5841_v51 = vld [vmem:[#allocation4 + $0xe1] ss:$2 sm:$0xff] }
 0x540   :  { %v5858_v52 = vmax.f32 %v5809_v50, %v5841_v51  ;;  %5780 = vst [vmem:[#allocation4 + $0xf8] sm:$0xff] %v5748_v49 }
 0x542   :  { %v5881_v53 = vadd.f32 %v11825_v63, %v5858_v52 }
 0x544   :  { %v5897_v2 = vmax.f32 %v5881_v53, 0.0 }
 0x546   :  { %5913 = vst [vmem:[#allocation5 + $0x70] sm:$0xff] %v5897_v2 }
 0x547   :  { %v5811_v3 = vld [vmem:[#allocation4 + $0xf0] ss:$2 sm:$0xff]  ;;  %v5843_v15 = vld [vmem:[#allocation4 + $0xf1] ss:$2 sm:$0xff] }
 0x548   :  { %v5859_v11 = vmax.f32 %v5811_v3, %v5843_v15  ;;  %v6491_v3 = vld [vmem:[%s11999_s8] ss:$0 sm:$0xff] }
 0x54a   :  { %v5882_v54 = vadd.f32 %v11825_v63, %v5859_v11 }
 0x54c   :  { %v5898_v55 = vmax.f32 %v5882_v54, 0.0 }
 0x54e   :  { %5914 = vst [vmem:[#allocation5 + $0x78] sm:$0xff] %v5898_v55 }
 0x555   :  { %v5929_v56 = vld [vmem:[#allocation5 + $0x61] ss:$4 sm:$0xff]  ;;  %v5921_v57 = vld [vmem:[#allocation5 + $0x60] ss:$4 sm:$0xff]  ;;  %v5945_v4 = vld [vmem:[#allocation5 + $0x63] ss:$4 sm:$0xff] }
 0x556   :  { %6096 = vmatprep.mubr.f32.mxu1 %v5929_v56  ;;  %v5937_v63 = vld [vmem:[#allocation5 + $0x62] ss:$4 sm:$0xff] }
 0x557   :  { %6097 = vmatmul.mubr.f32.gmra.mrb[70].mxu1 %v5921_v57 }
 0x558   :  { %6166 = vmatprep.mubr.f32.mxu1 %v5939_v58 }
 0x55b   :  { %6167 = vmatmul.mubr.f32.vlgmr.msra.gmra.mrb[72].mxu1 %v5931_v59 }
 0x55c   :  { %6171 = vmatprep.mubr.f32.mxu1 %v5941_v24  ;;  %6885 = vmatpush3.bf16.msra.mxu1 %v6882_v19 }
 0x55d   :  { %6887 = vmatprep.subr.bf16.mxu1 %v6886_v23 }
 0x55f   :  { %6172 = vmatmul.mubr.f32.gmra.mrb[74].mxu1 %v5933_v8 }
 0x560   :  { %6176 = vmatprep.mubr.f32.mxu1 %v5943_v31  ;;  %6889 = vmatpush3.bf16.msra.mxu1 %v6886_v23 }
 0x561   :  { %6891 = vmatprep.subr.bf16.mxu1 %v6890_v16 }
 0x563   :  { %6177 = vmatmul.mubr.f32.gmra.mrb[76].mxu1 %v5935_v60 }
 0x564   :  { %6181 = vmatprep.mubr.f32.mxu1 %v5945_v4  ;;  %6893 = vmatpush3.bf16.msra.mxu1 %v6890_v16 }
 0x565   :  { %6895 = vmatprep.subr.bf16.mxu1 %v6894_v32 }
 0x567   :  { %6182 = vmatmul.mubr.f32.gmra.mrb[78].mxu1 %v5937_v63 }
 0x568   :  { %6897 = vmatpush3.bf16.msra.mxu1 %v6894_v32 }
 0x5ca   :  { %v6528_v20 = vpop.f32.mrb[64].mxu1 }
 0x5cb   :  { %v6529_v35 = vpop.f32.mrb[65].mxu1 }
 0x5cc   :  { %v6530_v22 = vadd.f32 %v6529_v35, %v6528_v20 }
 0x5ce   :  { %v6084_v40 = vadd.f32 %v6530_v22, %v6490_v33 }
 0x5ea   :  { %v6531_v36 = vpop.f32.mrb[66].mxu1 }
 0x5eb   :  { %v6532_v26 = vpop.f32.mrb[67].mxu1 }
 0x5ec   :  { %v6533_v37 = vadd.f32 %v6532_v26, %v6531_v36 }
 0x5ee   :  { %v6089_v44 = vadd.f32 %v6533_v37, %v6490_v33 }
 0x60a   :  { %v6534_v9 = vpop.f32.mrb[68].mxu1 }
 0x60b   :  { %v6535_v25 = vpop.f32.mrb[69].mxu1 }
 0x60c   :  { %v6536_v28 = vadd.f32 %v6535_v25, %v6534_v9 }
 0x60e   :  { %v6094_v43 = vadd.f32 %v6536_v28, %v6490_v33 }
 0x62a   :  { %v6537_v38 = vpop.f32.mrb[70].mxu1 }
 0x62b   :  { %v6538_v30 = vpop.f32.mrb[71].mxu1 }
 0x62c   :  { %v6539_v39 = vadd.f32 %v6538_v30, %v6537_v38 }
 0x62e   :  { %v6572_v41 = vpop.f32.mrb[72].mxu1  ;;  %v6099_v50 = vadd.f32 %v6539_v39, %v6490_v33 }
 0x62f   :  { %v6573_v34 = vpop.f32.mrb[73].mxu1 }
 0x630   :  { %v6574_v61 = vadd.f32 %v6573_v34, %v6572_v41 }
 0x632   :  { %v6169_v62 = vadd.f32 %v6574_v61, %v6084_v40  ;;  %v6575_v0 = vpop.f32.mrb[74].mxu1 }
 0x633   :  { %v6576_v1 = vpop.f32.mrb[75].mxu1 }
 0x634   :  { %v6187_v5 = vmax.f32 %v6169_v62, 0.0  ;;  %v6577_v7 = vadd.f32 %v6576_v1, %v6575_v0 }
 0x636   :  { %v6174_v10 = vadd.f32 %v6577_v7, %v6089_v44  ;;  %v6578_v13 = vpop.f32.mrb[76].mxu1  ;;  %6612 = vmatprep.mubr.msk.f32.mxu1 %vm2337_vm1, %v6187_v5 }
 0x637   :  { %v6579_v42 = vpop.f32.mrb[77].mxu1 }
 0x638   :  { %v6188_v45 = vmax.f32 %v6174_v10, 0.0  ;;  %v6580_v46 = vadd.f32 %v6579_v42, %v6578_v13 }
 0x63a   :  { %v6179_v47 = vadd.f32 %v6580_v46, %v6094_v43  ;;  %v6581_v48 = vpop.f32.mrb[78].mxu1  ;;  %6613 = vmatmul.mubr.msk.f32.vlgmr.msra.gmra.mrb[80].mxu1 %vm2337_vm1, %v6188_v45 }
 0x63b   :  { %v6582_v49 = vpop.f32.mrb[79].mxu1 }
 0x63c   :  { %v6189_v51 = vmax.f32 %v6179_v47, 0.0  ;;  %v6583_v52 = vadd.f32 %v6582_v49, %v6581_v48 }
 0x63e   :  { %v6184_v53 = vadd.f32 %v6583_v52, %v6099_v50  ;;  %6615 = vmatprep.mubr.msk.f32.mxu1 %vm2337_vm1, %v6189_v51 }
 0x640   :  { %v6190_v2 = vmax.f32 %v6184_v53, 0.0 }
 0x642   :  { %6616 = vmatmul.mubr.msk.f32.gmra.mrb[82].mxu1 %vm2337_vm1, %v6190_v2 }
 0x70d   :  { %v6614_v15 = vpop.f32.mrb[80].mxu1 }
 0x70e   :  { %v6290_v11 = vadd.f32 %v6614_v15, %v6491_v3  ;;  %v6284_v54 = vpop.f32.mrb[81].mxu1 }
 0x70f   :  { %v6285_v55 = vadd.f32 %v6491_v3, %v6284_v54 }
 0x710   :  { %v6307_v56 = vsel %vm6303_vm3, %v6290_v11, -inf }
 0x711   :  { %6308 = vmax.xlane.f32.xlu0 %v6307_v56  ;;  %v6304_v57 = vsel %vm6303_vm3, %v6285_v55, -inf }
 0x712   :  { %6305 = vmax.xlane.f32.xlu1 %v6304_v57 }
 0x715   :  { %v6617_v58 = vpop.f32.mrb[82].mxu1 }
 0x716   :  { %v6300_v59 = vadd.f32 %v6617_v58, %v6491_v3  ;;  %v6294_v24 = vpop.f32.mrb[83].mxu1 }
 0x717   :  { %v6295_v8 = vadd.f32 %v6491_v3, %v6294_v24 }
 0x718   :  { %v6313_v31 = vsel %vm6303_vm3, %v6300_v59, -inf }
 0x719   :  { %6314 = vmax.xlane.f32.xlu1 %v6313_v31  ;;  %v6310_v60 = vsel %vm6303_vm3, %v6295_v8, -inf }
 0x71a   :  { %6311 = vmax.xlane.f32.xlu0 %v6310_v60 }
 0x79e   :  { %v6309_v4 = vpop.xlane.xlu0 %6308 }
 0x79f   :  { %v6317_v63 = vsub.f32 %v6290_v11, %v6309_v4  ;;  %v6306_v17 = vpop.xlane.xlu1 %6305 }
 0x7a0   :  { %v6316_v6 = vsub.f32 %v6285_v55, %v6306_v17 }
 0x7a1   :  { %v6322_v19 = vmul.f32 1.442695, %v6317_v63 }
 0x7a2   :  { %v6320_v21 = vmul.f32 1.442695, %v6316_v6 }
 0x7a3   :  { %7975 = vpow2.f32 %v6322_v19 }
 0x7a4   :  { %7977 = vpow2.f32 %v6320_v21 }
 0x7a6   :  { %v6315_v12 = vpop.xlane.xlu1 %6314 }
 0x7a7   :  { %v6319_v23 = vsub.f32 %v6300_v59, %v6315_v12  ;;  %v6312_v14 = vpop.xlane.xlu0 %6311 }
 0x7a8   :  { %v6318_v27 = vsub.f32 %v6295_v8, %v6312_v14 }
 0x7a9   :  { %v6326_v16 = vmul.f32 1.442695, %v6319_v23 }
 0x7aa   :  { %v6324_v29 = vmul.f32 1.442695, %v6318_v27 }
 0x7ab   :  { %7979 = vpow2.f32 %v6326_v16 }
 0x7ac   :  { %7981 = vpow2.f32 %v6324_v29 }
 0x7ad   :  { %v7976_v18 = vpop.eup %7975 }
 0x7ae   :  { %v7978_v32 = vpop.eup %7977  ;;  %v6331_v20 = vsel %vm6303_vm3, %v7976_v18, 0.0 }
 0x7af   :  { %6332 = vadd.xlane.f32.xlu1 %v6331_v20  ;;  %v6328_v35 = vsel %vm6303_vm3, %v7978_v32, 0.0 }
 0x7b0   :  { %6329 = vadd.xlane.f32.xlu0 %v6328_v35 }
 0x7b5   :  { %v7980_v22 = vpop.eup %7979 }
 0x7b6   :  { %v7982_v36 = vpop.eup %7981  ;;  %v6337_v26 = vsel %vm6303_vm3, %v7980_v22, 0.0 }
 0x7b7   :  { %6338 = vadd.xlane.f32.xlu1 %v6337_v26  ;;  %v6334_v37 = vsel %vm6303_vm3, %v7982_v36, 0.0 }
 0x7b8   :  { %6335 = vadd.xlane.f32.xlu0 %v6334_v37 }
 0x83c   :  { %v6333_v9 = vpop.xlane.xlu1 %6332 }
 0x83d   :  { %7983 = vlog2.f32 %v6333_v9  ;;  %v6330_v25 = vpop.xlane.xlu0 %6329 }
 0x83e   :  { %7985 = vlog2.f32 %v6330_v25 }
 0x844   :  { %v6339_v28 = vpop.xlane.xlu1 %6338 }
 0x845   :  { %7987 = vlog2.f32 %v6339_v28  ;;  %v6336_v38 = vpop.xlane.xlu0 %6335 }
 0x846   :  { %7989 = vlog2.f32 %v6336_v38 }
 0x847   :  { %v7984_v30 = vpop.eup %7983 }
 0x848   :  { %v7986_v39 = vpop.eup %7985  ;;  %v6343_v33 = vmul.f32 0.6931472, %v7984_v30 }
 0x849   :  { %v6341_v41 = vmul.f32 0.6931472, %v7986_v39 }
 0x84a   :  { %v6349_v34 = vsub.f32 %v6317_v63, %v6343_v33 }
 0x84b   :  { %v6348_v40 = vsub.f32 %v6316_v6, %v6341_v41 }
 0x84c   :  { %6353 = vst.msk [vmem:[%s12000_s9 + $0x8] sm:$0xff] %vm6303_vm3, %v6349_v34 }
 0x84d   :  { %6352 = vst.msk [vmem:[%s12000_s9] sm:$0xff] %vm6303_vm3, %v6348_v40 }
 0x84f   :  { %v7988_v61 = vpop.eup %7987 }
 0x850   :  { %v7990_v62 = vpop.eup %7989  ;;  %v6347_v0 = vmul.f32 0.6931472, %v7988_v61 }
 0x851   :  { %v6345_v1 = vmul.f32 0.6931472, %v7990_v62 }
 0x852   :  { %v6351_v44 = vsub.f32 %v6319_v23, %v6347_v0 }
 0x853   :  { %v6350_v5 = vsub.f32 %v6318_v27, %v6345_v1 }
 0x854   :  { %6355 = vst.msk [vmem:[%s12000_s9 + $0x18] sm:$0xff] %vm6303_vm3, %v6351_v44 }
 0x855   :  { %6354 = vst.msk [vmem:[%s12000_s9 + $0x10] sm:$0xff] %vm6303_vm3, %v6350_v5 }

</bundles_post_ra>
